<compile_context>
chip_gen: v7x
topology: tpu7x:2x2x1
jax: 0.10.0
libtpu: 0.0.40
codegen_flags: <defaults>
</compile_context>

<pallas_src>
import math
import functools

import jax
import jax.numpy as jnp
from jax import lax
from jax.experimental import pallas as pl
from jax.experimental.pallas import tpu as pltpu

SQRT2 = math.sqrt(2.0)
RGB_ROWS = 8          # sublane-padded output channels (rows 3..7 are zero, sliced outside)


# --------------------------------------------------------------------------
# Fused Pallas kernel: LFF + conv0 + n residual blocks + ToRGB per pixel tile
# --------------------------------------------------------------------------
def _fused_generator_kernel(coords_ref, emb_ref, lffw_ref, lffb_ref,
                            w0a_ref, w0b_ref, b0_ref,
                            wblk_ref, bblk_ref, wrgb_ref, brgb_ref,
                            o_ref, *, n_blocks):
    f32 = jnp.float32
    bf16 = jnp.bfloat16

    # ---- LFF: x = sin(coords @ W_lff + b)  as VPU broadcast-FMAs (K=2) -----
    c = coords_ref[...].astype(f32)                                   # (t, 2)
    cx = c[:, 0:1]                                                    # (t, 1)
    cy = c[:, 1:2]                                                    # (t, 1)
    x = jnp.sin(cx * lffw_ref[0:1, :] + cy * lffw_ref[1:2, :]
                + lffb_ref[...])                                      # (t, H)

    # ---- first StyledConv on cat([x, emb]) as two partial matmuls ----------
    # Weights are pre-modulated + demodulated + transposed to (Cin, Cout).
    y = jnp.dot(x.astype(bf16), w0a_ref[...], preferred_element_type=f32)
    y = y + jnp.dot(emb_ref[...], w0b_ref[...], preferred_element_type=f32)
    y = y + b0_ref[...]
    y = jnp.maximum(y, 0.2 * y) * SQRT2                               # FusedLeakyReLU

    # ---- StyledResBlocks (statically unrolled; identity skip) --------------
    for i in range(n_blocks):
        skip = y
        h = jnp.dot(y.astype(bf16), wblk_ref[2 * i],
                    preferred_element_type=f32) + bblk_ref[2 * i]
        h = jnp.maximum(h, 0.2 * h) * SQRT2
        h = jnp.dot(h.astype(bf16), wblk_ref[2 * i + 1],
                    preferred_element_type=f32) + bblk_ref[2 * i + 1]
        h = jnp.maximum(h, 0.2 * h) * SQRT2
        y = (h + skip) * (1.0 / SQRT2)

    # ---- ToRGB (no demod, no activation, +bias) ----------------------------
    # NT matmul: (8, C) x (t, C) contracted on C -> (8, t), channels land on
    # sublanes and pixels on lanes => lane-dense, unmasked stores, 32 B/pixel.
    rgb_t = lax.dot_general(wrgb_ref[...], y.astype(bf16),
                            dimension_numbers=(((1,), (1,)), ((), ())),
                            preferred_element_type=f32)               # (8, t)
    o_ref[...] = (rgb_t + brgb_ref[...]).astype(o_ref.dtype)


def fused_generator(coords_flat, emb, lffw, lffb, w0a, w0b, b0,
                    wblk, bblk, wrgb8, brgb, *, tile=1024):
    """coords_flat: (B, HW, 2) f32; emb: (B, HW, hidden) bf16.
    Per-sample weights are bf16, already modulated/demodulated:
      w0a/w0b: (B, hidden, C), wblk: (B, 2*n_blocks, C, C), wrgb8: (B, 8, C).
    Returns (B, 8, HW) f32 (first 3 channel rows valid)."""
    B, HW, _ = coords_flat.shape
    hidden = emb.shape[-1]
    C = w0a.shape[-1]
    n_convs = wblk.shape[1]
    n_blocks = n_convs // 2

    t = min(tile, HW)
    assert HW % t == 0 and t % 8 == 0, (HW, t)
    assert t % 128 == 0 or t == HW, (HW, t)       # lane-dense output stores

    # Roofline arithmetic, also handed to XLA for scheduling around the call.
    flops = 2 * B * HW * (2 * hidden * C + n_convs * C * C + C * RGB_ROWS)
    bytes_accessed = (coords_flat.size * 4 + emb.size * 2
                      + (w0a.size + w0b.size + wblk.size + wrgb8.size) * 2
                      + B * HW * RGB_ROWS * 4)
    cost = pl.CostEstimate(flops=int(flops),
                           transcendentals=int(B * HW * hidden),
                           bytes_accessed=int(bytes_accessed))

    return pl.pallas_call(
        functools.partial(_fused_generator_kernel, n_blocks=n_blocks),
        out_shape=jax.ShapeDtypeStruct((B, RGB_ROWS, HW), jnp.float32),
        grid=(B, HW // t),
        in_specs=[
            pl.BlockSpec((None, t, 2), lambda bi, si: (bi, si, 0)),           # coords
            pl.BlockSpec((None, t, hidden), lambda bi, si: (bi, si, 0)),      # emb
            pl.BlockSpec((2, hidden), lambda bi, si: (0, 0)),                 # lff W^T
            pl.BlockSpec((1, hidden), lambda bi, si: (0, 0)),                 # lff b
            pl.BlockSpec((None, hidden, C), lambda bi, si: (bi, 0, 0)),       # conv0 W (lff half)
            pl.BlockSpec((None, hidden, C), lambda bi, si: (bi, 0, 0)),       # conv0 W (emb half)
            pl.BlockSpec((1, C), lambda bi, si: (0, 0)),                      # conv0 bias
            pl.BlockSpec((None, n_convs, C, C), lambda bi, si: (bi, 0, 0, 0)),  # block Ws
            pl.BlockSpec((n_convs, 1, C), lambda bi, si: (0, 0, 0)),          # block biases
            pl.BlockSpec((None, RGB_ROWS, C), lambda bi, si: (bi, 0, 0)),     # to_rgb W rows
            pl.BlockSpec((RGB_ROWS, 1), lambda bi, si: (0, 0)),               # to_rgb bias
        ],
        out_specs=pl.BlockSpec((None, RGB_ROWS, t), lambda bi, si: (bi, 0, si)),
        compiler_params=pltpu.CompilerParams(
            dimension_semantics=("parallel", "parallel"),
            vmem_limit_bytes=32 * 1024 * 1024),
        cost_estimate=cost,
    )(coords_flat, emb, lffw, lffb, w0a, w0b, b0, wblk, bblk, wrgb8, brgb)


# --------------------------------------------------------------------------
# Plain-JAX glue (tiny per-sample math + data-dependent gather)
# --------------------------------------------------------------------------
def style_mlp(latent, layers, style_dim, lr_mlp):
    """PixelNorm + n_mlp x EqualLinear(lr_mul=lr_mlp, fused_lrelu)."""
    x = latent * jax.lax.rsqrt(jnp.mean(latent * latent, axis=1, keepdims=True) + 1e-8)
    scale = (1.0 / math.sqrt(style_dim)) * lr_mlp
    for w, b in layers:
        y = x @ (w * scale).T + b * lr_mlp
        x = jnp.maximum(y, 0.2 * y) * SQRT2
    return x


def modulated_weight(latent_w, p, style_dim, *, demodulate=True, transpose=True):
    """Per-sample modulated (optionally demodulated) 1x1 conv weight.
    transpose=True -> (B, Cin, Cout) for transpose-free in-kernel x @ W;
    transpose=False -> (B, Cout, Cin) row form (used by the NT ToRGB matmul)."""
    style = latent_w @ (p["mod_w"] * (1.0 / math.sqrt(style_dim))).T + p["mod_b"]  # (B, Cin)
    w_scale = 1.0 / math.sqrt(p["w"].shape[1])                      # kernel_size = 1
    w = p["w"][None] * w_scale * style[:, None, :]                  # (B, Cout, Cin)
    if demodulate:
        d = jax.lax.rsqrt(jnp.sum(w * w, axis=2, keepdims=True) + 1e-8)
        w = w * d
    if transpose:
        return jnp.transpose(w, (0, 2, 1))                          # (B, Cin, Cout)
    return w


def grid_sample_border(img, grid):
    """F.grid_sample(img[None].expand(B,...), grid, mode='bilinear',
    padding_mode='border', align_corners=False), single shared image.

    img: (C, Hin, Win); grid: (B, d2, d3, 2) in [-1,1]; grid[...,0] -> x (Win),
    grid[...,1] -> y (Hin). Returns channels-last (B, d2, d3, C) bf16 —
    corners gathered in bf16, blend fused, single bf16 result (no f32 slabs)."""
    C, Hin, Win = img.shape
    img16 = img.astype(jnp.bfloat16)
    gx, gy = grid[..., 0], grid[..., 1]
    ix = jnp.clip(((gx + 1.0) * Win - 1.0) * 0.5, 0.0, Win - 1.0)   # border padding
    iy = jnp.clip(((gy + 1.0) * Hin - 1.0) * 0.5, 0.0, Hin - 1.0)
    ix0 = jnp.floor(ix)
    iy0 = jnp.floor(iy)
    wx1, wy1 = ix - ix0, iy - iy0
    wx0, wy0 = 1.0 - wx1, 1.0 - wy1
    ix0i = jnp.clip(ix0.astype(jnp.int32), 0, Win - 1)
    ix1i = jnp.clip(ix0i + 1, 0, Win - 1)
    iy0i = jnp.clip(iy0.astype(jnp.int32), 0, Hin - 1)
    iy1i = jnp.clip(iy0i + 1, 0, Hin - 1)

    def gat(yy, xx):                                                # -> (B, d2, d3, C) bf16
        return img16[:, yy, xx].transpose(1, 2, 3, 0)

    out = (gat(iy0i, ix0i) * (wy0 * wx0)[..., None]
           + gat(iy0i, ix1i) * (wy0 * wx1)[..., None]
           + gat(iy1i, ix0i) * (wy1 * wx0)[..., None]
           + gat(iy1i, ix1i) * (wy1 * wx1)[..., None])              # f32 accum
    return out.astype(jnp.bfloat16)


# --------------------------------------------------------------------------
# Parameter init (deterministic, synthetic — mirrors the module's shapes)
# --------------------------------------------------------------------------
def init_styled_conv(key, cin, cout, style_dim):
    k1, k2 = jax.random.split(key)
    return {
        "w": jax.random.normal(k1, (cout, cin), jnp.float32),           # ModulatedConv2d (k=1)
        "mod_w": jax.random.normal(k2, (cin, style_dim), jnp.float32),  # modulation EqualLinear
        "mod_b": jnp.ones((cin,), jnp.float32),                         # bias_init=1
        "act_b": jnp.zeros((cout,), jnp.float32),                       # FusedLeakyReLU / ToRGB bias
    }


def init_params(key, *, size, hidden_size, style_dim, n_mlp, n_blocks, channels, lr_mlp):
    keys = iter(jax.random.split(key, 4 + n_mlp + 2 * n_blocks + 2))
    p = {}
    # LFF (ConLinear(2, hidden, is_first=True)) — uniform(-sqrt(9/2), sqrt(9/2))
    lim = math.sqrt(9.0 / 2.0)
    p["lff_w"] = jax.random.uniform(next(keys), (hidden_size, 2), jnp.float32, -lim, lim)
    p["lff_b"] = jnp.zeros((hidden_size,), jnp.float32)
    # ConstantInput embedding
    p["emb"] = jax.random.normal(next(keys), (1, hidden_size, size, size), jnp.float32)
    # style MLP
    p["style"] = []
    for _ in range(n_mlp):
        w = jax.random.normal(next(keys), (style_dim, style_dim), jnp.float32) / lr_mlp
        b = jnp.zeros((style_dim,), jnp.float32)
        p["style"].append((w, b))
    # linears[0] = StyledConv(2*hidden, channels[0])
    cin = channels[0]
    p["conv0"] = init_styled_conv(next(keys), 2 * hidden_size, cin, style_dim)
    # StyledResBlocks (uniform channels -> identity skip)
    p["blocks"] = []
    for i in range(n_blocks):
        cout = channels[i]
        blk = {"conv1": init_styled_conv(next(keys), cin, cout, style_dim),
               "conv2": init_styled_conv(next(keys), cout, cout, style_dim)}
        p["blocks"].append(blk)
        cin = cout
    # ToRGB (demodulate=False)
    p["to_rgb"] = init_styled_conv(next(keys), cin, 3, style_dim)
    p["to_rgb"]["act_b"] = jnp.zeros((3,), jnp.float32)
    return p


# --------------------------------------------------------------------------
# CIPSres forward
# --------------------------------------------------------------------------
def cips_res_forward(params, coords, latent_list, cfg,
                     return_latents=False, truncation=1,
                     truncation_latent=None, input_is_latent=False,
                     tile=1024):
    style_dim = cfg["style_dim"]
    hidden = cfg["hidden_size"]
    lr_mlp = cfg["lr_mlp"]

    B, _, D2, D3 = coords.shape                      # output spatial dims mirror coords dims 2,3
    HW = D2 * D3

    # ---- mapping network (plain JAX: tiny (B, style_dim) matmuls) ----------
    latent = latent_list[0]
    if truncation < 1:
        if truncation_latent is None:
            raise ValueError("truncation_latent must be provided when truncation < 1")
        latent = truncation_latent + truncation * (latent - truncation_latent)
    if not input_is_latent:
        latent = style_mlp(latent, params["style"], style_dim, lr_mlp)
    latent_w = latent

    # ---- per-sample modulated weights, hoisted out of the pixel loop -------
    bf16 = jnp.bfloat16
    w0 = modulated_weight(latent_w, params["conv0"], style_dim)         # (B, 2*hidden, C)
    C = w0.shape[-1]
    w0a = w0[:, :hidden, :].astype(bf16)                                # LFF-half
    w0b = w0[:, hidden:, :].astype(bf16)                                # emb-half
    b0 = params["conv0"]["act_b"].reshape(1, C)

    blk_ws, blk_bs = [], []
    for blk in params["blocks"]:
        blk_ws.append(modulated_weight(latent_w, blk["conv1"], style_dim))
        blk_bs.append(blk["conv1"]["act_b"])
        blk_ws.append(modulated_weight(latent_w, blk["conv2"], style_dim))
        blk_bs.append(blk["conv2"]["act_b"])
    wblk = jnp.stack(blk_ws, axis=1).astype(bf16)                       # (B, 2*n_blocks, C, C)
    bblk = jnp.stack(blk_bs, axis=0)[:, None, :]                        # (2*n_blocks, 1, C)

    # ToRGB kept in row form (Cout, Cin), zero-padded to 8 sublane rows.
    wrgb = modulated_weight(latent_w, params["to_rgb"], style_dim,
                            demodulate=False, transpose=False)          # (B, 3, C)
    wrgb8 = jnp.pad(wrgb, ((0, 0), (0, RGB_ROWS - 3), (0, 0))).astype(bf16)
    brgb = jnp.pad(params["to_rgb"]["act_b"], (0, RGB_ROWS - 3)).reshape(RGB_ROWS, 1)

    lffw = params["lff_w"].T                                            # (2, hidden), pre-transposed
    lffb = params["lff_b"].reshape(1, hidden)

    # ---- inputs: coords (channels-last, pixels flat) + grid-sampled emb ----
    coords_flat = coords.transpose(0, 2, 3, 1).reshape(B, HW, 2)
    grid = coords.transpose(0, 2, 3, 1)                                 # (B, D2, D3, 2)
    emb = grid_sample_border(params["emb"][0], grid).reshape(B, HW, hidden)

    # ---- single fused kernel for the whole generator body ------------------
    rgb8 = fused_generator(coords_flat, emb, lffw, lffb, w0a, w0b, b0,
                           wblk, bblk, wrgb8, brgb, tile=tile)          # (B, 8, HW)

    rgb = rgb8[:, :3, :].reshape(B, 3, D2, D3)                          # already NCHW
    if return_latents:
        return rgb, latent_w
    return rgb, None


# --------------------------------------------------------------------------
# Demo
# --------------------------------------------------------------------------
if __name__ == "__main__":
    B = 2
    size = 16                       # spatial resolution (square)
    hidden_size = 32
    style_dim = 32
    n_mlp = 4
    lr_mlp = 0.01
    log_size = int(math.log(size, 2))
    n_blocks = log_size - 1         # number of StyledResBlocks
    channels = {i: 128 for i in range(9)}   # scaled-down, uniform, MXU-lane aligned

    cfg = {"hidden_size": hidden_size, "style_dim": style_dim, "lr_mlp": lr_mlp}

    key = jax.random.PRNGKey(0)
    kp, kc, kz = jax.random.split(key, 3)
    params = init_params(kp, size=size, hidden_size=hidden_size,
                         style_dim=style_dim, n_mlp=n_mlp, n_blocks=n_blocks,
                         channels=channels, lr_mlp=lr_mlp)

    coords = jax.random.uniform(kc, (B, 2, size, size), jnp.float32, -1.0, 1.0)
    z = jax.random.normal(kz, (B, style_dim), jnp.float32)

    out, _ = cips_res_forward(params, coords, (z,), cfg)
    out = jax.block_until_ready(out)

    assert out.shape == (B, 3, size, size), out.shape
    assert bool(jnp.all(jnp.isfinite(out)))
    print("KERNEL_OK")
</pallas_src>

<mosaic_0001>
module attributes {stable_mosaic.version = 11 : i64} {
  func.func @_fused_generator_kernel(%arg0: i32, %arg1: i32, %arg2: memref<1x256x2xf32, #tpu.memory_space<vmem>>, %arg3: memref<1x256x32xbf16, #tpu.memory_space<vmem>>, %arg4: memref<2x32xf32, #tpu.memory_space<vmem>>, %arg5: memref<1x32xf32, #tpu.memory_space<vmem>>, %arg6: memref<1x32x128xbf16, #tpu.memory_space<vmem>>, %arg7: memref<1x32x128xbf16, #tpu.memory_space<vmem>>, %arg8: memref<1x128xf32, #tpu.memory_space<vmem>>, %arg9: memref<1x6x128x128xbf16, #tpu.memory_space<vmem>>, %arg10: memref<6x1x128xf32, #tpu.memory_space<vmem>>, %arg11: memref<1x8x128xbf16, #tpu.memory_space<vmem>>, %arg12: memref<8x1xf32, #tpu.memory_space<vmem>>, %arg13: memref<1x8x256xf32, #tpu.memory_space<vmem>>) attributes {dimension_semantics = [#tpu.dimension_semantics<parallel>, #tpu.dimension_semantics<parallel>], iteration_bounds = array<i64: 2, 1>, scalar_prefetch = 0 : i64, scratch_operands = 0 : i64, tpu.core_type = #tpu.core_type<tc>, window_params = [{transform_indices = @transform_0, window_bounds = array<i64: 1, 256, 2>}, {transform_indices = @transform_1, window_bounds = array<i64: 1, 256, 32>}, {pipeline_mode = #tpu.pipeline_mode<synchronous>, transform_indices = @transform_2, window_bounds = array<i64: 2, 32>}, {pipeline_mode = #tpu.pipeline_mode<synchronous>, transform_indices = @transform_3, window_bounds = array<i64: 1, 32>}, {transform_indices = @transform_4, window_bounds = array<i64: 1, 32, 128>}, {transform_indices = @transform_5, window_bounds = array<i64: 1, 32, 128>}, {pipeline_mode = #tpu.pipeline_mode<synchronous>, transform_indices = @transform_6, window_bounds = array<i64: 1, 128>}, {transform_indices = @transform_7, window_bounds = array<i64: 1, 6, 128, 128>}, {pipeline_mode = #tpu.pipeline_mode<synchronous>, transform_indices = @transform_8, window_bounds = array<i64: 6, 1, 128>}, {transform_indices = @transform_9, window_bounds = array<i64: 1, 8, 128>}, {pipeline_mode = #tpu.pipeline_mode<synchronous>, transform_indices = @transform_10, window_bounds = array<i64: 8, 1>}, {transform_indices = @transform_11, window_bounds = array<i64: 1, 8, 256>}]} {
    %c0 = arith.constant 0 : index
    %c0_0 = arith.constant 0 : index
    %c0_1 = arith.constant 0 : index
    %0 = vector.load %arg2[%c0, %c0_0, %c0_1] : memref<1x256x2xf32, #tpu.memory_space<vmem>>, vector<1x256x2xf32>
    %1 = vector.shape_cast %0 : vector<1x256x2xf32> to vector<256x2xf32>
    %2 = vector.extract_strided_slice %1 {offsets = [0, 0], sizes = [256, 1], strides = [1, 1]} : vector<256x2xf32> to vector<256x1xf32>
    %3 = vector.extract_strided_slice %1 {offsets = [0, 1], sizes = [256, 1], strides = [1, 1]} : vector<256x2xf32> to vector<256x1xf32>
    %c0_2 = arith.constant 0 : index
    %c0_3 = arith.constant 0 : index
    %4 = vector.load %arg4[%c0_2, %c0_3] : memref<2x32xf32, #tpu.memory_space<vmem>>, vector<1x32xf32>
    %5 = vector.broadcast %2 : vector<256x1xf32> to vector<256x32xf32>
    %6 = vector.broadcast %4 : vector<1x32xf32> to vector<256x32xf32>
    %7 = arith.mulf %5, %6 : vector<256x32xf32>
    %c1 = arith.constant 1 : index
    %c0_4 = arith.constant 0 : index
    %8 = vector.load %arg4[%c1, %c0_4] : memref<2x32xf32, #tpu.memory_space<vmem>>, vector<1x32xf32>
    %9 = vector.broadcast %3 : vector<256x1xf32> to vector<256x32xf32>
    %10 = vector.broadcast %8 : vector<1x32xf32> to vector<256x32xf32>
    %11 = arith.mulf %9, %10 : vector<256x32xf32>
    %12 = arith.addf %7, %11 : vector<256x32xf32>
    %c0_5 = arith.constant 0 : index
    %c0_6 = arith.constant 0 : index
    %13 = vector.load %arg5[%c0_5, %c0_6] : memref<1x32xf32, #tpu.memory_space<vmem>>, vector<1x32xf32>
    %14 = vector.broadcast %13 : vector<1x32xf32> to vector<256x32xf32>
    %15 = arith.addf %12, %14 : vector<256x32xf32>
    %16 = math.sin %15 : vector<256x32xf32>
    %17 = arith.truncf %16 : vector<256x32xf32> to vector<256x32xbf16>
    %c0_7 = arith.constant 0 : index
    %c0_8 = arith.constant 0 : index
    %c0_9 = arith.constant 0 : index
    %18 = vector.load %arg6[%c0_7, %c0_8, %c0_9] : memref<1x32x128xbf16, #tpu.memory_space<vmem>>, vector<1x32x128xbf16>
    %19 = vector.shape_cast %18 : vector<1x32x128xbf16> to vector<32x128xbf16>
    %cst = arith.constant dense<0.000000e+00> : vector<256x128xf32>
    %20 = tpu.matmul %17, %19, %cst {dimension_numbers = #tpu.dot_dimension_numbers<[1], [0], [0], [1], [0, 0, 1, 1], [], []>} : vector<256x32xbf16>, vector<32x128xbf16>, vector<256x128xf32> -> vector<256x128xf32>
    %c0_10 = arith.constant 0 : index
    %c0_11 = arith.constant 0 : index
    %c0_12 = arith.constant 0 : index
    %21 = vector.load %arg3[%c0_10, %c0_11, %c0_12] : memref<1x256x32xbf16, #tpu.memory_space<vmem>>, vector<1x256x32xbf16>
    %22 = vector.shape_cast %21 : vector<1x256x32xbf16> to vector<256x32xbf16>
    %c0_13 = arith.constant 0 : index
    %c0_14 = arith.constant 0 : index
    %c0_15 = arith.constant 0 : index
    %23 = vector.load %arg7[%c0_13, %c0_14, %c0_15] : memref<1x32x128xbf16, #tpu.memory_space<vmem>>, vector<1x32x128xbf16>
    %24 = vector.shape_cast %23 : vector<1x32x128xbf16> to vector<32x128xbf16>
    %cst_16 = arith.constant dense<0.000000e+00> : vector<256x128xf32>
    %25 = tpu.matmul %22, %24, %cst_16 {dimension_numbers = #tpu.dot_dimension_numbers<[1], [0], [0], [1], [0, 0, 1, 1], [], []>} : vector<256x32xbf16>, vector<32x128xbf16>, vector<256x128xf32> -> vector<256x128xf32>
    %26 = arith.addf %20, %25 : vector<256x128xf32>
    %c0_17 = arith.constant 0 : index
    %c0_18 = arith.constant 0 : index
    %27 = vector.load %arg8[%c0_17, %c0_18] : memref<1x128xf32, #tpu.memory_space<vmem>>, vector<1x128xf32>
    %28 = vector.broadcast %27 : vector<1x128xf32> to vector<256x128xf32>
    %29 = arith.addf %26, %28 : vector<256x128xf32>
    %cst_19 = arith.constant 2.000000e-01 : f32
    %30 = vector.broadcast %cst_19 : f32 to vector<256x128xf32>
    %31 = arith.mulf %30, %29 : vector<256x128xf32>
    %32 = arith.maximumf %29, %31 : vector<256x128xf32>
    %cst_20 = arith.constant 1.41421354 : f32
    %33 = vector.broadcast %cst_20 : f32 to vector<256x128xf32>
    %34 = arith.mulf %32, %33 : vector<256x128xf32>
    %35 = arith.truncf %34 : vector<256x128xf32> to vector<256x128xbf16>
    %c0_21 = arith.constant 0 : index
    %c0_22 = arith.constant 0 : index
    %c0_23 = arith.constant 0 : index
    %c0_24 = arith.constant 0 : index
    %36 = vector.load %arg9[%c0_21, %c0_22, %c0_23, %c0_24] : memref<1x6x128x128xbf16, #tpu.memory_space<vmem>>, vector<1x1x128x128xbf16>
    %37 = vector.shape_cast %36 : vector<1x1x128x128xbf16> to vector<128x128xbf16>
    %cst_25 = arith.constant dense<0.000000e+00> : vector<256x128xf32>
    %38 = tpu.matmul %35, %37, %cst_25 {dimension_numbers = #tpu.dot_dimension_numbers<[1], [0], [0], [1], [0, 0, 1, 1], [], []>} : vector<256x128xbf16>, vector<128x128xbf16>, vector<256x128xf32> -> vector<256x128xf32>
    %c0_26 = arith.constant 0 : index
    %c0_27 = arith.constant 0 : index
    %c0_28 = arith.constant 0 : index
    %39 = vector.load %arg10[%c0_26, %c0_27, %c0_28] : memref<6x1x128xf32, #tpu.memory_space<vmem>>, vector<1x1x128xf32>
    %40 = vector.shape_cast %39 : vector<1x1x128xf32> to vector<1x128xf32>
    %41 = vector.broadcast %40 : vector<1x128xf32> to vector<256x128xf32>
    %42 = arith.addf %38, %41 : vector<256x128xf32>
    %cst_29 = arith.constant 2.000000e-01 : f32
    %43 = vector.broadcast %cst_29 : f32 to vector<256x128xf32>
    %44 = arith.mulf %43, %42 : vector<256x128xf32>
    %45 = arith.maximumf %42, %44 : vector<256x128xf32>
    %cst_30 = arith.constant 1.41421354 : f32
    %46 = vector.broadcast %cst_30 : f32 to vector<256x128xf32>
    %47 = arith.mulf %45, %46 : vector<256x128xf32>
    %48 = arith.truncf %47 : vector<256x128xf32> to vector<256x128xbf16>
    %c0_31 = arith.constant 0 : index
    %c1_32 = arith.constant 1 : index
    %c0_33 = arith.constant 0 : index
    %c0_34 = arith.constant 0 : index
    %49 = vector.load %arg9[%c0_31, %c1_32, %c0_33, %c0_34] : memref<1x6x128x128xbf16, #tpu.memory_space<vmem>>, vector<1x1x128x128xbf16>
    %50 = vector.shape_cast %49 : vector<1x1x128x128xbf16> to vector<128x128xbf16>
    %cst_35 = arith.constant dense<0.000000e+00> : vector<256x128xf32>
    %51 = tpu.matmul %48, %50, %cst_35 {dimension_numbers = #tpu.dot_dimension_numbers<[1], [0], [0], [1], [0, 0, 1, 1], [], []>} : vector<256x128xbf16>, vector<128x128xbf16>, vector<256x128xf32> -> vector<256x128xf32>
    %c1_36 = arith.constant 1 : index
    %c0_37 = arith.constant 0 : index
    %c0_38 = arith.constant 0 : index
    %52 = vector.load %arg10[%c1_36, %c0_37, %c0_38] : memref<6x1x128xf32, #tpu.memory_space<vmem>>, vector<1x1x128xf32>
    %53 = vector.shape_cast %52 : vector<1x1x128xf32> to vector<1x128xf32>
    %54 = vector.broadcast %53 : vector<1x128xf32> to vector<256x128xf32>
    %55 = arith.addf %51, %54 : vector<256x128xf32>
    %cst_39 = arith.constant 2.000000e-01 : f32
    %56 = vector.broadcast %cst_39 : f32 to vector<256x128xf32>
    %57 = arith.mulf %56, %55 : vector<256x128xf32>
    %58 = arith.maximumf %55, %57 : vector<256x128xf32>
    %cst_40 = arith.constant 1.41421354 : f32
    %59 = vector.broadcast %cst_40 : f32 to vector<256x128xf32>
    %60 = arith.mulf %58, %59 : vector<256x128xf32>
    %61 = arith.addf %60, %34 : vector<256x128xf32>
    %cst_41 = arith.constant 0.707106769 : f32
    %62 = vector.broadcast %cst_41 : f32 to vector<256x128xf32>
    %63 = arith.mulf %61, %62 : vector<256x128xf32>
    %64 = arith.truncf %63 : vector<256x128xf32> to vector<256x128xbf16>
    %c0_42 = arith.constant 0 : index
    %c2 = arith.constant 2 : index
    %c0_43 = arith.constant 0 : index
    %c0_44 = arith.constant 0 : index
    %65 = vector.load %arg9[%c0_42, %c2, %c0_43, %c0_44] : memref<1x6x128x128xbf16, #tpu.memory_space<vmem>>, vector<1x1x128x128xbf16>
    %66 = vector.shape_cast %65 : vector<1x1x128x128xbf16> to vector<128x128xbf16>
    %cst_45 = arith.constant dense<0.000000e+00> : vector<256x128xf32>
    %67 = tpu.matmul %64, %66, %cst_45 {dimension_numbers = #tpu.dot_dimension_numbers<[1], [0], [0], [1], [0, 0, 1, 1], [], []>} : vector<256x128xbf16>, vector<128x128xbf16>, vector<256x128xf32> -> vector<256x128xf32>
    %c2_46 = arith.constant 2 : index
    %c0_47 = arith.constant 0 : index
    %c0_48 = arith.constant 0 : index
    %68 = vector.load %arg10[%c2_46, %c0_47, %c0_48] : memref<6x1x128xf32, #tpu.memory_space<vmem>>, vector<1x1x128xf32>
    %69 = vector.shape_cast %68 : vector<1x1x128xf32> to vector<1x128xf32>
    %70 = vector.broadcast %69 : vector<1x128xf32> to vector<256x128xf32>
    %71 = arith.addf %67, %70 : vector<256x128xf32>
    %cst_49 = arith.constant 2.000000e-01 : f32
    %72 = vector.broadcast %cst_49 : f32 to vector<256x128xf32>
    %73 = arith.mulf %72, %71 : vector<256x128xf32>
    %74 = arith.maximumf %71, %73 : vector<256x128xf32>
    %cst_50 = arith.constant 1.41421354 : f32
    %75 = vector.broadcast %cst_50 : f32 to vector<256x128xf32>
    %76 = arith.mulf %74, %75 : vector<256x128xf32>
    %77 = arith.truncf %76 : vector<256x128xf32> to vector<256x128xbf16>
    %c0_51 = arith.constant 0 : index
    %c3 = arith.constant 3 : index
    %c0_52 = arith.constant 0 : index
    %c0_53 = arith.constant 0 : index
    %78 = vector.load %arg9[%c0_51, %c3, %c0_52, %c0_53] : memref<1x6x128x128xbf16, #tpu.memory_space<vmem>>, vector<1x1x128x128xbf16>
    %79 = vector.shape_cast %78 : vector<1x1x128x128xbf16> to vector<128x128xbf16>
    %cst_54 = arith.constant dense<0.000000e+00> : vector<256x128xf32>
    %80 = tpu.matmul %77, %79, %cst_54 {dimension_numbers = #tpu.dot_dimension_numbers<[1], [0], [0], [1], [0, 0, 1, 1], [], []>} : vector<256x128xbf16>, vector<128x128xbf16>, vector<256x128xf32> -> vector<256x128xf32>
    %c3_55 = arith.constant 3 : index
    %c0_56 = arith.constant 0 : index
    %c0_57 = arith.constant 0 : index
    %81 = vector.load %arg10[%c3_55, %c0_56, %c0_57] : memref<6x1x128xf32, #tpu.memory_space<vmem>>, vector<1x1x128xf32>
    %82 = vector.shape_cast %81 : vector<1x1x128xf32> to vector<1x128xf32>
    %83 = vector.broadcast %82 : vector<1x128xf32> to vector<256x128xf32>
    %84 = arith.addf %80, %83 : vector<256x128xf32>
    %cst_58 = arith.constant 2.000000e-01 : f32
    %85 = vector.broadcast %cst_58 : f32 to vector<256x128xf32>
    %86 = arith.mulf %85, %84 : vector<256x128xf32>
    %87 = arith.maximumf %84, %86 : vector<256x128xf32>
    %cst_59 = arith.constant 1.41421354 : f32
    %88 = vector.broadcast %cst_59 : f32 to vector<256x128xf32>
    %89 = arith.mulf %87, %88 : vector<256x128xf32>
    %90 = arith.addf %89, %63 : vector<256x128xf32>
    %cst_60 = arith.constant 0.707106769 : f32
    %91 = vector.broadcast %cst_60 : f32 to vector<256x128xf32>
    %92 = arith.mulf %90, %91 : vector<256x128xf32>
    %93 = arith.truncf %92 : vector<256x128xf32> to vector<256x128xbf16>
    %c0_61 = arith.constant 0 : index
    %c4 = arith.constant 4 : index
    %c0_62 = arith.constant 0 : index
    %c0_63 = arith.constant 0 : index
    %94 = vector.load %arg9[%c0_61, %c4, %c0_62, %c0_63] : memref<1x6x128x128xbf16, #tpu.memory_space<vmem>>, vector<1x1x128x128xbf16>
    %95 = vector.shape_cast %94 : vector<1x1x128x128xbf16> to vector<128x128xbf16>
    %cst_64 = arith.constant dense<0.000000e+00> : vector<256x128xf32>
    %96 = tpu.matmul %93, %95, %cst_64 {dimension_numbers = #tpu.dot_dimension_numbers<[1], [0], [0], [1], [0, 0, 1, 1], [], []>} : vector<256x128xbf16>, vector<128x128xbf16>, vector<256x128xf32> -> vector<256x128xf32>
    %c4_65 = arith.constant 4 : index
    %c0_66 = arith.constant 0 : index
    %c0_67 = arith.constant 0 : index
    %97 = vector.load %arg10[%c4_65, %c0_66, %c0_67] : memref<6x1x128xf32, #tpu.memory_space<vmem>>, vector<1x1x128xf32>
    %98 = vector.shape_cast %97 : vector<1x1x128xf32> to vector<1x128xf32>
    %99 = vector.broadcast %98 : vector<1x128xf32> to vector<256x128xf32>
    %100 = arith.addf %96, %99 : vector<256x128xf32>
    %cst_68 = arith.constant 2.000000e-01 : f32
    %101 = vector.broadcast %cst_68 : f32 to vector<256x128xf32>
    %102 = arith.mulf %101, %100 : vector<256x128xf32>
    %103 = arith.maximumf %100, %102 : vector<256x128xf32>
    %cst_69 = arith.constant 1.41421354 : f32
    %104 = vector.broadcast %cst_69 : f32 to vector<256x128xf32>
    %105 = arith.mulf %103, %104 : vector<256x128xf32>
    %106 = arith.truncf %105 : vector<256x128xf32> to vector<256x128xbf16>
    %c0_70 = arith.constant 0 : index
    %c5 = arith.constant 5 : index
    %c0_71 = arith.constant 0 : index
    %c0_72 = arith.constant 0 : index
    %107 = vector.load %arg9[%c0_70, %c5, %c0_71, %c0_72] : memref<1x6x128x128xbf16, #tpu.memory_space<vmem>>, vector<1x1x128x128xbf16>
    %108 = vector.shape_cast %107 : vector<1x1x128x128xbf16> to vector<128x128xbf16>
    %cst_73 = arith.constant dense<0.000000e+00> : vector<256x128xf32>
    %109 = tpu.matmul %106, %108, %cst_73 {dimension_numbers = #tpu.dot_dimension_numbers<[1], [0], [0], [1], [0, 0, 1, 1], [], []>} : vector<256x128xbf16>, vector<128x128xbf16>, vector<256x128xf32> -> vector<256x128xf32>
    %c5_74 = arith.constant 5 : index
    %c0_75 = arith.constant 0 : index
    %c0_76 = arith.constant 0 : index
    %110 = vector.load %arg10[%c5_74, %c0_75, %c0_76] : memref<6x1x128xf32, #tpu.memory_space<vmem>>, vector<1x1x128xf32>
    %111 = vector.shape_cast %110 : vector<1x1x128xf32> to vector<1x128xf32>
    %112 = vector.broadcast %111 : vector<1x128xf32> to vector<256x128xf32>
    %113 = arith.addf %109, %112 : vector<256x128xf32>
    %cst_77 = arith.constant 2.000000e-01 : f32
    %114 = vector.broadcast %cst_77 : f32 to vector<256x128xf32>
    %115 = arith.mulf %114, %113 : vector<256x128xf32>
    %116 = arith.maximumf %113, %115 : vector<256x128xf32>
    %cst_78 = arith.constant 1.41421354 : f32
    %117 = vector.broadcast %cst_78 : f32 to vector<256x128xf32>
    %118 = arith.mulf %116, %117 : vector<256x128xf32>
    %119 = arith.addf %118, %92 : vector<256x128xf32>
    %cst_79 = arith.constant 0.707106769 : f32
    %120 = vector.broadcast %cst_79 : f32 to vector<256x128xf32>
    %121 = arith.mulf %119, %120 : vector<256x128xf32>
    %c0_80 = arith.constant 0 : index
    %c0_81 = arith.constant 0 : index
    %c0_82 = arith.constant 0 : index
    %122 = vector.load %arg11[%c0_80, %c0_81, %c0_82] : memref<1x8x128xbf16, #tpu.memory_space<vmem>>, vector<1x8x128xbf16>
    %123 = vector.shape_cast %122 : vector<1x8x128xbf16> to vector<8x128xbf16>
    %124 = arith.truncf %121 : vector<256x128xf32> to vector<256x128xbf16>
    %cst_83 = arith.constant dense<0.000000e+00> : vector<8x256xf32>
    %125 = tpu.matmul %123, %124, %cst_83 {dimension_numbers = #tpu.dot_dimension_numbers<[1], [1], [0], [0], [0, 0, 1, 0], [], []>} : vector<8x128xbf16>, vector<256x128xbf16>, vector<8x256xf32> -> vector<8x256xf32>
    %c0_84 = arith.constant 0 : index
    %c0_85 = arith.constant 0 : index
    %126 = vector.load %arg12[%c0_84, %c0_85] : memref<8x1xf32, #tpu.memory_space<vmem>>, vector<8x1xf32>
    %127 = vector.broadcast %126 : vector<8x1xf32> to vector<8x256xf32>
    %128 = arith.addf %125, %127 : vector<8x256xf32>
    %c0_86 = arith.constant 0 : index
    %c0_87 = arith.constant 0 : index
    %c0_88 = arith.constant 0 : index
    %129 = vector.load %arg13[%c0_86, %c0_87, %c0_88] : memref<1x8x256xf32, #tpu.memory_space<vmem>>, vector<1x8x256xf32>
    %130 = vector.shape_cast %129 : vector<1x8x256xf32> to vector<8x256xf32>
    %131 = vector.shape_cast %128 : vector<8x256xf32> to vector<1x8x256xf32>
    tpu.vector_store %arg13[%c0_86, %c0_87, %c0_88], %131 {strides = array<i32>} : memref<1x8x256xf32, #tpu.memory_space<vmem>>, vector<1x8x256xf32>,
    return
  }
  func.func @transform_0(%arg0: i32, %arg1: i32) -> (i32, i32, i32) {
    %c0_i32 = arith.constant 0 : i32
    %c0_i32_0 = arith.constant 0 : i32
    return %arg0, %arg1, %c0_i32 : i32, i32, i32
  }
  func.func @transform_1(%arg0: i32, %arg1: i32) -> (i32, i32, i32) {
    %c0_i32 = arith.constant 0 : i32
    %c0_i32_0 = arith.constant 0 : i32
    return %arg0, %arg1, %c0_i32 : i32, i32, i32
  }
  func.func @transform_2(%arg0: i32, %arg1: i32) -> (i32, i32) {
    %c0_i32 = arith.constant 0 : i32
    %c0_i32_0 = arith.constant 0 : i32
    %c0_i32_1 = arith.constant 0 : i32
    return %c0_i32, %c0_i32_0 : i32, i32
  }
  func.func @transform_3(%arg0: i32, %arg1: i32) -> (i32, i32) {
    %c0_i32 = arith.constant 0 : i32
    %c0_i32_0 = arith.constant 0 : i32
    %c0_i32_1 = arith.constant 0 : i32
    return %c0_i32, %c0_i32_0 : i32, i32
  }
  func.func @transform_4(%arg0: i32, %arg1: i32) -> (i32, i32, i32) {
    %c0_i32 = arith.constant 0 : i32
    %c0_i32_0 = arith.constant 0 : i32
    %c0_i32_1 = arith.constant 0 : i32
    return %arg0, %c0_i32, %c0_i32_0 : i32, i32, i32
  }
  func.func @transform_5(%arg0: i32, %arg1: i32) -> (i32, i32, i32) {
    %c0_i32 = arith.constant 0 : i32
    %c0_i32_0 = arith.constant 0 : i32
    %c0_i32_1 = arith.constant 0 : i32
    return %arg0, %c0_i32, %c0_i32_0 : i32, i32, i32
  }
  func.func @transform_6(%arg0: i32, %arg1: i32) -> (i32, i32) {
    %c0_i32 = arith.constant 0 : i32
    %c0_i32_0 = arith.constant 0 : i32
    %c0_i32_1 = arith.constant 0 : i32
    return %c0_i32, %c0_i32_0 : i32, i32
  }
  func.func @transform_7(%arg0: i32, %arg1: i32) -> (i32, i32, i32, i32) {
    %c0_i32 = arith.constant 0 : i32
    %c0_i32_0 = arith.constant 0 : i32
    %c0_i32_1 = arith.constant 0 : i32
    %c0_i32_2 = arith.constant 0 : i32
    return %arg0, %c0_i32, %c0_i32_0, %c0_i32_1 : i32, i32, i32, i32
  }
  func.func @transform_8(%arg0: i32, %arg1: i32) -> (i32, i32, i32) {
    %c0_i32 = arith.constant 0 : i32
    %c0_i32_0 = arith.constant 0 : i32
    %c0_i32_1 = arith.constant 0 : i32
    %c0_i32_2 = arith.constant 0 : i32
    return %c0_i32, %c0_i32_0, %c0_i32_1 : i32, i32, i32
  }
  func.func @transform_9(%arg0: i32, %arg1: i32) -> (i32, i32, i32) {
    %c0_i32 = arith.constant 0 : i32
    %c0_i32_0 = arith.constant 0 : i32
    %c0_i32_1 = arith.constant 0 : i32
    return %arg0, %c0_i32, %c0_i32_0 : i32, i32, i32
  }
  func.func @transform_10(%arg0: i32, %arg1: i32) -> (i32, i32) {
    %c0_i32 = arith.constant 0 : i32
    %c0_i32_0 = arith.constant 0 : i32
    %c0_i32_1 = arith.constant 0 : i32
    return %c0_i32, %c0_i32_0 : i32, i32
  }
  func.func @transform_11(%arg0: i32, %arg1: i32) -> (i32, i32, i32) {
    %c0_i32 = arith.constant 0 : i32
    %c0_i32_0 = arith.constant 0 : i32
    return %arg0, %c0_i32, %arg1 : i32, i32, i32
  }
}

</mosaic_0001>

<bundles_post_ra>
// kernel: tpu_custom_call.1
= control target key start
LH: loop header
LB: loop body
LE: loop exit
PB: predicated region body
PF: predicated region fallthrough
CT: control target
= control target key end

     0   :  { %s13574_s0 = inlined_call_operand.vmem [shape: f32[2,256,2], index: 0, kind: input, shape index: {}]   ;;  %s13575_s1 = inlined_call_operand.vmem [shape: bf16[2,256,32], index: 1, kind: input, shape index: {}]   ;;  %s13576_s2 = inlined_call_operand.vmem [shape: f32[2,32], index: 2, kind: input, shape index: {}]   ;;  %s13577_s3 = inlined_call_operand.vmem [shape: f32[1,32], index: 3, kind: input, shape index: {}]   ;;  %s13578_s4 = inlined_call_operand.vmem [shape: bf16[2,32,128], index: 4, kind: input, shape index: {}]   ;;  %s13579_s5 = inlined_call_operand.vmem [shape: bf16[2,32,128], index: 5, kind: input, shape index: {}]   ;;  %s13580_s6 = inlined_call_operand.vmem [shape: f32[1,128], index: 6, kind: input, shape index: {}]   ;;  %s13581_s7 = inlined_call_operand.vmem [shape: bf16[2,6,128,128], index: 7, kind: input, shape index: {}]   ;;  %s13582_s8 = inlined_call_operand.vmem [shape: f32[6,1,128], index: 8, kind: input, shape index: {}]   ;;  %s13583_s9 = inlined_call_operand.vmem [shape: bf16[2,8,128], index: 9, kind: input, shape index: {}]   ;;  %s13584_s10 = inlined_call_operand.vmem [shape: f32[8,1], index: 10, kind: input, shape index: {}]   ;;  %s13585_s11 = inlined_call_operand.hbm [shape: f32[2,8,256], index: 11, kind: output, shape index: {}]  }
   0x1   :  { %13816 = sst [smem:[#allocation83_spill]] %s13574_s0 }
   0x2   :  { %16 = vsyncpa [#allocation3], 0 }
   0x3   :  { %18 = vsyncpa [#allocation3 + $0x1], 0  ;;  %s9057_s17 = smov 0   ;;  %s9059_s18 = smov 0  }
   0x4   :  { %s9061_s19 = smov 0   ;;  %s9063_s20 = smov 0  }
   0x5   :  { %s9065_s21 = smov 0   ;;  %s9067_s22 = smov 0  }
   0x6 LB: > { %s7528_s23 = sadd.s32 4294967295, %s8986_s22   ;;  %s7529_s24 = sadd.s32 4294967294, %s8986_s22   ;;  %s8986_s22 = sphi %s9067_s22, %s24_s22   ;;  %s8982_s21 = sphi %s9065_s21, %s14250_s21   ;;  %s8978_s20 = sphi %s9063_s20, %s14249_s20   ;;  %s8974_s19 = sphi %s9061_s19, %s14248_s19   ;;  %s8970_s18 = sphi %s9059_s18, %s14247_s18   ;;  %s8966_s17 = sphi %s9057_s17, %s14246_s17  }
   0x7   : > { %s36_s25 = sadd.s32 1, %s8982_s21  ;;  %s310_s26 = sadd.s32 1, %s8974_s19 }
   0x8   : > { %p38_p0 = scmp.ge.s32.totalorder %s36_s25, 2  ;;  %p320_p1 = scmp.ne.s32.totalorder %s8974_s19, %s8970_s18 }
   0x9   : > { %p321_p2 = scmp.eq.s32.totalorder %s7528_s23, 1  ;;  %p326_p3 = scmp.ne.s32.totalorder %s8970_s18, %s8966_s17 }
   0xa   : > { %s14252_s25 = smov (%p38_p0, %s36_s25), 0  ;;  %p327_p5 = scmp.eq.s32.totalorder %s7529_s24, 1 }
   0xb   : > { %p9097_p4 = por %p321_p2, %p320_p1  ;;  %s305_s28 = ssub.s32 %s8982_s21, %s14252_s25 }
   0xc   : > { %p7532_p6 = scmp.ge.s32.totalorder %s8986_s22, 1  ;;  %p308_p7 = scmp.eq.s32.totalorder %s305_s28, 0 }
   0xd   : > { %p9104_p8 = por %p327_p5, %p326_p3  ;;  %p417_p9 = scmp.lt.s32.totalorder %s8986_s22, 3 }
   0xe   : > { %s9110_s30 = scalar_select %p308_p7, %s8974_s19, %s310_s26  }
   0xf   : > { %p418_p10 = pnand %p7532_p6, %p417_p9 }
  0x11   : > { %421 = sbr.rel (%p418_p10) target bundleno = 2880 (0xb40), region = 64 }
  0x18   : > { %p490_p11 = scmp.lt.s32.totalorder %s8978_s20, 1  ;;  %v8988_v0 = vmov 1   ;;  %s13819_s0 = sld [smem:[#allocation83_spill]]  ;;  %v8989_v7 = vmov 0   ;;  %v9201_v37 = vld [vmem:[%s13576_s2] ss:$0 sm:$0xff] }
  0x19   : > { %8661 = vset.pattern.permute.xlu0 %v8988_v0  ;;  %8659 = vset.pattern.permute.xlu1 %v8988_v0  ;;  %v9208_v39 = vld [vmem:[%s13576_s2 + $0x1] ss:$0 sm:$0xff]  ;;  %v9215_v43 = vld [vmem:[%s13577_s3] ss:$0 sm:$0xff]  ;;  %s7876_s26 = sshll.u32 %s8978_s20, 8 }
  0x1a   : > { %s9116_s12 = scalar_select %p490_p11, %s8978_s20, 1 }
  0x1c   : > { %s7872_s13 = sshll.u32 %s9116_s12, 8  ;;  %s8467_s23 = smul.u32 384, %s9116_s12 }
  0x1d   : > { %s7543_s15 = sshll.u32 %s9116_s12, 2 }
  0x1e   : > { %s9122_s16 = scalar_lea.vmem %s13819_s0, %s7872_s13  ;;  %s9134_s28 = scalar_lea.vmem %s13581_s7, %s8467_s23 }
  0x1f   : > { %v532_v1 = vld [vmem:[%s9122_s16 + $0x10] sm:$0xff]  ;;  %v530_v2 = vld [vmem:[%s9122_s16] sm:$0xff]  ;;  %v531_v4 = vld [vmem:[%s9122_s16 + $0x8] sm:$0xff]  ;;  %s7874_s13 = sshll.u32 %s9116_s12, 4  ;;  %s527_s24 = scalar_lea.vmem %s13583_s9, %s7543_s15 }
  0x20   : > { %769 = vperm.xlu0 %8661, %v532_v1   ;;  %761 = vperm.xlu1 %8659, %v530_v2   ;;  %v536_v3 = vld [vmem:[%s9122_s16 + $0x30] sm:$0xff]  ;;  %v533_v6 = vld [vmem:[%s9122_s16 + $0x18] sm:$0xff]  ;;  %v534_v10 = vld [vmem:[%s9122_s16 + $0x20] sm:$0xff]  ;;  %s9332_s23 = scalar_lea.vmem %s13579_s5, %s7874_s13 }
  0x21   : > { %v540_v5 = vld [vmem:[%s9122_s16 + $0x50] sm:$0xff]  ;;  %v535_v11 = vld [vmem:[%s9122_s16 + $0x28] sm:$0xff]  ;;  %v537_v12 = vld [vmem:[%s9122_s16 + $0x38] sm:$0xff] }
  0x22   : > { %v544_v8 = vld [vmem:[%s9122_s16 + $0x70] sm:$0xff]  ;;  %v539_v13 = vld [vmem:[%s9122_s16 + $0x48] sm:$0xff]  ;;  %v538_v14 = vld [vmem:[%s9122_s16 + $0x40] sm:$0xff] }
  0x23   : > { %v548_v9 = vld [vmem:[%s9122_s16 + $0x90] sm:$0xff]  ;;  %v543_v15 = vld [vmem:[%s9122_s16 + $0x68] sm:$0xff]  ;;  %v541_v17 = vld [vmem:[%s9122_s16 + $0x58] sm:$0xff] }
  0x24   : > { %785 = vperm.xlu0 %8661, %v536_v3   ;;  %765 = vperm.xlu1 %8659, %v531_v4   ;;  %v547_v16 = vld [vmem:[%s9122_s16 + $0x88] sm:$0xff]  ;;  %v542_v19 = vld [vmem:[%s9122_s16 + $0x60] sm:$0xff]  ;;  %v552_v20 = vld [vmem:[%s9122_s16 + $0xb0] sm:$0xff] }
  0x25   : > { %v551_v18 = vld [vmem:[%s9122_s16 + $0xa8] sm:$0xff]  ;;  %v556_v21 = vld [vmem:[%s9122_s16 + $0xd0] sm:$0xff]  ;;  %v545_v22 = vld [vmem:[%s9122_s16 + $0x78] sm:$0xff] }
  0x26   : > { %v555_v23 = vld [vmem:[%s9122_s16 + $0xc8] sm:$0xff]  ;;  %v546_v25 = vld [vmem:[%s9122_s16 + $0x80] sm:$0xff]  ;;  %v560_v26 = vld [vmem:[%s9122_s16 + $0xf0] sm:$0xff] }
  0x27   : > { %v9170_v24 = vld [vmem:[%s9122_s16 + $0xe8] sm:$0xff]  ;;  %v549_v27 = vld [vmem:[%s9122_s16 + $0x98] sm:$0xff]  ;;  %v550_v28 = vld [vmem:[%s9122_s16 + $0xa0] sm:$0xff] }
  0x28   : > { %801 = vperm.xlu0 %8661, %v540_v5   ;;  %8660 = vset.pattern.permute.xlu1 %v8989_v7  ;;  %v553_v29 = vld [vmem:[%s9122_s16 + $0xb8] sm:$0xff]  ;;  %v554_v36 = vld [vmem:[%s9122_s16 + $0xc0] sm:$0xff] }
  0x29   : > { %580 = vperm.xlu1 %8660, %v533_v6   ;;  %v557_v54 = vld [vmem:[%s9122_s16 + $0xd8] sm:$0xff] }
  0x2c   : > { %817 = vperm.xlu0 %8661, %v544_v8  }
  0x2d   : > { %8662 = vset.pattern.permute.xlu1 %v8988_v0 }
  0x2e   : > { %773 = vperm.xlu1 %8662, %v533_v6  }
  0x30   : > { %833 = vperm.xlu0 %8661, %v548_v9  }
  0x32   : > { %8663 = vset.pattern.permute.xlu1 %v8989_v7 }
  0x33   : > { %585 = vperm.xlu1 %8663, %v534_v10  }
  0x34   : > { %8678 = vset.pattern.permute.xlu0 %v8989_v7 }
  0x35   : > { %565 = vperm.xlu0 %8678, %v530_v2  }
  0x37   : > { %8664 = vset.pattern.permute.xlu1 %v8988_v0 }
  0x38   : > { %777 = vperm.xlu1 %8664, %v534_v10  }
  0x39   : > { %570 = vperm.xlu0 %8678, %v531_v4  }
  0x3c   : > { %781 = vperm.xlu1 %8664, %v535_v11  }
  0x3d   : > { %575 = vperm.xlu0 %8678, %v532_v1  }
  0x40   : > { %8665 = vset.pattern.permute.xlu1 %v8989_v7 }
  0x41   : > { %590 = vperm.xlu0 %8678, %v535_v11   ;;  %600 = vperm.xlu1 %8665, %v537_v12  }
  0x45   : > { %595 = vperm.xlu0 %8678, %v536_v3   ;;  %8666 = vset.pattern.permute.xlu1 %v8988_v0 }
  0x46   : > { %789 = vperm.xlu1 %8666, %v537_v12  }
  0x49   : > { %610 = vperm.xlu0 %8678, %v539_v13  }
  0x4a   : > { %8667 = vset.pattern.permute.xlu1 %v8989_v7 }
  0x4b   : > { %605 = vperm.xlu1 %8667, %v538_v14  }
  0x4d   : > { %615 = vperm.xlu0 %8678, %v540_v5  }
  0x4f   : > { %8668 = vset.pattern.permute.xlu1 %v8988_v0 }
  0x50   : > { %793 = vperm.xlu1 %8668, %v538_v14   ;;  %v558_v14 = vld [vmem:[%s9122_s16 + $0xe0] sm:$0xff] }
  0x51   : > { %630 = vperm.xlu0 %8678, %v543_v15  }
  0x54   : > { %797 = vperm.xlu1 %8668, %v539_v13  }
  0x55   : > { %635 = vperm.xlu0 %8678, %v544_v8  }
  0x58   : > { %8669 = vset.pattern.permute.xlu1 %v8989_v7 }
  0x59   : > { %650 = vperm.xlu0 %8678, %v547_v16   ;;  %620 = vperm.xlu1 %8669, %v541_v17  }
  0x5d   : > { %655 = vperm.xlu0 %8678, %v548_v9   ;;  %8670 = vset.pattern.permute.xlu1 %v8988_v0 }
  0x5e   : > { %805 = vperm.xlu1 %8670, %v541_v17   ;;  %v13605_v17 = vmov 2475754826  }
  0x61   : > { %670 = vperm.xlu0 %8678, %v551_v18  }
  0x62   : > { %8671 = vset.pattern.permute.xlu1 %v8989_v7 }
  0x63   : > { %625 = vperm.xlu1 %8671, %v542_v19  }
  0x65   : > { %675 = vperm.xlu0 %8678, %v552_v20  }
  0x67   : > { %8672 = vset.pattern.permute.xlu1 %v8988_v0 }
  0x68   : > { %809 = vperm.xlu1 %8672, %v542_v19   ;;  %v13600_v19 = vmov 2131351028  }
  0x69   : > { %8683 = vset.pattern.permute.xlu0 %v8988_v0 }
  0x6a   : > { %849 = vperm.xlu0 %8683, %v552_v20  }
  0x6c   : > { %813 = vperm.xlu1 %8672, %v543_v15   ;;  %v13598_v15 = vmov 683565275  }
  0x6e   : > { %865 = vperm.xlu0 %8683, %v556_v21  }
  0x70   : > { %8673 = vset.pattern.permute.xlu1 %v8989_v7 }
  0x71   : > { %640 = vperm.xlu1 %8673, %v545_v22  }
  0x72   : > { %8688 = vset.pattern.permute.xlu0 %v8989_v7 }
  0x73   : > { %690 = vperm.xlu0 %8688, %v555_v23  }
  0x75   : > { %8674 = vset.pattern.permute.xlu1 %v8988_v0 }
  0x76   : > { %821 = vperm.xlu1 %8674, %v545_v22  }
  0x77   : > { %695 = vperm.xlu0 %8688, %v556_v21   ;;  %v13592_v21 = vmov 2102212464  }
  0x7a   : > { %8675 = vset.pattern.permute.xlu1 %v8989_v7 }
  0x7b   : > { %710 = vperm.xlu0 %8688, %v9170_v24   ;;  %645 = vperm.xlu1 %8675, %v546_v25  }
  0x7f   : > { %715 = vperm.xlu0 %8688, %v560_v26   ;;  %8676 = vset.pattern.permute.xlu1 %v8988_v0 }
  0x80   : > { %825 = vperm.xlu1 %8676, %v546_v25  }
  0x83   : > { %8693 = vset.pattern.permute.xlu0 %v8988_v0 }
  0x84   : > { %881 = vperm.xlu0 %8693, %v560_v26   ;;  %829 = vperm.xlu1 %8676, %v547_v16  }
  0x88   : > { %8677 = vset.pattern.permute.xlu1 %v8989_v7  ;;  %8696 = vset.pattern.permute.xlu0 %v8989_v7 }
  0x89   : > { %660 = vperm.xlu1 %8677, %v549_v27  }
  0x8d   : > { %8679 = vset.pattern.permute.xlu1 %v8988_v0 }
  0x8e   : > { %837 = vperm.xlu1 %8679, %v549_v27   ;;  %v13596_v27 = vmov 920167782  }
  0x92   : > { %8680 = vset.pattern.permute.xlu1 %v8989_v7 }
  0x93   : > { %665 = vperm.xlu1 %8680, %v550_v28  }
  0x97   : > { %8681 = vset.pattern.permute.xlu1 %v8988_v0 }
  0x98   : > { %841 = vperm.xlu1 %8681, %v550_v28  }
  0x9c   : > { %845 = vperm.xlu1 %8681, %v551_v18  }
  0x9f   : > { %v762_v30 = vpop.permute.xlu1 %761  ;;  %v9186_v31 = vpop.permute.xlu0 %769 }
  0xa0   : > { %8682 = vset.pattern.permute.xlu1 %v8989_v7  ;;  %v892_v51 = vmul.f32 %v9208_v39, %v762_v30 }
  0xa1   : > { %680 = vperm.xlu1 %8682, %v553_v29  }
  0xa3   : > { %v9189_v32 = vpop.permute.xlu1 %765  ;;  %v9191_v33 = vpop.permute.xlu0 %785 }
  0xa5   : > { %8684 = vset.pattern.permute.xlu1 %v8988_v0 }
  0xa6   : > { %853 = vperm.xlu1 %8684, %v553_v29  }
  0xa7   : > { %v9194_v34 = vpop.permute.xlu0 %801 }
  0xa8   : > { %v581_v35 = vpop.permute.xlu1 %580 }
  0xa9   : > { %v730_v41 = vmul.f32 %v9201_v37, %v581_v35  ;;  %v13594_v35 = vmov 1326507024  }
  0xaa   : > { %8685 = vset.pattern.permute.xlu1 %v8989_v7 }
  0xab   : > { %685 = vperm.xlu1 %8685, %v554_v36   ;;  %v9203_v38 = vpop.permute.xlu0 %817 }
  0xad   : > { %v774_v40 = vpop.permute.xlu1 %773 }
  0xae   : > { %v895_v42 = vmul.f32 %v9208_v39, %v774_v40 }
  0xaf   : > { %8686 = vset.pattern.permute.xlu1 %v8988_v0  ;;  %v9218_v44 = vpop.permute.xlu0 %833 }
  0xb0   : > { %v927_v45 = vadd.f32 %v895_v42, %v730_v41  ;;  %857 = vperm.xlu1 %8686, %v554_v36  }
  0xb2   : > { %v9221_v46 = vadd.f32 %v9215_v43, %v927_v45  ;;  %v586_v47 = vpop.permute.xlu1 %585 }
  0xb3   : > { %v731_v62 = vmul.f32 %v9201_v37, %v586_v47 }
  0xb4   : > { %v1307_v48 = vand.u32 2147483647, %v9221_v46  ;;  %v1310_v49 = vand.u32 2139095040, %v9221_v46  ;;  %v566_v50 = vpop.permute.xlu0 %565  ;;  %861 = vperm.xlu1 %8686, %v555_v23  }
  0xb5   : > { %v727_v52 = vmul.f32 %v9201_v37, %v566_v50 }
  0xb6   : > { %v1311_v53 = vshrl.u32 %v1310_v49, 23  ;;  %v1314_v55 = vand.u32 8388607, %v1307_v48 }
  0xb7   : > { %v924_v56 = vadd.f32 %v892_v51, %v727_v52  ;;  %v778_v57 = vpop.permute.xlu1 %777 }
  0xb8   : > { %v7559_v58 = vadd.s32 4294967169, %v1311_v53  ;;  %v896_v59 = vmul.f32 %v9208_v39, %v778_v57  ;;  %8687 = vset.pattern.permute.xlu1 %v8989_v7  ;;  %v1315_v63 = vor.u32 8388608, %v1314_v55 }
  0xb9   : > { %v9233_v60 = vadd.f32 %v9215_v43, %v924_v56  ;;  %700 = vperm.xlu1 %8687, %v557_v54  }
  0xba   : > { %v1317_v61 = vadd.s32 1, %v7559_v58  ;;  %v928_v3 = vadd.f32 %v896_v59, %v731_v62  ;;  %v9239_v9 = vshll.u32 %v1315_v63, 8 }
  0xbb   : > { %13820 = vst [vmem:[#allocation5_spill] sm:$0xff] %v9233_v60  ;;  %v998_v1 = vand.u32 2139095040, %v9233_v60  ;;  %v13589_v2 = vand.u32 2147483647, %v9233_v60 }
  0xbc   : > { %vm1318_vm0 = vcmp.gt.s32.totalorder %v1317_v61, 0  ;;  %v9246_v13 = vadd.f32 %v9215_v43, %v928_v3 }
  0xbd   : > { %v1319_v4 = vsel %vm1318_vm0, %v1317_v61, 0  ;;  %v999_v5 = vshrl.u32 %v998_v1, 23  ;;  %8689 = vset.pattern.permute.xlu1 %v8988_v0  ;;  %v9243_v12 = vand.u32 8388607, %v13589_v2 }
  0xbe   : > { %v1321_v6 = vand.u32 31, %v1319_v4  ;;  %869 = vperm.xlu1 %8689, %v557_v54   ;;  %v1320_v8 = vshrl.u32 %v1319_v4, 5  ;;  %13821 = vst [vmem:[#allocation6_spill] sm:$0xff] %v9246_v13  ;;  %v1414_v1 = vand.u32 2139095040, %v9246_v13 }
  0xbf   : > { %v7547_v11 = vadd.s32 4294967169, %v999_v5 }
  0xc0   : > { %v1322_v10 = vsub.s32 32, %v1321_v6  ;;  %v1324_v16 = vshll.u32 %v13598_v15, %v1321_v6  ;;  %v1327_v18 = vshll.u32 %v13605_v17, %v1321_v6  ;;  %v1330_v20 = vshll.u32 %v13600_v19, %v1321_v6 }
  0xc1   : > { %v1333_v22 = vshll.u32 %v13592_v21, %v1321_v6  ;;  %v1336_v28 = vshll.u32 %v13596_v27, %v1321_v6  ;;  %vm1339_vm1 = vcmp.lt.s32.totalorder %v1320_v8, 1  ;;  %v1005_v45 = vadd.s32 1, %v7547_v11 }
  0xc2   : > { %v1325_v23 = vshrl.u32 %v13605_v17, %v1322_v10  ;;  %v1328_v25 = vshrl.u32 %v13600_v19, %v1322_v10  ;;  %v1331_v26 = vshrl.u32 %v13592_v21, %v1322_v10  ;;  %8690 = vset.pattern.permute.xlu1 %v8989_v7  ;;  %v1323_v29 = vshrl.u32 %v13598_v15, %v1322_v10 }
  0xc3   : > { %v1334_v30 = vshrl.u32 %v13596_v27, %v1322_v10  ;;  %v1337_v36 = vshrl.u32 %v13594_v35, %v1322_v10  ;;  %705 = vperm.xlu1 %8690, %v558_v14   ;;  %vm1341_vm2 = vcmp.lt.s32.totalorder %v1320_v8, 3  ;;  %vm1342_vm3 = vcmp.lt.s32.totalorder %v1320_v8, 4 }
  0xc4   : > { %v1326_v40 = vor.u32 %v1325_v23, %v1324_v16  ;;  %v1329_v41 = vor.u32 %v1328_v25, %v1327_v18  ;;  %v1332_v42 = vor.u32 %v1331_v26, %v1330_v20  ;;  %vm1006_vm4 = vcmp.gt.s32.totalorder %v1005_v45, 0 }
  0xc5   : > { %v1335_v47 = vor.u32 %v1334_v30, %v1333_v22  ;;  %v1338_v49 = vor.u32 %v1337_v36, %v1336_v28  ;;  %vm1340_vm5 = vcmp.lt.s32.totalorder %v1320_v8, 2  ;;  %v1007_v59 = vsel %vm1006_vm4, %v1005_v45, 0 }
  0xc6   : > { %v1343_v50 = vsel %vm1339_vm1, %v1323_v29, %v1326_v40  ;;  %v1344_v51 = vsel %vm1342_vm3, %v1332_v42, 2102212464  ;;  %v1347_v52 = vsel %vm1339_vm1, %v1326_v40, %v1329_v41  ;;  %v1351_v53 = vsel %vm1339_vm1, %v1329_v41, %v1332_v42 }
  0xc7   : > { %v1345_v54 = vsel %vm1341_vm2, %v1329_v41, %v1344_v51  ;;  %v1348_v55 = vsel %vm1342_vm3, %v1335_v47, 920167782  ;;  %v1352_v56 = vsel %vm1342_vm3, %v1338_v49, 1326507024  ;;  %8691 = vset.pattern.permute.xlu1 %v8988_v0  ;;  %v1009_v10 = vand.u32 31, %v1007_v59 }
  0xc8   : > { %v1349_v57 = vsel %vm1341_vm2, %v1332_v42, %v1348_v55  ;;  %v1353_v58 = vsel %vm1341_vm2, %v1335_v47, %v1352_v56  ;;  %873 = vperm.xlu1 %8691, %v558_v14   ;;  %v1346_v61 = vsel %vm1340_vm5, %v1343_v50, %v1345_v54  ;;  %v1003_v11 = vor.u32 8388608, %v9243_v12 }
  0xc9   : > { %v1350_v62 = vsel %vm1340_vm5, %v1347_v52, %v1349_v57  ;;  %v1354_v63 = vsel %vm1340_vm5, %v1351_v53, %v1353_v58  ;;  %v1362_v8 = vmul.u32 %v9239_v9, %v1346_v61  ;;  %v13588_v14 = vand.u32 2147483647, %v9246_v13 }
  0xca   : > { %v9264_v3 = vmul.u32.u64.low %v9239_v9, %v1354_v63  ;;  %v9265_v4 = vmul.u32.u64.high %v9239_v9, %v1354_v63, %v9264_v3  ;;  %v9268_v5 = vmul.u32.u64.low %v9239_v9, %v1350_v62  ;;  %v9269_v6 = vmul.u32.u64.high %v9239_v9, %v1350_v62, %v9268_v5 }
  0xcb   : > { %v9276_v16 = vshrl.u32 %v1007_v59, 5  ;;  %v1010_v18 = vsub.s32 32, %v1009_v10  ;;  %v1012_v20 = vshll.u32 %v13598_v15, %v1009_v10  ;;  %v1415_v22 = vshrl.u32 %v1414_v1, 23 }
  0xcc   : > { %877 = vperm.xlu1 %8691, %v9170_v24   ;;  %vm1364_vm6 = vc.u32 %v9265_v4, %v9268_v5  ;;  %v1365_v23 = vadd.s32 1, %v9269_v6  ;;  %v1015_v25 = vshll.u32 %v13605_v17, %v1009_v10  ;;  %v1018_v9 = vshll.u32 %v13600_v19, %v1009_v10 }
  0xcd   : > { %v1013_v12 = vshrl.u32 %v13605_v17, %v1010_v18  ;;  %v1016_v26 = vshrl.u32 %v13600_v19, %v1010_v18  ;;  %v1019_v24 = vshrl.u32 %v13592_v21, %v1010_v18  ;;  %v1021_v28 = vshll.u32 %v13592_v21, %v1009_v10 }
  0xce   : > { %v1366_v29 = vsel %vm1364_vm6, %v1365_v23, %v9269_v6  ;;  %v1022_v30 = vshrl.u32 %v13596_v27, %v1010_v18  ;;  %v1024_v36 = vshll.u32 %v13596_v27, %v1009_v10  ;;  %v1025_v40 = vshrl.u32 %v13594_v35, %v1010_v18 }
  0xcf   : > { %v1367_v41 = vadd.s32 %v1366_v29, %v1362_v8  ;;  %v1014_v42 = vor.u32 %v1013_v12, %v1012_v20  ;;  %v1017_v45 = vor.u32 %v1016_v26, %v1015_v25  ;;  %v1020_v47 = vor.u32 %v1019_v24, %v1018_v9  ;;  %v571_v20 = vpop.permute.xlu0 %570 }
  0xd0   : > { %8692 = vset.pattern.permute.xlu1 %v8989_v7  ;;  %v1023_v49 = vor.u32 %v1022_v30, %v1021_v28  ;;  %v1026_v50 = vor.u32 %v1025_v40, %v1024_v36  ;;  %vm1027_vm7 = vcmp.lt.s32.totalorder %v9276_v16, 1  ;;  %v7563_v51 = vadd.s32 4294967169, %v1415_v22  ;;  %v8697_v30 = vld [vmem:[%s9332_s23] sm:$0xff]  }
  0xd1   : > { %v1368_v52 = vadd.s32 536870912, %v1367_v41  ;;  %vm1030_vm8 = vcmp.lt.s32.totalorder %v9276_v16, 4  ;;  %v1035_v53 = vsel %vm1027_vm7, %v1014_v42, %v1017_v45  ;;  %v1043_v54 = vshll.u32 %v1003_v11, 8  ;;  %8075 = vmatprep.subr.bf16.mxu0 %v8697_v30 }
  0xd2   : > { %vm1029_vm9 = vcmp.lt.s32.totalorder %v9276_v16, 3  ;;  %v1036_v55 = vsel %vm1030_vm8, %v1023_v49, 920167782  ;;  %v1039_v56 = vsel %vm1027_vm7, %v1017_v45, %v1020_v47  ;;  %v1040_v57 = vsel %vm1030_vm8, %v1026_v50, 1326507024  ;;  %8076 = vmatpush3.bf16.msra.mxu0 %v8697_v30 }
  0xd3   : > { %v9300_v58 = vshrl.u32 %v1368_v52, 30  ;;  %vm1028_vm10 = vcmp.lt.s32.totalorder %v9276_v16, 2  ;;  %v1037_v59 = vsel %vm1029_vm9, %v1020_v47, %v1036_v55  ;;  %v1041_v61 = vsel %vm1029_vm9, %v1023_v49, %v1040_v57 }
  0xd4   : > { %v1032_v62 = vsel %vm1030_vm8, %v1020_v47, 2102212464  ;;  %v1038_v63 = vsel %vm1028_vm10, %v1035_v53, %v1037_v59  ;;  %v1042_v1 = vsel %vm1028_vm10, %v1039_v56, %v1041_v61  ;;  %v1421_v3 = vadd.s32 1, %v7563_v51 }
  0xd5   : > { %v1370_v6 = vshll.u32 %v9300_v58, 30  ;;  %v1011_v10 = vshrl.u32 %v13598_v15, %v1010_v18  ;;  %v9313_v8 = vmul.u32.u64.low %v1043_v54, %v1042_v1  ;;  %v9314_v11 = vmul.u32.u64.high %v1043_v54, %v1042_v1, %v9313_v8 }
  0xd6   : > { %v9316_v22 = vmul.u32.u64.low %v1043_v54, %v1038_v63  ;;  %v9317_v23 = vmul.u32.u64.high %v1043_v54, %v1038_v63, %v9316_v22  ;;  %vm1422_vm11 = vcmp.gt.s32.totalorder %v1421_v3, 0  ;;  %v1033_v12 = vsel %vm1029_vm9, %v1017_v45, %v1032_v62 }
  0xd7   : > { %v9321_v25 = vsub.s32 %v1367_v41, %v1370_v6  ;;  %v1031_v9 = vsel %vm1027_vm7, %v1011_v10, %v1014_v42  ;;  %v1423_v26 = vsel %vm1422_vm11, %v1421_v3, 0  ;;  %v728_v24 = vmul.f32 %v9201_v37, %v571_v20 }
  0xd8   : > { %v1425_v18 = vand.u32 31, %v1423_v26  ;;  %v1418_v29 = vand.u32 8388607, %v13588_v14  ;;  %v893_v36 = vmul.f32 %v9208_v39, %v9189_v32  ;;  %v1034_v40 = vsel %vm1028_vm10, %v1031_v9, %v1033_v12 }
  0xd9   : > { %v1373_v28 = vsub.s32 0, %v9321_v25  ;;  %v1053_v41 = vadd.s32 1, %v9317_v23  ;;  %vm1052_vm12 = vc.u32 %v9314_v11, %v9316_v22  ;;  %v1050_v50 = vmul.u32 %v1043_v54, %v1034_v40 }
  0xda   : > { %v1426_v42 = vsub.s32 32, %v1425_v18  ;;  %v925_v49 = vadd.f32 %v893_v36, %v728_v24  ;;  %v1419_v51 = vor.u32 8388608, %v1418_v29  ;;  %v1428_v32 = vshll.u32 %v13598_v15, %v1425_v18 }
  0xdb   : > { %v1431_v16 = vshll.u32 %v13605_v17, %v1425_v18  ;;  %v7560_v52 = vmin.u32 %v1373_v28, %v9321_v25  ;;  %v1054_v53 = vsel %vm1052_vm12, %v1053_v41, %v9317_v23  ;;  %v1434_v55 = vshll.u32 %v13600_v19, %v1425_v18 }
  0xdc   : > { %v1429_v45 = vshrl.u32 %v13605_v17, %v1426_v42  ;;  %v1432_v47 = vshrl.u32 %v13600_v19, %v1426_v42  ;;  %v1435_v56 = vshrl.u32 %v13592_v21, %v1426_v42  ;;  %v1424_v57 = vshrl.u32 %v1423_v26, 5 }
  0xdd   : > { %v1437_v59 = vshll.u32 %v13592_v21, %v1425_v18  ;;  %v1438_v61 = vshrl.u32 %v13596_v27, %v1426_v42  ;;  %v1441_v54 = vshrl.u32 %v13594_v35, %v1426_v42  ;;  %v1440_v3 = vshll.u32 %v13596_v27, %v1425_v18 }
  0xde   : > { %v1430_v62 = vor.u32 %v1429_v45, %v1428_v32  ;;  %v1433_v63 = vor.u32 %v1432_v47, %v1431_v16  ;;  %v1436_v1 = vor.u32 %v1435_v56, %v1434_v55  ;;  %v1055_v6 = vadd.s32 %v1054_v53, %v1050_v50 }
  0xdf   : > { %v1439_v10 = vor.u32 %v1438_v61, %v1437_v59  ;;  %v1375_v8 = vclz %v7560_v52  ;;  %v1442_v20 = vor.u32 %v1441_v54, %v1440_v3  ;;  %vm1443_vm13 = vcmp.lt.s32.totalorder %v1424_v57, 1  ;;  %v8698_v3 = vld [vmem:[%s9332_s23 + $0x8] sm:$0xff]  }
  0xe0   : > { %vm1446_vm14 = vcmp.lt.s32.totalorder %v1424_v57, 4  ;;  %v1459_v23 = vshll.u32 %v1419_v51, 8  ;;  %v9359_v9 = vadd.f32 %v9215_v43, %v925_v49  ;;  %vm1445_vm15 = vcmp.lt.s32.totalorder %v1424_v57, 3  ;;  %8077 = vmatprep.subr.bf16.mxu0 %v8698_v3 }
  0xe1   : > { %v1448_v12 = vsel %vm1446_vm14, %v1436_v1, 2102212464  ;;  %v1451_v26 = vsel %vm1443_vm13, %v1430_v62, %v1433_v63  ;;  %v1452_v24 = vsel %vm1446_vm14, %v1439_v10, 920167782  ;;  %v1056_v28 = vadd.s32 536870912, %v1055_v6  ;;  %8078 = vmatpush3.bf16.msra.mxu0 %v8698_v3 }
  0xe2   : > { %13822 = vst [vmem:[#allocation7_spill] sm:$0xff] %v9359_v9  ;;  %v1427_v29 = vshrl.u32 %v13598_v15, %v1426_v42  ;;  %vm1444_vm0 = vcmp.lt.s32.totalorder %v1424_v57, 2  ;;  %v1453_v18 = vsel %vm1445_vm15, %v1436_v1, %v1452_v24  ;;  %v7561_v30 = vadd.s32 4294967294, %v1375_v8 }
  0xe3   : > { %v1454_v36 = vsel %vm1444_vm0, %v1451_v26, %v1453_v18  ;;  %v1455_v40 = vsel %vm1443_vm13, %v1433_v63, %v1436_v1  ;;  %v1456_v41 = vsel %vm1446_vm14, %v1442_v20, 1326507024  ;;  %v1449_v47 = vsel %vm1445_vm15, %v1433_v63, %v1448_v12  ;;  %v561_v20 = vld [vmem:[%s9122_s16 + $0xf8] sm:$0xff]  ;;  %s7873_s16 = sshll.u32 %s9116_s12, 7  ;;  %s13527_s12 = scalar_lea.hbm %s13585_s11, %s7876_s26 }
  0xe4   : > { %v1447_v45 = vsel %vm1443_vm13, %v1427_v29, %v1430_v62  ;;  %v1457_v49 = vsel %vm1445_vm15, %v1439_v10, %v1456_v41  ;;  %v9365_v51 = vmul.u32.u64.low %v1459_v23, %v1454_v36  ;;  %v9366_v32 = vmul.u32.u64.high %v1459_v23, %v1454_v36, %v9365_v51  ;;  %720 = vperm.xlu1 %8692, %v561_v20   ;;  %s9442_s14 = scalar_lea.vmem %s13575_s1, %s7873_s16  ;;  %s9513_s16 = scalar_lea.vmem %s13578_s4, %s7874_s13 }
  0xe5   : > { %v1458_v50 = vsel %vm1444_vm0, %v1455_v40, %v1457_v49  ;;  %v9369_v16 = vshrl.u32 %v1056_v28, 30  ;;  %vm7562_vm1 = vcmp.lt.s32.totalorder %v7561_v30, 0  ;;  %v1450_v53 = vsel %vm1444_vm0, %v1447_v45, %v1449_v47 }
  0xe6   : > { %v9371_v42 = vmul.u32.u64.low %v1459_v23, %v1458_v50  ;;  %v9372_v52 = vmul.u32.u64.high %v1459_v23, %v1458_v50, %v9371_v42  ;;  %v1102_v55 = vand.u32 2139095040, %v9359_v9  ;;  %v1469_v56 = vadd.s32 1, %v9366_v32 }
  0xe7   : > { %13823 = vst [vmem:[#allocation8_spill] sm:$0xff] %v9369_v16  ;;  %v9376_v59 = vsel %vm7562_vm1, 0, %v7561_v30  ;;  %v1058_v61 = vshll.u32 %v9369_v16, 30  ;;  %v1466_v54 = vmul.u32 %v1459_v23, %v1450_v53  ;;  %v576_v23 = vpop.permute.xlu0 %575  ;;  %v13586_v18 = vand.u32 2147483647, %v9359_v9 }
  0xe8   : > { %v1103_v57 = vshrl.u32 %v1102_v55, 23  ;;  %vm1468_vm2 = vc.u32 %v9372_v52, %v9365_v51  ;;  %v1383_v10 = vsub.s32 4294967266, %v9376_v59  ;;  %8694 = vset.pattern.permute.xlu1 %v8988_v0  ;;  %v894_v36 = vmul.f32 %v9208_v39, %v9186_v31 }
  0xe9   : > { %v1470_v62 = vsel %vm1468_vm2, %v1469_v56, %v9366_v32  ;;  %v9385_v12 = vsub.s32 %v1055_v6, %v1058_v61  ;;  %v729_v6 = vmul.f32 %v9201_v37, %v576_v23  ;;  %885 = vperm.xlu1 %8694, %v561_v20   ;;  %v1363_v45 = vadd.s32 %v9268_v5, %v9265_v4 }
  0xea   : > { %v7551_v63 = vadd.s32 4294967169, %v1103_v57  ;;  %v1471_v1 = vadd.s32 %v1470_v62, %v1466_v54  ;;  %v1384_v24 = vadd.s32 127, %v1383_v10  ;;  %v1379_v47 = vsub.s32 32, %v9376_v59 }
  0xeb   : > { %v1061_v29 = vsub.s32 0, %v9385_v12  ;;  %v1106_v0 = vand.u32 8388607, %v13586_v18  ;;  %v926_v56 = vadd.f32 %v894_v36, %v729_v6  ;;  %v591_v10 = vpop.permute.xlu0 %590  ;;  %v1380_v6 = vshll.u32 %v9321_v25, %v9376_v59 }
  0xec   : > { %v1109_v8 = vadd.s32 1, %v7551_v63  ;;  %v1472_v26 = vadd.s32 536870912, %v1471_v1  ;;  %v1385_v49 = vshll.u32 %v1384_v24, 23  ;;  %v1381_v54 = vshrl.u32 %v1363_v45, %v1379_v47  ;;  %v782_v24 = vpop.permute.xlu1 %781 }
  0xed   : > { %v7548_v50 = vmin.u32 %v1061_v29, %v9385_v12  ;;  %8695 = vset.pattern.permute.xlu1 %v8989_v7  ;;  %v1107_v7 = vor.u32 8388608, %v1106_v0  ;;  %v9414_v36 = vadd.f32 %v9215_v43, %v926_v56  ;;  %v732_v47 = vmul.f32 %v9201_v37, %v591_v10 }
  0xee   : > { %vm1110_vm3 = vcmp.gt.s32.totalorder %v1109_v8, 0  ;;  %v9393_v40 = vshrl.u32 %v1472_v26, 30  ;;  %v897_v0 = vmul.f32 %v9208_v39, %v782_v24  ;;  %vm1309_vm11 = vcmp.lt.s32.totalorder %v9221_v46, 0 }
  0xef   : > { %v1111_v28 = vsel %vm1110_vm3, %v1109_v8, 0  ;;  %v1386_v8 = vor.u32 4788187, %v1385_v49  ;;  %v1063_v20 = vclz %v7548_v50  ;;  %v1147_v59 = vshll.u32 %v1107_v7, 8 }
  0xf0   : > { %v1113_v30 = vand.u32 31, %v1111_v28  ;;  %13824 = vst [vmem:[#allocation9_spill] sm:$0xff] %v9393_v40  ;;  %v1474_v4 = vshll.u32 %v9393_v40, 30  ;;  %v1112_v5 = vshrl.u32 %v1111_v28, 5  ;;  %v929_v56 = vadd.f32 %v897_v0, %v732_v47 }
  0xf1   : > { %vm9500_vm12 = vcmp.le.f32.partialorder %v1307_v48, 0.7853982 }
  0xf2   : > { %v1114_v41 = vsub.s32 32, %v1113_v30  ;;  %v1125_v53 = vshll.u32 %v13592_v21, %v1113_v30  ;;  %v1116_v57 = vshll.u32 %v13598_v15, %v1113_v30  ;;  %v1119_v61 = vshll.u32 %v13605_v17, %v1113_v30 }
  0xf3   : > { %v1122_v62 = vshll.u32 %v13600_v19, %v1113_v30  ;;  %v1128_v28 = vshll.u32 %v13596_v27, %v1113_v30  ;;  %v9418_v45 = vsub.s32 %v1471_v1, %v1474_v4  ;;  %vm1134_vm4 = vcmp.lt.s32.totalorder %v1112_v5, 4 }
  0xf4   : > { %v1117_v32 = vshrl.u32 %v13605_v17, %v1114_v41  ;;  %v1120_v31 = vshrl.u32 %v13600_v19, %v1114_v41  ;;  %v1123_v42 = vshrl.u32 %v13592_v21, %v1114_v41  ;;  %v1126_v55 = vshrl.u32 %v13596_v27, %v1114_v41 }
  0xf5   : > { %v1129_v3 = vshrl.u32 %v13594_v35, %v1114_v41  ;;  %vm1131_vm5 = vcmp.lt.s32.totalorder %v1112_v5, 1  ;;  %v1387_v30 = vand.u32 2147483647, %v1386_v8  ;;  %vm1133_vm6 = vcmp.lt.s32.totalorder %v1112_v5, 3 }
  0xf6   : > { %v1127_v63 = vor.u32 %v1126_v55, %v1125_v53  ;;  %v1118_v26 = vor.u32 %v1117_v32, %v1116_v57  ;;  %v1121_v23 = vor.u32 %v1120_v31, %v1119_v61  ;;  %v1124_v29 = vor.u32 %v1123_v42, %v1122_v62 }
  0xf7   : > { %v1130_v49 = vor.u32 %v1129_v3, %v1128_v28  ;;  %v1382_v32 = vor.u32 %v1381_v54, %v1380_v6  ;;  %v7549_v42 = vadd.s32 4294967294, %v1063_v20  ;;  %v1206_v1 = vand.u32 2139095040, %v9414_v36 }
  0xf8   : > { %v1140_v50 = vsel %vm1134_vm4, %v1127_v63, 920167782  ;;  %v1139_v31 = vsel %vm1131_vm5, %v1118_v26, %v1121_v23  ;;  %v1477_v53 = vsub.s32 0, %v9418_v45  ;;  %vm1132_vm7 = vcmp.lt.s32.totalorder %v1112_v5, 2 }
  0xf9   : > { %v1141_v25 = vsel %vm1133_vm6, %v1124_v29, %v1140_v50  ;;  %v13587_v55 = vand.u32 2147483647, %v9414_v36  ;;  %v1136_v4 = vsel %vm1134_vm4, %v1124_v29, 2102212464  ;;  %v1143_v61 = vsel %vm1131_vm5, %v1121_v23, %v1124_v29 }
  0xfa   : > { %v1142_v57 = vsel %vm1132_vm7, %v1139_v31, %v1141_v25  ;;  %v1144_v54 = vsel %vm1134_vm4, %v1130_v49, 1326507024  ;;  %v1115_v62 = vshrl.u32 %v13598_v15, %v1114_v41  ;;  %v1207_v24 = vshrl.u32 %v1206_v1, 23 }
  0xfb   : > { %v1145_v3 = vsel %vm1133_vm6, %v1127_v63, %v1144_v54  ;;  %v9435_v10 = vmul.u32.u64.low %v1147_v59, %v1142_v57  ;;  %v9436_v8 = vmul.u32.u64.high %v1147_v59, %v1142_v57, %v9435_v10  ;;  %v1137_v29 = vsel %vm1133_vm6, %v1121_v23, %v1136_v4 }
  0xfc   : > { %v1146_v20 = vsel %vm1132_vm7, %v1143_v61, %v1145_v3  ;;  %v1135_v7 = vsel %vm1131_vm5, %v1115_v62, %v1118_v26  ;;  %v1389_v63 = vcvt.s32.f32 %v1382_v32  ;;  %vm7550_vm8 = vcmp.lt.s32.totalorder %v7549_v42, 0 }
  0xfd   : > { %v9447_v28 = vmul.u32.u64.low %v1147_v59, %v1146_v20  ;;  %v9448_v41 = vmul.u32.u64.high %v1147_v59, %v1146_v20, %v9447_v28  ;;  %v7564_v6 = vmin.u32 %v1477_v53, %v9418_v45  ;;  %v7555_v47 = vadd.s32 4294967169, %v1207_v24 }
  0xfe   : > { %v1157_v49 = vadd.s32 1, %v9436_v8  ;;  %v9453_v50 = vadd.f32 %v9215_v43, %v929_v56  ;;  %v9455_v0 = vmul.f32 %v1389_v63, %v1387_v30  ;;  %v1138_v31 = vsel %vm1132_vm7, %v1135_v7, %v1137_v29 }
  0xff   : > { %v1213_v26 = vadd.s32 1, %v7555_v47  ;;  %v9458_v25 = vsel %vm7550_vm8, 0, %v7549_v42  ;;  %vm1156_vm9 = vc.u32 %v9448_v41, %v9435_v10  ;;  %v1210_v23 = vand.u32 8388607, %v13587_v55 }
 0x100   : > { %13825 = vst [vmem:[#allocation10_spill] sm:$0xff] %v9453_v50  ;;  %v9466_v32 = vmul.f32 %v9208_v39, %v9191_v33  ;;  %v1479_v1 = vclz %v7564_v6  ;;  %v1158_v53 = vsel %vm1156_vm9, %v1157_v49, %v9436_v8  ;;  %v1154_v5 = vmul.u32 %v1147_v59, %v1138_v31  ;;  %v596_v31 = vpop.permute.xlu0 %595 }
 0x101   : > { %vm1214_vm10 = vcmp.gt.s32.totalorder %v1213_v26, 0  ;;  %v1518_v42 = vand.u32 2139095040, %v9453_v50  ;;  %v1391_v56 = vxor.u32 2147483648, %v9455_v0  ;;  %v1393_v4 = vsub.s32 4, %v9300_v58 }
 0x102   : > { %v1215_v30 = vsel %vm1214_vm10, %v1213_v26, 0  ;;  %v1067_v57 = vsub.s32 32, %v9458_v25  ;;  %v1071_v33 = vsub.s32 4294967266, %v9458_v25  ;;  %v9475_v39 = vadd.s32 %v1158_v53, %v1154_v5 }
 0x103   : > { %v1217_v61 = vand.u32 31, %v1215_v30  ;;  %v1211_v54 = vor.u32 8388608, %v1210_v23  ;;  %v13591_v62 = vand.u32 2147483647, %v9453_v50  ;;  %v7565_v3 = vadd.s32 4294967294, %v1479_v1 }
 0x104   : > { %v1216_v24 = vshrl.u32 %v1215_v30, 5  ;;  %v1519_v28 = vshrl.u32 %v1518_v42, 23  ;;  %v9485_v63 = vsel %vm1309_vm11, %v1393_v4, %v9300_v58  ;;  %v1160_v26 = vadd.s32 536870912, %v9475_v39 }
 0x105   : > { %v1218_v8 = vsub.s32 32, %v1217_v61  ;;  %v1220_v59 = vshll.u32 %v13598_v15, %v1217_v61  ;;  %v1223_v20 = vshll.u32 %v13605_v17, %v1217_v61  ;;  %v1226_v7 = vshll.u32 %v13600_v19, %v1217_v61 }
 0x106   : > { %v1229_v29 = vshll.u32 %v13592_v21, %v1217_v61  ;;  %v1232_v49 = vshll.u32 %v13596_v27, %v1217_v61  ;;  %v9493_v53 = vshll.u32 %v1211_v54, 8  ;;  %v1051_v5 = vadd.s32 %v9316_v22, %v9314_v11 }
 0x107   : > { %v1221_v6 = vshrl.u32 %v13605_v17, %v1218_v8  ;;  %v1224_v47 = vshrl.u32 %v13600_v19, %v1218_v8  ;;  %v1227_v23 = vshrl.u32 %v13592_v21, %v1218_v8  ;;  %v1230_v1 = vshrl.u32 %v13596_v27, %v1218_v8 }
 0x108   : > { %v1233_v42 = vshrl.u32 %v13594_v35, %v1218_v8  ;;  %v1219_v61 = vshrl.u32 %v13598_v15, %v1218_v8  ;;  %v733_v54 = vmul.f32 %v9201_v37, %v596_v31  ;;  %vm1235_vm13 = vcmp.lt.s32.totalorder %v1216_v24, 1 }
 0x109   : > { %v1222_v58 = vor.u32 %v1221_v6, %v1220_v59  ;;  %v1225_v30 = vor.u32 %v1224_v47, %v1223_v20  ;;  %v1228_v18 = vor.u32 %v1227_v23, %v1226_v7  ;;  %v1231_v55 = vor.u32 %v1230_v1, %v1229_v29 }
 0x10a   : > { %v1234_v14 = vor.u32 %v1233_v42, %v1232_v49  ;;  %vm1237_vm14 = vcmp.lt.s32.totalorder %v1216_v24, 3  ;;  %v7567_v11 = vadd.s32 4294967169, %v1519_v28  ;;  %v9506_v22 = vshrl.u32 %v1160_v26, 30 }
 0x10b   : > { %vm1236_vm15 = vcmp.lt.s32.totalorder %v1216_v24, 2  ;;  %vm1238_vm0 = vcmp.lt.s32.totalorder %v1216_v24, 4  ;;  %v1243_v59 = vsel %vm1235_vm13, %v1222_v58, %v1225_v30  ;;  %v1247_v6 = vsel %vm1235_vm13, %v1225_v30, %v1228_v18 }
 0x10c   : > { %13828 = vst [vmem:[#allocation11_spill] sm:$0xff] %v9506_v22  ;;  %v1240_v48 = vsel %vm1238_vm0, %v1228_v18, 2102212464  ;;  %v1244_v20 = vsel %vm1238_vm0, %v1231_v55, 920167782  ;;  %v1239_v2 = vsel %vm1235_vm13, %v1219_v61, %v1222_v58  ;;  %v1392_v37 = vsel %vm1309_vm11, %v1391_v56, %v9455_v0 }
 0x10d   : > { %v1248_v47 = vsel %vm1238_vm0, %v1234_v14, 1326507024  ;;  %v1241_v8 = vsel %vm1237_vm14, %v1225_v30, %v1240_v48  ;;  %v1245_v7 = vsel %vm1237_vm14, %v1228_v18, %v1244_v20  ;;  %v1525_v31 = vadd.s32 1, %v7567_v11 }
 0x10e   : > { %v1249_v29 = vsel %vm1237_vm14, %v1231_v55, %v1248_v47  ;;  %v1246_v28 = vsel %vm1236_vm15, %v1243_v59, %v1245_v7  ;;  %vm7566_vm1 = vcmp.lt.s32.totalorder %v7565_v3, 0  ;;  %v1162_v14 = vshll.u32 %v9506_v22, 30 }
 0x10f   : > { %v1250_v49 = vsel %vm1236_vm15, %v1247_v6, %v1249_v29  ;;  %v1242_v26 = vsel %vm1236_vm15, %v1239_v2, %v1241_v8  ;;  %v9527_v23 = vmul.u32.u64.low %v9493_v53, %v1246_v28  ;;  %v9528_v1 = vmul.u32.u64.high %v9493_v53, %v1246_v28, %v9527_v23 }
 0x110   : > { %v9522_v18 = vmul.u32.u64.low %v9493_v53, %v1250_v49  ;;  %v9523_v55 = vmul.u32.u64.high %v9493_v53, %v1250_v49, %v9522_v18  ;;  %vm1526_vm2 = vcmp.gt.s32.totalorder %v1525_v31, 0  ;;  %v1069_v0 = vshrl.u32 %v1051_v5, %v1067_v57 }
 0x111   : > { %v1072_v56 = vadd.s32 127, %v1071_v33  ;;  %v1527_v58 = vsel %vm1526_vm2, %v1525_v31, 0  ;;  %v930_v30 = vadd.f32 %v9466_v32, %v733_v54  ;;  %v1395_v42 = vsel %vm9500_vm12, %v9221_v46, %v1392_v37 }
 0x112   : > { %v1068_v61 = vshll.u32 %v9385_v12, %v9458_v25  ;;  %v9537_v24 = vsel %vm7566_vm1, 0, %v7565_v3  ;;  %v1529_v2 = vand.u32 31, %v1527_v58  ;;  %v9540_v11 = vsub.s32 %v9475_v39, %v1162_v14 }
 0x113   : > { %v1258_v59 = vmul.u32 %v9493_v53, %v1242_v26  ;;  %vm1260_vm3 = vc.u32 %v9523_v55, %v9527_v23  ;;  %v1522_v32 = vand.u32 8388607, %v13591_v62  ;;  %v1396_v57 = vsel %vm9500_vm12, 0, %v9485_v63 }
 0x114   : > { %v1261_v12 = vadd.s32 1, %v9528_v1  ;;  %v1530_v25 = vsub.s32 32, %v1529_v2  ;;  %8765 = vcosq.f32 %v1395_v42  ;;  %v9551_v33 = vor.u32 %v1069_v0, %v1068_v61 }
 0x115   : > { %v1073_v39 = vshll.u32 %v1072_v56, 23  ;;  %v9555_v3 = vadd.s32 %v9365_v51, %v9372_v52  ;;  %v1487_v53 = vsub.s32 4294967266, %v9537_v24  ;;  %v1165_v20 = vsub.s32 0, %v9540_v11 }
 0x116   : > { %v1262_v5 = vsel %vm1260_vm3, %v1261_v12, %v9528_v1  ;;  %v1533_v54 = vshrl.u32 %v13605_v17, %v1530_v25  ;;  %v1536_v48 = vshrl.u32 %v13600_v19, %v1530_v25  ;;  %v1523_v47 = vor.u32 8388608, %v1522_v32 }
 0x117   : > { %v1263_v6 = vadd.s32 %v1262_v5, %v1258_v59  ;;  %v9563_v8 = vadd.f32 %v9215_v43, %v930_v30  ;;  %v9565_v7 = vshrl.u32 %v1527_v58, 5  ;;  %v1532_v51 = vshll.u32 %v13598_v15, %v1529_v2 }
 0x118   : > { %v1535_v52 = vshll.u32 %v13605_v17, %v1529_v2  ;;  %v1539_v29 = vshrl.u32 %v13592_v21, %v1530_v25  ;;  %v1538_v28 = vshll.u32 %v13600_v19, %v1529_v2  ;;  %v1541_v49 = vshll.u32 %v13592_v21, %v1529_v2 }
 0x119   : > { %13829 = vst [vmem:[#allocation12_spill] sm:$0xff] %v9563_v8  ;;  %v1264_v37 = vadd.s32 536870912, %v1263_v6  ;;  %v1542_v31 = vshrl.u32 %v13596_v27, %v1530_v25  ;;  %v1534_v14 = vor.u32 %v1533_v54, %v1532_v51  ;;  %v1544_v43 = vshll.u32 %v13596_v27, %v1529_v2 }
 0x11a   : > { %v1537_v18 = vor.u32 %v1536_v48, %v1535_v52  ;;  %v1545_v26 = vshrl.u32 %v13594_v35, %v1530_v25  ;;  %v1540_v0 = vor.u32 %v1539_v29, %v1538_v28  ;;  %v1622_v58 = vand.u32 2139095040, %v9563_v8 }
 0x11b   : > { %v9575_v1 = vshrl.u32 %v1264_v37, 30  ;;  %v1543_v56 = vor.u32 %v1542_v31, %v1541_v49  ;;  %8767 = vsinq.f32 %v1395_v42  ;;  %v1074_v30 = vor.u32 4788187, %v1073_v39 }
 0x11c   : > { %v1077_v61 = vcvt.s32.f32 %v9551_v33  ;;  %v1546_v59 = vor.u32 %v1545_v26, %v1544_v43  ;;  %v1488_v32 = vadd.s32 127, %v1487_v53  ;;  %vm1547_vm4 = vcmp.lt.s32.totalorder %v9565_v7, 1  ;;  %v601_v33 = vpop.permute.xlu1 %600 }
 0x11d   : > { %v1266_v12 = vshll.u32 %v9575_v1, 30  ;;  %vm1550_vm5 = vcmp.lt.s32.totalorder %v9565_v7, 4  ;;  %v7552_v2 = vmin.u32 %v1165_v20, %v9540_v11  ;;  %v1555_v5 = vsel %vm1547_vm4, %v1534_v14, %v1537_v18 }
 0x11e   : > { %v1556_v54 = vsel %vm1550_vm5, %v1543_v56, 920167782  ;;  %v1563_v48 = vshll.u32 %v1523_v47, 8  ;;  %v9585_v51 = vpop.eup %8765  ;;  %vm1548_vm6 = vcmp.lt.s32.totalorder %v9565_v7, 2  ;;  %vm1549_vm7 = vcmp.lt.s32.totalorder %v9565_v7, 3 }
 0x11f   : > { %v1552_v42 = vsel %vm1550_vm5, %v1540_v0, 2102212464  ;;  %v1623_v39 = vshrl.u32 %v1622_v58, 23  ;;  %v9589_v53 = vsub.s32 %v1263_v6, %v1266_v12  ;;  %v1557_v52 = vsel %vm1549_vm7, %v1540_v0, %v1556_v54 }
 0x120   : > { %v1559_v20 = vsel %vm1547_vm4, %v1537_v18, %v1540_v0  ;;  %v1560_v29 = vsel %vm1550_vm5, %v1546_v59, 1326507024  ;;  %v1075_v37 = vand.u32 2147483647, %v1074_v30  ;;  %v1483_v47 = vsub.s32 32, %v9537_v24  ;;  %v790_v54 = vpop.permute.xlu1 %789 }
 0x121   : > { %v1531_v28 = vshrl.u32 %v13598_v15, %v1530_v25  ;;  %v1558_v49 = vsel %vm1548_vm6, %v1555_v5, %v1557_v52  ;;  %v1489_v31 = vshll.u32 %v1488_v32, 23  ;;  %v1561_v6 = vsel %vm1549_vm7, %v1543_v56, %v1560_v29  ;;  %v9618_v5 = vld [vmem:[%s13576_s2 + $0x1] ss:$0 sm:$0xff] }
 0x122   : > { %v9601_v43 = vmul.u32.u64.low %v1563_v48, %v1558_v49  ;;  %v9602_v26 = vmul.u32.u64.high %v1563_v48, %v1558_v49, %v9601_v43  ;;  %v1167_v58 = vclz %v7552_v2  ;;  %v1553_v30 = vsel %vm1549_vm7, %v1537_v18, %v1552_v42 }
 0x123   : > { %v1551_v0 = vsel %vm1547_vm4, %v1531_v28, %v1534_v14  ;;  %v1562_v25 = vsel %vm1548_vm6, %v1559_v20, %v1561_v6  ;;  %v1269_v59 = vsub.s32 0, %v9589_v53  ;;  %v7571_v56 = vadd.s32 4294967169, %v1623_v39 }
 0x124   : > { %v9612_v32 = vmul.u32.u64.low %v1563_v48, %v1562_v25  ;;  %v9613_v12 = vmul.u32.u64.high %v1563_v48, %v1562_v25, %v9612_v32  ;;  %v9622_v14 = vmul.f32 %v9618_v5, %v9194_v34  ;;  %v1485_v18 = vshrl.u32 %v9555_v3, %v1483_v47 }
 0x125   : > { %v13590_v2 = vand.u32 2147483647, %v9563_v8  ;;  %v9626_v42 = vpop.eup %8767  ;;  %v9630_v52 = vmul.f32 %v9618_v5, %v9203_v38  ;;  %v1400_v39 = vadd.s32 3, %v1396_v57  ;;  %v9636_v20 = vmul.f32 %v1077_v61, %v1075_v37 }
 0x126   : > { %v1573_v34 = vadd.s32 1, %v9602_v26  ;;  %v1484_v3 = vshll.u32 %v9418_v45, %v9537_v24  ;;  %v1490_v29 = vor.u32 4788187, %v1489_v31  ;;  %v1554_v47 = vsel %vm1548_vm6, %v1551_v0, %v1553_v30 }
 0x127   : > { %v1629_v28 = vadd.s32 1, %v7571_v56  ;;  %v7553_v49 = vadd.s32 4294967294, %v1167_v58  ;;  %v7556_v38 = vmin.u32 %v1269_v59, %v9589_v53  ;;  %vm1572_vm8 = vc.u32 %v9613_v12, %v9601_v43 }
 0x128   : > { %v899_v63 = vmul.f32 %v9618_v5, %v790_v54  ;;  %v1486_v4 = vor.u32 %v1485_v18, %v1484_v3  ;;  %v1574_v57 = vsel %vm1572_vm8, %v1573_v34, %v9602_v26  ;;  %v1626_v61 = vand.u32 8388607, %v13590_v2  ;;  %v9661_v26 = vld [vmem:[%s13576_s2] ss:$0 sm:$0xff] }
 0x129   : > { %vm1630_vm9 = vcmp.gt.s32.totalorder %v1629_v28, 0  ;;  %v9650_v45 = vand.u32 3, %v1400_v39  ;;  %v9654_v24 = vmul.f32 %v9618_v5, %v9218_v44  ;;  %v1570_v7 = vmul.u32 %v1563_v48, %v1554_v47 }
 0x12a   : > { %v1631_v37 = vsel %vm1630_vm9, %v1629_v28, 0  ;;  %v1407_v31 = vxor.u32 2147483648, %v9585_v51  ;;  %v1079_v6 = vxor.u32 2147483648, %v9636_v20  ;;  %v1491_v58 = vand.u32 2147483647, %v1490_v29 }
 0x12b   : > { %v734_v0 = vmul.f32 %v9661_v26, %v601_v33  ;;  %vm7554_vm10 = vcmp.lt.s32.totalorder %v7553_v49, 0  ;;  %v1271_v30 = vclz %v7556_v38  ;;  %v9664_v25 = vadd.s32 %v1574_v57, %v1570_v7 }
 0x12c   : > { %v1633_v44 = vand.u32 31, %v1631_v37  ;;  %v1404_v48 = vxor.u32 2147483648, %v9626_v42  ;;  %v1493_v59 = vcvt.s32.f32 %v1486_v4  ;;  %v1627_v32 = vor.u32 8388608, %v1626_v61 }
 0x12d   : > { %v931_v56 = vadd.f32 %v899_v63, %v734_v0  ;;  %v1632_v18 = vshrl.u32 %v1631_v37, 5  ;;  %v9671_v29 = vsel %vm7554_vm10, 0, %v7553_v49  ;;  %v7557_v28 = vadd.s32 4294967294, %v1271_v30  ;;  %v9685_v49 = vld [vmem:[%s13577_s3] ss:$0 sm:$0xff] }
 0x12e   : > { %v1634_v54 = vsub.s32 32, %v1633_v44  ;;  %v1636_v39 = vshll.u32 %v13598_v15, %v1633_v44  ;;  %v1639_v34 = vshll.u32 %v13605_v17, %v1633_v44  ;;  %v9669_v3 = vmul.f32 %v1493_v59, %v1491_v58 }
 0x12f   : > { %v1642_v33 = vshll.u32 %v13600_v19, %v1633_v44  ;;  %v1645_v47 = vshll.u32 %v13592_v21, %v1633_v44  ;;  %v1576_v38 = vadd.s32 536870912, %v9664_v25  ;;  %v9680_v7 = vshll.u32 %v1627_v32, 8 }
 0x130   : > { %v1637_v4 = vshrl.u32 %v13605_v17, %v1634_v54  ;;  %v1640_v63 = vshrl.u32 %v13600_v19, %v1634_v54  ;;  %v1643_v57 = vshrl.u32 %v13592_v21, %v1634_v54  ;;  %v1646_v61 = vshrl.u32 %v13596_v27, %v1634_v54  ;;  %v9698_v21 = vpop.permute.xlu0 %610 }
 0x131   : > { %v9688_v37 = vadd.f32 %v9685_v49, %v931_v56  ;;  %vm1406_vm11 = vcmp.eq.s32.totalorder %v9650_v45, 2  ;;  %vm13681_vm12 = vcmp.lt.s32.totalorder %v9233_v60, 0  ;;  %v1648_v30 = vshll.u32 %v13596_v27, %v1633_v44 }
 0x132   : > { %v1638_v58 = vor.u32 %v1637_v4, %v1636_v39  ;;  %v1641_v0 = vor.u32 %v1640_v63, %v1639_v34  ;;  %vm1651_vm13 = vcmp.lt.s32.totalorder %v1632_v18, 1  ;;  %vm1403_vm14 = vcmp.eq.s32.totalorder %v9650_v45, 0 }
 0x133   : > { %13830 = vst [vmem:[#allocation13_spill] sm:$0xff] %v9688_v37  ;;  %v1635_v59 = vshrl.u32 %v13598_v15, %v1634_v54  ;;  %v1644_v32 = vor.u32 %v1643_v57, %v1642_v33  ;;  %v1647_v2 = vor.u32 %v1646_v61, %v1645_v47  ;;  %v1649_v62 = vshrl.u32 %v13594_v35, %v1634_v54 }
 0x134   : > { %vm7558_vm15 = vcmp.lt.s32.totalorder %v7557_v28, 0  ;;  %v9696_v56 = vshrl.u32 %v1576_v38, 30  ;;  %vm1653_vm0 = vcmp.lt.s32.totalorder %v1632_v18, 3  ;;  %vm1654_vm1 = vcmp.lt.s32.totalorder %v1632_v18, 4 }
 0x135   : > { %v13832_v39 = vand.u32 2147483647, %v9233_v60  ;;  %v13833_v44 = vmov 0  ;;  %v1650_v34 = vor.u32 %v1649_v62, %v1648_v30  ;;  %vm1652_vm3 = vcmp.lt.s32.totalorder %v1632_v18, 2 }
 0x136   : > { %13831 = vst [vmem:[#allocation14_spill] sm:$0xff] %v9696_v56  ;;  %v1656_v4 = vsel %vm1654_vm1, %v1644_v32, 2102212464  ;;  %v1659_v33 = vsel %vm1651_vm13, %v1638_v58, %v1641_v0  ;;  %v1175_v54 = vsub.s32 4294967266, %v9671_v29  ;;  %v1660_v47 = vsel %vm1654_vm1, %v1647_v2, 920167782 }
 0x137   : > { %vm9702_vm2 = vcmp.le.f32.partialorder %v13832_v39, 0.7853982  ;;  %v1663_v38 = vsel %vm1651_vm13, %v1641_v0, %v1644_v32  ;;  %v1726_v63 = vand.u32 2139095040, %v9688_v37  ;;  %v1655_v57 = vsel %vm1651_vm13, %v1635_v59, %v1638_v58 }
 0x138   : > { %v13834_v44 = vsel %vm9702_vm2, 4294967295, %v13833_v44  ;;  %v1657_v61 = vsel %vm1653_vm0, %v1641_v0, %v1656_v4  ;;  %v1661_v39 = vsel %vm1653_vm0, %v1644_v32, %v1660_v47  ;;  %v1664_v35 = vsel %vm1654_vm1, %v1650_v34, 1326507024  ;;  %v616_v47 = vpop.permute.xlu0 %615 }
 0x139   : > { %13835 = vst [vmem:[#allocation15_spill] sm:$0xff] %v13834_v44  ;;  %vm13638_vm4 = vcmp.lt.s32.totalorder %v9246_v13, 0  ;;  %v9715_v62 = vsel %vm7558_vm15, 0, %v7557_v28  ;;  %v1578_v30 = vshll.u32 %v9696_v56, 30  ;;  %v1662_v27 = vsel %vm1652_vm3, %v1659_v33, %v1661_v39 }
 0x13a   : > { %v1665_v15 = vsel %vm1653_vm0, %v1647_v2, %v1664_v35  ;;  %v1171_v19 = vsub.s32 32, %v9671_v29  ;;  %v9723_v0 = vmul.u32.u64.low %v9680_v7, %v1662_v27  ;;  %v9724_v59 = vmul.u32.u64.high %v9680_v7, %v1662_v27, %v9723_v0 }
 0x13b   : > { %v1666_v58 = vsel %vm1652_vm3, %v1663_v38, %v1665_v15  ;;  %v1176_v32 = vadd.s32 127, %v1175_v54  ;;  %v1658_v34 = vsel %vm1652_vm3, %v1655_v57, %v1657_v61  ;;  %vm1402_vm5 = vcmp.lt.s32.totalorder %v9650_v45, 2 }
 0x13c   : > { %v9729_v28 = vmul.u32.u64.low %v9680_v7, %v1666_v58  ;;  %v9730_v4 = vmul.u32.u64.high %v9680_v7, %v1666_v58, %v9729_v28  ;;  %v1408_v15 = vsel %vm1406_vm11, %v1407_v31, %v9626_v42  ;;  %v1080_v27 = vsel %vm13681_vm12, %v1079_v6, %v9636_v20 }
 0x13d   : > { %v1279_v35 = vsub.s32 4294967266, %v9715_v62  ;;  %v1727_v2 = vshrl.u32 %v1726_v63, 23  ;;  %v1405_v18 = vsel %vm1403_vm14, %v9585_v51, %v1404_v48  ;;  %v1495_v33 = vxor.u32 2147483648, %v9669_v3 }
 0x13e   : > { %v1155_v31 = vadd.s32 %v9435_v10, %v9448_v41  ;;  %v9753_v54 = vsub.s32 %v9664_v25, %v1578_v30  ;;  %v1674_v38 = vmul.u32 %v9680_v7, %v1658_v34  ;;  %v1677_v20 = vadd.s32 1, %v9724_v59  ;;  %v606_v34 = vpop.permute.xlu1 %605 }
 0x13f   : > { %v7575_v6 = vadd.s32 4294967169, %v1727_v2  ;;  %v737_v63 = vmul.f32 %v9661_v26, %v616_v47  ;;  %v9761_v42 = vsel %vm9702_vm2, %v9233_v60, %v1080_v27  ;;  %v1177_v48 = vshll.u32 %v1176_v32, 23 }
 0x140   : > { %v1173_v51 = vshrl.u32 %v1155_v31, %v1171_v19  ;;  %v1259_v10 = vadd.s32 %v9527_v23, %v9523_v55  ;;  %v1275_v41 = vsub.s32 32, %v9715_v62  ;;  %v1280_v25 = vadd.s32 127, %v1279_v35 }
 0x141   : > { %vm1676_vm6 = vc.u32 %v9730_v4, %v9723_v0  ;;  %v1733_v7 = vadd.s32 1, %v7575_v6  ;;  %v1172_v57 = vshll.u32 %v9540_v11, %v9671_v29  ;;  %v1581_v61 = vsub.s32 0, %v9753_v54 }
 0x142   : > { %v1678_v39 = vsel %vm1676_vm6, %v1677_v20, %v9724_v59  ;;  %v13602_v19 = vand.u32 2147483647, %v9688_v37  ;;  %v1496_v55 = vsel %vm13638_vm4, %v1495_v33, %v9669_v3  ;;  %v934_v30 = vadd.f32 %v9622_v14, %v737_v63 }
 0x143   : > { %v1679_v23 = vadd.s32 %v1678_v39, %v1674_v38  ;;  %vm1734_vm7 = vcmp.gt.s32.totalorder %v1733_v7, 0  ;;  %v9777_v58 = vor.u32 %v1173_v51, %v1172_v57  ;;  %v9779_v32 = vor.u32 4788187, %v1177_v48 }
 0x144   : > { %v1276_v11 = vshll.u32 %v9589_v53, %v9715_v62  ;;  %v1735_v29 = vsel %vm1734_vm7, %v1733_v7, 0  ;;  %v1277_v59 = vshrl.u32 %v1259_v10, %v1275_v41  ;;  %v1281_v28 = vshll.u32 %v1280_v25, 23 }
 0x145   : > { %v1680_v47 = vadd.s32 536870912, %v1679_v23  ;;  %v1737_v27 = vand.u32 31, %v1735_v29  ;;  %v9785_v3 = vsel %vm1402_vm5, %v1405_v18, %v1408_v15  ;;  %v13836_v35 = vand.u32 2147483647, %v9246_v13 }
 0x146   : > { %v13837_v14 = vmov 0  ;;  %v7568_v2 = vmin.u32 %v1581_v61, %v9753_v54  ;;  %v1730_v53 = vand.u32 8388607, %v13602_v19  ;;  %8769 = vcosq.f32 %v9761_v42  ;;  %v794_v61 = vpop.permute.xlu1 %793 }
 0x147   : > { %vm9789_vm8 = vcmp.le.f32.partialorder %v13836_v35, 0.7853982  ;;  %v9797_v62 = vshrl.u32 %v1680_v47, 30  ;;  %v1738_v33 = vsub.s32 32, %v1737_v27  ;;  %v9800_v45 = vadd.f32 %v9685_v49, %v934_v30 }
 0x148   : > { %v13838_v14 = vsel %vm9789_vm8, 4294967295, %v13837_v14  ;;  %v9805_v15 = vsel %vm9789_vm8, %v9246_v13, %v1496_v55  ;;  %v1179_v18 = vand.u32 2147483647, %v9779_v32  ;;  %v1181_v31 = vcvt.s32.f32 %v9777_v58 }
 0x149   : > { %13839 = vst [vmem:[#allocation16_spill] sm:$0xff] %v13838_v14  ;;  %13840 = vst [vmem:[#allocation17_spill] sm:$0xff] %v9797_v62  ;;  %v1289_v38 = vsub.s32 4, %v9575_v1  ;;  %v9810_v20 = vor.u32 %v1277_v59, %v1276_v11  ;;  %v9812_v6 = vor.u32 4788187, %v1281_v28  ;;  %v1682_v63 = vshll.u32 %v9797_v62, 30 }
 0x14a   : > { %13841 = vst [vmem:[#allocation18_spill] sm:$0xff] %v9800_v45  ;;  %v1741_v51 = vshrl.u32 %v13605_v17, %v1738_v33  ;;  %v1583_v48 = vclz %v7568_v2  ;;  %v1731_v10 = vor.u32 8388608, %v1730_v53  ;;  %v13842_v41 = vmov 2131351028  }
 0x14b   : > { %v1744_v25 = vshrl.u32 %v13842_v41, %v1738_v33  ;;  %v13843_v7 = vmov 2102212464   ;;  %v13844_v39 = vmov 683565275   ;;  %v1743_v30 = vshll.u32 %v13605_v17, %v1737_v27 }
 0x14c   : > { %v1747_v57 = vshrl.u32 %v13843_v7, %v1738_v33  ;;  %v1740_v55 = vshll.u32 %v13844_v39, %v1737_v27  ;;  %v13845_v58 = vmov 920167782   ;;  %v2038_v11 = vand.u32 2139095040, %v9800_v45 }
 0x14d   : > { %v1750_v32 = vshrl.u32 %v13845_v58, %v1738_v33  ;;  %vm1205_vm9 = vcmp.lt.s32.totalorder %v9414_v36, 0  ;;  %v9823_v59 = vsub.s32 %v1679_v23, %v1682_v63  ;;  %v1736_v28 = vshrl.u32 %v1735_v29, 5 }
 0x14e   : > { %v1746_v47 = vshll.u32 %v13842_v41, %v1737_v27  ;;  %v1749_v35 = vshll.u32 %v13843_v7, %v1737_v27  ;;  %v1742_v2 = vor.u32 %v1741_v51, %v1740_v55  ;;  %v1745_v53 = vor.u32 %v1744_v25, %v1743_v30 }
 0x14f   : > { %v735_v19 = vmul.f32 %v9661_v26, %v606_v34  ;;  %v900_v62 = vmul.f32 %v9618_v5, %v794_v61  ;;  %v1752_v14 = vshll.u32 %v13845_v58, %v1737_v27  ;;  %v13846_v13 = vmov 1326507024  }
 0x150   : > { %v1748_v17 = vor.u32 %v1747_v57, %v1746_v47  ;;  %v1751_v56 = vor.u32 %v1750_v32, %v1749_v35  ;;  %v1753_v40 = vshrl.u32 %v13846_v13, %v1738_v33  ;;  %v13847_v23 = vand.u32 2147483647, %v9414_v36  ;;  %v9840_v27 = vpop.eup %8769 }
 0x151   : > { %v1283_v63 = vand.u32 2147483647, %v9812_v6  ;;  %v1285_v51 = vcvt.s32.f32 %v9810_v20  ;;  %v7569_v25 = vadd.s32 4294967294, %v1583_v48  ;;  %v1771_v34 = vshll.u32 %v1731_v10, 8  ;;  %13850 = vst [vmem:[#allocation19_spill] sm:$0xff] %v9840_v27 }
 0x152   : > { %vm9833_vm10 = vcmp.le.f32.partialorder %v13847_v23, 0.7853982  ;;  %v1685_v61 = vsub.s32 0, %v9823_v59  ;;  %v1754_v57 = vor.u32 %v1753_v40, %v1752_v14  ;;  %vm1755_vm11 = vcmp.lt.s32.totalorder %v1736_v28, 1 }
 0x153   : > { %v2039_v55 = vshrl.u32 %v2038_v11, 23  ;;  %vm1757_vm13 = vcmp.lt.s32.totalorder %v1736_v28, 3  ;;  %vm1758_vm14 = vcmp.lt.s32.totalorder %v1736_v28, 4  ;;  %v1763_v30 = vsel %vm1755_vm11, %v1742_v2, %v1745_v53 }
 0x154   : > { %v932_v32 = vadd.f32 %v900_v62, %v735_v19  ;;  %v1760_v47 = vsel %vm1758_vm14, %v1748_v17, 2102212464  ;;  %v1764_v35 = vsel %vm1758_vm14, %v1751_v56, 920167782  ;;  %v1767_v6 = vsel %vm1755_vm11, %v1745_v53, %v1748_v17 }
 0x155   : > { %v1768_v23 = vsel %vm1758_vm14, %v1754_v57, 1326507024  ;;  %v1739_v20 = vshrl.u32 %v13844_v39, %v1738_v33  ;;  %vm1756_vm15 = vcmp.lt.s32.totalorder %v1736_v28, 2  ;;  %v1765_v48 = vsel %vm1757_vm13, %v1748_v17, %v1764_v35 }
 0x156   : > { %v1769_v40 = vsel %vm1757_vm13, %v1751_v56, %v1768_v23  ;;  %v7572_v14 = vmin.u32 %v1685_v61, %v9823_v59  ;;  %v1766_v10 = vsel %vm1756_vm15, %v1763_v30, %v1765_v48  ;;  %v7587_v22 = vadd.s32 4294967169, %v2039_v55 }
 0x157   : > { %v1770_v11 = vsel %vm1756_vm15, %v1767_v6, %v1769_v40  ;;  %v1759_v19 = vsel %vm1755_vm11, %v1739_v20, %v1742_v2  ;;  %v1761_v62 = vsel %vm1757_vm13, %v1745_v53, %v1760_v47  ;;  %v9855_v33 = vmul.f32 %v1181_v31, %v1179_v18 }
 0x158   : > { %v9852_v27 = vmul.u32.u64.low %v1771_v34, %v1770_v11  ;;  %v9853_v57 = vmul.u32.u64.high %v1771_v34, %v1770_v11, %v9852_v27  ;;  %v9857_v44 = vmul.u32.u64.low %v1771_v34, %v1766_v10  ;;  %v9858_v17 = vmul.u32.u64.high %v1771_v34, %v1766_v10, %v9857_v44 }
 0x159   : > { %v2045_v56 = vadd.s32 1, %v7587_v22  ;;  %8771 = vsinq.f32 %v9761_v42  ;;  %v9865_v61 = vsel %vm1205_vm9, %v1289_v38, %v9575_v1  ;;  %v13618_v2 = vand.u32 2147483647, %v9800_v45 }
 0x15a   : > { %v9869_v53 = vadd.f32 %v9685_v49, %v932_v32  ;;  %8773 = vcosq.f32 %v9805_v15  ;;  %v1286_v18 = vmul.f32 %v1285_v51, %v1283_v63  ;;  %v1762_v31 = vsel %vm1756_vm15, %v1759_v19, %v1761_v62 }
 0x15b   : > { %vm2046_vm0 = vcmp.gt.s32.totalorder %v2045_v56, 0  ;;  %vm7570_vm1 = vcmp.lt.s32.totalorder %v7569_v25, 0  ;;  %v1687_v22 = vclz %v7572_v14  ;;  %vm1780_vm3 = vc.u32 %v9853_v57, %v9857_v44 }
 0x15c   : > { %13851 = vst [vmem:[#allocation20_spill] sm:$0xff] %v9869_v53  ;;  %v9877_v1 = vmul.f32 %v9661_v26, %v9698_v21  ;;  %v1781_v63 = vadd.s32 1, %v9858_v17  ;;  %v2047_v28 = vsel %vm2046_vm0, %v2045_v56, 0  ;;  %v1778_v51 = vmul.u32 %v1771_v34, %v1762_v31 }
 0x15d   : > { %v2042_v55 = vand.u32 8388607, %v13618_v2  ;;  %v2049_v27 = vand.u32 31, %v2047_v28  ;;  %v1830_v30 = vand.u32 2139095040, %v9869_v53  ;;  %v1287_v32 = vxor.u32 2147483648, %v1286_v18 }
 0x15e   : > { %v1571_v21 = vadd.s32 %v9601_v43, %v9613_v12  ;;  %v9889_v47 = vsel %vm7570_vm1, 0, %v7569_v25  ;;  %v1782_v35 = vsel %vm1780_vm3, %v1781_v63, %v9858_v17  ;;  %v7573_v6 = vadd.s32 4294967294, %v1687_v22 }
 0x15f   : > { %v1783_v23 = vadd.s32 %v1782_v35, %v1778_v51  ;;  %v2048_v20 = vshrl.u32 %v2047_v28, 5  ;;  %v2050_v48 = vsub.s32 32, %v2049_v27  ;;  %v2052_v34 = vshll.u32 %v13844_v39, %v2049_v27 }
 0x160   : > { %v13852_v40 = vmov 2475754826   ;;  %v2058_v10 = vshll.u32 %v13842_v41, %v2049_v27  ;;  %v2061_v11 = vshll.u32 %v13843_v7, %v2049_v27  ;;  %v2043_v62 = vor.u32 8388608, %v2042_v55 }
 0x161   : > { %v2055_v14 = vshll.u32 %v13852_v40, %v2049_v27  ;;  %v1784_v19 = vadd.s32 536870912, %v1783_v23  ;;  %v2053_v43 = vshrl.u32 %v13852_v40, %v2050_v48  ;;  %v1831_v12 = vshrl.u32 %v1830_v30, 23 }
 0x162   : > { %v2056_v25 = vshrl.u32 %v13842_v41, %v2050_v48  ;;  %v2059_v17 = vshrl.u32 %v13843_v7, %v2050_v48  ;;  %v2062_v56 = vshrl.u32 %v13845_v58, %v2050_v48  ;;  %v2064_v31 = vshll.u32 %v13845_v58, %v2049_v27 }
 0x163   : > { %v9901_v22 = vpop.eup %8771  ;;  %v9903_v63 = vshrl.u32 %v1784_v19, 30  ;;  %v2051_v28 = vshrl.u32 %v13844_v39, %v2050_v48  ;;  %v2054_v51 = vor.u32 %v2053_v43, %v2052_v34  ;;  %v2065_v55 = vshrl.u32 %v13846_v13, %v2050_v48 }
 0x164   : > { %13853 = vst [vmem:[#allocation21_spill] sm:$0xff] %v9901_v22  ;;  %v9907_v35 = vpop.eup %8773  ;;  %v2057_v30 = vor.u32 %v2056_v25, %v2055_v14  ;;  %v2060_v2 = vor.u32 %v2059_v17, %v2058_v10  ;;  %v2063_v38 = vor.u32 %v2062_v56, %v2061_v11  ;;  %vm2067_vm5 = vcmp.lt.s32.totalorder %v2048_v20, 1 }
 0x165   : > { %13854 = vst [vmem:[#allocation22_spill] sm:$0xff] %v9903_v63  ;;  %13855 = vst [vmem:[#allocation23_spill] sm:$0xff] %v9907_v35  ;;  %vm13680_vm6 = vcmp.lt.s32.totalorder %v9359_v9, 0  ;;  %v1288_v27 = vsel %vm1205_vm9, %v1287_v32, %v1286_v18  ;;  %v1786_v42 = vshll.u32 %v9903_v63, 30  ;;  %v2066_v19 = vor.u32 %v2065_v55, %v2064_v31  ;;  %v8699_v63 = vld [vmem:[%s9442_s14] sm:$0xff]  }
 0x166   : > { %v9913_v22 = vshll.u32 %v2043_v62, 8  ;;  %vm2068_vm7 = vcmp.lt.s32.totalorder %v2048_v20, 2  ;;  %vm2069_vm11 = vcmp.lt.s32.totalorder %v2048_v20, 3  ;;  %vm2070_vm13 = vcmp.lt.s32.totalorder %v2048_v20, 4 }
 0x167   : > { %v2075_v48 = vsel %vm2067_vm5, %v2054_v51, %v2057_v30  ;;  %v1587_v34 = vsub.s32 32, %v9889_v47  ;;  %v1591_v14 = vsub.s32 4294967266, %v9889_v47  ;;  %v2072_v10 = vsel %vm2070_vm13, %v2060_v2, 2102212464 }
 0x168   : > { %v2076_v18 = vsel %vm2070_vm13, %v2063_v38, 920167782  ;;  %vm7574_vm9 = vcmp.lt.s32.totalorder %v7573_v6, 0  ;;  %v2071_v32 = vsel %vm2067_vm5, %v2051_v28, %v2054_v51  ;;  %v7579_v62 = vadd.s32 4294967169, %v1831_v12 }
 0x169   : > { %v2077_v11 = vsel %vm2069_vm11, %v2060_v2, %v2076_v18  ;;  %v13856_v43 = vand.u32 2147483647, %v9359_v9  ;;  %v13857_v25 = vmov 0  ;;  %v9928_v17 = vsub.s32 %v1783_v23, %v1786_v42  ;;  %v8700_v42 = vld [vmem:[%s9442_s14 + $0x8] sm:$0xff]  }
 0x16a   : > { %v2073_v56 = vsel %vm2069_vm11, %v2057_v30, %v2072_v10  ;;  %v2078_v31 = vsel %vm2068_vm7, %v2075_v48, %v2077_v11  ;;  %v2079_v55 = vsel %vm2067_vm5, %v2057_v30, %v2060_v2  ;;  %v1588_v28 = vshll.u32 %v9753_v54, %v9889_v47  ;;  %v8701_v30 = vld [vmem:[%s9442_s14 + $0x10] sm:$0xff]  }
 0x16b   : > { %vm9924_vm14 = vcmp.le.f32.partialorder %v13856_v43, 0.7853982  ;;  %v2080_v12 = vsel %vm2070_vm13, %v2066_v19, 1326507024  ;;  %v9938_v51 = vmul.u32.u64.low %v9913_v22, %v2078_v31  ;;  %v9939_v18 = vmul.u32.u64.high %v9913_v22, %v2078_v31, %v9938_v51  ;;  %v798_v43 = vpop.permute.xlu1 %797 }
 0x16c   : > { %v13858_v25 = vsel %vm9924_vm14, 4294967295, %v13857_v25  ;;  %v1589_v23 = vshrl.u32 %v1571_v21, %v1587_v34  ;;  %v1592_v35 = vadd.s32 127, %v1591_v14  ;;  %v9944_v10 = vsel %vm7574_vm9, 0, %v7573_v6 }
 0x16d   : > { %13859 = vst [vmem:[#allocation24_spill] sm:$0xff] %v13858_v25  ;;  %v2081_v2 = vsel %vm2069_vm11, %v2063_v38, %v2080_v12  ;;  %v2074_v48 = vsel %vm2068_vm7, %v2071_v32, %v2073_v56  ;;  %v1837_v47 = vadd.s32 1, %v7579_v62  ;;  %vm13679_vm15 = vcmask 261120   ;;  %v8702_v12 = vld [vmem:[%s9442_s14 + $0x18] sm:$0xff]  }
 0x16e   : > { %v2082_v54 = vsel %vm2068_vm7, %v2079_v55, %v2081_v2  ;;  %v1789_v19 = vsub.s32 0, %v9928_v17  ;;  %v901_v21 = vmul.f32 %v9618_v5, %v798_v43  ;;  %8079 = vmatprep.mubr.msk.bf16.mxu0 %vm13679_vm15, %v8699_v63  ;;  %v13860_v38 = vxor.u32 2147483648, %v9855_v33 }
 0x16f   : > { %v9952_v11 = vmul.u32.u64.low %v9913_v22, %v2082_v54  ;;  %v9953_v31 = vmul.u32.u64.high %v9913_v22, %v2082_v54, %v9952_v11  ;;  %v1291_v20 = vsel %vm9833_vm10, %v9414_v36, %v1288_v27  ;;  %v2093_v34 = vadd.s32 1, %v9939_v18  ;;  %8080 = vmatmul.mubr.msk.bf16.vlgmr.msra.gmra.mrb[0].mxu0 %vm13679_vm15, %v8700_v42 }
 0x170   : > { %v1184_v6 = vsel %vm13680_vm6, %v13860_v38, %v9855_v33  ;;  %vm1838_vm0 = vcmp.gt.s32.totalorder %v1837_v47, 0  ;;  %v9967_v14 = vor.u32 %v1589_v23, %v1588_v28  ;;  %v1593_v5 = vshll.u32 %v1592_v35, 23  ;;  %8083 = vmatprep.mubr.msk.bf16.mxu0 %vm13679_vm15, %v8701_v30 }
 0x171   : > { %v2090_v63 = vmul.u32 %v9913_v22, %v2074_v48  ;;  %v1839_v32 = vsel %vm1838_vm0, %v1837_v47, 0  ;;  %v13861_v33 = vsel %vm9833_vm10, 0, %v9865_v61  ;;  %v1695_v27 = vsub.s32 4294967266, %v9944_v10 }
 0x172   : > { %v9975_v62 = vadd.s32 3, %v13861_v33  ;;  %v13623_v56 = vand.u32 2147483647, %v9869_v53  ;;  %v1841_v55 = vand.u32 31, %v1839_v32  ;;  %8775 = vcosq.f32 %v1291_v20 }
 0x173   : > { %v7576_v35 = vmin.u32 %v1789_v19, %v9928_v17  ;;  %vm2092_vm1 = vc.u32 %v9953_v31, %v9938_v51  ;;  %v933_v22 = vadd.f32 %v901_v21, %v9877_v1  ;;  %v9986_v29 = vsel %vm9924_vm14, %v9359_v9, %v1184_v6  ;;  %v8703_v1 = vld [vmem:[%s9442_s14 + $0x20] sm:$0xff]  }
 0x174   : > { %8777 = vsinq.f32 %v1291_v20  ;;  %v2094_v61 = vsel %vm2092_vm1, %v2093_v34, %v9939_v18  ;;  %v1842_v28 = vsub.s32 32, %v1841_v55  ;;  %v9990_v43 = vor.u32 4788187, %v1593_v5 }
 0x175   : > { %v9995_v23 = vadd.s32 %v9723_v0, %v9730_v4  ;;  %v2095_v2 = vadd.s32 %v2094_v61, %v2090_v63  ;;  %v9998_v30 = vadd.s32 127, %v1695_v27  ;;  %v1834_v48 = vand.u32 8388607, %v13623_v56 }
 0x176   : > { %v1845_v54 = vshrl.u32 %v13852_v40, %v1842_v28  ;;  %v1848_v18 = vshrl.u32 %v13842_v41, %v1842_v28  ;;  %v1791_v47 = vclz %v7576_v35  ;;  %v1844_v11 = vshll.u32 %v13844_v39, %v1841_v55 }
 0x177   : > { %v2096_v19 = vadd.s32 536870912, %v2095_v2  ;;  %v10006_v21 = vadd.f32 %v9685_v49, %v933_v22  ;;  %v1840_v0 = vshrl.u32 %v1839_v32, 5  ;;  %v1847_v4 = vshll.u32 %v13852_v40, %v1841_v55  ;;  %8084 = vmatmul.mubr.msk.bf16.gmra.mrb[4].mxu0 %vm13679_vm15, %v8702_v12 }
 0x178   : > { %v1850_v38 = vshll.u32 %v13842_v41, %v1841_v55  ;;  %v1851_v6 = vshrl.u32 %v13843_v7, %v1842_v28  ;;  %v1846_v34 = vor.u32 %v1845_v54, %v1844_v11  ;;  %v1853_v5 = vshll.u32 %v13843_v7, %v1841_v55  ;;  %8087 = vmatprep.mubr.msk.bf16.mxu0 %vm13679_vm15, %v8703_v1  ;;  %v10024_v1 = vpop.permute.xlu0 %630 }
 0x179   : > { %13862 = vst [vmem:[#allocation25_spill] sm:$0xff] %v10006_v21  ;;  %v10012_v20 = vshrl.u32 %v2096_v19, 30  ;;  %v1854_v63 = vshrl.u32 %v13845_v58, %v1842_v28  ;;  %v1849_v33 = vor.u32 %v1848_v18, %v1847_v4  ;;  %v1856_v27 = vshll.u32 %v13845_v58, %v1841_v55  ;;  %v8704_v18 = vld [vmem:[%s9442_s14 + $0x28] sm:$0xff]  }
 0x17a   : > { %v1852_v32 = vor.u32 %v1851_v6, %v1850_v38  ;;  %v1857_v35 = vshrl.u32 %v13846_v13, %v1842_v28  ;;  %v1595_v22 = vand.u32 2147483647, %v9990_v43  ;;  %v1691_v61 = vsub.s32 32, %v9944_v10 }
 0x17b   : > { %13863 = vst [vmem:[#allocation26_spill] sm:$0xff] %v10012_v20  ;;  %v1692_v12 = vshll.u32 %v9823_v59, %v9944_v10  ;;  %v1855_v54 = vor.u32 %v1854_v63, %v1853_v5  ;;  %v1697_v19 = vshll.u32 %v9998_v30, 23  ;;  %v7577_v11 = vadd.s32 4294967294, %v1791_v47 }
 0x17c   : > { %v1835_v56 = vor.u32 8388608, %v1834_v48  ;;  %v1858_v42 = vor.u32 %v1857_v35, %v1856_v27  ;;  %v10027_v4 = vpop.eup %8775  ;;  %v2098_v55 = vshll.u32 %v10012_v20, 30  ;;  %vm1859_vm10 = vcmp.lt.s32.totalorder %v1840_v0, 1 }
 0x17d   : > { %vm1862_vm3 = vcmp.lt.s32.totalorder %v1840_v0, 4  ;;  %v1934_v43 = vand.u32 2139095040, %v10006_v21  ;;  %vm1861_vm5 = vcmp.lt.s32.totalorder %v1840_v0, 3  ;;  %v1867_v10 = vsel %vm1859_vm10, %v1846_v34, %v1849_v33 }
 0x17e   : > { %v10031_v38 = vpop.eup %8777  ;;  %v1864_v59 = vsel %vm1862_vm3, %v1852_v32, 2102212464  ;;  %v1868_v30 = vsel %vm1862_vm3, %v1855_v54, 920167782  ;;  %v1843_v48 = vshrl.u32 %v13844_v39, %v1842_v28  ;;  %vm1860_vm7 = vcmp.lt.s32.totalorder %v1840_v0, 2 }
 0x17f   : > { %v1869_v47 = vsel %vm1861_vm5, %v1852_v32, %v1868_v30  ;;  %v1871_v6 = vsel %vm1859_vm10, %v1849_v33, %v1852_v32  ;;  %vm7578_vm11 = vcmp.lt.s32.totalorder %v7577_v11, 0  ;;  %v1872_v63 = vsel %vm1862_vm3, %v1858_v42, 1326507024  ;;  %8088 = vmatmul.mubr.msk.bf16.gmra.mrb[8].mxu0 %vm13679_vm15, %v8704_v18 }
 0x180   : > { %v1870_v5 = vsel %vm1860_vm7, %v1867_v10, %v1869_v47  ;;  %v1875_v27 = vshll.u32 %v1835_v56, 8  ;;  %v1863_v35 = vsel %vm1859_vm10, %v1843_v48, %v1846_v34  ;;  %v1865_v20 = vsel %vm1861_vm5, %v1849_v33, %v1864_v59  ;;  %v636_v10 = vpop.permute.xlu0 %635 }
 0x181   : > { %v1873_v25 = vsel %vm1861_vm5, %v1855_v54, %v1872_v63  ;;  %v1935_v9 = vshrl.u32 %v1934_v43, 23  ;;  %v10039_v60 = vsub.s32 %v2095_v2, %v2098_v55  ;;  %vm13637_vm13 = vcmp.lt.s32.totalorder %v9453_v50, 0  ;;  %v8705_v54 = vld [vmem:[%s9442_s14 + $0x30] sm:$0xff]   ;;  %v8706_v43 = vld [vmem:[%s9442_s14 + $0x38] sm:$0xff]  }
 0x182   : > { %v1874_v28 = vsel %vm1860_vm7, %v1871_v6, %v1873_v25  ;;  %v10042_v30 = vmul.u32.u64.low %v1875_v27, %v1870_v5  ;;  %v10043_v32 = vmul.u32.u64.high %v1875_v27, %v1870_v5, %v10042_v30  ;;  %v1693_v56 = vshrl.u32 %v9995_v23, %v1691_v61  ;;  %8091 = vmatprep.mubr.msk.bf16.mxu0 %vm13679_vm15, %v8705_v54 }
 0x183   : > { %v10048_v42 = vsel %vm7578_vm11, 0, %v7577_v11  ;;  %v10050_v34 = vmul.u32.u64.low %v1875_v27, %v1874_v28  ;;  %v10051_v33 = vmul.u32.u64.high %v1875_v27, %v1874_v28, %v10050_v34  ;;  %8779 = vsinq.f32 %v9805_v15 }
 0x184   : > { %v13864_v2 = vcvt.s32.f32 %v9967_v14  ;;  %v1866_v18 = vsel %vm1860_vm7, %v1863_v35, %v1865_v20  ;;  %v7583_v55 = vadd.s32 4294967169, %v1935_v9  ;;  %8781 = vcosq.f32 %v9986_v29 }
 0x185   : > { %v10061_v59 = vand.u32 3, %v9975_v62  ;;  %v1698_v23 = vor.u32 4788187, %v1697_v19  ;;  %v741_v61 = vmul.f32 %v9661_v26, %v636_v10  ;;  %v1799_v11 = vsub.s32 4294967266, %v10048_v42  ;;  %v8707_v10 = vld [vmem:[%s9442_s14 + $0x40] sm:$0xff]  }
 0x186   : > { %v1598_v25 = vmul.f32 %v13864_v2, %v1595_v22  ;;  %v2101_v15 = vsub.s32 0, %v10039_v60  ;;  %v1885_v14 = vadd.s32 1, %v10043_v32  ;;  %v1941_v0 = vadd.s32 1, %v7583_v55 }
 0x187   : > { %8783 = vsinq.f32 %v9986_v29  ;;  %v1694_v9 = vor.u32 %v1693_v56, %v1692_v12  ;;  %v1882_v20 = vmul.u32 %v1875_v27, %v1866_v18  ;;  %vm1884_vm9 = vc.u32 %v10051_v33, %v10042_v30  ;;  %8092 = vmatmul.mubr.msk.bf16.gmra.mrb[12].mxu0 %vm13679_vm15, %v8706_v43  ;;  %v8708_v43 = vld [vmem:[%s9442_s14 + $0x48] sm:$0xff]  }
 0x188   : > { %v1303_v62 = vxor.u32 2147483648, %v10027_v4  ;;  %v1599_v22 = vxor.u32 2147483648, %v1598_v25  ;;  %v1886_v19 = vsel %vm1884_vm9, %v1885_v14, %v10043_v32  ;;  %vm1942_vm0 = vcmp.gt.s32.totalorder %v1941_v0, 0  ;;  %8095 = vmatprep.mubr.msk.bf16.mxu0 %vm13679_vm15, %v8707_v10 }
 0x189   : > { %vm1302_vm1 = vcmp.eq.s32.totalorder %v10061_v59, 2  ;;  %v1699_v48 = vand.u32 2147483647, %v1698_v23  ;;  %v1887_v47 = vadd.s32 %v1886_v19, %v1882_v20  ;;  %v938_v29 = vadd.f32 %v9630_v52, %v741_v61 }
 0x18a   : > { %v1800_v12 = vadd.s32 127, %v1799_v11  ;;  %v7588_v6 = vmin.u32 %v2101_v15, %v10039_v60  ;;  %v13631_v5 = vand.u32 2147483647, %v10006_v21  ;;  %v1943_v63 = vsel %vm1942_vm0, %v1941_v0, 0 }
 0x18b   : > { %v1701_v35 = vcvt.s32.f32 %v1694_v9  ;;  %v1888_v28 = vadd.s32 536870912, %v1887_v47  ;;  %v10081_v32 = vmul.f32 %v9661_v26, %v10024_v1  ;;  %v10085_v56 = vsel %vm1302_vm1, %v1303_v62, %v10031_v38 }
 0x18c   : > { %v10089_v52 = vsel %vm13637_vm13, %v1599_v22, %v1598_v25  ;;  %v1779_v34 = vadd.s32 %v9857_v44, %v9853_v57  ;;  %v1945_v54 = vand.u32 31, %v1943_v63  ;;  %v1795_v18 = vsub.s32 32, %v10048_v42 }
 0x18d   : > { %v10093_v2 = vmul.f32 %v1701_v35, %v1699_v48  ;;  %v10096_v55 = vshrl.u32 %v1888_v28, 30  ;;  %v10099_v1 = vadd.f32 %v9685_v49, %v938_v29  ;;  %v10103_v23 = vpop.eup %8779  ;;  %v1801_v25 = vshll.u32 %v1800_v12, 23 }
 0x18e   : > { %13867 = vst [vmem:[#allocation29_spill] sm:$0xff] %v10103_v23  ;;  %v2103_v61 = vclz %v7588_v6  ;;  %v1938_v44 = vand.u32 8388607, %v13631_v5  ;;  %v1946_v57 = vsub.s32 32, %v1945_v54  ;;  %v10107_v11 = vpop.eup %8781  ;;  %v10110_v14 = vshrl.u32 %v1943_v63, 5 }
 0x18f   : > { %13865 = vst [vmem:[#allocation27_spill] sm:$0xff] %v10096_v55  ;;  %13866 = vst [vmem:[#allocation28_spill] sm:$0xff] %v10099_v1  ;;  %v1890_v15 = vshll.u32 %v10096_v55, 30  ;;  %v1948_v0 = vshll.u32 %v13844_v39, %v1945_v54  ;;  %v1951_v9 = vshll.u32 %v13852_v40, %v1945_v54  ;;  %v1954_v22 = vshll.u32 %v13842_v41, %v1945_v54 }
 0x190   : > { %13868 = vst [vmem:[#allocation30_spill] sm:$0xff] %v10107_v11  ;;  %v1949_v20 = vshrl.u32 %v13852_v40, %v1946_v57  ;;  %v1952_v62 = vshrl.u32 %v13842_v41, %v1946_v57  ;;  %v1955_v19 = vshrl.u32 %v13843_v7, %v1946_v57  ;;  %8096 = vmatmul.mubr.msk.bf16.gmra.mrb[16].mxu0 %vm13679_vm15, %v8708_v43  ;;  %v2454_v63 = vand.u32 2139095040, %v10099_v1 }
 0x191   : > { %v10119_v48 = vpop.eup %8783  ;;  %v1957_v29 = vshll.u32 %v13843_v7, %v1945_v54  ;;  %v1958_v12 = vshrl.u32 %v13845_v58, %v1946_v57  ;;  %v1960_v6 = vshll.u32 %v13845_v58, %v1945_v54  ;;  %v1961_v5 = vshrl.u32 %v13846_v13, %v1946_v57 }
 0x192   : > { %13869 = vst [vmem:[#allocation31_spill] sm:$0xff] %v10119_v48  ;;  %v1950_v35 = vor.u32 %v1949_v20, %v1948_v0  ;;  %v1953_v28 = vor.u32 %v1952_v62, %v1951_v9  ;;  %v1956_v10 = vor.u32 %v1955_v19, %v1954_v22  ;;  %vm1299_vm10 = vcmp.eq.s32.totalorder %v10061_v59, 0  ;;  %v10138_v62 = vpop.permute.xlu0 %650 }
 0x193   : > { %v1796_v43 = vshll.u32 %v9928_v17, %v10048_v42  ;;  %v1797_v27 = vshrl.u32 %v1779_v34, %v1795_v18  ;;  %v10129_v55 = vsub.s32 %v1887_v47, %v1890_v15  ;;  %v1959_v23 = vor.u32 %v1958_v12, %v1957_v29 }
 0x194   : > { %v13870_v11 = vand.u32 2147483647, %v9453_v50  ;;  %v13871_v54 = vmov 0  ;;  %v1802_v0 = vor.u32 4788187, %v1801_v25  ;;  %v1939_v9 = vor.u32 8388608, %v1938_v44 }
 0x195   : > { %v1962_v20 = vor.u32 %v1961_v5, %v1960_v6  ;;  %vm1963_vm5 = vcmp.lt.s32.totalorder %v10110_v14, 1  ;;  %v7589_v22 = vadd.s32 4294967294, %v2103_v61  ;;  %vm1966_vm7 = vcmp.lt.s32.totalorder %v10110_v14, 4 }
 0x196   : > { %vm10133_vm3 = vcmp.le.f32.partialorder %v13870_v11, 0.7853982  ;;  %v1971_v17 = vsel %vm1963_vm5, %v1950_v35, %v1953_v28  ;;  %v2455_v42 = vshrl.u32 %v2454_v63, 23  ;;  %vm1965_vm11 = vcmp.lt.s32.totalorder %v10110_v14, 3 }
 0x197   : > { %v13872_v54 = vsel %vm10133_vm3, 4294967295, %v13871_v54  ;;  %v1972_v47 = vsel %vm1966_vm7, %v1959_v23, 920167782  ;;  %v1975_v34 = vsel %vm1963_vm5, %v1953_v28, %v1956_v10  ;;  %v1976_v18 = vsel %vm1966_vm7, %v1962_v20, 1326507024 }
 0x198   : > { %13873 = vst [vmem:[#allocation32_spill] sm:$0xff] %v13872_v54  ;;  %v1893_v5 = vsub.s32 0, %v10129_v55  ;;  %vm1964_vm9 = vcmp.lt.s32.totalorder %v10110_v14, 2  ;;  %v1968_v25 = vsel %vm1966_vm7, %v1956_v10, 2102212464  ;;  %v1973_v61 = vsel %vm1965_vm11, %v1956_v10, %v1972_v47 }
 0x199   : > { %v1947_v44 = vshrl.u32 %v13844_v39, %v1946_v57  ;;  %v1974_v11 = vsel %vm1964_vm9, %v1971_v17, %v1973_v61  ;;  %v1977_v15 = vsel %vm1965_vm11, %v1959_v23, %v1976_v18  ;;  %v1979_v19 = vshll.u32 %v1939_v9, 8  ;;  %v656_v17 = vpop.permute.xlu0 %655 }
 0x19a   : > { %v1798_v29 = vor.u32 %v1797_v27, %v1796_v43  ;;  %vm7590_vm0 = vcmp.lt.s32.totalorder %v7589_v22, 0  ;;  %v1978_v12 = vsel %vm1964_vm9, %v1975_v34, %v1977_v15  ;;  %v7603_v6 = vadd.s32 4294967169, %v2455_v42 }
 0x19b   : > { %v1967_v63 = vsel %vm1963_vm5, %v1947_v44, %v1950_v35  ;;  %v1969_v10 = vsel %vm1965_vm11, %v1953_v28, %v1968_v25  ;;  %v10161_v57 = vmul.u32.u64.low %v1979_v19, %v1978_v12  ;;  %v10162_v20 = vmul.u32.u64.high %v1979_v19, %v1978_v12, %v10161_v57 }
 0x19c   : > { %v7580_v47 = vmin.u32 %v1893_v5, %v10129_v55  ;;  %v10165_v23 = vmul.u32.u64.low %v1979_v19, %v1974_v11  ;;  %v10166_v9 = vmul.u32.u64.high %v1979_v19, %v1974_v11, %v10165_v23  ;;  %v2461_v27 = vadd.s32 1, %v7603_v6 }
 0x19d   : > { %v13874_v43 = vxor.u32 2147483648, %v10031_v38  ;;  %v1803_v42 = vand.u32 2147483647, %v1802_v0  ;;  %v10176_v28 = vsel %vm7590_vm0, 0, %v7589_v22  ;;  %v13636_v34 = vand.u32 2147483647, %v10099_v1 }
 0x19e   : > { %v10183_v18 = vsel %vm10133_vm3, %v9453_v50, %v10089_v52  ;;  %v1970_v5 = vsel %vm1964_vm9, %v1967_v63, %v1969_v10  ;;  %vm2462_vm1 = vcmp.gt.s32.totalorder %v2461_v27, 0  ;;  %v745_v38 = vmul.f32 %v9661_v26, %v656_v17 }
 0x19f   : > { %v10174_v35 = vsel %vm1299_vm10, %v10027_v4, %v13874_v43  ;;  %v1805_v25 = vcvt.s32.f32 %v1798_v29  ;;  %vm1988_vm10 = vc.u32 %v10162_v20, %v10165_v23  ;;  %v2463_v0 = vsel %vm2462_vm1, %v2461_v27, 0 }
 0x1a0   : > { %v10193_v22 = vadd.s32 %v9938_v51, %v9953_v31  ;;  %v2111_v52 = vsub.s32 4294967266, %v10176_v28  ;;  %v1895_v61 = vclz %v7580_v47  ;;  %v1989_v14 = vadd.s32 1, %v10166_v9 }
 0x1a1   : > { %v10197_v44 = vmul.f32 %v1805_v25, %v1803_v42  ;;  %v1986_v11 = vmul.u32 %v1979_v19, %v1970_v5  ;;  %v2458_v26 = vand.u32 8388607, %v13636_v34  ;;  %v2465_v15 = vand.u32 31, %v2463_v0 }
 0x1a2   : > { %v1990_v12 = vsel %vm1988_vm10, %v1989_v14, %v10166_v9  ;;  %v2464_v6 = vshrl.u32 %v2463_v0, 5  ;;  %v942_v51 = vadd.f32 %v9654_v24, %v745_v38  ;;  %v10208_v17 = vadd.s32 127, %v2111_v52  ;;  %v621_v0 = vpop.permute.xlu1 %620 }
 0x1a3   : > { %v10204_v31 = vadd.s32 %v1990_v12, %v1986_v11  ;;  %v2466_v63 = vsub.s32 32, %v2465_v15  ;;  %v2468_v10 = vshll.u32 %v13844_v39, %v2465_v15  ;;  %v2471_v57 = vshll.u32 %v13852_v40, %v2465_v15 }
 0x1a4   : > { %v7581_v19 = vadd.s32 4294967294, %v1895_v61  ;;  %v2474_v47 = vshll.u32 %v13842_v41, %v2465_v15  ;;  %v2477_v27 = vshll.u32 %v13843_v7, %v2465_v15  ;;  %v2459_v9 = vor.u32 8388608, %v2458_v26 }
 0x1a5   : > { %v1992_v43 = vadd.s32 536870912, %v10204_v31  ;;  %v2469_v42 = vshrl.u32 %v13852_v40, %v2466_v63  ;;  %v2472_v24 = vshrl.u32 %v13842_v41, %v2466_v63  ;;  %v2475_v5 = vshrl.u32 %v13843_v7, %v2466_v63 }
 0x1a6   : > { %v2478_v38 = vshrl.u32 %v13845_v58, %v2466_v63  ;;  %v2480_v25 = vshll.u32 %v13845_v58, %v2465_v15  ;;  %vm2483_vm5 = vcmp.lt.s32.totalorder %v2464_v6, 1  ;;  %vm13664_vm7 = vcmp.lt.s32.totalorder %v9563_v8, 0 }
 0x1a7   : > { %v2467_v52 = vshrl.u32 %v13844_v39, %v2466_v63  ;;  %v2470_v61 = vor.u32 %v2469_v42, %v2468_v10  ;;  %v2473_v14 = vor.u32 %v2472_v24, %v2471_v57  ;;  %v2481_v11 = vshrl.u32 %v13846_v13, %v2466_v63 }
 0x1a8   : > { %vm7582_vm11 = vcmp.lt.s32.totalorder %v7581_v19, 0  ;;  %v2476_v26 = vor.u32 %v2475_v5, %v2474_v47  ;;  %v2479_v12 = vor.u32 %v2478_v38, %v2477_v27  ;;  %v10222_v34 = vadd.f32 %v9685_v49, %v942_v51  ;;  %v806_v38 = vpop.permute.xlu1 %805 }
 0x1a9   : > { %v10224_v29 = vshrl.u32 %v1992_v43, 30  ;;  %v2482_v4 = vor.u32 %v2481_v11, %v2480_v25  ;;  %vm2485_vm9 = vcmp.lt.s32.totalorder %v2464_v6, 3  ;;  %vm2486_vm0 = vcmp.lt.s32.totalorder %v2464_v6, 4 }
 0x1aa   : > { %13875 = vst [vmem:[#allocation33_spill] sm:$0xff] %v10222_v34  ;;  %vm13663_vm1 = vcmp.lt.s32.totalorder %v9688_v37, 0  ;;  %vm2484_vm10 = vcmp.lt.s32.totalorder %v2464_v6, 2  ;;  %v2488_v15 = vsel %vm2486_vm0, %v2476_v26, 2102212464  ;;  %v2491_v10 = vsel %vm2483_vm5, %v2470_v61, %v2473_v14 }
 0x1ab   : > { %13876 = vst [vmem:[#allocation34_spill] sm:$0xff] %v10224_v29  ;;  %v2499_v57 = vshll.u32 %v2459_v9, 8  ;;  %v2487_v63 = vsel %vm2483_vm5, %v2467_v52, %v2470_v61  ;;  %v2489_v47 = vsel %vm2485_vm9, %v2473_v14, %v2488_v15  ;;  %v2492_v27 = vsel %vm2486_vm0, %v2479_v12, 920167782 }
 0x1ac   : > { %v2495_v49 = vsel %vm2483_vm5, %v2473_v14, %v2476_v26  ;;  %v13877_v51 = vand.u32 2147483647, %v9563_v8  ;;  %v13878_v43 = vmov 0  ;;  %v2113_v42 = vshll.u32 %v10208_v17, 23 }
 0x1ad   : > { %v2493_v24 = vsel %vm2485_vm9, %v2476_v26, %v2492_v27  ;;  %v2496_v5 = vsel %vm2486_vm0, %v2482_v4, 1326507024  ;;  %v2870_v9 = vand.u32 2139095040, %v10222_v34  ;;  %v13881_v25 = vand.u32 2147483647, %v9688_v37 }
 0x1ae   : > { %vm10233_vm13 = vcmp.le.f32.partialorder %v13877_v51, 0.7853982  ;;  %v13882_v52 = vmov 0  ;;  %v10247_v61 = vsel %vm7582_vm11, 0, %v7581_v19  ;;  %v1994_v14 = vshll.u32 %v10224_v29, 30 }
 0x1af   : > { %v13879_v43 = vsel %vm10233_vm13, 4294967295, %v13878_v43  ;;  %vm10242_vm4 = vcmp.le.f32.partialorder %v13881_v25, 0.7853982  ;;  %v2494_v17 = vsel %vm2484_vm10, %v2491_v10, %v2493_v24  ;;  %v2497_v11 = vsel %vm2485_vm9, %v2479_v12, %v2496_v5  ;;  %v10266_v12 = vld [vmem:[%s13576_s2 + $0x1] ss:$0 sm:$0xff]  ;;  %v8709_v5 = vld [vmem:[%s9442_s14 + $0x50] sm:$0xff]  }
 0x1b0   : > { %13880 = vst [vmem:[#allocation35_spill] sm:$0xff] %v13879_v43  ;;  %v13883_v52 = vsel %vm10242_vm4, 4294967295, %v13882_v52  ;;  %v2490_v4 = vsel %vm2484_vm10, %v2487_v63, %v2489_v47  ;;  %v2498_v26 = vsel %vm2484_vm10, %v2495_v49, %v2497_v11  ;;  %vm1298_vm5 = vcmp.lt.s32.totalorder %v10061_v59, 2  ;;  %8099 = vmatprep.mubr.msk.bf16.mxu0 %vm13679_vm15, %v8709_v5 }
 0x1b1   : > { %13884 = vst [vmem:[#allocation36_spill] sm:$0xff] %v13883_v52  ;;  %v10254_v15 = vmul.u32.u64.low %v2499_v57, %v2494_v17  ;;  %v10255_v27 = vmul.u32.u64.high %v2499_v57, %v2494_v17, %v10254_v15  ;;  %v1807_v19 = vxor.u32 2147483648, %v10197_v44  ;;  %v903_v6 = vmul.f32 %v10266_v12, %v806_v38 }
 0x1b2   : > { %v10260_v51 = vmul.u32.u64.low %v2499_v57, %v2498_v26  ;;  %v10261_v25 = vmul.u32.u64.high %v2499_v57, %v2498_v26, %v10260_v51  ;;  %8785 = vcosq.f32 %v10183_v18  ;;  %v13885_v10 = vxor.u32 2147483648, %v10093_v2  ;;  %v10285_v26 = vld [vmem:[%s13576_s2] ss:$0 sm:$0xff] }
 0x1b3   : > { %v13886_v47 = vsub.s32 32, %v10176_v28  ;;  %v2871_v24 = vshrl.u32 %v2870_v9, 23  ;;  %v2108_v17 = vshll.u32 %v10039_v60, %v10176_v28  ;;  %v1903_v11 = vsub.s32 4294967266, %v10247_v61 }
 0x1b4   : > { %v1704_v63 = vsel %vm13664_vm7, %v13885_v10, %v10093_v2  ;;  %v2506_v38 = vmul.u32 %v2499_v57, %v2490_v4  ;;  %v738_v51 = vmul.f32 %v10285_v26, %v621_v0  ;;  %v8710_v2 = vld [vmem:[%s9442_s14 + $0x58] sm:$0xff]   ;;  %v2114_v10 = vor.u32 4788187, %v2113_v42 }
 0x1b5   : > { %v2109_v49 = vshrl.u32 %v10193_v22, %v13886_v47  ;;  %v10290_v29 = vsub.s32 %v10204_v31, %v1994_v14  ;;  %v2509_v22 = vadd.s32 1, %v10255_v27  ;;  %v7619_v9 = vadd.s32 4294967169, %v2871_v24  ;;  %8100 = vmatmul.mubr.msk.bf16.gmra.mrb[20].mxu0 %vm13679_vm15, %v8710_v2 }
 0x1b6   : > { %v1808_v60 = vsel %vm13663_vm1, %v1807_v19, %v10197_v44  ;;  %v1899_v28 = vsub.s32 32, %v10247_v61  ;;  %vm2508_vm11 = vc.u32 %v10261_v25, %v10254_v15  ;;  %v935_v0 = vadd.f32 %v903_v6, %v738_v51 }
 0x1b7   : > { %8787 = vsinq.f32 %v10183_v18  ;;  %v2110_v31 = vor.u32 %v2109_v49, %v2108_v17  ;;  %v2510_v57 = vsel %vm2508_vm11, %v2509_v22, %v10255_v27  ;;  %v2877_v42 = vadd.s32 1, %v7619_v9 }
 0x1b8   : > { %v1707_v14 = vsel %vm10233_vm13, %v9563_v8, %v1704_v63  ;;  %v1883_v44 = vadd.s32 %v10042_v30, %v10051_v33  ;;  %v1904_v4 = vadd.s32 127, %v1903_v11  ;;  %v2511_v19 = vadd.s32 %v2510_v57, %v2506_v38  ;;  %v10318_v63 = vld [vmem:[%s13577_s3] ss:$0 sm:$0xff] }
 0x1b9   : > { %v10311_v6 = vsel %vm10242_vm4, %v9688_v37, %v1808_v60  ;;  %v2115_v47 = vand.u32 2147483647, %v2114_v10  ;;  %v1997_v18 = vsub.s32 0, %v10290_v29  ;;  %vm2878_vm9 = vcmp.gt.s32.totalorder %v2877_v42, 0 }
 0x1ba   : > { %v1901_v27 = vshrl.u32 %v1883_v44, %v1899_v28  ;;  %v2512_v49 = vadd.s32 536870912, %v2511_v19  ;;  %v13641_v24 = vand.u32 2147483647, %v10222_v34  ;;  %v10321_v30 = vadd.f32 %v10318_v63, %v935_v0 }
 0x1bb   : > { %v10327_v33 = vsel %vm1298_vm5, %v10174_v35, %v10085_v56  ;;  %8789 = vcosq.f32 %v1707_v14  ;;  %v2117_v5 = vcvt.s32.f32 %v2110_v31  ;;  %v2879_v17 = vsel %vm2878_vm9, %v2877_v42, 0 }
 0x1bc   : > { %13887 = vst [vmem:[#allocation37_spill] sm:$0xff] %v10321_v30  ;;  %8791 = vsinq.f32 %v1707_v14  ;;  %v1900_v11 = vshll.u32 %v10129_v55, %v10247_v61  ;;  %v1905_v38 = vshll.u32 %v1904_v4, 23  ;;  %v10331_v51 = vshrl.u32 %v2512_v49, 30  ;;  %v10333_v2 = vpop.eup %8785 }
 0x1bd   : > { %13889 = vst [vmem:[#allocation39_spill] sm:$0xff] %v10333_v2  ;;  %8793 = vcosq.f32 %v10311_v6  ;;  %v10336_v10 = vmul.f32 %v2117_v5, %v2115_v47  ;;  %v7584_v59 = vmin.u32 %v1997_v18, %v10290_v29  ;;  %v2881_v56 = vand.u32 31, %v2879_v17 }
 0x1be   : > { %13888 = vst [vmem:[#allocation38_spill] sm:$0xff] %v10331_v51  ;;  %v10339_v35 = vor.u32 %v1901_v27, %v1900_v11  ;;  %v2514_v22 = vshll.u32 %v10331_v51, 30  ;;  %v2874_v9 = vand.u32 8388607, %v13641_v24  ;;  %v2142_v55 = vand.u32 2139095040, %v10321_v30  ;;  %v626_v51 = vpop.permute.xlu1 %625 }
 0x1bf   : > { %v2882_v61 = vsub.s32 32, %v2881_v56  ;;  %v2884_v60 = vshll.u32 %v13844_v39, %v2881_v56  ;;  %v2887_v28 = vshll.u32 %v13852_v40, %v2881_v56  ;;  %v2890_v0 = vshll.u32 %v13842_v41, %v2881_v56 }
 0x1c0   : > { %v10348_v31 = vor.u32 4788187, %v1905_v38  ;;  %v10350_v57 = vsub.s32 %v2511_v19, %v2514_v22  ;;  %v10352_v42 = vshrl.u32 %v2879_v17, 5  ;;  %v2893_v14 = vshll.u32 %v13843_v7, %v2881_v56 }
 0x1c1   : > { %v10355_v44 = vpop.eup %8787  ;;  %v1999_v4 = vclz %v7584_v59  ;;  %v2885_v47 = vshrl.u32 %v13852_v40, %v2882_v61  ;;  %v2888_v18 = vshrl.u32 %v13842_v41, %v2882_v61  ;;  %v2891_v27 = vshrl.u32 %v13843_v7, %v2882_v61 }
 0x1c2   : > { %13890 = vst [vmem:[#allocation40_spill] sm:$0xff] %v10355_v44  ;;  %v2875_v49 = vor.u32 8388608, %v2874_v9  ;;  %v2894_v5 = vshrl.u32 %v13845_v58, %v2882_v61  ;;  %v2896_v11 = vshll.u32 %v13845_v58, %v2881_v56  ;;  %v2143_v19 = vshrl.u32 %v2142_v55, 23 }
 0x1c3   : > { %v2886_v38 = vor.u32 %v2885_v47, %v2884_v60  ;;  %v2889_v17 = vor.u32 %v2888_v18, %v2887_v28  ;;  %v2892_v22 = vor.u32 %v2891_v27, %v2890_v0  ;;  %v2897_v24 = vshrl.u32 %v13846_v13, %v2882_v61  ;;  %v10380_v18 = vpop.permute.xlu0 %670 }
 0x1c4   : > { %v2517_v59 = vsub.s32 0, %v10350_v57  ;;  %v2895_v52 = vor.u32 %v2894_v5, %v2893_v14  ;;  %vm2899_vm0 = vcmp.lt.s32.totalorder %v10352_v42, 1  ;;  %v7585_v9 = vadd.s32 4294967294, %v1999_v4  ;;  %13894 = vst [vmem:[#allocation44_spill] sm:$0xff] %v10380_v18 }
 0x1c5   : > { %v10366_v43 = vpop.eup %8789  ;;  %v2898_v8 = vor.u32 %v2897_v24, %v2896_v11  ;;  %vm2901_vm10 = vcmp.lt.s32.totalorder %v10352_v42, 3  ;;  %vm2902_vm5 = vcmp.lt.s32.totalorder %v10352_v42, 4  ;;  %v2883_v55 = vshrl.u32 %v13844_v39, %v2882_v61 }
 0x1c6   : > { %13891 = vst [vmem:[#allocation41_spill] sm:$0xff] %v10366_v43  ;;  %v10370_v56 = vpop.eup %8791  ;;  %vm2900_vm11 = vcmp.lt.s32.totalorder %v10352_v42, 2  ;;  %v2915_v60 = vshll.u32 %v2875_v49, 8  ;;  %v7591_v28 = vadd.s32 4294967169, %v2143_v19  ;;  %v2907_v14 = vsel %vm2899_vm0, %v2886_v38, %v2889_v17 }
 0x1c7   : > { %13892 = vst [vmem:[#allocation42_spill] sm:$0xff] %v10370_v56  ;;  %v10374_v0 = vpop.eup %8793  ;;  %v2908_v47 = vsel %vm2902_vm5, %v2895_v52, 920167782  ;;  %v2911_v24 = vsel %vm2899_vm0, %v2889_v17, %v2892_v22  ;;  %v2912_v4 = vsel %vm2902_vm5, %v2898_v8, 1326507024  ;;  %v7604_v61 = vmin.u32 %v2517_v59, %v10350_v57 }
 0x1c8   : > { %13893 = vst [vmem:[#allocation43_spill] sm:$0xff] %v10374_v0  ;;  %v2904_v5 = vsel %vm2902_vm5, %v2892_v22, 2102212464  ;;  %v2909_v49 = vsel %vm2901_vm10, %v2892_v22, %v2908_v47  ;;  %v1907_v11 = vand.u32 2147483647, %v10348_v31  ;;  %v1909_v19 = vcvt.s32.f32 %v10339_v35  ;;  %v810_v0 = vpop.permute.xlu1 %809 }
 0x1c9   : > { %vm7586_vm9 = vcmp.lt.s32.totalorder %v7585_v9, 0  ;;  %v2913_v37 = vsel %vm2901_vm10, %v2895_v52, %v2912_v4  ;;  %v2910_v8 = vsel %vm2900_vm11, %v2907_v14, %v2909_v49  ;;  %v13895_v59 = vand.u32 2147483647, %v10321_v30 }
 0x1ca   : > { %v2914_v27 = vsel %vm2900_vm11, %v2911_v24, %v2913_v37  ;;  %v2149_v56 = vadd.s32 1, %v7591_v28  ;;  %v2903_v31 = vsel %vm2899_vm0, %v2883_v55, %v2886_v38  ;;  %v2905_v35 = vsel %vm2901_vm10, %v2889_v17, %v2904_v5  ;;  %v676_v55 = vpop.permute.xlu0 %675 }
 0x1cb   : > { %v2146_v43 = vand.u32 8388607, %v13895_v59  ;;  %v10400_v22 = vmul.u32.u64.low %v2915_v60, %v2914_v27  ;;  %v10401_v47 = vmul.u32.u64.high %v2915_v60, %v2914_v27, %v10400_v22  ;;  %v10403_v52 = vsel %vm7586_vm9, 0, %v7585_v9 }
 0x1cc   : > { %v2519_v4 = vclz %v7604_v61  ;;  %vm2150_vm5 = vcmp.gt.s32.totalorder %v2149_v56, 0  ;;  %v904_v14 = vmul.f32 %v10266_v12, %v810_v0  ;;  %v1987_v37 = vadd.s32 %v10165_v23, %v10162_v20 }
 0x1cd   : > { %v10408_v24 = vmul.u32.u64.low %v2915_v60, %v2910_v8  ;;  %v10409_v28 = vmul.u32.u64.high %v2915_v60, %v2910_v8, %v10408_v24  ;;  %v2151_v38 = vsel %vm2150_vm5, %v2149_v56, 0  ;;  %v10412_v49 = vmul.f32 %v1909_v19, %v1907_v11 }
 0x1ce   : > { %v2906_v17 = vsel %vm2900_vm11, %v2903_v31, %v2905_v35  ;;  %v2153_v9 = vand.u32 31, %v2151_v38  ;;  %v739_v27 = vmul.f32 %v10285_v26, %v626_v51  ;;  %v2003_v61 = vsub.s32 32, %v10403_v52 }
 0x1cf   : > { %v2007_v0 = vsub.s32 4294967266, %v10403_v52  ;;  %v2147_v5 = vor.u32 8388608, %v2146_v43  ;;  %v10420_v20 = vmul.f32 %v10285_v26, %v676_v55  ;;  %v7605_v23 = vadd.s32 4294967294, %v2519_v4 }
 0x1d0   : > { %vm2924_vm0 = vc.u32 %v10401_v47, %v10408_v24  ;;  %v2154_v56 = vsub.s32 32, %v2153_v9  ;;  %v936_v11 = vadd.f32 %v904_v14, %v739_v27  ;;  %v2922_v19 = vmul.u32 %v2915_v60, %v2906_v17 }
 0x1d1   : > { %v2925_v42 = vadd.s32 1, %v10409_v28  ;;  %v10425_v8 = vshrl.u32 %v2151_v38, 5  ;;  %v2156_v51 = vshll.u32 %v13844_v39, %v2153_v9  ;;  %v2159_v43 = vshll.u32 %v13852_v40, %v2153_v9  ;;  %v850_v38 = vpop.permute.xlu0 %849 }
 0x1d2   : > { %v2157_v59 = vshrl.u32 %v13852_v40, %v2154_v56  ;;  %v2162_v31 = vshll.u32 %v13842_v41, %v2153_v9  ;;  %v2165_v35 = vshll.u32 %v13843_v7, %v2153_v9  ;;  %v2160_v4 = vshrl.u32 %v13842_v41, %v2154_v56 }
 0x1d3   : > { %v2926_v22 = vsel %vm2924_vm0, %v2925_v42, %v10409_v28  ;;  %v2163_v60 = vshrl.u32 %v13843_v7, %v2154_v56  ;;  %v2166_v14 = vshrl.u32 %v13845_v58, %v2154_v56  ;;  %vm7606_vm10 = vcmp.lt.s32.totalorder %v7605_v23, 0 }
 0x1d4   : > { %v2927_v55 = vadd.s32 %v2926_v22, %v2922_v19  ;;  %v2158_v17 = vor.u32 %v2157_v59, %v2156_v51  ;;  %v2168_v27 = vshll.u32 %v13845_v58, %v2153_v9  ;;  %v2161_v2 = vor.u32 %v2160_v4, %v2159_v43 }
 0x1d5   : > { %v2164_v44 = vor.u32 %v2163_v60, %v2162_v31  ;;  %v2167_v54 = vor.u32 %v2166_v14, %v2165_v35  ;;  %v2169_v50 = vshrl.u32 %v13846_v13, %v2154_v56  ;;  %vm13670_vm11 = vcmp.lt.s32.totalorder %v9800_v45, 0 }
 0x1d6   : > { %v2005_v28 = vshrl.u32 %v1987_v37, %v2003_v61  ;;  %v2008_v42 = vadd.s32 127, %v2007_v0  ;;  %v2928_v48 = vadd.s32 536870912, %v2927_v55  ;;  %v914_v16 = vmul.f32 %v10266_v12, %v850_v38 }
 0x1d7   : > { %v2170_v30 = vor.u32 %v2169_v50, %v2168_v27  ;;  %vm2171_vm9 = vcmp.lt.s32.totalorder %v10425_v8, 1  ;;  %v2187_v18 = vshll.u32 %v2147_v5, 8  ;;  %v10442_v19 = vadd.f32 %v10318_v63, %v936_v11 }
 0x1d8   : > { %v10445_v9 = vsel %vm7606_vm10, 0, %v7605_v23  ;;  %v10447_v51 = vshrl.u32 %v2928_v48, 30  ;;  %vm2174_vm5 = vcmp.lt.s32.totalorder %v10425_v8, 4  ;;  %v2179_v37 = vsel %vm2171_vm9, %v2158_v17, %v2161_v2 }
 0x1d9   : > { %13896 = vst [vmem:[#allocation45_spill] sm:$0xff] %v10442_v19  ;;  %vm2173_vm0 = vcmp.lt.s32.totalorder %v10425_v8, 3  ;;  %v2180_v61 = vsel %vm2174_vm5, %v2167_v54, 920167782  ;;  %v2183_v50 = vsel %vm2171_vm9, %v2161_v2, %v2164_v44  ;;  %v2184_v0 = vsel %vm2174_vm5, %v2170_v30, 1326507024 }
 0x1da   : > { %13897 = vst [vmem:[#allocation46_spill] sm:$0xff] %v10447_v51  ;;  %v13898_v5 = vand.u32 2147483647, %v9800_v45  ;;  %v13899_v11 = vmov 0  ;;  %vm13671_vm10 = vcmp.lt.s32.totalorder %v9869_v53, 0  ;;  %v2930_v48 = vshll.u32 %v10447_v51, 30 }
 0x1db   : > { %vm2172_vm7 = vcmp.lt.s32.totalorder %v10425_v8, 2  ;;  %v2176_v23 = vsel %vm2174_vm5, %v2164_v44, 2102212464  ;;  %v2181_v59 = vsel %vm2173_vm0, %v2164_v44, %v2180_v61  ;;  %v2009_v43 = vshll.u32 %v2008_v42, 23 }
 0x1dc   : > { %vm10457_vm1 = vcmp.le.f32.partialorder %v13898_v5, 0.7853982  ;;  %v2155_v31 = vshrl.u32 %v13844_v39, %v2154_v56  ;;  %v2182_v30 = vsel %vm2172_vm7, %v2179_v37, %v2181_v59  ;;  %v2185_v35 = vsel %vm2173_vm0, %v2167_v54, %v2184_v0 }
 0x1dd   : > { %v13900_v11 = vsel %vm10457_vm1, 4294967295, %v13899_v11  ;;  %v2527_v22 = vsub.s32 4294967266, %v10445_v9  ;;  %v10472_v4 = vsub.s32 %v2927_v55, %v2930_v48  ;;  %v2186_v60 = vsel %vm2172_vm7, %v2183_v50, %v2185_v35 }
 0x1de   : > { %13901 = vst [vmem:[#allocation47_spill] sm:$0xff] %v13900_v11  ;;  %v2246_v14 = vand.u32 2139095040, %v10442_v19  ;;  %v2175_v44 = vsel %vm2171_vm9, %v2155_v31, %v2158_v17  ;;  %v2177_v56 = vsel %vm2173_vm0, %v2161_v2, %v2176_v23  ;;  %v13902_v61 = vxor.u32 2147483648, %v10336_v10 }
 0x1df   : > { %v10481_v38 = vmul.u32.u64.low %v2187_v18, %v2186_v60  ;;  %v10482_v27 = vmul.u32.u64.high %v2187_v18, %v2186_v60, %v10481_v38  ;;  %v2933_v54 = vsub.s32 0, %v10472_v4  ;;  %v1911_v17 = vxor.u32 2147483648, %v10412_v49 }
 0x1e0   : > { %v10485_v42 = vmul.u32.u64.low %v2187_v18, %v2182_v30  ;;  %v10486_v37 = vmul.u32.u64.high %v2187_v18, %v2182_v30, %v10485_v42  ;;  %v2247_v55 = vshrl.u32 %v2246_v14, 23  ;;  %v2120_v50 = vsel %vm13670_vm11, %v13902_v61, %v10336_v10 }
 0x1e1   : > { %v2004_v2 = vshll.u32 %v10290_v29, %v10403_v52  ;;  %v2010_v0 = vor.u32 4788187, %v2009_v43  ;;  %v2523_v5 = vsub.s32 32, %v10445_v9  ;;  %v7620_v48 = vmin.u32 %v2933_v54, %v10472_v4 }
 0x1e2   : > { %v2178_v23 = vsel %vm2172_vm7, %v2175_v44, %v2177_v56  ;;  %v7595_v59 = vadd.s32 4294967169, %v2247_v55  ;;  %v2507_v31 = vadd.s32 %v10254_v15, %v10261_v25  ;;  %v2528_v30 = vadd.s32 127, %v2527_v22 }
 0x1e3   : > { %vm2196_vm9 = vc.u32 %v10482_v27, %v10485_v42  ;;  %v13665_v10 = vand.u32 2147483647, %v10442_v19  ;;  %v2006_v35 = vor.u32 %v2005_v28, %v2004_v2  ;;  %v2197_v29 = vadd.s32 1, %v10486_v37 }
 0x1e4   : > { %v2253_v52 = vadd.s32 1, %v7595_v59  ;;  %v946_v43 = vadd.f32 %v914_v16, %v10420_v20  ;;  %v10511_v8 = vsel %vm10457_vm1, %v9800_v45, %v2120_v50  ;;  %v1912_v15 = vsel %vm13671_vm10, %v1911_v17, %v10412_v49 }
 0x1e5   : > { %v2011_v25 = vand.u32 2147483647, %v2010_v0  ;;  %v2194_v22 = vmul.u32 %v2187_v18, %v2178_v23  ;;  %v2525_v60 = vshrl.u32 %v2507_v31, %v2523_v5  ;;  %v2935_v14 = vclz %v7620_v48 }
 0x1e6   : > { %v2198_v28 = vsel %vm2196_vm9, %v2197_v29, %v10486_v37  ;;  %vm2254_vm7 = vcmp.gt.s32.totalorder %v2253_v52, 0  ;;  %v2529_v44 = vshll.u32 %v2528_v30, 23  ;;  %v2250_v16 = vand.u32 8388607, %v13665_v10 }
 0x1e7   : > { %v2199_v56 = vadd.s32 %v2198_v28, %v2194_v22  ;;  %v2255_v20 = vsel %vm2254_vm7, %v2253_v52, 0  ;;  %8795 = vsinq.f32 %v10311_v6  ;;  %v2013_v38 = vcvt.s32.f32 %v2006_v35 }
 0x1e8   : > { %v2257_v54 = vand.u32 31, %v2255_v20  ;;  %v10521_v55 = vadd.f32 %v10318_v63, %v946_v43  ;;  %8797 = vcosq.f32 %v10511_v8  ;;  %v13904_v18 = vand.u32 2147483647, %v9869_v53 }
 0x1e9   : > { %v13905_v49 = vmov 0  ;;  %v2524_v37 = vshll.u32 %v10350_v57, %v10445_v9  ;;  %v2200_v61 = vadd.s32 536870912, %v2199_v56  ;;  %v10537_v50 = vmul.f32 %v2013_v38, %v2011_v25 }
 0x1ea   : > { %13903 = vst [vmem:[#allocation48_spill] sm:$0xff] %v10521_v55  ;;  %vm10526_vm5 = vcmp.le.f32.partialorder %v13904_v18, 0.7853982  ;;  %v7621_v17 = vadd.s32 4294967294, %v2935_v14  ;;  %v2258_v2 = vsub.s32 32, %v2257_v54  ;;  %v2251_v23 = vor.u32 8388608, %v2250_v16 }
 0x1eb   : > { %v13906_v49 = vsel %vm10526_vm5, 4294967295, %v13905_v49  ;;  %v10535_v6 = vsel %vm10526_vm5, %v9869_v53, %v1912_v15  ;;  %v10539_v0 = vor.u32 %v2525_v60, %v2524_v37  ;;  %v10541_v5 = vor.u32 4788187, %v2529_v44  ;;  %v814_v37 = vpop.permute.xlu1 %813 }
 0x1ec   : > { %13907 = vst [vmem:[#allocation49_spill] sm:$0xff] %v13906_v49  ;;  %v10543_v48 = vshrl.u32 %v2200_v61, 30  ;;  %v2260_v59 = vshll.u32 %v13844_v39, %v2257_v54  ;;  %v2261_v57 = vshrl.u32 %v13852_v40, %v2258_v2  ;;  %v2263_v9 = vshll.u32 %v13852_v40, %v2257_v54 }
 0x1ed   : > { %v3286_v31 = vand.u32 2139095040, %v10521_v55  ;;  %v2264_v35 = vshrl.u32 %v13842_v41, %v2258_v2  ;;  %v2266_v29 = vshll.u32 %v13842_v41, %v2257_v54  ;;  %v2267_v52 = vshrl.u32 %v13843_v7, %v2258_v2 }
 0x1ee   : > { %13908 = vst [vmem:[#allocation50_spill] sm:$0xff] %v10543_v48  ;;  %v2202_v30 = vshll.u32 %v10543_v48, 30  ;;  %vm7622_vm0 = vcmp.lt.s32.totalorder %v7621_v17, 0  ;;  %v2256_v43 = vshrl.u32 %v2255_v20, 5  ;;  %v2269_v15 = vshll.u32 %v13843_v7, %v2257_v54 }
 0x1ef   : > { %v2270_v25 = vshrl.u32 %v13845_v58, %v2258_v2  ;;  %v2262_v60 = vor.u32 %v2261_v57, %v2260_v59  ;;  %v2265_v14 = vor.u32 %v2264_v35, %v2263_v9  ;;  %v2268_v28 = vor.u32 %v2267_v52, %v2266_v29 }
 0x1f0   : > { %v10555_v22 = vsub.s32 %v2199_v56, %v2202_v30  ;;  %v2272_v16 = vshll.u32 %v13845_v58, %v2257_v54  ;;  %v2273_v38 = vshrl.u32 %v13846_v13, %v2258_v2  ;;  %v3287_v18 = vshrl.u32 %v3286_v31, 23 }
 0x1f1   : > { %v2271_v44 = vor.u32 %v2270_v25, %v2269_v15  ;;  %v2531_v61 = vand.u32 2147483647, %v10541_v5  ;;  %v10560_v10 = vsel %vm7622_vm0, 0, %v7621_v17  ;;  %v2291_v51 = vshll.u32 %v2251_v23, 8  ;;  %v10563_v48 = vpop.eup %8795 }
 0x1f2   : > { %v2205_v20 = vsub.s32 0, %v10555_v22  ;;  %v2259_v56 = vshrl.u32 %v13844_v39, %v2258_v2  ;;  %v2274_v59 = vor.u32 %v2273_v38, %v2272_v16  ;;  %vm2275_vm9 = vcmp.lt.s32.totalorder %v2256_v43, 1  ;;  %v10566_v57 = vpop.eup %8797  ;;  %v10575_v38 = vpop.permute.xlu1 %640 }
 0x1f3   : > { %vm2278_vm7 = vcmp.lt.s32.totalorder %v2256_v43, 4  ;;  %13909 = vst [vmem:[#allocation51_spill] sm:$0xff] %v10566_v57  ;;  %vm13675_vm11 = vcmp.lt.s32.totalorder %v10006_v21, 0  ;;  %vm2277_vm10 = vcmp.lt.s32.totalorder %v2256_v43, 3  ;;  %v2283_v9 = vsel %vm2275_vm9, %v2262_v60, %v2265_v14 }
 0x1f4   : > { %v2280_v54 = vsel %vm2278_vm7, %v2268_v28, 2102212464  ;;  %v2284_v5 = vsel %vm2278_vm7, %v2271_v44, 920167782  ;;  %vm2276_vm0 = vcmp.lt.s32.totalorder %v2256_v43, 2  ;;  %v2287_v31 = vsel %vm2275_vm9, %v2265_v14, %v2268_v28 }
 0x1f5   : > { %v2285_v17 = vsel %vm2277_vm10, %v2268_v28, %v2284_v5  ;;  %v7635_v23 = vadd.s32 4294967169, %v3287_v18  ;;  %v7592_v30 = vmin.u32 %v2205_v20, %v10555_v22  ;;  %v2279_v2 = vsel %vm2275_vm9, %v2259_v56, %v2262_v60  ;;  %v8711_v60 = vld [vmem:[%s9442_s14 + $0x60] sm:$0xff]  }
 0x1f6   : > { %v2286_v35 = vsel %vm2276_vm0, %v2283_v9, %v2285_v17  ;;  %v2288_v29 = vsel %vm2278_vm7, %v2274_v59, 1326507024  ;;  %v2281_v52 = vsel %vm2277_vm10, %v2265_v14, %v2280_v54  ;;  %v2015_v57 = vxor.u32 2147483648, %v10537_v50  ;;  %v8712_v54 = vld [vmem:[%s9442_s14 + $0x68] sm:$0xff]   ;;  %8103 = vmatprep.mubr.msk.bf16.mxu0 %vm13679_vm15, %v8711_v60 }
 0x1f7   : > { %v2289_v15 = vsel %vm2277_vm10, %v2271_v44, %v2288_v29  ;;  %v10571_v25 = vmul.u32.u64.low %v2291_v51, %v2286_v35  ;;  %v10572_v16 = vmul.u32.u64.high %v2291_v51, %v2286_v35, %v10571_v25  ;;  %v2943_v28 = vsub.s32 4294967266, %v10560_v10  ;;  %8104 = vmatmul.mubr.msk.bf16.gmra.mrb[24].mxu0 %vm13679_vm15, %v8712_v54 }
 0x1f8   : > { %v2290_v18 = vsel %vm2276_vm0, %v2287_v31, %v2289_v15  ;;  %v905_v20 = vmul.f32 %v10266_v12, %v814_v37  ;;  %v2533_v56 = vcvt.s32.f32 %v10539_v0  ;;  %v3293_v44 = vadd.s32 1, %v7635_v23 }
 0x1f9   : > { %v10583_v59 = vmul.u32.u64.low %v2291_v51, %v2290_v18  ;;  %v10584_v14 = vmul.u32.u64.high %v2291_v51, %v2290_v18, %v10583_v59  ;;  %8799 = vsinq.f32 %v10511_v8  ;;  %v2207_v9 = vclz %v7592_v30 }
 0x1fa   : > { %v2282_v5 = vsel %vm2276_vm0, %v2279_v2, %v2281_v52  ;;  %v13673_v17 = vand.u32 2147483647, %v10521_v55  ;;  %8801 = vcosq.f32 %v10535_v6  ;;  %v10592_v37 = vmul.f32 %v2533_v56, %v2531_v61  ;;  %v822_v2 = vpop.permute.xlu1 %821  ;;  %v8714_v59 = vld [vmem:[%s9442_s14 + $0x78] sm:$0xff]  }
 0x1fb   : > { %v2301_v0 = vadd.s32 1, %v10572_v16  ;;  %vm3294_vm10 = vcmp.gt.s32.totalorder %v3293_v44, 0  ;;  %8803 = vsinq.f32 %v10535_v6  ;;  %v2939_v8 = vsub.s32 32, %v10560_v10 }
 0x1fc   : > { %v10598_v31 = vadd.s32 127, %v2943_v28  ;;  %v937_v43 = vadd.f32 %v905_v20, %v10081_v32  ;;  %v10604_v23 = vsel %vm13675_vm11, %v2015_v57, %v10537_v50  ;;  %v2298_v61 = vmul.u32 %v2291_v51, %v2282_v5 }
 0x1fd   : > { %vm2300_vm9 = vc.u32 %v10584_v14, %v10571_v25  ;;  %v3295_v30 = vsel %vm3294_vm10, %v3293_v44, 0  ;;  %v2923_v6 = vadd.s32 %v10408_v24, %v10401_v47  ;;  %v10610_v35 = vadd.s32 4294967294, %v2207_v9  ;;  %v8715_v44 = vld [vmem:[%s9513_s16] sm:$0xff]  }
 0x1fe   : > { %v2302_v32 = vsel %vm2300_vm9, %v2301_v0, %v10572_v16  ;;  %v3290_v50 = vand.u32 8388607, %v13673_v17  ;;  %v10616_v29 = vshrl.u32 %v3295_v30, 5  ;;  %v3297_v52 = vand.u32 31, %v3295_v30  ;;  %v8713_v16 = vld [vmem:[%s9442_s14 + $0x70] sm:$0xff]   ;;  %8111 = vmatprep.subr.bf16.mxu0 %v8715_v44  ;;  %s486_s14 = sand.u32 1, %s8970_s18  }
 0x1ff   : > { %v2303_v57 = vadd.s32 %v2302_v32, %v2298_v61  ;;  %v10618_v15 = vshrl.u32 %v2923_v6, %v2939_v8  ;;  %v2945_v28 = vshll.u32 %v10598_v31, 23  ;;  %v10622_v47 = vadd.f32 %v10318_v63, %v937_v43  ;;  %8107 = vmatprep.mubr.msk.bf16.mxu0 %vm13679_vm15, %v8713_v16  ;;  %8112 = vmatpush3.bf16.msra.mxu0 %v8715_v44  ;;  %s7370_s20 = scalar_lea.sflag [#allocation3], %s486_s14 }
 0x200   : > { %v10625_v24 = vmul.f32 %v10266_v12, %v822_v2  ;;  %v3298_v20 = vsub.s32 32, %v3297_v52  ;;  %v3300_v60 = vshll.u32 %v13844_v39, %v3297_v52  ;;  %v3303_v56 = vshll.u32 %v13852_v40, %v3297_v52  ;;  %8108 = vmatmul.mubr.msk.bf16.gmra.mrb[28].mxu0 %vm13679_vm15, %v8714_v59 }
 0x201   : > { %13910 = vst [vmem:[#allocation52_spill] sm:$0xff] %v10622_v47  ;;  %v2304_v18 = vadd.s32 536870912, %v2303_v57  ;;  %vm7594_vm7 = vcmp.lt.s32.totalorder %v10610_v35, 0  ;;  %v3291_v54 = vor.u32 8388608, %v3290_v50  ;;  %v3306_v9 = vshll.u32 %v13842_v41, %v3297_v52 }
 0x202   : > { %v3309_v5 = vshll.u32 %v13843_v7, %v3297_v52  ;;  %v3301_v8 = vshrl.u32 %v13852_v40, %v3298_v20  ;;  %v3304_v31 = vshrl.u32 %v13842_v41, %v3298_v20  ;;  %vm3315_vm0 = vcmp.lt.s32.totalorder %v10616_v29, 1 }
 0x203   : > { %v10636_v0 = vshrl.u32 %v2304_v18, 30  ;;  %v10642_v43 = vpop.eup %8799  ;;  %v3299_v61 = vshrl.u32 %v13844_v39, %v3298_v20  ;;  %v3307_v30 = vshrl.u32 %v13843_v7, %v3298_v20  ;;  %v3310_v2 = vshrl.u32 %v13845_v58, %v3298_v20 }
 0x204   : > { %13912 = vst [vmem:[#allocation54_spill] sm:$0xff] %v10642_v43  ;;  %v3312_v6 = vshll.u32 %v13845_v58, %v3297_v52  ;;  %v10648_v32 = vpop.eup %8801  ;;  %v13914_v50 = vand.u32 2147483647, %v10006_v21  ;;  %v13915_v16 = vmov 0  ;;  %vm13691_vm9 = vcmp.lt.s32.totalorder %v10099_v1, 0 }
 0x205   : > { %13911 = vst [vmem:[#allocation53_spill] sm:$0xff] %v10636_v0  ;;  %13913 = vst [vmem:[#allocation55_spill] sm:$0xff] %v10648_v32  ;;  %v2306_v18 = vshll.u32 %v10636_v0, 30  ;;  %v3302_v59 = vor.u32 %v3301_v8, %v3300_v60  ;;  %v3305_v17 = vor.u32 %v3304_v31, %v3303_v56  ;;  %v3313_v51 = vshrl.u32 %v13846_v13, %v3298_v20  ;;  %v10659_v43 = vpop.eup %8803 }
 0x206   : > { %vm10652_vm10 = vcmp.le.f32.partialorder %v13914_v50, 0.7853982  ;;  %13918 = vst [vmem:[#allocation57_spill] sm:$0xff] %v10659_v43  ;;  %v3308_v52 = vor.u32 %v3307_v30, %v3306_v9  ;;  %v3311_v44 = vor.u32 %v3310_v2, %v3309_v5  ;;  %vm3317_vm11 = vcmp.lt.s32.totalorder %v10616_v29, 3 }
 0x207   : > { %v13916_v16 = vsel %vm10652_vm10, 4294967295, %v13915_v16  ;;  %v3331_v11 = vshll.u32 %v3291_v54, 8  ;;  %v10662_v45 = vsub.s32 %v2303_v57, %v2306_v18  ;;  %v3314_v50 = vor.u32 %v3313_v51, %v3312_v6 }
 0x208   : > { %13917 = vst [vmem:[#allocation56_spill] sm:$0xff] %v13916_v16  ;;  %vm3316_vm15 = vcmp.lt.s32.totalorder %v10616_v29, 2  ;;  %vm3318_vm6 = vcmp.lt.s32.totalorder %v10616_v29, 4  ;;  %v3319_v60 = vsel %vm3315_vm0, %v3299_v61, %v3302_v59  ;;  %v3323_v20 = vsel %vm3315_vm0, %v3302_v59, %v3305_v17 }
 0x209   : > { %v3320_v56 = vsel %vm3318_vm6, %v3308_v52, 2102212464  ;;  %v3324_v8 = vsel %vm3318_vm6, %v3311_v44, 920167782  ;;  %v13919_v9 = vand.u32 2147483647, %v10099_v1  ;;  %v3327_v31 = vsel %vm3315_vm0, %v3305_v17, %v3308_v52 }
 0x20a   : > { %v13920_v5 = vmov 0  ;;  %v2309_v51 = vsub.s32 0, %v10662_v45  ;;  %v3321_v57 = vsel %vm3317_vm11, %v3305_v17, %v3320_v56  ;;  %v3325_v54 = vsel %vm3317_vm11, %v3308_v52, %v3324_v8 }
 0x20b   : > { %vm10672_vm12 = vcmp.le.f32.partialorder %v13919_v9, 0.7853982  ;;  %v2940_v61 = vshll.u32 %v10472_v4, %v10560_v10  ;;  %v3326_v30 = vsel %vm3316_vm15, %v3323_v20, %v3325_v54  ;;  %v3328_v2 = vsel %vm3318_vm6, %v3314_v50, 1326507024 }
 0x20c   : > { %v13921_v5 = vsel %vm10672_vm12, 4294967295, %v13920_v5  ;;  %v2350_v6 = vand.u32 2139095040, %v10622_v47  ;;  %v2946_v18 = vor.u32 4788187, %v2945_v28  ;;  %v2210_v59 = vsel %vm7594_vm7, 0, %v10610_v35 }
 0x20d   : > { %13922 = vst [vmem:[#allocation58_spill] sm:$0xff] %v13921_v5  ;;  %v7596_v56 = vmin.u32 %v2309_v51, %v10662_v45  ;;  %v3329_v17 = vsel %vm3317_vm11, %v3311_v44, %v3328_v2  ;;  %v3322_v4 = vsel %vm3316_vm15, %v3319_v60, %v3321_v57  ;;  %v2942_v28 = vor.u32 %v10618_v15, %v2940_v61  ;;  %v8716_v15 = vld [vmem:[%s9513_s16 + $0x8] sm:$0xff]   ;;  %s7533_s16 = sshll.u32 %s486_s14, 4 }
 0x20e   : > { %v3330_v10 = vsel %vm3316_vm15, %v3327_v31, %v3329_v17  ;;  %v10698_v52 = vmul.u32.u64.low %v3331_v11, %v3326_v30  ;;  %v10699_v50 = vmul.u32.u64.high %v3331_v11, %v3326_v30, %v10698_v52  ;;  %v2019_v44 = vsel %vm10652_vm10, %v10006_v21, %v10604_v23  ;;  %v866_v30 = vpop.permute.xlu0 %865  ;;  %8113 = vmatprep.subr.bf16.mxu0 %v8716_v15  ;;  %s488_s15 = scalar_lea.vmem [#allocation2], %s7533_s16  ;;  %s8996_s16 = smov [#allocation2]  }
 0x20f   : > { %v2311_v20 = vclz %v7596_v56  ;;  %v10703_v8 = vmul.u32.u64.low %v3331_v11, %v3330_v10  ;;  %v10704_v35 = vmul.u32.u64.high %v3331_v11, %v3330_v10, %v10703_v8  ;;  %v13923_v60 = vxor.u32 2147483648, %v10592_v37  ;;  %8114 = vmatpush3.bf16.msra.mxu0 %v8716_v15  ;;  %s7386_s23 = sshll.u32 %s488_s15, 4  ;;  %s8912_s0 = sshll.u32 %s8996_s16, 4  ;;  %s13529_s23 = int_to_ptr.vmem [resolvable:$true] %s7386_s23  ;;  %s8913_s0 = int_to_ptr.vmem [resolvable:$false] %s8912_s0 }
 0x210   : > { %v2351_v9 = vshrl.u32 %v2350_v6, 23  ;;  %v742_v51 = vmul.f32 %v10285_v26, %v10575_v38  ;;  %v2947_v57 = vand.u32 2147483647, %v2946_v18  ;;  %v2211_v54 = vsub.s32 32, %v2210_v59  ;;  %s8914_s13 = scalar_lea.vmem %s8913_s0, 512  ;;  %p8915_p1 = scmp.lt.s32.totalorder %s13529_s23, %s8913_s0 }
 0x211   : > { %v2536_v29 = vsel %vm13691_vm9, %v13923_v60, %v10592_v37  ;;  %v2215_v31 = vsub.s32 4294967266, %v2210_v59  ;;  %v3338_v61 = vmul.u32 %v3331_v11, %v3322_v4  ;;  %v3341_v2 = vadd.s32 1, %v10699_v50 }
 0x212   : > { %v13682_v23 = vand.u32 2147483647, %v10622_v47  ;;  %v7599_v56 = vadd.s32 4294967169, %v2351_v9  ;;  %v939_v17 = vadd.f32 %v10625_v24, %v742_v51  ;;  %v2949_v10 = vcvt.s32.f32 %v2942_v28  ;;  %v10737_v9 = vpop.permute.xlu0 %690 }
 0x213   : > { %v2195_v37 = vadd.s32 %v10485_v42, %v10482_v27  ;;  %v7597_v6 = vadd.s32 4294967294, %v2311_v20  ;;  %vm3340_vm6 = vc.u32 %v10704_v35, %v10698_v52  ;;  %8805 = vcosq.f32 %v2019_v44 }
 0x214   : > { %v10728_v11 = vsel %vm10672_vm12, %v10099_v1, %v2536_v29  ;;  %v3342_v38 = vsel %vm3340_vm6, %v3341_v2, %v10699_v50  ;;  %v2357_v18 = vadd.s32 1, %v7599_v56  ;;  %v2950_v24 = vmul.f32 %v2949_v10, %v2947_v57 }
 0x215   : > { %v2213_v4 = vshrl.u32 %v2195_v37, %v2211_v54  ;;  %v2216_v28 = vadd.s32 127, %v2215_v31  ;;  %v3343_v8 = vadd.s32 %v3342_v38, %v3338_v61  ;;  %8807 = vsinq.f32 %v2019_v44 }
 0x216   : > { %v2354_v27 = vand.u32 8388607, %v13682_v23  ;;  %vm2358_vm15 = vcmp.gt.s32.totalorder %v2357_v18, 0  ;;  %v10734_v42 = vadd.f32 %v10318_v63, %v939_v17  ;;  %v2212_v20 = vshll.u32 %v10555_v22, %v2210_v59 }
 0x217   : > { %vm7598_vm11 = vcmp.lt.s32.totalorder %v7597_v6, 0  ;;  %v3344_v60 = vadd.s32 536870912, %v3343_v8  ;;  %v2359_v29 = vsel %vm2358_vm15, %v2357_v18, 0  ;;  %8809 = vcosq.f32 %v10728_v11 }
 0x218   : > { %vm13690_vm7 = vcmp.lt.s32.totalorder %v10222_v34, 0  ;;  %v2361_v50 = vand.u32 31, %v2359_v29  ;;  %v918_v44 = vmul.f32 %v10266_v12, %v866_v30  ;;  %v2951_v51 = vxor.u32 2147483648, %v2950_v24 }
 0x219   : > { %v10742_v15 = vor.u32 %v2213_v4, %v2212_v20  ;;  %v2217_v57 = vshll.u32 %v2216_v28, 23  ;;  %v10744_v54 = vshrl.u32 %v3344_v60, 30  ;;  %v10746_v31 = vsel %vm7598_vm11, 0, %v7597_v6 }
 0x21a   : > { %v2355_v22 = vor.u32 8388608, %v2354_v27  ;;  %v2362_v59 = vsub.s32 32, %v2361_v50  ;;  %v2558_v61 = vand.u32 2139095040, %v10734_v42  ;;  %v2360_v56 = vshrl.u32 %v2359_v29, 5  ;;  %v696_v27 = vpop.permute.xlu0 %695 }
 0x21b   : > { %13924 = vst [vmem:[#allocation59_spill] sm:$0xff] %v10744_v54  ;;  %v3346_v2 = vshll.u32 %v10744_v54, 30  ;;  %v2364_v17 = vshll.u32 %v13844_v39, %v2361_v50  ;;  %v2367_v10 = vshll.u32 %v13852_v40, %v2361_v50  ;;  %v2370_v37 = vshll.u32 %v13842_v41, %v2361_v50 }
 0x21c   : > { %v2365_v12 = vshrl.u32 %v13852_v40, %v2362_v59  ;;  %v2368_v30 = vshrl.u32 %v13842_v41, %v2362_v59  ;;  %v2371_v6 = vshrl.u32 %v13843_v7, %v2362_v59  ;;  %v2373_v18 = vshll.u32 %v13843_v7, %v2361_v50 }
 0x21d   : > { %v10756_v38 = vsub.s32 %v3343_v8, %v3346_v2  ;;  %v2374_v4 = vshrl.u32 %v13845_v58, %v2362_v59  ;;  %v2376_v28 = vshll.u32 %v13845_v58, %v2361_v50  ;;  %v10761_v20 = vpop.eup %8805  ;;  %v2377_v54 = vshrl.u32 %v13846_v13, %v2362_v59 }
 0x21e   : > { %13925 = vst [vmem:[#allocation60_spill] sm:$0xff] %v10761_v20  ;;  %v2366_v60 = vor.u32 %v2365_v12, %v2364_v17  ;;  %v2369_v29 = vor.u32 %v2368_v30, %v2367_v10  ;;  %v2372_v23 = vor.u32 %v2371_v6, %v2370_v37  ;;  %v2952_v5 = vsel %vm13690_vm7, %v2951_v51, %v2950_v24 }
 0x21f   : > { %v2218_v1 = vor.u32 4788187, %v2217_v57  ;;  %v2221_v8 = vcvt.s32.f32 %v10742_v15  ;;  %v2375_v2 = vor.u32 %v2374_v4, %v2373_v18  ;;  %v10767_v0 = vpop.eup %8807  ;;  %vm1399_vm0 = vweird.f32 %v9221_v46 }
 0x220   : > { %13926 = vst [vmem:[#allocation61_spill] sm:$0xff] %v10767_v0  ;;  %v13927_v50 = vand.u32 2147483647, %v10222_v34  ;;  %v13928_v17 = vmov 0  ;;  %v3349_v10 = vsub.s32 0, %v10756_v38  ;;  %v2378_v12 = vor.u32 %v2377_v54, %v2376_v28 }
 0x221   : > { %v2395_v24 = vshll.u32 %v2355_v22, 8  ;;  %v753_v51 = vmul.f32 %v10285_v26, %v696_v27  ;;  %v2319_v15 = vsub.s32 4294967266, %v10746_v31  ;;  %vm2379_vm11 = vcmp.lt.s32.totalorder %v2360_v56, 1  ;;  %v10780_v30 = vpop.eup %8809 }
 0x222   : > { %vm10773_vm15 = vcmp.le.f32.partialorder %v13927_v50, 0.7853982  ;;  %vm2382_vm7 = vcmp.lt.s32.totalorder %v2360_v56, 4  ;;  %v2559_v57 = vshrl.u32 %v2558_v61, 23  ;;  %13931 = vst [vmem:[#allocation63_spill] sm:$0xff] %v10780_v30  ;;  %vm2381_vm9 = vcmp.lt.s32.totalorder %v2360_v56, 3 }
 0x223   : > { %v13929_v17 = vsel %vm10773_vm15, 4294967295, %v13928_v17  ;;  %v2384_v37 = vsel %vm2382_vm7, %v2372_v23, 2102212464  ;;  %v2387_v6 = vsel %vm2379_vm11, %v2366_v60, %v2369_v29  ;;  %v2388_v18 = vsel %vm2382_vm7, %v2375_v2, 920167782 }
 0x224   : > { %13930 = vst [vmem:[#allocation62_spill] sm:$0xff] %v13929_v17  ;;  %v2363_v4 = vshrl.u32 %v13844_v39, %v2362_v59  ;;  %vm2380_vm6 = vcmp.lt.s32.totalorder %v2360_v56, 2  ;;  %v2389_v50 = vsel %vm2381_vm9, %v2372_v23, %v2388_v18  ;;  %v2391_v54 = vsel %vm2379_vm11, %v2369_v29, %v2372_v23 }
 0x225   : > { %v7636_v26 = vmin.u32 %v3349_v10, %v10756_v38  ;;  %v2390_v22 = vsel %vm2380_vm6, %v2387_v6, %v2389_v50  ;;  %v2392_v28 = vsel %vm2382_vm7, %v2378_v12, 1326507024  ;;  %v950_v27 = vadd.f32 %v918_v44, %v753_v51 }
 0x226   : > { %v2383_v61 = vsel %vm2379_vm11, %v2363_v4, %v2366_v60  ;;  %v2385_v30 = vsel %vm2381_vm9, %v2369_v29, %v2384_v37  ;;  %v2393_v20 = vsel %vm2381_vm9, %v2375_v2, %v2392_v28  ;;  %v7607_v0 = vadd.s32 4294967169, %v2559_v57  ;;  %v13934_v57 = vld [vmem:[#allocation44_spill] sm:$0xff] }
 0x227   : > { %v2219_v32 = vand.u32 2147483647, %v2218_v1  ;;  %v2394_v16 = vsel %vm2380_vm6, %v2391_v54, %v2393_v20  ;;  %v10789_v43 = vmul.u32.u64.low %v2395_v24, %v2390_v22  ;;  %v10790_v59 = vmul.u32.u64.high %v2395_v24, %v2390_v22, %v10789_v43 }
 0x228   : > { %v2320_v18 = vadd.s32 127, %v2319_v15  ;;  %v10793_v23 = vmul.u32.u64.low %v2395_v24, %v2394_v16  ;;  %v10794_v21 = vmul.u32.u64.high %v2395_v24, %v2394_v16, %v10793_v23  ;;  %v13700_v10 = vand.u32 2147483647, %v10734_v42 }
 0x229   : > { %v3351_v12 = vclz %v7636_v26  ;;  %v2386_v44 = vsel %vm2380_vm6, %v2383_v61, %v2385_v30  ;;  %v2565_v60 = vadd.s32 1, %v7607_v0  ;;  %v10799_v29 = vadd.f32 %v10318_v63, %v950_v27 }
 0x22a   : > { %v10804_v1 = vsel %vm1399_vm0, nan, %v9785_v3  ;;  %vm13933_vm9 = vweird.f32 %v9414_v36  ;;  %8811 = vsinq.f32 %v10728_v11  ;;  %v2955_v16 = vsel %vm10773_vm15, %v10222_v34, %v2952_v5  ;;  %v10828_v5 = vld [vmem:[%s13576_s2] ss:$0 sm:$0xff] }
 0x22b   : > { %13932 = vst [vmem:[#allocation64_spill] sm:$0xff] %v10799_v29  ;;  %v10809_v20 = vsel %vm13933_vm9, nan, %v10327_v33  ;;  %v10815_v0 = vmul.f32 %v2221_v8, %v2219_v32  ;;  %v2315_v63 = vsub.s32 32, %v10746_v31  ;;  %v2405_v56 = vadd.s32 1, %v10790_v59 }
 0x22c   : > { %vm2566_vm7 = vcmp.gt.s32.totalorder %v2565_v60, 0  ;;  %v2321_v46 = vshll.u32 %v2320_v18, 23  ;;  %v2402_v3 = vmul.u32 %v2395_v24, %v2386_v44  ;;  %vm2404_vm0 = vc.u32 %v10794_v21, %v10789_v43 }
 0x22d   : > { %v2562_v36 = vand.u32 8388607, %v13700_v10  ;;  %v7637_v33 = vadd.s32 4294967294, %v3351_v12  ;;  %v2406_v11 = vsel %vm2404_vm0, %v2405_v56, %v10790_v59  ;;  %v2567_v2 = vsel %vm2566_vm7, %v2565_v60, 0 }
 0x22e   : > { %v3702_v32 = vand.u32 2139095040, %v10799_v29  ;;  %v10832_v8 = vmul.f32 %v10828_v5, %v10138_v62  ;;  %8813 = vcosq.f32 %v2955_v16  ;;  %v2299_v24 = vadd.s32 %v10571_v25, %v10584_v14 }
 0x22f   : > { %v2407_v51 = vadd.s32 %v2406_v11, %v2402_v3  ;;  %8815 = vsinq.f32 %v2955_v16  ;;  %v10839_v30 = vmul.f32 %v10828_v5, %v13934_v57  ;;  %v2569_v37 = vand.u32 31, %v2567_v2  ;;  %v13937_v3 = vld [vmem:[#allocation37_spill] sm:$0xff] }
 0x230   : > { %v2316_v6 = vshll.u32 %v10662_v45, %v10746_v31  ;;  %v2317_v4 = vshrl.u32 %v2299_v24, %v2315_v63  ;;  %v10843_v50 = vor.u32 4788187, %v2321_v46  ;;  %vm7638_vm6 = vcmp.lt.s32.totalorder %v7637_v33, 0 }
 0x231   : > { %v2408_v62 = vadd.s32 536870912, %v2407_v51  ;;  %v2563_v54 = vor.u32 8388608, %v2562_v36  ;;  %v2570_v26 = vsub.s32 32, %v2569_v37  ;;  %v3703_v25 = vshrl.u32 %v3702_v32, 23  ;;  %v646_v32 = vpop.permute.xlu1 %645 }
 0x232   : > { %v10847_v22 = vshrl.u32 %v2567_v2, 5  ;;  %v2572_v28 = vshll.u32 %v13844_v39, %v2569_v37  ;;  %v2575_v27 = vshll.u32 %v13852_v40, %v2569_v37  ;;  %v2578_v31 = vshll.u32 %v13842_v41, %v2569_v37 }
 0x233   : > { %v10845_v14 = vshrl.u32 %v2408_v62, 30  ;;  %v2573_v61 = vshrl.u32 %v13852_v40, %v2570_v26  ;;  %v2576_v45 = vshrl.u32 %v13842_v41, %v2570_v26  ;;  %v2579_v59 = vshrl.u32 %v13843_v7, %v2570_v26 }
 0x234   : > { %v10855_v18 = vpop.eup %8811  ;;  %v2581_v12 = vshll.u32 %v13843_v7, %v2569_v37  ;;  %v2582_v44 = vshrl.u32 %v13845_v58, %v2570_v26  ;;  %v2585_v60 = vshrl.u32 %v13846_v13, %v2570_v26  ;;  %v2584_v46 = vshll.u32 %v13845_v58, %v2569_v37 }
 0x235   : > { %13935 = vst [vmem:[#allocation44_spill] sm:$0xff] %v10845_v14  ;;  %13936 = vst [vmem:[#allocation65_spill] sm:$0xff] %v10855_v18  ;;  %v2410_v23 = vshll.u32 %v10845_v14, 30  ;;  %v2574_v16 = vor.u32 %v2573_v61, %v2572_v28  ;;  %v2577_v63 = vor.u32 %v2576_v45, %v2575_v27  ;;  %v2580_v56 = vor.u32 %v2579_v59, %v2578_v31  ;;  %v10891_v59 = vpop.permute.xlu0 %710 }
 0x236   : > { %vm13708_vm11 = vcmp.lt.s32.totalorder %v13937_v3, 0  ;;  %v10864_v36 = vsel %vm7638_vm6, 0, %v7637_v33  ;;  %v2583_v2 = vor.u32 %v2582_v44, %v2581_v12  ;;  %vm2587_vm9 = vcmp.lt.s32.totalorder %v10847_v22, 1 }
 0x237   : > { %v10866_v11 = vsub.s32 %v2407_v51, %v2410_v23  ;;  %v2318_v24 = vor.u32 %v2317_v4, %v2316_v6  ;;  %v2586_v57 = vor.u32 %v2585_v60, %v2584_v46  ;;  %vm2590_vm7 = vcmp.lt.s32.totalorder %v10847_v22, 4 }
 0x238   : > { %v2595_v62 = vsel %vm2587_vm9, %v2574_v16, %v2577_v63  ;;  %v10872_v28 = vpop.eup %8813  ;;  %v2323_v37 = vand.u32 2147483647, %v10843_v50  ;;  %vm2589_vm0 = vcmp.lt.s32.totalorder %v10847_v22, 3  ;;  %v2596_v33 = vsel %vm2590_vm7, %v2583_v2, 920167782 }
 0x239   : > { %13938 = vst [vmem:[#allocation66_spill] sm:$0xff] %v10872_v28  ;;  %v7651_v51 = vadd.s32 4294967169, %v3703_v25  ;;  %v10878_v27 = vpop.eup %8815  ;;  %v3359_v6 = vsub.s32 4294967266, %v10864_v36  ;;  %vm2588_vm6 = vcmp.lt.s32.totalorder %v10847_v22, 2  ;;  %v2597_v4 = vsel %vm2589_vm0, %v2580_v56, %v2596_v33 }
 0x23a   : > { %13939 = vst [vmem:[#allocation67_spill] sm:$0xff] %v10878_v27  ;;  %v2603_v61 = vshll.u32 %v2563_v54, 8  ;;  %v2413_v45 = vsub.s32 0, %v10866_v11  ;;  %v2592_v50 = vsel %vm2590_vm7, %v2580_v56, 2102212464  ;;  %v2598_v31 = vsel %vm2588_vm6, %v2595_v62, %v2597_v4 }
 0x23b   : > { %v2599_v25 = vsel %vm2587_vm9, %v2577_v63, %v2580_v56  ;;  %v2571_v23 = vshrl.u32 %v13844_v39, %v2570_v26  ;;  %v2600_v12 = vsel %vm2590_vm7, %v2586_v57, 1326507024  ;;  %v3355_v60 = vsub.s32 32, %v10864_v36  ;;  %v826_v56 = vpop.permute.xlu1 %825 }
 0x23c   : > { %v10896_v44 = vmul.u32.u64.low %v2603_v61, %v2598_v31  ;;  %v10897_v54 = vmul.u32.u64.high %v2603_v61, %v2598_v31, %v10896_v44  ;;  %v2601_v46 = vsel %vm2589_vm0, %v2583_v2, %v2600_v12  ;;  %v13702_v62 = vand.u32 2147483647, %v10799_v29 }
 0x23d   : > { %v3709_v33 = vadd.s32 1, %v7651_v51  ;;  %v10904_v4 = vadd.s32 127, %v3359_v6  ;;  %v2591_v26 = vsel %vm2587_vm9, %v2571_v23, %v2574_v16  ;;  %v2593_v57 = vsel %vm2589_vm0, %v2577_v63, %v2592_v50  ;;  %v10926_v63 = vld [vmem:[%s13576_s2 + $0x1] ss:$0 sm:$0xff] }
 0x23e   : > { %v2602_v31 = vsel %vm2588_vm6, %v2599_v25, %v2601_v46  ;;  %v7600_v10 = vmin.u32 %v2413_v45, %v10866_v11  ;;  %v13940_v2 = vxor.u32 2147483648, %v10815_v0  ;;  %v2325_v16 = vcvt.s32.f32 %v2318_v24 }
 0x23f   : > { %v10913_v15 = vmul.u32.u64.low %v2603_v61, %v2602_v31  ;;  %v10914_v28 = vmul.u32.u64.high %v2603_v61, %v2602_v31, %v10913_v15  ;;  %vm3710_vm7 = vcmp.gt.s32.totalorder %v3709_v33, 0  ;;  %v908_v45 = vmul.f32 %v10926_v63, %v826_v56 }
 0x240   : > { %v10921_v51 = vsel %vm13708_vm11, %v13940_v2, %v10815_v0  ;;  %v3711_v6 = vsel %vm3710_vm7, %v3709_v33, 0  ;;  %v3339_v15 = vadd.s32 %v10698_v52, %v10704_v35  ;;  %v2594_v50 = vsel %vm2588_vm6, %v2591_v26, %v2593_v57  ;;  %v716_v0 = vpop.permute.xlu0 %715 }
 0x241   : > { %v2613_v25 = vadd.s32 1, %v10897_v54  ;;  %v3713_v23 = vand.u32 31, %v3711_v6  ;;  %v10934_v12 = vmul.f32 %v2325_v16, %v2323_v37  ;;  %v743_v46 = vmul.f32 %v10828_v5, %v646_v32 }
 0x242   : > { %v10940_v33 = vmul.f32 %v10828_v5, %v716_v0  ;;  %v10942_v56 = vshrl.u32 %v3339_v15, %v3355_v60  ;;  %v3361_v52 = vshll.u32 %v10904_v4, 23  ;;  %v2415_v35 = vclz %v7600_v10 }
 0x243   : > { %v3706_v22 = vand.u32 8388607, %v13702_v62  ;;  %v2610_v26 = vmul.u32 %v2603_v61, %v2594_v50  ;;  %vm2612_vm9 = vc.u32 %v10914_v28, %v10896_v44  ;;  %v3714_v37 = vsub.s32 32, %v3713_v23 }
 0x244   : > { %v940_v57 = vadd.f32 %v908_v45, %v743_v46  ;;  %v2614_v31 = vsel %vm2612_vm9, %v2613_v25, %v10897_v54  ;;  %v3716_v32 = vshll.u32 %v13844_v39, %v3713_v23  ;;  %v3719_v2 = vshll.u32 %v13852_v40, %v3713_v23 }
 0x245   : > { %v3722_v60 = vshll.u32 %v13842_v41, %v3713_v23  ;;  %v2615_v16 = vadd.s32 %v2614_v31, %v2610_v26  ;;  %v3712_v4 = vshrl.u32 %v3711_v6, 5  ;;  %v3717_v10 = vshrl.u32 %v13852_v40, %v3714_v37  ;;  %v10962_v26 = vld [vmem:[%s13577_s3] ss:$0 sm:$0xff] }
 0x246   : > { %v3720_v15 = vshrl.u32 %v13842_v41, %v3714_v37  ;;  %v7601_v61 = vadd.s32 4294967294, %v2415_v35  ;;  %v3707_v50 = vor.u32 8388608, %v3706_v22  ;;  %v3723_v0 = vshrl.u32 %v13843_v7, %v3714_v37 }
 0x247   : > { %v3725_v45 = vshll.u32 %v13843_v7, %v3713_v23  ;;  %v2616_v46 = vadd.s32 536870912, %v2615_v16  ;;  %v3715_v54 = vshrl.u32 %v13844_v39, %v3714_v37  ;;  %v3726_v25 = vshrl.u32 %v13845_v58, %v3714_v37 }
 0x248   : > { %v10965_v6 = vadd.f32 %v10962_v26, %v940_v57  ;;  %v3718_v31 = vor.u32 %v3717_v10, %v3716_v32  ;;  %v3721_v35 = vor.u32 %v3720_v15, %v3719_v2  ;;  %v3724_v22 = vor.u32 %v3723_v0, %v3722_v60  ;;  %v882_v60 = vpop.permute.xlu0 %881 }
 0x249   : > { %v3728_v62 = vshll.u32 %v13845_v58, %v3713_v23  ;;  %v10968_v24 = vshrl.u32 %v2616_v46, 30  ;;  %v3727_v27 = vor.u32 %v3726_v25, %v3725_v45  ;;  %v3729_v17 = vshrl.u32 %v13846_v13, %v3714_v37 }
 0x24a   : > { %13941 = vst [vmem:[#allocation68_spill] sm:$0xff] %v10965_v6  ;;  %vm3731_vm0 = vcmp.lt.s32.totalorder %v3712_v4, 1  ;;  %vm7602_vm6 = vcmp.lt.s32.totalorder %v7601_v61, 0  ;;  %vm3733_vm7 = vcmp.lt.s32.totalorder %v3712_v4, 3  ;;  %vm3734_vm9 = vcmp.lt.s32.totalorder %v3712_v4, 4 }
 0x24b   : > { %13942 = vst [vmem:[#allocation69_spill] sm:$0xff] %v10968_v24  ;;  %v3747_v34 = vshll.u32 %v3707_v50, 8  ;;  %v13943_v18 = vand.u32 2147483647, %v13937_v3  ;;  %v13944_v57 = vmov 0  ;;  %v2618_v32 = vshll.u32 %v10968_v24, 30 }
 0x24c   : > { %v3730_v2 = vor.u32 %v3729_v17, %v3728_v62  ;;  %vm3732_vm15 = vcmp.lt.s32.totalorder %v3712_v4, 2  ;;  %v3736_v23 = vsel %vm3734_vm9, %v3724_v22, 2102212464  ;;  %v3735_v37 = vsel %vm3731_vm0, %v3715_v54, %v3718_v31 }
 0x24d   : > { %vm10973_vm11 = vcmp.le.f32.partialorder %v13943_v18, 0.7853982  ;;  %v3739_v10 = vsel %vm3731_vm0, %v3718_v31, %v3721_v35  ;;  %v3740_v15 = vsel %vm3734_vm9, %v3727_v27, 920167782  ;;  %v2662_v50 = vand.u32 2139095040, %v10965_v6 }
 0x24e   : > { %v13945_v57 = vsel %vm10973_vm11, 4294967295, %v13944_v57  ;;  %v10983_v0 = vsub.s32 %v2615_v16, %v2618_v32  ;;  %v3737_v18 = vsel %vm3733_vm7, %v3721_v35, %v3736_v23  ;;  %v3741_v45 = vsel %vm3733_vm7, %v3724_v22, %v3740_v15 }
 0x24f   : > { %13946 = vst [vmem:[#allocation70_spill] sm:$0xff] %v13945_v57  ;;  %v3743_v17 = vsel %vm3731_vm0, %v3721_v35, %v3724_v22  ;;  %v2418_v62 = vsel %vm7602_vm6, 0, %v7601_v61  ;;  %v3742_v46 = vsel %vm3732_vm15, %v3739_v10, %v3741_v45  ;;  %v3744_v54 = vsel %vm3734_vm9, %v3730_v2, 1326507024 }
 0x250   : > { %v922_v25 = vmul.f32 %v10926_v63, %v882_v60  ;;  %vm13725_vm12 = vcmp.lt.s32.totalorder %v10442_v19, 0  ;;  %v2621_v31 = vsub.s32 0, %v10983_v0  ;;  %v3745_v16 = vsel %vm3733_vm7, %v3727_v27, %v3744_v54 }
 0x251   : > { %v10995_v32 = vmul.u32.u64.low %v3747_v34, %v3742_v46  ;;  %v10996_v23 = vmul.u32.u64.high %v3747_v34, %v3742_v46, %v10995_v32  ;;  %v3362_v15 = vor.u32 4788187, %v3361_v52  ;;  %v3738_v35 = vsel %vm3732_vm15, %v3735_v37, %v3737_v18 }
 0x252   : > { %v3746_v61 = vsel %vm3732_vm15, %v3743_v17, %v3745_v16  ;;  %v2663_v22 = vshrl.u32 %v2662_v50, 23  ;;  %v2419_v10 = vsub.s32 32, %v2418_v62  ;;  %v7608_v2 = vmin.u32 %v2621_v31, %v10983_v0 }
 0x253   : > { %v11002_v60 = vmul.u32.u64.low %v3747_v34, %v3746_v61  ;;  %v11003_v45 = vmul.u32.u64.high %v3747_v34, %v3746_v61, %v11002_v60  ;;  %v2403_v24 = vadd.s32 %v10789_v43, %v10794_v21  ;;  %v2423_v27 = vsub.s32 4294967266, %v2418_v62 }
 0x254   : > { %v7611_v54 = vadd.s32 4294967169, %v2663_v22  ;;  %v954_v46 = vadd.f32 %v922_v25, %v10940_v33  ;;  %v13947_v52 = vshll.u32 %v10756_v38, %v10864_v36  ;;  %v2623_v37 = vclz %v7608_v2 }
 0x255   : > { %v3754_v50 = vmul.u32 %v3747_v34, %v3738_v35  ;;  %v3757_v18 = vadd.s32 1, %v10996_v23  ;;  %v11017_v17 = vsel %vm10973_vm11, %v13937_v3, %v10921_v51  ;;  %v2327_v21 = vxor.u32 2147483648, %v10934_v12  ;;  %v830_v51 = vpop.permute.xlu1 %829 }
 0x256   : > { %v3358_v4 = vor.u32 %v10942_v56, %v13947_v52  ;;  %v3363_v43 = vand.u32 2147483647, %v3362_v15  ;;  %v2669_v31 = vadd.s32 1, %v7611_v54  ;;  %v2421_v33 = vshrl.u32 %v2403_v24, %v2419_v10 }
 0x257   : > { %v7609_v25 = vadd.s32 4294967294, %v2623_v37  ;;  %vm3756_vm15 = vc.u32 %v11003_v45, %v10995_v32  ;;  %v13713_v38 = vand.u32 2147483647, %v10965_v6  ;;  %v2424_v34 = vadd.s32 127, %v2423_v27 }
 0x258   : > { %v3758_v36 = vsel %vm3756_vm15, %v3757_v18, %v10996_v23  ;;  %vm2670_vm0 = vcmp.gt.s32.totalorder %v2669_v31, 0  ;;  %v11025_v56 = vadd.f32 %v10962_v26, %v954_v46  ;;  %v3365_v16 = vcvt.s32.f32 %v3358_v4 }
 0x259   : > { %v2420_v35 = vshll.u32 %v10866_v11, %v2418_v62  ;;  %v3759_v15 = vadd.s32 %v3758_v36, %v3754_v50  ;;  %v2671_v61 = vsel %vm2670_vm0, %v2669_v31, 0  ;;  %8817 = vcosq.f32 %v11017_v17 }
 0x25a   : > { %13948 = vst [vmem:[#allocation71_spill] sm:$0xff] %v11025_v56  ;;  %v11032_v24 = vsel %vm13725_vm12, %v2327_v21, %v10934_v12  ;;  %vm7610_vm6 = vcmp.lt.s32.totalorder %v7609_v25, 0  ;;  %v2673_v22 = vand.u32 31, %v2671_v61  ;;  %v11034_v23 = vmul.f32 %v3365_v16, %v3363_v43 }
 0x25b   : > { %v11036_v10 = vor.u32 %v2421_v33, %v2420_v35  ;;  %v3760_v2 = vadd.s32 536870912, %v3759_v15  ;;  %v11039_v60 = vmul.f32 %v10926_v63, %v830_v51  ;;  %v2425_v11 = vshll.u32 %v2424_v34, 23 }
 0x25c   : > { %v2666_v62 = vand.u32 8388607, %v13713_v38  ;;  %v2674_v27 = vsub.s32 32, %v2673_v22  ;;  %v4118_v54 = vand.u32 2139095040, %v11025_v56  ;;  %v11044_v46 = vsel %vm7610_vm6, 0, %v7609_v25 }
 0x25d   : > { %v11046_v12 = vshrl.u32 %v3760_v2, 30  ;;  %v2676_v52 = vshll.u32 %v13844_v39, %v2673_v22  ;;  %v2679_v4 = vshll.u32 %v13852_v40, %v2673_v22  ;;  %v2682_v18 = vshll.u32 %v13842_v41, %v2673_v22 }
 0x25e   : > { %v2677_v37 = vshrl.u32 %v13852_v40, %v2674_v27  ;;  %v2680_v50 = vshrl.u32 %v13842_v41, %v2674_v27  ;;  %v2683_v21 = vshrl.u32 %v13843_v7, %v2674_v27  ;;  %v2672_v31 = vshrl.u32 %v2671_v61, 5 }
 0x25f   : > { %13949 = vst [vmem:[#allocation72_spill] sm:$0xff] %v11046_v12  ;;  %v3762_v43 = vshll.u32 %v11046_v12, 30  ;;  %v2685_v33 = vshll.u32 %v13843_v7, %v2673_v22  ;;  %v2686_v25 = vshrl.u32 %v13845_v58, %v2674_v27  ;;  %v11057_v34 = vor.u32 4788187, %v2425_v11 }
 0x260   : > { %v2678_v36 = vor.u32 %v2677_v37, %v2676_v52  ;;  %v2681_v51 = vor.u32 %v2680_v50, %v2679_v4  ;;  %v2684_v16 = vor.u32 %v2683_v21, %v2682_v18  ;;  %v13950_v35 = vand.u32 2147483647, %v10442_v19 }
 0x261   : > { %v13951_v2 = vmov 0  ;;  %v11065_v38 = vsub.s32 %v3759_v15, %v3762_v43  ;;  %v2667_v14 = vor.u32 8388608, %v2666_v62  ;;  %v2687_v12 = vor.u32 %v2686_v25, %v2685_v33 }
 0x262   : > { %vm11061_vm7 = vcmp.le.f32.partialorder %v13950_v35, 0.7853982  ;;  %v2631_v57 = vsub.s32 4294967266, %v11044_v46  ;;  %v2688_v11 = vshll.u32 %v13845_v58, %v2673_v22  ;;  %v2689_v52 = vshrl.u32 %v13846_v13, %v2674_v27 }
 0x263   : > { %v13952_v2 = vsel %vm11061_vm7, 4294967295, %v13951_v2  ;;  %v4119_v4 = vshrl.u32 %v4118_v54, 23  ;;  %v3765_v37 = vsub.s32 0, %v11065_v38  ;;  %vm2691_vm9 = vcmp.lt.s32.totalorder %v2672_v31, 1  ;;  %v11072_v50 = vpop.eup %8817 }
 0x264   : > { %13953 = vst [vmem:[#allocation73_spill] sm:$0xff] %v13952_v2  ;;  %vm2693_vm15 = vcmp.lt.s32.totalorder %v2672_v31, 3  ;;  %vm2694_vm0 = vcmp.lt.s32.totalorder %v2672_v31, 4  ;;  %13954 = vst [vmem:[#allocation74_spill] sm:$0xff] %v11072_v50  ;;  %v2690_v15 = vor.u32 %v2689_v52, %v2688_v11  ;;  %v2699_v62 = vsel %vm2691_vm9, %v2678_v36, %v2681_v51 }
 0x265   : > { %v2696_v18 = vsel %vm2694_vm0, %v2684_v16, 2102212464  ;;  %v2700_v21 = vsel %vm2694_vm0, %v2687_v12, 920167782  ;;  %v7652_v43 = vmin.u32 %v3765_v37, %v11065_v38  ;;  %v2675_v33 = vshrl.u32 %v13844_v39, %v2674_v27 }
 0x266   : > { %vm2692_vm6 = vcmp.lt.s32.totalorder %v2672_v31, 2  ;;  %v2701_v22 = vsel %vm2693_vm15, %v2684_v16, %v2700_v21  ;;  %v2703_v25 = vsel %vm2691_vm9, %v2681_v51, %v2684_v16  ;;  %v2704_v35 = vsel %vm2694_vm0, %v2690_v15, 1326507024 }
 0x267   : > { %v2702_v54 = vsel %vm2692_vm6, %v2699_v62, %v2701_v22  ;;  %v2707_v61 = vshll.u32 %v2667_v14, 8  ;;  %v3767_v3 = vclz %v7652_v43  ;;  %v2695_v11 = vsel %vm2691_vm9, %v2675_v33, %v2678_v36 }
 0x268   : > { %v2697_v52 = vsel %vm2693_vm15, %v2681_v51, %v2696_v18  ;;  %v2705_v50 = vsel %vm2693_vm15, %v2687_v12, %v2704_v35  ;;  %v7667_v21 = vadd.s32 4294967169, %v4119_v4  ;;  %v2632_v53 = vadd.s32 127, %v2631_v57 }
 0x269   : > { %v2706_v37 = vsel %vm2692_vm6, %v2703_v25, %v2705_v50  ;;  %v11084_v49 = vmul.u32.u64.low %v2707_v61, %v2702_v54  ;;  %v11085_v27 = vmul.u32.u64.high %v2707_v61, %v2702_v54, %v11084_v49  ;;  %v7653_v62 = vadd.s32 4294967294, %v3767_v3  ;;  %v661_v25 = vpop.permute.xlu1 %660 }
 0x26a   : > { %v11088_v22 = vmul.u32.u64.low %v2707_v61, %v2706_v37  ;;  %v11089_v16 = vmul.u32.u64.high %v2707_v61, %v2706_v37, %v11088_v22  ;;  %8819 = vsinq.f32 %v11017_v17  ;;  %v11096_v14 = vsel %vm11061_vm7, %v10442_v19, %v11032_v24 }
 0x26b   : > { %v11100_v12 = vmul.f32 %v10828_v5, %v10737_v9  ;;  %v4125_v36 = vadd.s32 1, %v7667_v21  ;;  %v2627_v3 = vsub.s32 32, %v11044_v46  ;;  %v2698_v57 = vsel %vm2692_vm6, %v2695_v11, %v2697_v52 }
 0x26c   : > { %v13956_v4 = vand.u32 2147483647, %v11025_v56  ;;  %v2611_v24 = vadd.s32 %v10896_v44, %v10914_v28  ;;  %v2717_v15 = vadd.s32 1, %v11085_v27  ;;  %v2633_v18 = vshll.u32 %v2632_v53, 23 }
 0x26d   : > { %13955 = vst [vmem:[#allocation75_spill] sm:$0xff] %v11100_v12  ;;  %vm4126_vm9 = vcmp.gt.s32.totalorder %v4125_v36, 0  ;;  %vm7654_vm15 = vcmp.lt.s32.totalorder %v7653_v62, 0  ;;  %v941_v43 = vadd.f32 %v11039_v60, %v10832_v8  ;;  %v3755_v31 = vadd.s32 %v10995_v32, %v11003_v45  ;;  %v838_v19 = vpop.permute.xlu1 %837 }
 0x26e   : > { %v4122_v17 = vand.u32 8388607, %v13956_v4  ;;  %v2714_v33 = vmul.u32 %v2707_v61, %v2698_v57  ;;  %vm2716_vm0 = vc.u32 %v11089_v16, %v11084_v49  ;;  %v4127_v54 = vsel %vm4126_vm9, %v4125_v36, 0 }
 0x26f   : > { %v11120_v44 = vshrl.u32 %v2611_v24, %v2627_v3  ;;  %v2718_v53 = vsel %vm2716_vm0, %v2717_v15, %v11085_v27  ;;  %v11123_v11 = vsel %vm7654_vm15, 0, %v7653_v62  ;;  %v4128_v60 = vshrl.u32 %v4127_v54, 5 }
 0x270   : > { %v4123_v35 = vor.u32 8388608, %v4122_v17  ;;  %v2719_v8 = vadd.s32 %v2718_v53, %v2714_v33  ;;  %v4129_v52 = vand.u32 31, %v4127_v54  ;;  %v11125_v32 = vor.u32 4788187, %v2633_v18 }
 0x271   : > { %v3771_v45 = vsub.s32 32, %v11123_v11  ;;  %v11129_v61 = vadd.f32 %v10962_v26, %v941_v43  ;;  %v746_v37 = vmul.f32 %v10828_v5, %v661_v25  ;;  %v3775_v62 = vsub.s32 4294967266, %v11123_v11 }
 0x272   : > { %v2720_v21 = vadd.s32 536870912, %v2719_v8  ;;  %v4130_v22 = vsub.s32 32, %v4129_v52  ;;  %v4132_v36 = vshll.u32 %v13844_v39, %v4129_v52  ;;  %v4135_v27 = vshll.u32 %v13852_v40, %v4129_v52 }
 0x273   : > { %v4138_v3 = vshll.u32 %v13842_v41, %v4129_v52  ;;  %v4141_v57 = vshll.u32 %v13843_v7, %v4129_v52  ;;  %v11137_v4 = vshll.u32 %v4123_v35, 8  ;;  %vm4147_vm6 = vcmp.lt.s32.totalorder %v4128_v60, 1 }
 0x274   : > { %v11139_v17 = vpop.eup %8819  ;;  %v11141_v24 = vshrl.u32 %v2720_v21, 30  ;;  %v4133_v5 = vshrl.u32 %v13852_v40, %v4130_v22  ;;  %v4136_v15 = vshrl.u32 %v13842_v41, %v4130_v22  ;;  %v4131_v18 = vshrl.u32 %v13844_v39, %v4130_v22 }
 0x275   : > { %13957 = vst [vmem:[#allocation76_spill] sm:$0xff] %v11139_v17  ;;  %v4139_v43 = vshrl.u32 %v13843_v7, %v4130_v22  ;;  %v4142_v33 = vshrl.u32 %v13845_v58, %v4130_v22  ;;  %v4144_v54 = vshll.u32 %v13845_v58, %v4129_v52  ;;  %v4145_v21 = vshrl.u32 %v13846_v13, %v4130_v22 }
 0x276   : > { %13958 = vst [vmem:[#allocation77_spill] sm:$0xff] %v11141_v24  ;;  %v2722_v25 = vshll.u32 %v11141_v24, 30  ;;  %v4134_v53 = vor.u32 %v4133_v5, %v4132_v36  ;;  %v4137_v35 = vor.u32 %v4136_v15, %v4135_v27  ;;  %v3776_v50 = vadd.s32 127, %v3775_v62 }
 0x277   : > { %v4140_v9 = vor.u32 %v4139_v43, %v4138_v3  ;;  %v4143_v28 = vor.u32 %v4142_v33, %v4141_v57  ;;  %vm4149_vm15 = vcmp.lt.s32.totalorder %v4128_v60, 3  ;;  %v4146_v2 = vor.u32 %v4145_v21, %v4144_v54 }
 0x278   : > { %v11152_v51 = vsub.s32 %v2719_v8, %v2722_v25  ;;  %vm4148_vm0 = vcmp.lt.s32.totalorder %v4128_v60, 2  ;;  %vm4150_vm12 = vcmp.lt.s32.totalorder %v4128_v60, 4  ;;  %v4151_v52 = vsel %vm4147_vm6, %v4131_v18, %v4134_v53 }
 0x279   : > { %v4152_v17 = vsel %vm4150_vm12, %v4140_v9, 2102212464  ;;  %v4155_v12 = vsel %vm4147_vm6, %v4134_v53, %v4137_v35  ;;  %v4156_v24 = vsel %vm4150_vm12, %v4143_v28, 920167782  ;;  %v4159_v62 = vsel %vm4147_vm6, %v4137_v35, %v4140_v9 }
 0x27a   : > { %v2725_v36 = vsub.s32 0, %v11152_v51  ;;  %v4153_v22 = vsel %vm4149_vm15, %v4137_v35, %v4152_v17  ;;  %v4157_v27 = vsel %vm4149_vm15, %v4140_v9, %v4156_v24  ;;  %v13959_v8 = vand.u32 2147483647, %v10521_v55 }
 0x27b   : > { %v13960_v3 = vmov 0  ;;  %v3772_v57 = vshll.u32 %v11065_v38, %v11123_v11  ;;  %v4158_v5 = vsel %vm4148_vm0, %v4155_v12, %v4157_v27  ;;  %v4160_v15 = vsel %vm4150_vm12, %v4146_v2, 1326507024 }
 0x27c   : > { %vm11162_vm9 = vcmp.le.f32.partialorder %v13959_v8, 0.7853982  ;;  %v911_v18 = vmul.f32 %v10926_v63, %v838_v19  ;;  %v3773_v43 = vshrl.u32 %v3755_v31, %v3771_v45  ;;  %v3777_v17 = vshll.u32 %v3776_v50, 23 }
 0x27d   : > { %v13961_v3 = vsel %vm11162_vm9, 4294967295, %v13960_v3  ;;  %v7612_v24 = vmin.u32 %v2725_v36, %v11152_v51  ;;  %v4161_v9 = vsel %vm4149_vm15, %v4143_v28, %v4160_v15  ;;  %v4154_v33 = vsel %vm4148_vm0, %v4151_v52, %v4153_v22 }
 0x27e   : > { %13962 = vst [vmem:[#allocation78_spill] sm:$0xff] %v13961_v3  ;;  %v4162_v54 = vsel %vm4148_vm0, %v4159_v62, %v4161_v9  ;;  %v11175_v25 = vmul.u32.u64.low %v11137_v4, %v4158_v5  ;;  %v11176_v53 = vmul.u32.u64.high %v11137_v4, %v4158_v5, %v11175_v25  ;;  %v13731_v19 = vand.u32 2147483647, %v11129_v61  ;;  %v13968_v9 = vld [vmem:[#allocation8_spill] sm:$0xff] }
 0x27f   : > { %v2727_v38 = vclz %v7612_v24  ;;  %v11180_v2 = vmul.u32.u64.low %v11137_v4, %v4162_v54  ;;  %v11181_v12 = vmul.u32.u64.high %v11137_v4, %v4162_v54, %v11180_v2  ;;  %v13963_v50 = vxor.u32 2147483648, %v11034_v23 }
 0x280   : > { %vm13964_vm12 = vcmp.lt.s32.totalorder %v10521_v55, 0  ;;  %v13965_v28 = vshll.u32 %v10983_v0, %v11044_v46  ;;  %v2766_v60 = vand.u32 2139095040, %v11129_v61  ;;  %v943_v45 = vadd.f32 %v911_v18, %v746_v37 }
 0x281   : > { %v3368_v31 = vsel %vm13964_vm12, %v13963_v50, %v11034_v23  ;;  %v13966_v35 = vand.u32 2147483647, %v11057_v34  ;;  %v13967_v21 = vcvt.s32.f32 %v11036_v10  ;;  %v2635_v36 = vand.u32 2147483647, %v11125_v32 }
 0x282   : > { %v2630_v11 = vor.u32 %v11120_v44, %v13965_v28  ;;  %v7613_v22 = vadd.s32 4294967294, %v2727_v38  ;;  %v4170_v27 = vmul.u32 %v11137_v4, %v4154_v33  ;;  %v3774_v62 = vor.u32 %v3773_v43, %v3772_v57 }
 0x283   : > { %v2430_v52 = vmul.f32 %v13967_v21, %v13966_v35  ;;  %v3778_v23 = vor.u32 4788187, %v3777_v17  ;;  %v4173_v8 = vadd.s32 1, %v11176_v53  ;;  %v2767_v0 = vshrl.u32 %v2766_v60, 23  ;;  %v13970_v21 = vld [vmem:[#allocation5_spill] sm:$0xff] }
 0x284   : > { %8821 = vcosq.f32 %v11096_v14  ;;  %vm13734_vm6 = vcmp.lt.s32.totalorder %v10622_v47, 0  ;;  %vm4172_vm15 = vc.u32 %v11181_v12, %v11175_v25  ;;  %v2770_v10 = vand.u32 8388607, %v13731_v19 }
 0x285   : > { %v2637_v46 = vcvt.s32.f32 %v2630_v11  ;;  %v4174_v34 = vsel %vm4172_vm15, %v4173_v8, %v11176_v53  ;;  %v7615_v44 = vadd.s32 4294967169, %v2767_v0  ;;  %v11209_v32 = vadd.f32 %v10962_v26, %v943_v45 }
 0x286   : > { %v3371_v37 = vsel %vm11162_vm9, %v10521_v55, %v3368_v31  ;;  %v2431_v4 = vxor.u32 2147483648, %v2430_v52  ;;  %vm7614_vm0 = vcmp.lt.s32.totalorder %v7613_v22, 0  ;;  %v4175_v57 = vadd.s32 %v4174_v34, %v4170_v27  ;;  %v13987_v55 = vld [vmem:[#allocation11_spill] sm:$0xff] }
 0x287   : > { %v11214_v5 = vmul.f32 %v2637_v46, %v2635_v36  ;;  %v3779_v15 = vand.u32 2147483647, %v3778_v23  ;;  %v3781_v18 = vcvt.s32.f32 %v3774_v62  ;;  %v2773_v43 = vadd.s32 1, %v7615_v44 }
 0x288   : > { %8823 = vsinq.f32 %v11096_v14  ;;  %v4176_v17 = vadd.s32 536870912, %v4175_v57  ;;  %v2771_v24 = vor.u32 8388608, %v2770_v10  ;;  %v1081_v33 = vsub.s32 4, %v13968_v9 }
 0x289   : > { %8825 = vcosq.f32 %v3371_v37  ;;  %v11218_v54 = vsel %vm7614_vm0, 0, %v7613_v22  ;;  %vm2774_vm12 = vcmp.gt.s32.totalorder %v2773_v43, 0  ;;  %v2974_v53 = vand.u32 2139095040, %v11209_v32 }
 0x28a   : > { %8827 = vsinq.f32 %v3371_v37  ;;  %v11223_v38 = vsel %vm13734_vm6, %v2431_v4, %v2430_v52  ;;  %v11225_v2 = vshrl.u32 %v4176_v17, 30  ;;  %v2775_v50 = vsel %vm2774_vm12, %v2773_v43, 0 }
 0x28b   : > { %v11228_v31 = vmul.f32 %v3781_v18, %v3779_v15  ;;  %v2715_v28 = vadd.s32 %v11084_v49, %v11089_v16  ;;  %v2777_v11 = vand.u32 31, %v2775_v50  ;;  %v2731_v60 = vsub.s32 32, %v11218_v54 }
 0x28c   : > { %13969 = vst [vmem:[#allocation8_spill] sm:$0xff] %v11225_v2  ;;  %v4178_v45 = vshll.u32 %v11225_v2, 30  ;;  %v11234_v35 = vshll.u32 %v2771_v24, 8  ;;  %vm13971_vm15 = vcmp.lt.s32.totalorder %v13970_v21, 0  ;;  %v2735_v36 = vsub.s32 4294967266, %v11218_v54 }
 0x28d   : > { %v11239_v52 = vsel %vm13971_vm15, %v1081_v33, %v13968_v9  ;;  %v2778_v22 = vsub.s32 32, %v2777_v11  ;;  %v2975_v62 = vshrl.u32 %v2974_v53, 23  ;;  %v2776_v16 = vshrl.u32 %v2775_v50, 5 }
 0x28e   : > { %v11243_v23 = vpop.eup %8821  ;;  %v11245_v49 = vsub.s32 %v4175_v57, %v4178_v45  ;;  %v2780_v8 = vshll.u32 %v13844_v39, %v2777_v11  ;;  %v2783_v0 = vshll.u32 %v13852_v40, %v2777_v11  ;;  %v2786_v34 = vshll.u32 %v13842_v41, %v2777_v11 }
 0x28f   : > { %13972 = vst [vmem:[#allocation5_spill] sm:$0xff] %v11243_v23  ;;  %v2781_v10 = vshrl.u32 %v13852_v40, %v2778_v22  ;;  %v2784_v46 = vshrl.u32 %v13842_v41, %v2778_v22  ;;  %v2787_v44 = vshrl.u32 %v13843_v7, %v2778_v22  ;;  %v13973_v37 = vand.u32 2147483647, %v10622_v47 }
 0x290   : > { %v13974_v4 = vmov 0  ;;  %v4181_v57 = vsub.s32 0, %v11245_v49  ;;  %v2789_v15 = vshll.u32 %v13843_v7, %v2777_v11  ;;  %v2790_v18 = vshrl.u32 %v13845_v58, %v2778_v22 }
 0x291   : > { %vm11255_vm0 = vcmp.le.f32.partialorder %v13973_v37, 0.7853982  ;;  %v2793_v43 = vshrl.u32 %v13846_v13, %v2778_v22  ;;  %v2782_v17 = vor.u32 %v2781_v10, %v2780_v8  ;;  %v2785_v24 = vor.u32 %v2784_v46, %v2783_v0 }
 0x292   : > { %v13975_v4 = vsel %vm11255_vm0, 4294967295, %v13974_v4  ;;  %v2788_v9 = vor.u32 %v2787_v44, %v2786_v34  ;;  %v2792_v33 = vshll.u32 %v13845_v58, %v2777_v11  ;;  %v11265_v53 = vpop.eup %8823  ;;  %v2732_v50 = vshll.u32 %v11152_v51, %v11218_v54 }
 0x293   : > { %13976 = vst [vmem:[#allocation79_spill] sm:$0xff] %v13975_v4  ;;  %13977 = vst [vmem:[#allocation80_spill] sm:$0xff] %v11265_v53  ;;  %v2736_v45 = vadd.s32 127, %v2735_v36  ;;  %v7668_v37 = vmin.u32 %v4181_v57, %v11245_v49  ;;  %v2791_v19 = vor.u32 %v2790_v18, %v2789_v15  ;;  %v11270_v14 = vpop.eup %8825  ;;  %v2733_v27 = vshrl.u32 %v2715_v28, %v2731_v60 }
 0x294   : > { %13978 = vst [vmem:[#allocation81_spill] sm:$0xff] %v11270_v14  ;;  %v2794_v2 = vor.u32 %v2793_v43, %v2792_v33  ;;  %vm2795_vm15 = vcmp.lt.s32.totalorder %v2776_v16, 1  ;;  %vm2798_vm6 = vcmp.lt.s32.totalorder %v2776_v16, 4  ;;  %v11272_v8 = vpop.eup %8827  ;;  %v13980_v46 = vand.u32 2147483647, %v11209_v32 }
 0x295   : > { %13979 = vst [vmem:[#allocation82_spill] sm:$0xff] %v11272_v8  ;;  %v4183_v0 = vclz %v7668_v37  ;;  %v2800_v11 = vsel %vm2798_vm6, %v2788_v9, 2102212464  ;;  %v2803_v10 = vsel %vm2795_vm15, %v2782_v17, %v2785_v24  ;;  %v2779_v51 = vshrl.u32 %v13844_v39, %v2778_v22 }
 0x296   : > { %v2978_v34 = vand.u32 8388607, %v13980_v46  ;;  %vm2797_vm12 = vcmp.lt.s32.totalorder %v2776_v16, 3  ;;  %v2804_v54 = vsel %vm2798_vm6, %v2791_v19, 920167782  ;;  %v7623_v36 = vadd.s32 4294967169, %v2975_v62 }
 0x297   : > { %v2737_v44 = vshll.u32 %v2736_v45, 23  ;;  %vm2796_vm9 = vcmp.lt.s32.totalorder %v2776_v16, 2  ;;  %v2805_v28 = vsel %vm2797_vm12, %v2788_v9, %v2804_v54  ;;  %v2807_v60 = vsel %vm2795_vm15, %v2785_v24, %v2788_v9  ;;  %v13985_v16 = vld [vmem:[#allocation19_spill] sm:$0xff] }
 0x298   : > { %v2799_v57 = vsel %vm2795_vm15, %v2779_v51, %v2782_v17  ;;  %v2801_v15 = vsel %vm2797_vm12, %v2785_v24, %v2800_v11  ;;  %v2806_v18 = vsel %vm2796_vm9, %v2803_v10, %v2805_v28  ;;  %v2808_v43 = vsel %vm2798_vm6, %v2794_v2, 1326507024 }
 0x299   : > { %v7669_v33 = vadd.s32 4294967294, %v4183_v0  ;;  %v2809_v37 = vsel %vm2797_vm12, %v2791_v19, %v2808_v43  ;;  %v11282_v46 = vmul.u32.u64.low %v11234_v35, %v2806_v18  ;;  %v11283_v14 = vmul.u32.u64.high %v11234_v35, %v2806_v18, %v11282_v46 }
 0x29a   : > { %v11290_v22 = vsel %vm11255_vm0, %v10622_v47, %v11223_v38  ;;  %v13981_v62 = vxor.u32 2147483648, %v11214_v5  ;;  %vm13982_vm15 = vcmp.lt.s32.totalorder %v10734_v42, 0  ;;  %v2810_v19 = vsel %vm2796_vm9, %v2807_v60, %v2809_v37 }
 0x29b   : > { %v2981_v2 = vadd.s32 1, %v7623_v36  ;;  %v11300_v24 = vor.u32 %v2733_v27, %v2732_v50  ;;  %v11302_v9 = vor.u32 4788187, %v2737_v44  ;;  %v2979_v45 = vor.u32 8388608, %v2978_v34  ;;  %v13984_v36 = vld [vmem:[#allocation21_spill] sm:$0xff] }
 0x29c   : > { %v11297_v17 = vsel %vm13982_vm15, %v13981_v62, %v11214_v5  ;;  %v1084_v38 = vsel %vm9702_vm2, 0, %v11239_v52  ;;  %v2802_v11 = vsel %vm2796_vm9, %v2799_v57, %v2801_v15  ;;  %vm7670_vm12 = vcmp.lt.s32.totalorder %v7669_v33, 0 }
 0x29d   : > { %v11309_v10 = vmul.u32.u64.low %v11234_v35, %v2810_v19  ;;  %v11310_v51 = vmul.u32.u64.high %v11234_v35, %v2810_v19, %v11309_v10  ;;  %vm2982_vm6 = vcmp.gt.s32.totalorder %v2981_v2, 0  ;;  %v2821_v27 = vadd.s32 1, %v11283_v14 }
 0x29e   : > { %v2983_v50 = vsel %vm2982_vm6, %v2981_v2, 0  ;;  %v11316_v34 = vadd.s32 %v11175_v25, %v11181_v12  ;;  %v1092_v52 = vxor.u32 2147483648, %v13984_v36  ;;  %v1095_v44 = vxor.u32 2147483648, %v13985_v16 }
 0x29f   : > { %v2985_v54 = vand.u32 31, %v2983_v50  ;;  %v2818_v57 = vmul.u32 %v11234_v35, %v2802_v11  ;;  %v1088_v15 = vadd.s32 3, %v1084_v38  ;;  %v11323_v18 = vsel %vm7670_vm12, 0, %v7669_v33 }
 0x2a0   : > { %vm2820_vm2 = vc.u32 %v11310_v51, %v11282_v46  ;;  %v11327_v25 = vshll.u32 %v2979_v45, 8  ;;  %v4187_v12 = vsub.s32 32, %v11323_v18  ;;  %v2984_v38 = vshrl.u32 %v2983_v50, 5 }
 0x2a1   : > { %v2986_v43 = vsub.s32 32, %v2985_v54  ;;  %v2822_v62 = vsel %vm2820_vm2, %v2821_v27, %v11283_v14  ;;  %v2988_v19 = vshll.u32 %v13844_v39, %v2985_v54  ;;  %v2991_v33 = vshll.u32 %v13852_v40, %v2985_v54 }
 0x2a2   : > { %v2823_v2 = vadd.s32 %v2822_v62, %v2818_v57  ;;  %v2994_v45 = vshll.u32 %v13842_v41, %v2985_v54  ;;  %v2997_v10 = vshll.u32 %v13843_v7, %v2985_v54  ;;  %v3000_v57 = vshll.u32 %v13845_v58, %v2985_v54 }
 0x2a3   : > { %v2989_v35 = vshrl.u32 %v13852_v40, %v2986_v43  ;;  %v2992_v0 = vshrl.u32 %v13842_v41, %v2986_v43  ;;  %v2995_v11 = vshrl.u32 %v13843_v7, %v2986_v43  ;;  %v2998_v14 = vshrl.u32 %v13845_v58, %v2986_v43 }
 0x2a4   : > { %v2824_v5 = vadd.s32 536870912, %v2823_v2  ;;  %v3001_v62 = vshrl.u32 %v13846_v13, %v2986_v43  ;;  %v1089_v28 = vand.u32 3, %v1088_v15  ;;  %v4191_v8 = vsub.s32 4294967266, %v11323_v18 }
 0x2a5   : > { %v2990_v37 = vor.u32 %v2989_v35, %v2988_v19  ;;  %v2993_v60 = vor.u32 %v2992_v0, %v2991_v33  ;;  %v2996_v27 = vor.u32 %v2995_v11, %v2994_v45  ;;  %v2999_v3 = vor.u32 %v2998_v14, %v2997_v10  ;;  %v666_v33 = vpop.permute.xlu1 %665 }
 0x2a6   : > { %v11344_v50 = vshrl.u32 %v2824_v5, 30  ;;  %v1185_v23 = vsub.s32 4, %v13987_v55  ;;  %v2987_v53 = vshrl.u32 %v13844_v39, %v2986_v43  ;;  %v3002_v4 = vor.u32 %v3001_v62, %v3000_v57 }
 0x2a7   : > { %vm3003_vm9 = vcmp.lt.s32.totalorder %v2984_v38, 1  ;;  %vm3006_vm15 = vcmp.lt.s32.totalorder %v2984_v38, 4  ;;  %vm3005_vm6 = vcmp.lt.s32.totalorder %v2984_v38, 3  ;;  %vm1091_vm12 = vcmp.eq.s32.totalorder %v1089_v28, 0 }
 0x2a8   : > { %13986 = vst [vmem:[#allocation15_spill] sm:$0xff] %v11344_v50  ;;  %v2826_v19 = vshll.u32 %v11344_v50, 30  ;;  %v3008_v54 = vsel %vm3006_vm15, %v2996_v27, 2102212464  ;;  %v3011_v35 = vsel %vm3003_vm9, %v2990_v37, %v2993_v60  ;;  %v3007_v15 = vsel %vm3003_vm9, %v2987_v53, %v2990_v37 }
 0x2a9   : > { %v3009_v0 = vsel %vm3005_vm6, %v2993_v60, %v3008_v54  ;;  %v3012_v5 = vsel %vm3006_vm15, %v2999_v3, 920167782  ;;  %vm3004_vm2 = vcmp.lt.s32.totalorder %v2984_v38, 2  ;;  %v3015_v11 = vsel %vm3003_vm9, %v2993_v60, %v2996_v27 }
 0x2aa   : > { %v11352_v45 = vsub.s32 %v2823_v2, %v2826_v19  ;;  %v3013_v43 = vsel %vm3005_vm6, %v2996_v27, %v3012_v5  ;;  %v4192_v10 = vadd.s32 127, %v4191_v8  ;;  %v3016_v57 = vsel %vm3006_vm15, %v3002_v4, 1326507024 }
 0x2ab   : > { %v3014_v14 = vsel %vm3004_vm2, %v3011_v35, %v3013_v43  ;;  %v1093_v62 = vsel %vm1091_vm12, %v13985_v16, %v1092_v52  ;;  %v3010_v53 = vsel %vm3004_vm2, %v3007_v15, %v3009_v0  ;;  %v3017_v37 = vsel %vm3005_vm6, %v2999_v3, %v3016_v57  ;;  %v842_v3 = vpop.permute.xlu1 %841  ;;  %v13988_v35 = vld [vmem:[#allocation7_spill] sm:$0xff] }
 0x2ac   : > { %v2829_v50 = vsub.s32 0, %v11352_v45  ;;  %vm1087_vm0 = vweird.f32 %v13970_v21  ;;  %vm1094_vm7 = vcmp.eq.s32.totalorder %v1089_v28, 2  ;;  %v3018_v2 = vsel %vm3004_vm2, %v3015_v11, %v3017_v37 }
 0x2ad   : > { %v11361_v19 = vmul.u32.u64.low %v11327_v25, %v3014_v14  ;;  %v11362_v54 = vmul.u32.u64.high %v11327_v25, %v3014_v14, %v11361_v19  ;;  %v1096_v8 = vsel %vm1094_vm7, %v1095_v44, %v13984_v36  ;;  %v4189_v4 = vshrl.u32 %v11316_v34, %v4187_v12  ;;  %v13996_v14 = vld [vmem:[#allocation31_spill] sm:$0xff] }
 0x2ae   : > { %v7616_v52 = vmin.u32 %v2829_v50, %v11352_v45  ;;  %v11369_v16 = vmul.u32.u64.low %v11327_v25, %v3018_v2  ;;  %v11370_v60 = vmul.u32.u64.high %v11327_v25, %v3018_v2, %v11369_v16  ;;  %v4193_v38 = vshll.u32 %v4192_v10, 23  ;;  %v11382_v50 = vld [vmem:[%s13576_s2] ss:$0 sm:$0xff] }
 0x2af   : > { %v3026_v27 = vmul.u32 %v11327_v25, %v3010_v53  ;;  %vm1090_vm9 = vcmp.lt.s32.totalorder %v1089_v28, 2  ;;  %vm13989_vm15 = vcmp.lt.s32.totalorder %v13988_v35, 0  ;;  %v747_v0 = vmul.f32 %v11382_v50, %v666_v33  ;;  %v13997_v33 = vld [vmem:[#allocation30_spill] sm:$0xff] }
 0x2b0   : > { %v1186_v15 = vsel %vm13989_vm15, %v1185_v23, %v13987_v55  ;;  %v2831_v36 = vclz %v7616_v52  ;;  %v1097_v44 = vsel %vm1090_vm9, %v1093_v62, %v1096_v8  ;;  %v3029_v28 = vadd.s32 1, %v11362_v54  ;;  %v13991_v55 = vld [vmem:[#allocation9_spill] sm:$0xff]  ;;  %v14002_v52 = vld [vmem:[#allocation6_spill] sm:$0xff] }
 0x2b1   : > { %v1188_v12 = vsel %vm9924_vm14, 0, %v1186_v15  ;;  %v912_v5 = vmul.f32 %v10926_v63, %v842_v3  ;;  %v1497_v23 = vsub.s32 4, %v13991_v55  ;;  %v13992_v43 = vand.u32 2147483647, %v10734_v42 }
 0x2b2   : > { %v1192_v25 = vadd.s32 3, %v1188_v12  ;;  %v13993_v11 = vmov 0  ;;  %v7617_v10 = vadd.s32 4294967294, %v2831_v36  ;;  %vm3028_vm14 = vc.u32 %v11370_v60, %v11361_v19 }
 0x2b3   : > { %vm11390_vm7 = vcmp.le.f32.partialorder %v13992_v43, 0.7853982  ;;  %v1196_v57 = vxor.u32 2147483648, %v13996_v14  ;;  %v1199_v62 = vxor.u32 2147483648, %v13997_v33  ;;  %v13998_v53 = vand.u32 2147483647, %v10799_v29 }
 0x2b4   : > { %v13994_v11 = vsel %vm11390_vm7, 4294967295, %v13993_v11  ;;  %v13999_v63 = vmov 0  ;;  %v3030_v37 = vsel %vm3028_vm14, %v3029_v28, %v11362_v54  ;;  %v1193_v2 = vand.u32 3, %v1192_v25 }
 0x2b5   : > { %13995 = vst [vmem:[#allocation21_spill] sm:$0xff] %v13994_v11  ;;  %vm11400_vm12 = vcmp.le.f32.partialorder %v13998_v53, 0.7853982  ;;  %v944_v8 = vadd.f32 %v912_v5, %v747_v0  ;;  %vm14003_vm2 = vcmp.lt.s32.totalorder %v14002_v52, 0  ;;  %v14004_v3 = vand.u32 2147483647, %v11302_v9 }
 0x2b6   : > { %v14000_v63 = vsel %vm11400_vm12, 4294967295, %v13999_v63  ;;  %v1498_v16 = vsel %vm14003_vm2, %v1497_v23, %v13991_v55  ;;  %v14005_v15 = vcvt.s32.f32 %v11300_v24  ;;  %v14006_v34 = vshll.u32 %v11245_v49, %v11323_v18  ;;  %v14019_v0 = vld [vmem:[#allocation23_spill] sm:$0xff] }
 0x2b7   : > { %14001 = vst [vmem:[#allocation19_spill] sm:$0xff] %v14000_v63  ;;  %vm7618_vm9 = vcmp.lt.s32.totalorder %v7617_v10, 0  ;;  %v3031_v43 = vadd.s32 %v3030_v37, %v3026_v27  ;;  %v4194_v53 = vor.u32 4788187, %v4193_v38  ;;  %v1098_v54 = vsel %vm1087_vm0, nan, %v1097_v44  ;;  %v14029_v63 = vld [vmem:[#allocation39_spill] sm:$0xff] }
 0x2b8   : > { %v2742_v36 = vmul.f32 %v14005_v15, %v14004_v3  ;;  %v4190_v12 = vor.u32 %v4189_v4, %v14006_v34  ;;  %v11415_v47 = vsel %vm7618_vm9, 0, %v7617_v10  ;;  %v1500_v28 = vsel %vm9789_vm8, 0, %v1498_v16 }
 0x2b9   : > { %v2839_v9 = vsub.s32 4294967266, %v11415_v47  ;;  %v3032_v25 = vadd.s32 536870912, %v3031_v43  ;;  %vm1195_vm15 = vcmp.eq.s32.totalorder %v1193_v2, 0  ;;  %vm1198_vm14 = vcmp.eq.s32.totalorder %v1193_v2, 2 }
 0x2ba   : > { %vm13750_vm2 = vcmp.lt.s32.totalorder %v10965_v6, 0  ;;  %vm1194_vm6 = vcmp.lt.s32.totalorder %v1193_v2, 2  ;;  %v1197_v49 = vsel %vm1195_vm15, %v13997_v33, %v1196_v57  ;;  %v1200_v24 = vsel %vm1198_vm14, %v1199_v62, %v13996_v14 }
 0x2bb   : > { %v11426_v18 = vadd.f32 %v10962_v26, %v944_v8  ;;  %v11428_v21 = vshrl.u32 %v3032_v25, 30  ;;  %vm1191_vm0 = vweird.f32 %v13988_v35  ;;  %v1201_v4 = vsel %vm1194_vm6, %v1197_v49, %v1200_v24  ;;  %v14020_v24 = vld [vmem:[#allocation14_spill] sm:$0xff] }
 0x2bc   : > { %v4324_v38 = vpack.c.bf16 %v10804_v1, %v10809_v20  ;;  %v2840_v27 = vadd.s32 127, %v2839_v9  ;;  %v1202_v44 = vsel %vm1191_vm0, nan, %v1201_v4  ;;  %8829 = vcosq.f32 %v11290_v22 }
 0x2bd   : > { %14008 = vst [vmem:[#allocation11_spill] sm:$0xff] %v11426_v18  ;;  %14009 = vst [vmem:[#allocation7_spill] sm:$0xff] %v11428_v21  ;;  %v13751_v5 = vand.u32 2147483647, %v11426_v18  ;;  %v3078_v55 = vand.u32 2139095040, %v11426_v18  ;;  %v3034_v23 = vshll.u32 %v11428_v21, 30  ;;  %v4323_v26 = vpack.c.bf16 %v1202_v44, %v1098_v54 }
 0x2be   : > { %v1504_v10 = vadd.s32 3, %v1500_v28  ;;  %8831 = vsinq.f32 %v11290_v22  ;;  %v2643_v35 = vsel %vm11390_vm7, %v10734_v42, %v11297_v17  ;;  %v14010_v1 = vxor.u32 2147483648, %v11228_v31 }
 0x2bf   : > { %vm14011_vm8 = vcmp.lt.s32.totalorder %v10799_v29, 0  ;;  %v3079_v14 = vshrl.u32 %v3078_v55, 23  ;;  %v14012_v57 = vand.u32 2147483647, %v10965_v6  ;;  %v14013_v33 = vmov 0 }
 0x2c0   : > { %v3784_v20 = vsel %vm14011_vm8, %v14010_v1, %v11228_v31  ;;  %v2743_v62 = vxor.u32 2147483648, %v2742_v36  ;;  %v4195_v22 = vand.u32 2147483647, %v4194_v53  ;;  %v4197_v37 = vcvt.s32.f32 %v4190_v12  ;;  %v14018_v53 = vld [vmem:[#allocation29_spill] sm:$0xff] }
 0x2c1   : > { %vm11449_vm6 = vcmp.le.f32.partialorder %v14012_v57, 0.7853982  ;;  %v11453_v2 = vsub.s32 %v3031_v43, %v3034_v23  ;;  %vm14016_vm9 = vcmask 261120   ;;  %v2835_v17 = vsub.s32 32, %v11415_v47 }
 0x2c2   : > { %v14014_v33 = vsel %vm11449_vm6, 4294967295, %v14013_v33  ;;  %8115 = vmatprep.mubr.msk.bf16.mxu0 %vm14016_vm9, %v4323_v26  ;;  %v2841_v8 = vshll.u32 %v2840_v27, 23  ;;  %vm14017_vm15 = vmmov %vm14016_vm9  ;;  %v7627_v31 = vadd.s32 4294967169, %v3079_v14  ;;  %v3082_v16 = vand.u32 8388607, %v13751_v5 }
 0x2c3   : > { %14015 = vst [vmem:[#allocation24_spill] sm:$0xff] %v14014_v33  ;;  %8116 = vmatmul.mubr.msk.bf16.vlgmr.msra.gmra.mrb[0].mxu0 %vm14017_vm15, %v4324_v38  ;;  %8833 = vcosq.f32 %v2643_v35  ;;  %v11463_v3 = vsel %vm11400_vm12, %v10799_v29, %v3784_v20  ;;  %v3037_v15 = vsub.s32 0, %v11453_v2  ;;  %v1505_v34 = vand.u32 3, %v1504_v10  ;;  %v14021_v20 = vld [vmem:[#allocation10_spill] sm:$0xff] }
 0x2c4   : > { %v2819_v12 = vadd.s32 %v11282_v46, %v11310_v51  ;;  %v3085_v43 = vadd.s32 1, %v7627_v31  ;;  %v1508_v54 = vxor.u32 2147483648, %v14018_v53  ;;  %v1511_v28 = vxor.u32 2147483648, %v14019_v0 }
 0x2c5   : > { %v2744_v9 = vsel %vm13750_vm2, %v2743_v62, %v2742_v36  ;;  %v11472_v25 = vmul.f32 %v4197_v37, %v4195_v22  ;;  %v7624_v49 = vmin.u32 %v3037_v15, %v11453_v2  ;;  %v1601_v4 = vsub.s32 4, %v14020_v24 }
 0x2c6   : > { %v2837_v38 = vshrl.u32 %v2819_v12, %v2835_v17  ;;  %v11476_v27 = vor.u32 4788187, %v2841_v8  ;;  %v3083_v44 = vor.u32 8388608, %v3082_v16  ;;  %vm3086_vm14 = vcmp.gt.s32.totalorder %v3085_v43, 0  ;;  %v11480_v26 = vpop.eup %8829 }
 0x2c7   : > { %v3039_v46 = vclz %v7624_v49  ;;  %v3087_v51 = vsel %vm3086_vm14, %v3085_v43, 0  ;;  %vm1507_vm0 = vcmp.eq.s32.totalorder %v1505_v34, 0  ;;  %vm1510_vm8 = vcmp.eq.s32.totalorder %v1505_v34, 2 }
 0x2c8   : > { %8835 = vsinq.f32 %v2643_v35  ;;  %v3089_v55 = vand.u32 31, %v3087_v51  ;;  %v1509_v23 = vsel %vm1507_vm0, %v14019_v0, %v1508_v54  ;;  %v1512_v36 = vsel %vm1510_vm8, %v1511_v28, %v14018_v53  ;;  %v11488_v57 = vpop.eup %8831  ;;  %v846_v0 = vpop.permute.xlu1 %845 }
 0x2c9   : > { %8837 = vcosq.f32 %v11463_v3  ;;  %v2836_v10 = vshll.u32 %v11352_v45, %v11415_v47  ;;  %v7625_v1 = vadd.s32 4294967294, %v3039_v46  ;;  %vm14022_vm9 = vcmp.lt.s32.totalorder %v14021_v20, 0  ;;  %v14028_v47 = vld [vmem:[#allocation40_spill] sm:$0xff] }
 0x2ca   : > { %v1602_v14 = vsel %vm14022_vm9, %v1601_v4, %v14020_v24  ;;  %v11493_v35 = vsel %vm11449_vm6, %v10965_v6, %v2744_v9  ;;  %v3090_v22 = vsub.s32 32, %v3089_v55  ;;  %vm1506_vm15 = vcmp.lt.s32.totalorder %v1505_v34, 2 }
 0x2cb   : > { %v11496_v37 = vor.u32 %v2837_v38, %v2836_v10  ;;  %v11499_v45 = vshll.u32 %v3083_v44, 8  ;;  %v1513_v17 = vsel %vm1506_vm15, %v1509_v23, %v1512_v36  ;;  %v3088_v8 = vshrl.u32 %v3087_v51, 5  ;;  %v11519_v36 = vld [vmem:[%s13576_s2 + $0x1] ss:$0 sm:$0xff] }
 0x2cc   : > { %v3092_v31 = vshll.u32 %v13844_v39, %v3089_v55  ;;  %v3093_v16 = vshrl.u32 %v13852_v40, %v3090_v22  ;;  %v1604_v12 = vsel %vm10133_vm3, 0, %v1602_v14  ;;  %vm7626_vm14 = vcmp.lt.s32.totalorder %v7625_v1, 0  ;;  %v14025_v14 = vld [vmem:[#allocation17_spill] sm:$0xff] }
 0x2cd   : > { %v11505_v43 = vpop.eup %8833  ;;  %v3095_v34 = vshll.u32 %v13852_v40, %v3089_v55  ;;  %v3096_v53 = vshrl.u32 %v13842_v41, %v3090_v22  ;;  %v3098_v54 = vshll.u32 %v13842_v41, %v3089_v55  ;;  %v3099_v9 = vshrl.u32 %v13843_v7, %v3090_v22 }
 0x2ce   : > { %14024 = vst [vmem:[#allocation9_spill] sm:$0xff] %v11505_v43  ;;  %v3094_v28 = vor.u32 %v3093_v16, %v3092_v31  ;;  %v3101_v49 = vshll.u32 %v13843_v7, %v3089_v55  ;;  %v3102_v24 = vshrl.u32 %v13845_v58, %v3090_v22  ;;  %v3104_v38 = vshll.u32 %v13845_v58, %v3089_v55 }
 0x2cf   : > { %v3097_v4 = vor.u32 %v3096_v53, %v3095_v34  ;;  %v3105_v44 = vshrl.u32 %v13846_v13, %v3090_v22  ;;  %v1608_v46 = vadd.s32 3, %v1604_v12  ;;  %v3100_v51 = vor.u32 %v3099_v9, %v3098_v54 }
 0x2d0   : > { %v3103_v23 = vor.u32 %v3102_v24, %v3101_v49  ;;  %vm1503_vm3 = vweird.f32 %v14002_v52  ;;  %v913_v10 = vmul.f32 %v11519_v36, %v846_v0  ;;  %v1705_v31 = vsub.s32 4, %v14025_v14 }
 0x2d1   : > { %v11524_v16 = vsel %vm7626_vm14, 0, %v7625_v1  ;;  %v3091_v55 = vshrl.u32 %v13844_v39, %v3090_v22  ;;  %v3106_v15 = vor.u32 %v3105_v44, %v3104_v38  ;;  %vm3107_vm0 = vcmp.lt.s32.totalorder %v3088_v8, 1 }
 0x2d2   : > { %v11527_v12 = vpop.eup %8835  ;;  %vm3108_vm8 = vcmp.lt.s32.totalorder %v3088_v8, 2  ;;  %vm3109_vm9 = vcmp.lt.s32.totalorder %v3088_v8, 3  ;;  %vm3110_vm15 = vcmp.lt.s32.totalorder %v3088_v8, 4  ;;  %v3115_v34 = vsel %vm3107_vm0, %v3094_v28, %v3097_v4 }
 0x2d3   : > { %14026 = vst [vmem:[#allocation31_spill] sm:$0xff] %v11527_v12  ;;  %v11529_v53 = vpop.eup %8837  ;;  %v3111_v54 = vsel %vm3107_vm0, %v3091_v55, %v3094_v28  ;;  %v3112_v0 = vsel %vm3110_vm15, %v3100_v51, 2102212464  ;;  %v3116_v9 = vsel %vm3110_vm15, %v3103_v23, 920167782  ;;  %v3119_v49 = vsel %vm3107_vm0, %v3097_v4, %v3100_v51 }
 0x2d4   : > { %14027 = vst [vmem:[#allocation30_spill] sm:$0xff] %v11529_v53  ;;  %v3113_v1 = vsel %vm3109_vm9, %v3097_v4, %v3112_v0  ;;  %v3117_v24 = vsel %vm3109_vm9, %v3100_v51, %v3116_v9  ;;  %v3120_v5 = vsel %vm3110_vm15, %v3106_v15, 1326507024  ;;  %v1609_v22 = vand.u32 3, %v1608_v46  ;;  %v14034_v15 = vld [vmem:[#allocation12_spill] sm:$0xff] }
 0x2d5   : > { %v3118_v38 = vsel %vm3108_vm8, %v3115_v34, %v3117_v24  ;;  %v3121_v44 = vsel %vm3109_vm9, %v3103_v23, %v3120_v5  ;;  %v1612_v62 = vxor.u32 2147483648, %v14028_v47  ;;  %v1615_v29 = vxor.u32 2147483648, %v14029_v63 }
 0x2d6   : > { %v3122_v21 = vsel %vm3108_vm8, %v3119_v49, %v3121_v44  ;;  %v11537_v53 = vmul.u32.u64.low %v11499_v45, %v3118_v38  ;;  %v11538_v33 = vmul.u32.u64.high %v11499_v45, %v3118_v38, %v11537_v53  ;;  %v14030_v28 = vand.u32 2147483647, %v11025_v56 }
 0x2d7   : > { %v14031_v4 = vmov 0  ;;  %v3047_v5 = vsub.s32 4294967266, %v11524_v16  ;;  %v3114_v46 = vsel %vm3108_vm8, %v3111_v54, %v3113_v1  ;;  %vm1611_vm9 = vcmp.eq.s32.totalorder %v1609_v22, 0 }
 0x2d8   : > { %vm11544_vm0 = vcmp.le.f32.partialorder %v14030_v28, 0.7853982  ;;  %v11551_v51 = vmul.u32.u64.low %v11499_v45, %v3122_v21  ;;  %v11552_v23 = vmul.u32.u64.high %v11499_v45, %v3122_v21, %v11551_v51  ;;  %vm1614_vm15 = vcmp.eq.s32.totalorder %v1609_v22, 2 }
 0x2d9   : > { %v14032_v4 = vsel %vm11544_vm0, 4294967295, %v14031_v4  ;;  %v945_v55 = vadd.f32 %v913_v10, %v10839_v30  ;;  %vm14035_vm2 = vcmp.lt.s32.totalorder %v14034_v15, 0  ;;  %v1514_v0 = vsel %vm1503_vm3, nan, %v1513_v17  ;;  %v11567_v30 = vld [vmem:[%s13577_s3] ss:$0 sm:$0xff]  ;;  %v14043_v51 = vld [vmem:[#allocation22_spill] sm:$0xff] }
 0x2da   : > { %14033 = vst [vmem:[#allocation6_spill] sm:$0xff] %v14032_v4  ;;  %v1706_v34 = vsel %vm14035_vm2, %v1705_v31, %v14025_v14  ;;  %vm1610_vm14 = vcmp.lt.s32.totalorder %v1609_v22, 2  ;;  %v1613_v9 = vsel %vm1611_vm9, %v14029_v63, %v1612_v62  ;;  %v1616_v8 = vsel %vm1614_vm15, %v1615_v29, %v14028_v47 }
 0x2db   : > { %v3043_v54 = vsub.s32 32, %v11524_v16  ;;  %v3133_v21 = vadd.s32 1, %v11538_v33  ;;  %v1617_v49 = vsel %vm1610_vm14, %v1613_v9, %v1616_v8  ;;  %v11570_v10 = vadd.f32 %v11567_v30, %v945_v55  ;;  %v14046_v8 = vld [vmem:[#allocation41_spill] sm:$0xff] }
 0x2dc   : > { %v3130_v52 = vmul.u32 %v11499_v45, %v3114_v46  ;;  %vm3132_vm2 = vc.u32 %v11552_v23, %v11537_v53  ;;  %vm14037_vm3 = vweird.f32 %v14021_v20  ;;  %v1708_v62 = vsel %vm10233_vm13, 0, %v1706_v34 }
 0x2dd   : > { %14036 = vst [vmem:[#allocation16_spill] sm:$0xff] %v11570_v10  ;;  %v1618_v29 = vsel %vm14037_vm3, nan, %v1617_v49  ;;  %v2845_v47 = vcvt.s32.f32 %v11496_v37  ;;  %v3048_v17 = vadd.s32 127, %v3047_v5  ;;  %v3134_v14 = vsel %vm3132_vm2, %v3133_v21, %v11538_v33 }
 0x2de   : > { %v4325_v31 = vpack.c.bf16 %v1618_v29, %v1514_v0  ;;  %8839 = vsinq.f32 %v11463_v3  ;;  %v3027_v45 = vadd.s32 %v11361_v19, %v11370_v60  ;;  %v3135_v1 = vadd.s32 %v3134_v14, %v3130_v52  ;;  %v14045_v0 = vld [vmem:[#allocation42_spill] sm:$0xff] }
 0x2df   : > { %v3182_v24 = vand.u32 2139095040, %v11570_v10  ;;  %8841 = vcosq.f32 %v11493_v35  ;;  %v14039_v20 = vxor.u32 2147483648, %v11472_v25  ;;  %vm14040_vm13 = vcmp.lt.s32.totalorder %v11025_v56, 0 }
 0x2e0   : > { %v14041_v22 = vand.u32 2147483647, %v11476_v27  ;;  %vm14042_vm8 = vcmask 261120   ;;  %v1712_v3 = vadd.s32 3, %v1708_v62  ;;  %v3045_v38 = vshrl.u32 %v3027_v45, %v3043_v54 }
 0x2e1   : > { %v4200_v37 = vsel %vm14040_vm13, %v14039_v20, %v11472_v25  ;;  %8119 = vmatprep.mubr.msk.bf16.mxu0 %vm14042_vm8, %v4325_v31  ;;  %v3136_v19 = vadd.s32 536870912, %v3135_v1  ;;  %v13759_v60 = vand.u32 2147483647, %v11570_v10  ;;  %v3183_v44 = vshrl.u32 %v3182_v24, 23  ;;  %v681_v25 = vpop.permute.xlu1 %680 }
 0x2e2   : > { %v11593_v33 = vmul.f32 %v2845_v47, %v14041_v22  ;;  %v3044_v28 = vshll.u32 %v11453_v2, %v11524_v16  ;;  %v3049_v5 = vshll.u32 %v3048_v17, 23  ;;  %v1713_v46 = vand.u32 3, %v1712_v3 }
 0x2e3   : > { %v1809_v55 = vsub.s32 4, %v14043_v51  ;;  %v11600_v34 = vshrl.u32 %v3136_v19, 30  ;;  %v7631_v27 = vadd.s32 4294967169, %v3183_v44  ;;  %v1716_v9 = vxor.u32 2147483648, %v14045_v0 }
 0x2e4   : > { %v1719_v21 = vxor.u32 2147483648, %v14046_v8  ;;  %v11606_v54 = vmul.f32 %v11382_v50, %v10891_v59  ;;  %8843 = vsinq.f32 %v11493_v35  ;;  %v11612_v2 = vsel %vm11544_vm0, %v11025_v56, %v4200_v37  ;;  %v14047_v59 = vld [vmem:[#allocation13_spill] sm:$0xff] }
 0x2e5   : > { %14044 = vst [vmem:[#allocation29_spill] sm:$0xff] %v11600_v34  ;;  %v11615_v49 = vor.u32 %v3045_v38, %v3044_v28  ;;  %v3138_v52 = vshll.u32 %v11600_v34, 30  ;;  %v3186_v29 = vand.u32 8388607, %v13759_v60  ;;  %v3189_v63 = vadd.s32 1, %v7631_v27  ;;  %v854_v37 = vpop.permute.xlu1 %853 }
 0x2e6   : > { %v11620_v62 = vor.u32 4788187, %v3049_v5  ;;  %vm1715_vm14 = vcmp.eq.s32.totalorder %v1713_v46, 0  ;;  %vm1718_vm9 = vcmp.eq.s32.totalorder %v1713_v46, 2  ;;  %vm14048_vm15 = vcmp.lt.s32.totalorder %v14047_v59, 0 }
 0x2e7   : > { %v1810_v35 = vsel %vm14048_vm15, %v1809_v55, %v14043_v51  ;;  %v11625_v47 = vsub.s32 %v3135_v1, %v3138_v52  ;;  %vm3190_vm2 = vcmp.gt.s32.totalorder %v3189_v63, 0  ;;  %v1717_v17 = vsel %vm1715_vm14, %v14046_v8, %v1716_v9 }
 0x2e8   : > { %v1720_v14 = vsel %vm1718_vm9, %v1719_v21, %v14045_v0  ;;  %v11631_v31 = vadd.s32 %v11537_v53, %v11552_v23  ;;  %v3191_v45 = vsel %vm3190_vm2, %v3189_v63, 0  ;;  %vm1711_vm3 = vweird.f32 %v14034_v15  ;;  %v11636_v22 = vpop.eup %8839  ;;  %v14052_v23 = vld [vmem:[#allocation43_spill] sm:$0xff] }
 0x2e9   : > { %v1812_v20 = vsel %vm10242_vm4, 0, %v1810_v35  ;;  %14050 = vst [vmem:[#allocation23_spill] sm:$0xff] %v11636_v22  ;;  %v3141_v1 = vsub.s32 0, %v11625_v47  ;;  %v3187_v3 = vor.u32 8388608, %v3186_v29  ;;  %v3193_v38 = vand.u32 31, %v3191_v45  ;;  %v11639_v19 = vpop.eup %8841 }
 0x2ea   : > { %vm1714_vm13 = vcmp.lt.s32.totalorder %v1713_v46, 2  ;;  %14051 = vst [vmem:[#allocation14_spill] sm:$0xff] %v11639_v19  ;;  %v1820_v53 = vxor.u32 2147483648, %v10563_v48  ;;  %v1823_v28 = vxor.u32 2147483648, %v14052_v23  ;;  %v750_v5 = vmul.f32 %v11382_v50, %v681_v25 }
 0x2eb   : > { %v1721_v44 = vsel %vm1714_vm13, %v1717_v17, %v1720_v14  ;;  %v7628_v51 = vmin.u32 %v3141_v1, %v11625_v47  ;;  %v3194_v55 = vsub.s32 32, %v3193_v38  ;;  %v1816_v27 = vadd.s32 3, %v1812_v20 }
 0x2ec   : > { %v915_v0 = vmul.f32 %v11519_v36, %v854_v37  ;;  %v3192_v9 = vshrl.u32 %v3191_v45, 5  ;;  %v3196_v8 = vshll.u32 %v13844_v39, %v3193_v38  ;;  %v3199_v46 = vshll.u32 %v13852_v40, %v3193_v38 }
 0x2ed   : > { %v3202_v21 = vshll.u32 %v13842_v41, %v3193_v38  ;;  %v3143_v52 = vclz %v7628_v51  ;;  %v3197_v29 = vshrl.u32 %v13852_v40, %v3194_v55  ;;  %v3200_v63 = vshrl.u32 %v13842_v41, %v3194_v55 }
 0x2ee   : > { %v3205_v25 = vshll.u32 %v13843_v7, %v3193_v38  ;;  %v11652_v35 = vpop.eup %8843  ;;  %v3203_v17 = vshrl.u32 %v13843_v7, %v3194_v55  ;;  %v3206_v14 = vshrl.u32 %v13845_v58, %v3194_v55  ;;  %v3208_v45 = vshll.u32 %v13845_v58, %v3193_v38 }
 0x2ef   : > { %14053 = vst [vmem:[#allocation10_spill] sm:$0xff] %v11652_v35  ;;  %v3209_v24 = vshrl.u32 %v13846_v13, %v3194_v55  ;;  %v7629_v20 = vadd.s32 4294967294, %v3143_v52  ;;  %v3198_v37 = vor.u32 %v3197_v29, %v3196_v8  ;;  %v3201_v1 = vor.u32 %v3200_v63, %v3199_v46 }
 0x2f0   : > { %v3227_v51 = vshll.u32 %v3187_v3, 8  ;;  %v3204_v60 = vor.u32 %v3203_v17, %v3202_v21  ;;  %v3207_v16 = vor.u32 %v3206_v14, %v3205_v25  ;;  %v947_v56 = vadd.f32 %v915_v0, %v750_v5 }
 0x2f1   : > { %v3210_v4 = vor.u32 %v3209_v24, %v3208_v45  ;;  %vm7630_vm4 = vcmp.lt.s32.totalorder %v7629_v20, 0  ;;  %vm3211_vm8 = vcmp.lt.s32.totalorder %v3192_v9, 1  ;;  %vm3214_vm14 = vcmp.lt.s32.totalorder %v3192_v9, 4 }
 0x2f2   : > { %v1722_v22 = vsel %vm1711_vm3, nan, %v1721_v44  ;;  %v3216_v34 = vsel %vm3214_vm14, %v3204_v60, 2102212464  ;;  %v3219_v19 = vsel %vm3211_vm8, %v3198_v37, %v3201_v1  ;;  %v3220_v35 = vsel %vm3214_vm14, %v3207_v16, 920167782 }
 0x2f3   : > { %v1817_v38 = vand.u32 3, %v1816_v27  ;;  %v3146_v6 = vsel %vm7630_vm4, 0, %v7629_v20  ;;  %v3195_v52 = vshrl.u32 %v13844_v39, %v3194_v55  ;;  %vm3213_vm9 = vcmp.lt.s32.totalorder %v3192_v9, 3 }
 0x2f4   : > { %v3223_v8 = vsel %vm3211_vm8, %v3201_v1, %v3204_v60  ;;  %vm3212_vm15 = vcmp.lt.s32.totalorder %v3192_v9, 2  ;;  %v3221_v3 = vsel %vm3213_vm9, %v3204_v60, %v3220_v35  ;;  %v3224_v46 = vsel %vm3214_vm14, %v3210_v4, 1326507024 }
 0x2f5   : > { %v11662_v5 = vadd.f32 %v11567_v30, %v947_v56  ;;  %v3215_v0 = vsel %vm3211_vm8, %v3195_v52, %v3198_v37  ;;  %v3217_v21 = vsel %vm3213_vm9, %v3201_v1, %v3216_v34  ;;  %v3222_v29 = vsel %vm3212_vm15, %v3219_v19, %v3221_v3  ;;  %v14054_v19 = vld [vmem:[#allocation27_spill] sm:$0xff] }
 0x2f6   : > { %v3225_v15 = vsel %vm3213_vm9, %v3207_v16, %v3224_v46  ;;  %v3147_v44 = vsub.s32 32, %v3146_v6  ;;  %v11664_v25 = vmul.u32.u64.low %v3227_v51, %v3222_v29  ;;  %v11665_v17 = vmul.u32.u64.high %v3227_v51, %v3222_v29, %v11664_v25 }
 0x2f7   : > { %v3226_v63 = vsel %vm3212_vm15, %v3223_v8, %v3225_v15  ;;  %v3151_v27 = vsub.s32 4294967266, %v3146_v6  ;;  %vm1819_vm2 = vcmp.eq.s32.totalorder %v1817_v38, 0  ;;  %vm13787_vm3 = vcmp.lt.s32.totalorder %v11129_v61, 0  ;;  %v14055_v8 = vld [vmem:[#allocation20_spill] sm:$0xff] }
 0x2f8   : > { %v11668_v55 = vmul.u32.u64.low %v3227_v51, %v3226_v63  ;;  %v11669_v14 = vmul.u32.u64.high %v3227_v51, %v3226_v63, %v11668_v55  ;;  %v3218_v4 = vsel %vm3212_vm15, %v3215_v0, %v3217_v21  ;;  %v1821_v56 = vsel %vm1819_vm2, %v14052_v23, %v1820_v53  ;;  %v14059_v21 = vld [vmem:[#allocation34_spill] sm:$0xff] }
 0x2f9   : > { %vm1822_vm13 = vcmp.eq.s32.totalorder %v1817_v38, 2  ;;  %v13770_v60 = vand.u32 2147483647, %v11662_v5  ;;  %vm1818_vm4 = vcmp.lt.s32.totalorder %v1817_v38, 2  ;;  %v3390_v16 = vand.u32 2139095040, %v11662_v5 }
 0x2fa   : > { %v1824_v34 = vsel %vm1822_vm13, %v1823_v28, %v10563_v48  ;;  %v1913_v9 = vsub.s32 4, %v14054_v19  ;;  %v3149_v35 = vshrl.u32 %v11631_v31, %v3147_v44  ;;  %v3237_v45 = vadd.s32 1, %v11665_v17 }
 0x2fb   : > { %vm1815_vm8 = vweird.f32 %v14047_v59  ;;  %v1825_v24 = vsel %vm1818_vm4, %v1821_v56, %v1824_v34  ;;  %v3152_v20 = vadd.s32 127, %v3151_v27  ;;  %v3234_v37 = vmul.u32 %v3227_v51, %v3218_v4  ;;  %v686_v59 = vpop.permute.xlu1 %685 }
 0x2fc   : > { %vm3236_vm14 = vc.u32 %v11669_v14, %v11664_v25  ;;  %v1826_v53 = vsel %vm1815_vm8, nan, %v1825_v24  ;;  %v3391_v28 = vshrl.u32 %v3390_v16, 23  ;;  %v3394_v1 = vand.u32 8388607, %v13770_v60 }
 0x2fd   : > { %v3238_v23 = vsel %vm3236_vm14, %v3237_v45, %v11665_v17  ;;  %v4326_v48 = vpack.c.bf16 %v1826_v53, %v1722_v22  ;;  %v3051_v31 = vand.u32 2147483647, %v11620_v62  ;;  %v3148_v38 = vshll.u32 %v11625_v47, %v3146_v6  ;;  %v14060_v17 = vld [vmem:[#allocation25_spill] sm:$0xff] }
 0x2fe   : > { %v3239_v52 = vadd.s32 %v3238_v23, %v3234_v37  ;;  %vm14056_vm9 = vcmp.lt.s32.totalorder %v14055_v8, 0  ;;  %v3053_v3 = vcvt.s32.f32 %v11615_v49  ;;  %vm14057_vm15 = vcmask 261120  }
 0x2ff   : > { %v1914_v51 = vsel %vm14056_vm9, %v1913_v9, %v14054_v19  ;;  %8120 = vmatmul.mubr.msk.bf16.gmra.mrb[4].mxu0 %vm14057_vm15, %v4326_v48  ;;  %v7639_v46 = vadd.s32 4294967169, %v3391_v28  ;;  %v2017_v29 = vsub.s32 4, %v14059_v21  ;;  %v11695_v15 = vor.u32 %v3149_v35, %v3148_v38  ;;  %v14064_v19 = vld [vmem:[#allocation57_spill] sm:$0xff]  ;;  %v858_v53 = vpop.permute.xlu1 %857  ;;  %v14066_v28 = vld [vmem:[#allocation55_spill] sm:$0xff] }
 0x300   : > { %v1916_v0 = vsel %vm10526_vm5, 0, %v1914_v51  ;;  %v3153_v62 = vshll.u32 %v3152_v20, 23  ;;  %v3240_v6 = vadd.s32 536870912, %v3239_v52  ;;  %8845 = vcosq.f32 %v11612_v2  ;;  %v14068_v51 = vld [vmem:[#allocation60_spill] sm:$0xff] }
 0x301   : > { %v1920_v47 = vadd.s32 3, %v1916_v0  ;;  %v3395_v44 = vor.u32 8388608, %v3394_v1  ;;  %v3397_v63 = vadd.s32 1, %v7639_v46  ;;  %vm14061_vm2 = vcmp.lt.s32.totalorder %v14060_v17, 0 }
 0x302   : > { %v2018_v49 = vsel %vm14061_vm2, %v2017_v29, %v14059_v21  ;;  %v14062_v27 = vxor.u32 2147483648, %v11593_v33  ;;  %v11708_v4 = vmul.f32 %v3053_v3, %v3051_v31  ;;  %v11710_v56 = vshrl.u32 %v3240_v6, 30 }
 0x303   : > { %v11712_v34 = vand.u32 3, %v1920_v47  ;;  %vm3398_vm5 = vcmp.gt.s32.totalorder %v3397_v63, 0  ;;  %v11715_v16 = vmul.f32 %v11382_v50, %v686_v59  ;;  %v1924_v9 = vxor.u32 2147483648, %v14064_v19  ;;  %v14067_v50 = vld [vmem:[#allocation61_spill] sm:$0xff] }
 0x304   : > { %v11706_v55 = vsel %vm13787_vm3, %v14062_v27, %v11593_v33  ;;  %14063 = vst [vmem:[#allocation32_spill] sm:$0xff] %v11710_v56  ;;  %v2020_v45 = vsel %vm10652_vm10, 0, %v2018_v49  ;;  %v11720_v24 = vor.u32 4788187, %v3153_v62  ;;  %v3242_v20 = vshll.u32 %v11710_v56, 30 }
 0x305   : > { %v3399_v37 = vsel %vm3398_vm5, %v3397_v63, 0  ;;  %v11724_v48 = vshll.u32 %v3395_v44, 8  ;;  %v1927_v1 = vxor.u32 2147483648, %v14066_v28  ;;  %v2028_v31 = vxor.u32 2147483648, %v14067_v50 }
 0x306   : > { %v3401_v23 = vand.u32 31, %v3399_v37  ;;  %v11728_v38 = vsub.s32 %v3239_v52, %v3242_v20  ;;  %vm1923_vm13 = vcmp.eq.s32.totalorder %v11712_v34, 0  ;;  %v2024_v59 = vadd.s32 3, %v2020_v45 }
 0x307   : > { %v3400_v46 = vshrl.u32 %v3399_v37, 5  ;;  %v1925_v0 = vsel %vm1923_vm13, %v14066_v28, %v1924_v9  ;;  %v916_v21 = vmul.f32 %v11519_v36, %v858_v53  ;;  %vm1926_vm10 = vcmp.eq.s32.totalorder %v11712_v34, 2 }
 0x308   : > { %v3402_v22 = vsub.s32 32, %v3401_v23  ;;  %v3245_v29 = vsub.s32 0, %v11728_v38  ;;  %v3404_v62 = vshll.u32 %v13844_v39, %v3401_v23  ;;  %v3407_v6 = vshll.u32 %v13852_v40, %v3401_v23 }
 0x309   : > { %v3410_v52 = vshll.u32 %v13842_v41, %v3401_v23  ;;  %v3413_v49 = vshll.u32 %v13843_v7, %v3401_v23  ;;  %v3416_v35 = vshll.u32 %v13845_v58, %v3401_v23  ;;  %vm3419_vm4 = vcmp.lt.s32.totalorder %v3400_v46, 1 }
 0x30a   : > { %v3405_v47 = vshrl.u32 %v13852_v40, %v3402_v22  ;;  %v3408_v44 = vshrl.u32 %v13842_v41, %v3402_v22  ;;  %v3411_v63 = vshrl.u32 %v13843_v7, %v3402_v22  ;;  %v7632_v27 = vmin.u32 %v3245_v29, %v11728_v38  ;;  %v11746_v20 = vpop.eup %8845 }
 0x30b   : > { %v3414_v9 = vshrl.u32 %v13845_v58, %v3402_v22  ;;  %v3417_v45 = vshrl.u32 %v13846_v13, %v3402_v22  ;;  %14069 = vst [vmem:[#allocation17_spill] sm:$0xff] %v11746_v20  ;;  %vm3422_vm8 = vcmp.lt.s32.totalorder %v3400_v46, 4  ;;  %v2025_v43 = vand.u32 3, %v2024_v59  ;;  %v14095_v20 = vld [vmem:[#allocation51_spill] sm:$0xff] }
 0x30c   : > { %v3406_v37 = vor.u32 %v3405_v47, %v3404_v62  ;;  %v3409_v53 = vor.u32 %v3408_v44, %v3407_v6  ;;  %v3412_v28 = vor.u32 %v3411_v63, %v3410_v52  ;;  %v3247_v60 = vclz %v7632_v27  ;;  %v862_v27 = vpop.permute.xlu1 %861 }
 0x30d   : > { %v3415_v33 = vor.u32 %v3414_v9, %v3413_v49  ;;  %v3418_v3 = vor.u32 %v3417_v45, %v3416_v35  ;;  %vm3421_vm14 = vcmp.lt.s32.totalorder %v3400_v46, 3  ;;  %vm1919_vm9 = vweird.f32 %v14055_v8 }
 0x30e   : > { %v3427_v29 = vsel %vm3419_vm4, %v3406_v37, %v3409_v53  ;;  %v3431_v56 = vsel %vm3419_vm4, %v3409_v53, %v3412_v28  ;;  %v7633_v23 = vadd.s32 4294967294, %v3247_v60  ;;  %vm3420_vm15 = vcmp.lt.s32.totalorder %v3400_v46, 2 }
 0x30f   : > { %v3428_v12 = vsel %vm3422_vm8, %v3415_v33, 920167782  ;;  %v3432_v11 = vsel %vm3422_vm8, %v3418_v3, 1326507024  ;;  %v3424_v62 = vsel %vm3422_vm8, %v3412_v28, 2102212464  ;;  %v3403_v47 = vshrl.u32 %v13844_v39, %v3402_v22 }
 0x310   : > { %v3429_v6 = vsel %vm3421_vm14, %v3412_v28, %v3428_v12  ;;  %v3433_v52 = vsel %vm3421_vm14, %v3415_v33, %v3432_v11  ;;  %vm7634_vm2 = vcmp.lt.s32.totalorder %v7633_v23, 0  ;;  %v1928_v3 = vsel %vm1926_vm10, %v1927_v1, %v14064_v19 }
 0x311   : > { %v3430_v44 = vsel %vm3420_vm15, %v3427_v29, %v3429_v6  ;;  %v3434_v63 = vsel %vm3420_vm15, %v3431_v56, %v3433_v52  ;;  %v3250_v59 = vsel %vm7634_vm2, 0, %v7633_v23  ;;  %v3155_v12 = vand.u32 2147483647, %v11720_v24 }
 0x312   : > { %v11758_v60 = vmul.u32.u64.low %v11724_v48, %v3434_v63  ;;  %v11759_v49 = vmul.u32.u64.high %v11724_v48, %v3434_v63, %v11758_v60  ;;  %v3423_v11 = vsel %vm3419_vm4, %v3403_v47, %v3406_v37  ;;  %v3425_v33 = vsel %vm3421_vm14, %v3409_v53, %v3424_v62 }
 0x313   : > { %vm2023_vm5 = vweird.f32 %v14060_v17  ;;  %v11769_v22 = vmul.u32.u64.low %v11724_v48, %v3430_v44  ;;  %v11770_v56 = vmul.u32.u64.high %v11724_v48, %v3430_v44, %v11769_v22  ;;  %vm1922_vm13 = vcmp.lt.s32.totalorder %v11712_v34, 2 }
 0x314   : > { %vm2027_vm8 = vcmp.eq.s32.totalorder %v2025_v43, 0  ;;  %v3255_v9 = vsub.s32 4294967266, %v3250_v59  ;;  %v1929_v35 = vsel %vm1922_vm13, %v1925_v0, %v1928_v3  ;;  %vm2030_vm10 = vcmp.eq.s32.totalorder %v2025_v43, 2 }
 0x315   : > { %v2029_v19 = vsel %vm2027_vm8, %v14068_v51, %v2028_v31  ;;  %v3426_v24 = vsel %vm3420_vm15, %v3423_v11, %v3425_v33  ;;  %vm2026_vm4 = vcmp.lt.s32.totalorder %v2025_v43, 2  ;;  %v14070_v1 = vxor.u32 2147483648, %v14068_v51 }
 0x316   : > { %v948_v37 = vadd.f32 %v916_v21, %v11715_v16  ;;  %v3251_v53 = vsub.s32 32, %v3250_v59  ;;  %vm3444_vm14 = vc.u32 %v11759_v49, %v11769_v22  ;;  %v917_v28 = vmul.f32 %v11519_v36, %v862_v27  ;;  %v14072_v21 = vld [vmem:[#allocation75_spill] sm:$0xff] }
 0x317   : > { %v2032_v45 = vsel %vm2030_vm10, %v14070_v1, %v14067_v50  ;;  %v3445_v0 = vadd.s32 1, %v11770_v56  ;;  %v1930_v31 = vsel %vm1919_vm9, nan, %v1929_v35  ;;  %v3256_v50 = vadd.s32 127, %v3255_v9  ;;  %v14079_v35 = vld [vmem:[#allocation26_spill] sm:$0xff] }
 0x318   : > { %v2033_v34 = vsel %vm2026_vm4, %v2029_v19, %v2032_v45  ;;  %v11789_v51 = vadd.f32 %v11567_v30, %v948_v37  ;;  %v3442_v16 = vmul.u32 %v11724_v48, %v3426_v24  ;;  %v949_v29 = vadd.f32 %v917_v28, %v14072_v21 }
 0x319   : > { %v2034_v43 = vsel %vm2023_vm5, nan, %v2033_v34  ;;  %v3235_v23 = vadd.s32 %v11664_v25, %v11669_v14  ;;  %v3446_v62 = vsel %vm3444_vm14, %v3445_v0, %v11770_v56  ;;  %8847 = vsinq.f32 %v11612_v2 }
 0x31a   : > { %14071 = vst [vmem:[#allocation40_spill] sm:$0xff] %v11789_v51  ;;  %v4327_v46 = vpack.c.bf16 %v2034_v43, %v1930_v31  ;;  %v13777_v8 = vand.u32 2147483647, %v11789_v51  ;;  %v3494_v6 = vand.u32 2139095040, %v11789_v51  ;;  %v14073_v17 = vand.u32 2147483647, %v11129_v61 }
 0x31b   : > { %v3447_v48 = vadd.s32 %v3446_v62, %v3442_v16  ;;  %vm14076_vm15 = vcmask 261120   ;;  %v11807_v47 = vadd.f32 %v11567_v30, %v949_v29  ;;  %v14078_v14 = vcvt.s32.f32 %v11695_v15  ;;  %v14084_v31 = vld [vmem:[#allocation18_spill] sm:$0xff] }
 0x31c   : > { %vm11801_vm9 = vcmp.le.f32.partialorder %v14073_v17, 0.7853982  ;;  %8123 = vmatprep.mubr.msk.bf16.mxu0 %vm14076_vm15, %v4327_v46  ;;  %v3253_v44 = vshrl.u32 %v3235_v23, %v3251_v53  ;;  %v3495_v63 = vshrl.u32 %v3494_v6, 23  ;;  %v3055_v60 = vxor.u32 2147483648, %v11708_v4 }
 0x31d   : > { %14077 = vst [vmem:[#allocation39_spill] sm:$0xff] %v11807_v47  ;;  %v2851_v25 = vsel %vm11801_vm9, %v11129_v61, %v11706_v55  ;;  %v3158_v2 = vmul.f32 %v14078_v14, %v3155_v12  ;;  %v3252_v3 = vshll.u32 %v11728_v38, %v3250_v59  ;;  %v3257_v11 = vshll.u32 %v3256_v50, 23 }
 0x31e   : > { %v3448_v33 = vadd.s32 536870912, %v3447_v48  ;;  %v7643_v56 = vadd.s32 4294967169, %v3495_v63  ;;  %v3498_v27 = vand.u32 8388607, %v13777_v8  ;;  %v3598_v9 = vand.u32 2139095040, %v11807_v47 }
 0x31f   : > { %v2121_v19 = vsub.s32 4, %v14079_v35  ;;  %8849 = vcosq.f32 %v2851_v25  ;;  %v14080_v15 = vand.u32 2147483647, %v11209_v32  ;;  %vm13786_vm5 = vcmp.lt.s32.totalorder %v11209_v32, 0 }
 0x320   : > { %v11828_v38 = vshrl.u32 %v3448_v33, 30  ;;  %v3159_v59 = vxor.u32 2147483648, %v3158_v2  ;;  %v11830_v12 = vor.u32 %v3253_v44, %v3252_v3  ;;  %v3501_v24 = vadd.s32 1, %v7643_v56 }
 0x321   : > { %vm11823_vm2 = vcmp.le.f32.partialorder %v14080_v15, 0.7853982  ;;  %v3599_v1 = vshrl.u32 %v3598_v9, 23  ;;  %v3056_v45 = vsel %vm13786_vm5, %v3055_v60, %v11708_v4  ;;  %v11835_v37 = vor.u32 4788187, %v3257_v11 }
 0x322   : > { %14083 = vst [vmem:[#allocation12_spill] sm:$0xff] %v11828_v38  ;;  %v3450_v53 = vshll.u32 %v11828_v38, 30  ;;  %v13776_v34 = vand.u32 2147483647, %v11807_v47  ;;  %v3499_v28 = vor.u32 8388608, %v3498_v27  ;;  %vm3502_vm13 = vcmp.gt.s32.totalorder %v3501_v24, 0 }
 0x323   : > { %v7647_v0 = vadd.s32 4294967169, %v3599_v1  ;;  %vm14085_vm8 = vcmp.lt.s32.totalorder %v14084_v31, 0  ;;  %8851 = vsinq.f32 %v2851_v25  ;;  %vm13785_vm10 = vcmp.lt.s32.totalorder %v11426_v18, 0  ;;  %v11855_v23 = vpop.eup %8847 }
 0x324   : > { %v2122_v43 = vsel %vm14085_vm8, %v2121_v19, %v14079_v35  ;;  %v11843_v50 = vsub.s32 %v3447_v48, %v3450_v53  ;;  %v3503_v16 = vsel %vm3502_vm13, %v3501_v24, 0  ;;  %v11848_v4 = vsel %vm11823_vm2, %v11209_v32, %v3056_v45  ;;  %14086 = vst [vmem:[#allocation35_spill] sm:$0xff] %v11855_v23 }
 0x325   : > { %v11852_v46 = vsel %vm13785_vm10, %v3159_v59, %v3158_v2  ;;  %v3261_v21 = vcvt.s32.f32 %v11830_v12  ;;  %v3505_v29 = vand.u32 31, %v3503_v16  ;;  %v3259_v62 = vand.u32 2147483647, %v11835_v37 }
 0x326   : > { %v3453_v6 = vsub.s32 0, %v11843_v50  ;;  %v11861_v17 = vand.u32 8388607, %v13776_v34  ;;  %v2124_v25 = vsel %vm10457_vm1, 0, %v2122_v43  ;;  %v3504_v14 = vshrl.u32 %v3503_v16, 5 }
 0x327   : > { %v3506_v44 = vsub.s32 32, %v3505_v29  ;;  %v11865_v2 = vshll.u32 %v3499_v28, 8  ;;  %v3605_v63 = vadd.s32 1, %v7647_v0  ;;  %v3508_v3 = vshll.u32 %v13844_v39, %v3505_v29 }
 0x328   : > { %v7640_v60 = vmin.u32 %v3453_v6, %v11843_v50  ;;  %v3511_v11 = vshll.u32 %v13852_v40, %v3505_v29  ;;  %v3514_v33 = vshll.u32 %v13842_v41, %v3505_v29  ;;  %v3517_v35 = vshll.u32 %v13843_v7, %v3505_v29 }
 0x329   : > { %v3509_v56 = vshrl.u32 %v13852_v40, %v3506_v44  ;;  %v3512_v27 = vshrl.u32 %v13842_v41, %v3506_v44  ;;  %v3515_v9 = vshrl.u32 %v13843_v7, %v3506_v44  ;;  %v11875_v19 = vpop.eup %8849  ;;  %v3518_v59 = vshrl.u32 %v13845_v58, %v3506_v44 }
 0x32a   : > { %v3455_v15 = vclz %v7640_v60  ;;  %v3520_v12 = vshll.u32 %v13845_v58, %v3505_v29  ;;  %v3521_v24 = vshrl.u32 %v13846_v13, %v3506_v44  ;;  %v14088_v1 = vand.u32 2147483647, %v11426_v18 }
 0x32b   : > { %v14089_v45 = vmov 0  ;;  %v3510_v37 = vor.u32 %v3509_v56, %v3508_v3  ;;  %v3513_v53 = vor.u32 %v3512_v27, %v3511_v11  ;;  %v3516_v28 = vor.u32 %v3515_v9, %v3514_v33 }
 0x32c   : > { %vm11882_vm1 = vcmp.le.f32.partialorder %v14088_v1, 0.7853982  ;;  %vm3523_vm4 = vcmp.lt.s32.totalorder %v3504_v14, 1  ;;  %v7641_v0 = vadd.s32 4294967294, %v3455_v15  ;;  %v3519_v43 = vor.u32 %v3518_v59, %v3517_v35 }
 0x32d   : > { %v14090_v45 = vsel %vm11882_vm1, 4294967295, %v14089_v45  ;;  %v3522_v16 = vor.u32 %v3521_v24, %v3520_v12  ;;  %vm3526_vm14 = vcmp.lt.s32.totalorder %v3504_v14, 4  ;;  %v3507_v6 = vshrl.u32 %v13844_v39, %v3506_v44  ;;  %v11888_v60 = vpop.eup %8851 }
 0x32e   : > { %14091 = vst [vmem:[#allocation22_spill] sm:$0xff] %v14090_v45  ;;  %vm3525_vm15 = vcmp.lt.s32.totalorder %v3504_v14, 3  ;;  %v3528_v29 = vsel %vm3526_vm14, %v3516_v28, 2102212464  ;;  %v3531_v48 = vsel %vm3523_vm4, %v3510_v37, %v3513_v53  ;;  %vm7642_vm13 = vcmp.lt.s32.totalorder %v7641_v0, 0 }
 0x32f   : > { %v3532_v1 = vsel %vm3526_vm14, %v3519_v43, 920167782  ;;  %v3535_v34 = vsel %vm3523_vm4, %v3513_v53, %v3516_v28  ;;  %v3536_v3 = vsel %vm3526_vm14, %v3522_v16, 1326507024  ;;  %v11891_v11 = vsel %vm7642_vm13, 0, %v7641_v0 }
 0x330   : > { %vm3524_vm8 = vcmp.lt.s32.totalorder %v3504_v14, 2  ;;  %v3533_v33 = vsel %vm3525_vm15, %v3516_v28, %v3532_v1  ;;  %v3537_v56 = vsel %vm3525_vm15, %v3519_v43, %v3536_v3  ;;  %v3463_v27 = vsub.s32 4294967266, %v11891_v11 }
 0x331   : > { %v3527_v44 = vsel %vm3523_vm4, %v3507_v6, %v3510_v37  ;;  %v3529_v9 = vsel %vm3525_vm15, %v3513_v53, %v3528_v29  ;;  %v3534_v35 = vsel %vm3524_vm8, %v3531_v48, %v3533_v33  ;;  %v11895_v15 = vmul.f32 %v3261_v21, %v3259_v62  ;;  %v14092_v6 = vld [vmem:[#allocation54_spill] sm:$0xff] }
 0x332   : > { %v3538_v59 = vsel %vm3524_vm8, %v3535_v34, %v3537_v56  ;;  %v11898_v12 = vmul.u32.u64.low %v11865_v2, %v3534_v35  ;;  %v11899_v24 = vmul.u32.u64.high %v11865_v2, %v3534_v35, %v11898_v12  ;;  %v3603_v28 = vor.u32 8388608, %v11861_v17 }
 0x333   : > { %v11903_v0 = vmul.u32.u64.low %v11865_v2, %v3538_v59  ;;  %v11904_v16 = vmul.u32.u64.high %v11865_v2, %v3538_v59, %v11903_v0  ;;  %v2128_v43 = vadd.s32 3, %v2124_v25  ;;  %8853 = vcosq.f32 %v11848_v4 }
 0x334   : > { %v3464_v14 = vadd.s32 127, %v3463_v27  ;;  %v3530_v37 = vsel %vm3524_vm8, %v3527_v44, %v3529_v9  ;;  %vm3606_vm4 = vcmp.gt.s32.totalorder %v3605_v63, 0  ;;  %8855 = vsinq.f32 %v11848_v4 }
 0x335   : > { %v11913_v34 = vsel %vm11882_vm1, %v11426_v18, %v11852_v46  ;;  %v3443_v21 = vadd.s32 %v11769_v22, %v11759_v49  ;;  %v3607_v62 = vsel %vm3606_vm4, %v3605_v63, 0  ;;  %v3549_v25 = vadd.s32 1, %v11899_v24 }
 0x336   : > { %v3609_v53 = vand.u32 31, %v3607_v62  ;;  %v3546_v48 = vmul.u32 %v11865_v2, %v3530_v37  ;;  %vm3548_vm14 = vc.u32 %v11904_v16, %v11898_v12  ;;  %v11923_v4 = vshll.u32 %v3603_v28, 8 }
 0x337   : > { %v11925_v46 = vand.u32 3, %v2128_v43  ;;  %v3459_v1 = vsub.s32 32, %v11891_v11  ;;  %v3465_v49 = vshll.u32 %v3464_v14, 23  ;;  %v3550_v22 = vsel %vm3548_vm14, %v3549_v25, %v11899_v24 }
 0x338   : > { %v3610_v63 = vsub.s32 32, %v3609_v53  ;;  %v3551_v3 = vadd.s32 %v3550_v22, %v3546_v48  ;;  %v3608_v33 = vshrl.u32 %v3607_v62, 5  ;;  %v3612_v56 = vshll.u32 %v13844_v39, %v3609_v53 }
 0x339   : > { %v3615_v27 = vshll.u32 %v13852_v40, %v3609_v53  ;;  %v3618_v9 = vshll.u32 %v13842_v41, %v3609_v53  ;;  %v3621_v0 = vshll.u32 %v13843_v7, %v3609_v53  ;;  %v3624_v28 = vshll.u32 %v13845_v58, %v3609_v53 }
 0x33a   : > { %v3613_v2 = vshrl.u32 %v13852_v40, %v3610_v63  ;;  %v3616_v44 = vshrl.u32 %v13842_v41, %v3610_v63  ;;  %v3619_v35 = vshrl.u32 %v13843_v7, %v3610_v63  ;;  %v3552_v59 = vadd.s32 536870912, %v3551_v3 }
 0x33b   : > { %v3622_v24 = vshrl.u32 %v13845_v58, %v3610_v63  ;;  %v3625_v62 = vshrl.u32 %v13846_v13, %v3610_v63  ;;  %vm2131_vm15 = vcmp.eq.s32.totalorder %v11925_v46, 0  ;;  %v3460_v25 = vshll.u32 %v11843_v50, %v11891_v11 }
 0x33c   : > { %v3614_v43 = vor.u32 %v3613_v2, %v3612_v56  ;;  %v3617_v14 = vor.u32 %v3616_v44, %v3615_v27  ;;  %v3620_v37 = vor.u32 %v3619_v35, %v3618_v9  ;;  %v3461_v48 = vshrl.u32 %v3443_v21, %v3459_v1  ;;  %v14096_v56 = vld [vmem:[#allocation50_spill] sm:$0xff]  ;;  %v701_v2 = vpop.permute.xlu1 %700 }
 0x33d   : > { %v11942_v22 = vshrl.u32 %v3552_v59, 30  ;;  %v3623_v8 = vor.u32 %v3622_v24, %v3621_v0  ;;  %v11944_v17 = vpop.eup %8853  ;;  %v3626_v29 = vor.u32 %v3625_v62, %v3624_v28  ;;  %vm3630_vm13 = vcmp.lt.s32.totalorder %v3608_v33, 4 }
 0x33e   : > { %14094 = vst [vmem:[#allocation41_spill] sm:$0xff] %v11944_v17  ;;  %v2135_v53 = vxor.u32 2147483648, %v14095_v20  ;;  %v2225_v27 = vsub.s32 4, %v14096_v56  ;;  %v11948_v44 = vpop.eup %8855  ;;  %v3611_v35 = vshrl.u32 %v13844_v39, %v3610_v63  ;;  %vm3627_vm8 = vcmp.lt.s32.totalorder %v3608_v33, 1 }
 0x33f   : > { %14093 = vst [vmem:[#allocation42_spill] sm:$0xff] %v11942_v22  ;;  %v3554_v9 = vshll.u32 %v11942_v22, 30  ;;  %v3632_v50 = vsel %vm3630_vm13, %v3620_v37, 2102212464  ;;  %v3466_v11 = vor.u32 4788187, %v3465_v49  ;;  %v3635_v21 = vsel %vm3627_vm8, %v3614_v43, %v3617_v14 }
 0x340   : > { %vm3629_vm4 = vcmp.lt.s32.totalorder %v3608_v33, 3  ;;  %v3636_v1 = vsel %vm3630_vm13, %v3623_v8, 920167782  ;;  %vm3628_vm14 = vcmp.lt.s32.totalorder %v3608_v33, 2  ;;  %v3631_v0 = vsel %vm3627_vm8, %v3611_v35, %v3614_v43  ;;  %v14101_v33 = vld [vmem:[#allocation76_spill] sm:$0xff] }
 0x341   : > { %v11954_v59 = vsub.s32 %v3551_v3, %v3554_v9  ;;  %v3637_v24 = vsel %vm3629_vm4, %v3620_v37, %v3636_v1  ;;  %v3633_v28 = vsel %vm3629_vm4, %v3617_v14, %v3632_v50  ;;  %v3639_v23 = vsel %vm3627_vm8, %v3617_v14, %v3620_v37  ;;  %v14097_v9 = vld [vmem:[#allocation37_spill] sm:$0xff] }
 0x342   : > { %v3638_v62 = vsel %vm3628_vm14, %v3635_v21, %v3637_v24  ;;  %v3640_v22 = vsel %vm3630_vm13, %v3626_v29, 1326507024  ;;  %vm2130_vm10 = vcmp.lt.s32.totalorder %v11925_v46, 2  ;;  %v3462_v3 = vor.u32 %v3461_v48, %v3460_v25  ;;  %v870_v29 = vpop.permute.xlu1 %869 }
 0x343   : > { %v3557_v63 = vsub.s32 0, %v11954_v59  ;;  %v3641_v38 = vsel %vm3629_vm4, %v3623_v8, %v3640_v22  ;;  %v11960_v49 = vmul.u32.u64.low %v11923_v4, %v3638_v62  ;;  %v11961_v45 = vmul.u32.u64.high %v11923_v4, %v3638_v62, %v11960_v49 }
 0x344   : > { %v3642_v43 = vsel %vm3628_vm14, %v3639_v23, %v3641_v38  ;;  %vm2134_vm5 = vcmp.eq.s32.totalorder %v11925_v46, 2  ;;  %vm14098_vm8 = vcmp.lt.s32.totalorder %v14097_v9, 0  ;;  %v14099_v35 = vxor.u32 2147483648, %v14092_v6 }
 0x345   : > { %v2226_v14 = vsel %vm14098_vm8, %v2225_v27, %v14096_v56  ;;  %v7644_v37 = vmin.u32 %v3557_v63, %v11954_v59  ;;  %v11972_v8 = vmul.u32.u64.low %v11923_v4, %v3642_v43  ;;  %v11973_v22 = vmul.u32.u64.high %v11923_v4, %v3642_v43, %v11972_v8 }
 0x346   : > { %v2133_v25 = vsel %vm2131_vm15, %v14095_v20, %v14099_v35  ;;  %v3467_v38 = vand.u32 2147483647, %v3466_v11  ;;  %v3634_v23 = vsel %vm3628_vm14, %v3631_v0, %v3633_v28  ;;  %v2136_v48 = vsel %vm2134_vm5, %v2135_v53, %v14092_v6  ;;  %v11994_v6 = vld [vmem:[%s13576_s2] ss:$0 sm:$0xff] }
 0x347   : > { %v2228_v56 = vsel %vm10973_vm11, 0, %v2226_v14  ;;  %v3559_v27 = vclz %v7644_v37  ;;  %v3653_v21 = vadd.s32 1, %v11961_v45  ;;  %vm2127_vm13 = vweird.f32 %v14084_v31 }
 0x348   : > { %vm2231_vm4 = vweird.f32 %v14097_v9  ;;  %v2232_v1 = vadd.s32 3, %v2228_v56  ;;  %v919_v24 = vmul.f32 %v11519_v36, %v870_v29  ;;  %v3469_v62 = vcvt.s32.f32 %v3462_v3  ;;  %v14103_v29 = vld [vmem:[#allocation53_spill] sm:$0xff] }
 0x349   : > { %v3547_v20 = vadd.s32 %v11898_v12, %v11904_v16  ;;  %v2236_v11 = vxor.u32 2147483648, %v14101_v33  ;;  %v754_v53 = vmul.f32 %v11994_v6, %v701_v2  ;;  %v7645_v0 = vadd.s32 4294967294, %v3559_v27  ;;  %v14102_v16 = vld [vmem:[#allocation74_spill] sm:$0xff] }
 0x34a   : > { %v3650_v28 = vmul.u32 %v11923_v4, %v3634_v23  ;;  %vm3652_vm11 = vc.u32 %v11973_v22, %v11960_v49  ;;  %v2233_v36 = vand.u32 3, %v2232_v1  ;;  %vm13800_vm5 = vcmp.lt.s32.totalorder %v11570_v10, 0  ;;  %v14109_v1 = vld [vmem:[#allocation45_spill] sm:$0xff] }
 0x34b   : > { %v3470_v63 = vmul.f32 %v3469_v62, %v3467_v38  ;;  %v3654_v12 = vsel %vm3652_vm11, %v3653_v21, %v11961_v45  ;;  %v2239_v3 = vxor.u32 2147483648, %v14102_v16  ;;  %v951_v43 = vadd.f32 %v919_v24, %v754_v53 }
 0x34c   : > { %vm7646_vm15 = vcmp.lt.s32.totalorder %v7645_v0, 0  ;;  %v3655_v14 = vadd.s32 %v3654_v12, %v3650_v28  ;;  %vm2235_vm14 = vcmp.eq.s32.totalorder %v2233_v36, 0  ;;  %v2329_v2 = vsub.s32 4, %v14103_v29 }
 0x34d   : > { %v3562_v37 = vsel %vm7646_vm15, 0, %v7645_v0  ;;  %v2137_v4 = vsel %vm2130_vm10, %v2133_v25, %v2136_v48  ;;  %v2237_v8 = vsel %vm2235_vm14, %v14102_v16, %v2236_v11  ;;  %v12008_v35 = vadd.f32 %v11567_v30, %v951_v43  ;;  %v14111_v43 = vld [vmem:[#allocation73_spill] sm:$0xff] }
 0x34e   : > { %v14104_v38 = vand.u32 2147483647, %v11570_v10  ;;  %v14105_v45 = vmov 0  ;;  %vm13799_vm11 = vcmp.lt.s32.totalorder %v11662_v5, 0  ;;  %v3563_v23 = vsub.s32 32, %v3562_v37 }
 0x34f   : > { %v3567_v50 = vsub.s32 4294967266, %v3562_v37  ;;  %v3656_v56 = vadd.s32 536870912, %v3655_v14  ;;  %vm2238_vm15 = vcmp.eq.s32.totalorder %v2233_v36, 2  ;;  %vm2234_vm3 = vcmp.lt.s32.totalorder %v2233_v36, 2 }
 0x350   : > { %vm12012_vm8 = vcmp.le.f32.partialorder %v14104_v38, 0.7853982  ;;  %v2240_v46 = vsel %vm2238_vm15, %v2239_v3, %v14101_v33  ;;  %v13788_v25 = vand.u32 2147483647, %v12008_v35  ;;  %v3806_v30 = vand.u32 2139095040, %v12008_v35 }
 0x351   : > { %v14106_v45 = vsel %vm12012_vm8, 4294967295, %v14105_v45  ;;  %v3568_v48 = vadd.s32 127, %v3567_v50  ;;  %v12020_v27 = vshrl.u32 %v3656_v56, 30  ;;  %v2241_v21 = vsel %vm2234_vm3, %v2237_v8, %v2240_v46  ;;  %v14116_v46 = vld [vmem:[#allocation52_spill] sm:$0xff] }
 0x352   : > { %14107 = vst [vmem:[#allocation13_spill] sm:$0xff] %v14106_v45  ;;  %vm14110_vm10 = vcmp.lt.s32.totalorder %v14109_v1, 0  ;;  %v3565_v62 = vshrl.u32 %v3547_v20, %v3563_v23  ;;  %v2138_v11 = vsel %vm2127_vm13, nan, %v2137_v4  ;;  %v2242_v53 = vsel %vm2231_vm4, nan, %v2241_v21  ;;  %v14113_v20 = vld [vmem:[#allocation44_spill] sm:$0xff]  ;;  %v706_v23 = vpop.permute.xlu1 %705 }
 0x353   : > { %14108 = vst [vmem:[#allocation36_spill] sm:$0xff] %v12020_v27  ;;  %v2330_v24 = vsel %vm14110_vm10, %v2329_v2, %v14103_v29  ;;  %v3807_v33 = vshrl.u32 %v3806_v30, 23  ;;  %v3569_v0 = vshll.u32 %v3568_v48, 23  ;;  %v3658_v28 = vshll.u32 %v12020_v27, 30 }
 0x354   : > { %v4328_v36 = vpack.c.bf16 %v2242_v53, %v2138_v11  ;;  %v3810_v12 = vand.u32 8388607, %v13788_v25  ;;  %v3471_v16 = vxor.u32 2147483648, %v3470_v63  ;;  %vm14112_vm3 = vnez %v14111_v43  ;;  %v14118_v11 = vld [vmem:[#allocation79_spill] sm:$0xff]  ;;  %v14121_v43 = vld [vmem:[#allocation5_spill] sm:$0xff] }
 0x355   : > { %v7655_v3 = vadd.s32 4294967169, %v3807_v33  ;;  %v2332_v29 = vsel %vm14112_vm3, 0, %v2330_v24  ;;  %v2433_v2 = vsub.s32 4, %v14113_v20  ;;  %v14114_v31 = vxor.u32 2147483648, %v11895_v15 }
 0x356   : > { %v3564_v4 = vshll.u32 %v11954_v59, %v3562_v37  ;;  %v3570_v8 = vor.u32 4788187, %v3569_v0  ;;  %v12041_v38 = vsub.s32 %v3655_v14, %v3658_v28  ;;  %vm14115_vm13 = vcmask 261120  }
 0x357   : > { %v3264_v9 = vsel %vm13800_vm5, %v14114_v31, %v11895_v15  ;;  %8124 = vmatmul.mubr.msk.bf16.gmra.mrb[8].mxu0 %vm14115_vm13, %v4328_v36  ;;  %8857 = vcosq.f32 %v11913_v34  ;;  %v3813_v50 = vadd.s32 1, %v7655_v3  ;;  %v2336_v56 = vadd.s32 3, %v2332_v29  ;;  %v14120_v36 = vld [vmem:[#allocation80_spill] sm:$0xff]  ;;  %v874_v29 = vpop.permute.xlu1 %873 }
 0x358   : > { %vm14117_vm4 = vcmp.lt.s32.totalorder %v14116_v46, 0  ;;  %8859 = vsinq.f32 %v11913_v34  ;;  %v3566_v48 = vor.u32 %v3565_v62, %v3564_v4  ;;  %v3661_v15 = vsub.s32 0, %v12041_v38 }
 0x359   : > { %v2434_v30 = vsel %vm14117_vm4, %v2433_v2, %v14113_v20  ;;  %v3811_v59 = vor.u32 8388608, %v3810_v12  ;;  %v12053_v14 = vsel %vm12012_vm8, %v11570_v10, %v3264_v9  ;;  %v12057_v37 = vsel %vm13799_vm11, %v3471_v16, %v3470_v63 }
 0x35a   : > { %vm3814_vm14 = vcmp.gt.s32.totalorder %v3813_v50, 0  ;;  %v12060_v21 = vmul.f32 %v11994_v6, %v706_v23  ;;  %v3571_v24 = vand.u32 2147483647, %v3570_v8  ;;  %v7648_v34 = vmin.u32 %v3661_v15, %v12041_v38 }
 0x35b   : > { %v3815_v62 = vsel %vm3814_vm14, %v3813_v50, 0  ;;  %vm14119_vm15 = vnez %v14118_v11  ;;  %v3651_v33 = vadd.s32 %v11960_v49, %v11973_v22  ;;  %v12067_v28 = vand.u32 3, %v2336_v56 }
 0x35c   : > { %v2436_v53 = vsel %vm14119_vm15, 0, %v2434_v30  ;;  %v3817_v0 = vand.u32 31, %v3815_v62  ;;  %v2340_v63 = vxor.u32 2147483648, %v14120_v36  ;;  %v3573_v12 = vcvt.s32.f32 %v3566_v48 }
 0x35d   : > { %v3663_v16 = vclz %v7648_v34  ;;  %v12070_v3 = vshll.u32 %v3811_v59, 8  ;;  %v12073_v2 = vadd.s32 3, %v2436_v53  ;;  %v3816_v22 = vshrl.u32 %v3815_v62, 5 }
 0x35e   : > { %v3818_v20 = vsub.s32 32, %v3817_v0  ;;  %v12077_v4 = vmul.f32 %v3573_v12, %v3571_v24  ;;  %v3820_v8 = vshll.u32 %v13844_v39, %v3817_v0  ;;  %v3823_v50 = vshll.u32 %v13852_v40, %v3817_v0 }
 0x35f   : > { %v7649_v49 = vadd.s32 4294967294, %v3663_v16  ;;  %v3826_v30 = vshll.u32 %v13842_v41, %v3817_v0  ;;  %vm2339_vm10 = vcmp.eq.s32.totalorder %v12067_v28, 0  ;;  %v3829_v15 = vshll.u32 %v13843_v7, %v3817_v0 }
 0x360   : > { %v3821_v23 = vshrl.u32 %v13852_v40, %v3818_v20  ;;  %v3824_v56 = vshrl.u32 %v13842_v41, %v3818_v20  ;;  %v3827_v48 = vshrl.u32 %v13843_v7, %v3818_v20  ;;  %v3830_v59 = vshrl.u32 %v13845_v58, %v3818_v20 }
 0x361   : > { %vm7650_vm3 = vcmp.lt.s32.totalorder %v7649_v49, 0  ;;  %v12088_v24 = vpop.eup %8857  ;;  %v3832_v53 = vshll.u32 %v13845_v58, %v3817_v0  ;;  %v3819_v9 = vshrl.u32 %v13844_v39, %v3818_v20  ;;  %v3833_v10 = vshrl.u32 %v13846_v13, %v3818_v20 }
 0x362   : > { %14122 = vst [vmem:[#allocation43_spill] sm:$0xff] %v12088_v24  ;;  %v3666_v34 = vsel %vm7650_vm3, 0, %v7649_v49  ;;  %v3822_v62 = vor.u32 %v3821_v23, %v3820_v8  ;;  %v3825_v11 = vor.u32 %v3824_v56, %v3823_v50  ;;  %v12092_v12 = vpop.eup %8859  ;;  %v3828_v31 = vor.u32 %v3827_v48, %v3826_v30 }
 0x363   : > { %14123 = vst [vmem:[#allocation27_spill] sm:$0xff] %v12092_v12  ;;  %v3667_v16 = vsub.s32 32, %v3666_v34  ;;  %v3671_v25 = vsub.s32 4294967266, %v3666_v34  ;;  %v3668_v27 = vshll.u32 %v12041_v38, %v3666_v34  ;;  %v3831_v45 = vor.u32 %v3830_v59, %v3829_v15  ;;  %v878_v15 = vpop.permute.xlu1 %877 }
 0x364   : > { %vm3835_vm4 = vcmp.lt.s32.totalorder %v3816_v22, 1  ;;  %vm3836_vm14 = vcmp.lt.s32.totalorder %v3816_v22, 2  ;;  %vm3838_vm15 = vcmp.lt.s32.totalorder %v3816_v22, 4  ;;  %v3834_v0 = vor.u32 %v3833_v10, %v3832_v53  ;;  %v12130_v53 = vld [vmem:[%s13576_s2 + $0x1] ss:$0 sm:$0xff] }
 0x365   : > { %v3669_v49 = vshrl.u32 %v3651_v33, %v3667_v16  ;;  %v3672_v8 = vadd.s32 127, %v3671_v25  ;;  %vm3837_vm3 = vcmp.lt.s32.totalorder %v3816_v22, 3  ;;  %v3840_v23 = vsel %vm3838_vm15, %v3828_v31, 2102212464 }
 0x366   : > { %v3843_v50 = vsel %vm3835_vm4, %v3822_v62, %v3825_v11  ;;  %v3839_v24 = vsel %vm3835_vm4, %v3819_v9, %v3822_v62  ;;  %v3841_v12 = vsel %vm3837_vm3, %v3825_v11, %v3840_v23  ;;  %v3844_v18 = vsel %vm3838_vm15, %v3831_v45, 920167782 }
 0x367   : > { %v3673_v56 = vshll.u32 %v3672_v8, 23  ;;  %v3670_v30 = vor.u32 %v3669_v49, %v3668_v27  ;;  %v3845_v48 = vsel %vm3837_vm3, %v3828_v31, %v3844_v18  ;;  %v3847_v17 = vsel %vm3835_vm4, %v3825_v11, %v3828_v31  ;;  %v14133_v8 = vld [vmem:[#allocation38_spill] sm:$0xff] }
 0x368   : > { %v3848_v38 = vsel %vm3838_vm15, %v3834_v0, 1326507024  ;;  %vm2335_vm11 = vweird.f32 %v14109_v1  ;;  %v3846_v33 = vsel %vm3836_vm14, %v3843_v50, %v3845_v48  ;;  %v2341_v10 = vsel %vm2339_vm10, %v14121_v43, %v2340_v63 }
 0x369   : > { %v3674_v20 = vor.u32 4788187, %v3673_v56  ;;  %v3849_v25 = vsel %vm3837_vm3, %v3831_v45, %v3848_v38  ;;  %v3842_v27 = vsel %vm3836_vm14, %v3839_v24, %v3841_v12  ;;  %v14124_v63 = vxor.u32 2147483648, %v14121_v43 }
 0x36a   : > { %v3850_v18 = vsel %vm3836_vm14, %v3847_v17, %v3849_v25  ;;  %v12107_v31 = vmul.u32.u64.low %v12070_v3, %v3846_v33  ;;  %v12108_v9 = vmul.u32.u64.high %v12070_v3, %v3846_v33, %v12107_v31  ;;  %vm14125_vm10 = vcmp.eq.s32.totalorder %v12067_v28, 2 }
 0x36b   : > { %v3675_v59 = vand.u32 2147483647, %v3674_v20  ;;  %v12112_v45 = vmul.u32.u64.low %v12070_v3, %v3850_v18  ;;  %v12113_v34 = vmul.u32.u64.high %v12070_v3, %v3850_v18, %v12112_v45  ;;  %v2344_v62 = vsel %vm14125_vm10, %v14124_v63, %v14120_v36  ;;  %v14140_v63 = vld [vmem:[#allocation58_spill] sm:$0xff] }
 0x36c   : > { %v14126_v24 = vand.u32 2147483647, %v11662_v5  ;;  %v3677_v22 = vcvt.s32.f32 %v3670_v30  ;;  %v2441_v11 = vand.u32 3, %v12073_v2  ;;  %v920_v12 = vmul.f32 %v12130_v53, %v874_v29 }
 0x36d   : > { %v921_v43 = vmul.f32 %v12130_v53, %v878_v15  ;;  %v14129_v36 = vand.u32 2147483647, %v11789_v51  ;;  %v14130_v16 = vmov 0  ;;  %v3575_v49 = vxor.u32 2147483648, %v12077_v4  ;;  %v14136_v15 = vld [vmem:[#allocation28_spill] sm:$0xff] }
 0x36e   : > { %vm12122_vm4 = vcmp.le.f32.partialorder %v14126_v24, 0.7853982  ;;  %v3858_v2 = vmul.u32 %v12070_v3, %v3842_v27  ;;  %vm2338_vm3 = vcmp.lt.s32.totalorder %v12067_v28, 2  ;;  %v2537_v0 = vsub.s32 4, %v14133_v8 }
 0x36f   : > { %vm12136_vm14 = vcmp.le.f32.partialorder %v14129_v36, 0.7853982  ;;  %v3678_v23 = vmul.f32 %v3677_v22, %v3675_v59  ;;  %v3861_v29 = vadd.s32 1, %v12108_v9  ;;  %v2345_v50 = vsel %vm2338_vm3, %v2341_v10, %v2344_v62 }
 0x370   : > { %v14131_v16 = vsel %vm12136_vm14, 4294967295, %v14130_v16  ;;  %vm2443_vm10 = vcmp.eq.s32.totalorder %v2441_v11, 0  ;;  %vm3860_vm13 = vc.u32 %v12113_v34, %v12107_v31  ;;  %vm2442_vm5 = vcmp.lt.s32.totalorder %v2441_v11, 2 }
 0x371   : > { %14132 = vst [vmem:[#allocation20_spill] sm:$0xff] %v14131_v16  ;;  %v14134_v56 = vxor.u32 2147483648, %v11488_v57  ;;  %vm2446_vm15 = vcmp.eq.s32.totalorder %v2441_v11, 2  ;;  %v3862_v3 = vsel %vm3860_vm13, %v3861_v29, %v12108_v9  ;;  %v14135_v28 = vxor.u32 2147483648, %v11480_v26 }
 0x372   : > { %v952_v38 = vadd.f32 %v920_v12, %v12060_v21  ;;  %v953_v20 = vadd.f32 %v921_v43, %v11606_v54  ;;  %v3863_v33 = vadd.s32 %v3862_v3, %v3858_v2  ;;  %v2346_v25 = vsel %vm2335_vm11, nan, %v2345_v50 }
 0x373   : > { %v2445_v30 = vsel %vm2443_vm10, %v11480_v26, %v14134_v56  ;;  %v2448_v48 = vsel %vm2446_vm15, %v14135_v28, %v11488_v57  ;;  %vm14137_vm3 = vcmp.lt.s32.totalorder %v14136_v15, 0  ;;  %v3679_v18 = vxor.u32 2147483648, %v3678_v23  ;;  %v12167_v26 = vld [vmem:[%s13577_s3] ss:$0 sm:$0xff] }
 0x374   : > { %v2449_v10 = vsel %vm2442_vm5, %v2445_v30, %v2448_v48  ;;  %v2538_v27 = vsel %vm14137_vm3, %v2537_v0, %v14133_v8  ;;  %vm14138_vm13 = vweird.f32 %v14116_v46  ;;  %v12170_v57 = vadd.f32 %v12167_v26, %v952_v38 }
 0x375   : > { %v2450_v9 = vsel %vm14138_vm13, nan, %v2449_v10  ;;  %v12173_v54 = vadd.f32 %v12167_v26, %v953_v20  ;;  %8861 = vcosq.f32 %v12053_v14  ;;  %vm14139_vm5 = vcmp.lt.s32.totalorder %v11789_v51, 0  ;;  %v14149_v10 = vld [vmem:[#allocation65_spill] sm:$0xff] }
 0x376   : > { %v3576_v1 = vsel %vm14139_vm5, %v3575_v49, %v12077_v4  ;;  %v3864_v21 = vadd.s32 536870912, %v3863_v33  ;;  %v4329_v46 = vpack.c.bf16 %v2450_v9, %v2346_v25  ;;  %8863 = vsinq.f32 %v12053_v14 }
 0x377   : > { %v13802_v59 = vand.u32 2147483647, %v12170_v57  ;;  %v3910_v45 = vand.u32 2139095040, %v12170_v57  ;;  %vm14141_vm11 = vnez %v14140_v63  ;;  %v3475_v24 = vsel %vm12122_vm4, %v11662_v5, %v12057_v37  ;;  %v14150_v63 = vld [vmem:[#allocation63_spill] sm:$0xff] }
 0x378   : > { %v2540_v62 = vsel %vm14141_vm11, 0, %v2538_v27  ;;  %v12188_v22 = vshrl.u32 %v3864_v21, 30  ;;  %vm14143_vm15 = vcmask 261120   ;;  %v13801_v4 = vand.u32 2147483647, %v12173_v54 }
 0x379   : > { %8127 = vmatprep.mubr.msk.bf16.mxu0 %vm14143_vm15, %v4329_v46  ;;  %v4014_v14 = vand.u32 2139095040, %v12173_v54  ;;  %v3579_v11 = vsel %vm12136_vm14, %v11789_v51, %v3576_v1  ;;  %vm14144_vm10 = vcmp.lt.s32.totalorder %v11807_v47, 0  ;;  %v3911_v43 = vshrl.u32 %v3910_v45, 23 }
 0x37a   : > { %14142 = vst [vmem:[#allocation49_spill] sm:$0xff] %v12188_v22  ;;  %v3680_v12 = vsel %vm14144_vm10, %v3679_v18, %v3678_v23  ;;  %v3914_v36 = vand.u32 8388607, %v13802_v59  ;;  %v3866_v37 = vshll.u32 %v12188_v22, 30  ;;  %v4018_v2 = vand.u32 8388607, %v13801_v4 }
 0x37b   : > { %v4015_v49 = vshrl.u32 %v4014_v14, 23  ;;  %v2544_v8 = vadd.s32 3, %v2540_v62  ;;  %8865 = vcosq.f32 %v3475_v24  ;;  %v7659_v0 = vadd.s32 4294967169, %v3911_v43 }
 0x37c   : > { %8867 = vsinq.f32 %v3475_v24  ;;  %v14145_v29 = vand.u32 2147483647, %v11807_v47  ;;  %v14146_v50 = vmov 0  ;;  %v12209_v23 = vsub.s32 %v3863_v33, %v3866_v37 }
 0x37d   : > { %v7663_v56 = vadd.s32 4294967169, %v4015_v49  ;;  %8869 = vcosq.f32 %v3579_v11  ;;  %v3915_v3 = vor.u32 8388608, %v3914_v36  ;;  %v3917_v28 = vadd.s32 1, %v7659_v0 }
 0x37e   : > { %vm12205_vm3 = vcmp.le.f32.partialorder %v14145_v29, 0.7853982  ;;  %v3869_v48 = vsub.s32 0, %v12209_v23  ;;  %v4019_v38 = vor.u32 8388608, %v4018_v2  ;;  %v12217_v25 = vand.u32 3, %v2544_v8 }
 0x37f   : > { %v14147_v50 = vsel %vm12205_vm3, 4294967295, %v14146_v50  ;;  %v12214_v30 = vsel %vm12205_vm3, %v11807_v47, %v3680_v12  ;;  %v4021_v20 = vadd.s32 1, %v7663_v56  ;;  %8871 = vsinq.f32 %v3579_v11  ;;  %v12224_v18 = vpop.eup %8861 }
 0x380   : > { %14148 = vst [vmem:[#allocation34_spill] sm:$0xff] %v14147_v50  ;;  %v12221_v33 = vadd.s32 %v12107_v31, %v12113_v34  ;;  %vm3918_vm13 = vcmp.gt.s32.totalorder %v3917_v28, 0  ;;  %v2548_v27 = vxor.u32 2147483648, %v14149_v10  ;;  %8873 = vcosq.f32 %v12214_v30  ;;  %v12228_v21 = vpop.eup %8863  ;;  %v14151_v31 = vld [vmem:[#allocation69_spill] sm:$0xff] }
 0x381   : > { %v7656_v9 = vmin.u32 %v3869_v48, %v12209_v23  ;;  %v3919_v1 = vsel %vm3918_vm13, %v3917_v28, 0  ;;  %vm4022_vm5 = vcmp.gt.s32.totalorder %v4021_v20, 0  ;;  %v12234_v14 = vshll.u32 %v3915_v3, 8 }
 0x382   : > { %v3921_v46 = vand.u32 31, %v3919_v1  ;;  %v12230_v45 = vsel %vm4022_vm5, %v4021_v20, 0  ;;  %v12236_v11 = vshll.u32 %v4019_v38, 8  ;;  %vm2547_vm11 = vcmp.eq.s32.totalorder %v12217_v25, 0 }
 0x383   : > { %v3871_v24 = vclz %v7656_v9  ;;  %v3920_v12 = vshrl.u32 %v3919_v1, 5  ;;  %v12240_v36 = vand.u32 31, %v12230_v45  ;;  %v12243_v37 = vsel %vm2547_vm11, %v14150_v63, %v2548_v27  ;;  %v8717_v1 = vld [vmem:[%s9134_s28] sm:$0xff]  }
 0x384   : > { %v3922_v43 = vsub.s32 32, %v3921_v46  ;;  %v3924_v2 = vshll.u32 %v13844_v39, %v3921_v46  ;;  %v3927_v8 = vshll.u32 %v13852_v40, %v3921_v46  ;;  %v3930_v0 = vshll.u32 %v13842_v41, %v3921_v46  ;;  %8147 = vmatprep.subr.bf16.mxu1 %v8717_v1 }
 0x385   : > { %v7657_v49 = vadd.s32 4294967294, %v3871_v24  ;;  %v12248_v29 = vpop.eup %8865  ;;  %v3933_v48 = vshll.u32 %v13843_v7, %v3921_v46  ;;  %v3936_v27 = vshll.u32 %v13845_v58, %v3921_v46  ;;  %v8718_v24 = vld [vmem:[%s9134_s28 + $0x8] sm:$0xff]   ;;  %vm3939_vm10 = vcmp.lt.s32.totalorder %v3920_v12, 1  ;;  %8148 = vmatpush3.bf16.msra.mxu1 %v8717_v1 }
 0x386   : > { %14152 = vst [vmem:[#allocation25_spill] sm:$0xff] %v12248_v29  ;;  %v3925_v56 = vshrl.u32 %v13852_v40, %v3922_v43  ;;  %v3928_v3 = vshrl.u32 %v13842_v41, %v3922_v43  ;;  %v3931_v28 = vshrl.u32 %v13843_v7, %v3922_v43  ;;  %v12254_v38 = vpop.eup %8867  ;;  %v3934_v20 = vshrl.u32 %v13845_v58, %v3922_v43 }
 0x387   : > { %14153 = vst [vmem:[#allocation57_spill] sm:$0xff] %v12254_v38  ;;  %vm7658_vm15 = vcmp.lt.s32.totalorder %v7657_v49, 0  ;;  %v3937_v9 = vshrl.u32 %v13846_v13, %v3922_v43  ;;  %v12261_v4 = vpop.eup %8869  ;;  %v3923_v16 = vshrl.u32 %v13844_v39, %v3922_v43  ;;  %vm3941_vm13 = vcmp.lt.s32.totalorder %v3920_v12, 3  ;;  %8149 = vmatprep.subr.bf16.mxu1 %v8718_v24 }
 0x388   : > { %v3874_v59 = vsel %vm7658_vm15, 0, %v7657_v49  ;;  %v3926_v34 = vor.u32 %v3925_v56, %v3924_v2  ;;  %v3929_v62 = vor.u32 %v3928_v3, %v3927_v8  ;;  %v3932_v22 = vor.u32 %v3931_v28, %v3930_v0  ;;  %v8719_v56 = vld [vmem:[%s9134_s28 + $0x10] sm:$0xff]  }
 0x389   : > { %v3875_v50 = vsub.s32 32, %v3874_v59  ;;  %v3879_v47 = vsub.s32 4294967266, %v3874_v59  ;;  %v3935_v51 = vor.u32 %v3934_v20, %v3933_v48  ;;  %v12264_v29 = vpop.eup %8871  ;;  %v3938_v46 = vor.u32 %v3937_v9, %v3936_v27  ;;  %8150 = vmatpush3.bf16.msra.mxu1 %v8718_v24 }
 0x38a   : > { %vm3942_vm5 = vcmp.lt.s32.totalorder %v3920_v12, 4  ;;  %v12266_v38 = vpop.eup %8873  ;;  %v3943_v2 = vsel %vm3939_vm10, %v3923_v16, %v3926_v34  ;;  %v3947_v0 = vsel %vm3939_vm10, %v3926_v34, %v3929_v62  ;;  %v3951_v28 = vsel %vm3939_vm10, %v3929_v62, %v3932_v22  ;;  %8151 = vmatprep.subr.bf16.mxu1 %v8719_v56 }
 0x38b   : > { %v3880_v49 = vadd.s32 127, %v3879_v47  ;;  %v3944_v8 = vsel %vm3942_vm5, %v3932_v22, 2102212464  ;;  %v3948_v43 = vsel %vm3942_vm5, %v3935_v51, 920167782  ;;  %v3877_v20 = vshrl.u32 %v12221_v33, %v3875_v50 }
 0x38c   : > { %v3945_v3 = vsel %vm3941_vm13, %v3929_v62, %v3944_v8  ;;  %v3952_v48 = vsel %vm3942_vm5, %v3938_v46, 1326507024  ;;  %vm3940_vm11 = vcmp.lt.s32.totalorder %v3920_v12, 2  ;;  %v3949_v9 = vsel %vm3941_vm13, %v3932_v22, %v3948_v43  ;;  %v8720_v22 = vld [vmem:[%s9134_s28 + $0x18] sm:$0xff]  }
 0x38d   : > { %v3881_v27 = vshll.u32 %v3880_v49, 23  ;;  %vm2546_vm15 = vcmp.lt.s32.totalorder %v12217_v25, 2  ;;  %v3950_v47 = vsel %vm3940_vm11, %v3947_v0, %v3949_v9  ;;  %v3953_v16 = vsel %vm3941_vm13, %v3935_v51, %v3952_v48  ;;  %8152 = vmatpush3.bf16.msra.mxu1 %v8719_v56 }
 0x38e   : > { %v4026_v34 = vsub.s32 32, %v12240_v36  ;;  %vm2550_vm0 = vcmp.eq.s32.totalorder %v12217_v25, 2  ;;  %v3876_v62 = vshll.u32 %v12209_v23, %v3874_v59  ;;  %v3946_v1 = vsel %vm3940_vm11, %v3943_v2, %v3945_v3  ;;  %8153 = vmatprep.subr.bf16.mxu1 %v8720_v22 }
 0x38f   : > { %v3954_v46 = vsel %vm3940_vm11, %v3951_v28, %v3953_v16  ;;  %v14154_v50 = vxor.u32 2147483648, %v14150_v63  ;;  %v12286_v51 = vmul.u32.u64.low %v12234_v14, %v3950_v47  ;;  %v12287_v12 = vmul.u32.u64.high %v12234_v14, %v3950_v47, %v12286_v51 }
 0x390   : > { %v12282_v49 = vmul.u32.u64.low %v12234_v14, %v3954_v46  ;;  %v12283_v8 = vmul.u32.u64.high %v12234_v14, %v3954_v46, %v12282_v49  ;;  %v3878_v24 = vor.u32 %v3877_v20, %v3876_v62  ;;  %v3882_v59 = vor.u32 4788187, %v3881_v27  ;;  %v8721_v20 = vld [vmem:[%s9134_s28 + $0x20] sm:$0xff]  }
 0x391   : > { %v2552_v33 = vsel %vm2550_vm0, %v14154_v50, %v14149_v10  ;;  %v12291_v23 = vshrl.u32 %v12230_v45, 5  ;;  %v4029_v63 = vshrl.u32 %v13852_v40, %v4026_v34  ;;  %v4028_v10 = vshll.u32 %v13844_v39, %v12240_v36  ;;  %8154 = vmatpush3.bf16.msra.mxu1 %v8720_v22 }
 0x392   : > { %v4031_v2 = vshll.u32 %v13852_v40, %v12240_v36  ;;  %v4032_v0 = vshrl.u32 %v13842_v41, %v4026_v34  ;;  %v4035_v3 = vshrl.u32 %v13843_v7, %v4026_v34  ;;  %v3962_v43 = vmul.u32 %v12234_v14, %v3946_v1  ;;  %8155 = vmatprep.subr.bf16.mxu1 %v8721_v20 }
 0x393   : > { %v4034_v28 = vshll.u32 %v13842_v41, %v12240_v36  ;;  %v4037_v45 = vshll.u32 %v13843_v7, %v12240_v36  ;;  %v4038_v48 = vshrl.u32 %v13845_v58, %v4026_v34  ;;  %vm3964_vm0 = vc.u32 %v12283_v8, %v12286_v51 }
 0x394   : > { %v3965_v27 = vadd.s32 1, %v12287_v12  ;;  %v4030_v9 = vor.u32 %v4029_v63, %v4028_v10  ;;  %v4033_v47 = vor.u32 %v4032_v0, %v4031_v2  ;;  %v4040_v16 = vshll.u32 %v13845_v58, %v12240_v36  ;;  %v721_v10 = vpop.permute.xlu1 %720 }
 0x395   : > { %v4036_v56 = vor.u32 %v4035_v3, %v4034_v28  ;;  %v4039_v14 = vor.u32 %v4038_v48, %v4037_v45  ;;  %v4041_v62 = vshrl.u32 %v13846_v13, %v4026_v34  ;;  %v3883_v1 = vand.u32 2147483647, %v3882_v59  ;;  %8156 = vmatpush3.bf16.msra.mxu1 %v8721_v20 }
 0x396   : > { %v3966_v46 = vsel %vm3964_vm0, %v3965_v27, %v12287_v12  ;;  %vm2543_vm10 = vweird.f32 %v14136_v15  ;;  %v2553_v50 = vsel %vm2546_vm15, %v12243_v37, %v2552_v33  ;;  %v14155_v49 = vsub.s32 4, %v14151_v31  ;;  %v8722_v12 = vld [vmem:[%s9134_s28 + $0x28] sm:$0xff]   ;;  %v8723_v27 = vld [vmem:[%s9134_s28 + $0x30] sm:$0xff]  }
 0x397   : > { %vm14156_vm13 = vcmp.lt.s32.totalorder %v10734_v42, 0  ;;  %v3967_v36 = vadd.s32 %v3966_v46, %v3962_v43  ;;  %v4042_v2 = vor.u32 %v4041_v62, %v4040_v16  ;;  %vm4043_vm5 = vcmp.lt.s32.totalorder %v12291_v23, 1  ;;  %8157 = vmatprep.subr.bf16.mxu1 %v8722_v12 }
 0x398   : > { %v2642_v63 = vsel %vm14156_vm13, %v14155_v49, %v14151_v31  ;;  %vm4046_vm11 = vcmp.lt.s32.totalorder %v12291_v23, 4  ;;  %v3885_v59 = vcvt.s32.f32 %v3878_v24  ;;  %v4027_v25 = vshrl.u32 %v13844_v39, %v4026_v34 }
 0x399   : > { %v4048_v37 = vsel %vm4046_vm11, %v4036_v56, 2102212464  ;;  %v4051_v33 = vsel %vm4043_vm5, %v4030_v9, %v4033_v47  ;;  %v3968_v0 = vadd.s32 536870912, %v3967_v36  ;;  %vm4044_vm15 = vcmp.lt.s32.totalorder %v12291_v23, 2  ;;  %8158 = vmatpush3.bf16.msra.mxu1 %v8722_v12  ;;  %v14163_v12 = vld [vmem:[#allocation77_spill] sm:$0xff] }
 0x39a   : > { %vm4045_vm0 = vcmp.lt.s32.totalorder %v12291_v23, 3  ;;  %v4052_v31 = vsel %vm4046_vm11, %v4039_v14, 920167782  ;;  %v4047_v22 = vsel %vm4043_vm5, %v4027_v25, %v4030_v9  ;;  %v4055_v28 = vsel %vm4043_vm5, %v4033_v47, %v4036_v56  ;;  %v14158_v25 = vld [vmem:[#allocation31_spill] sm:$0xff]  ;;  %8159 = vmatprep.subr.bf16.mxu1 %v8723_v27  ;;  %v8724_v23 = vld [vmem:[%s9134_s28 + $0x38] sm:$0xff]  }
 0x39b   : > { %v4049_v3 = vsel %vm4045_vm0, %v4033_v47, %v4048_v37  ;;  %v4053_v43 = vsel %vm4045_vm0, %v4036_v56, %v4052_v31  ;;  %v3886_v24 = vmul.f32 %v3885_v59, %v3883_v1  ;;  %v12333_v34 = vshrl.u32 %v3968_v0, 30  ;;  %v886_v56 = vpop.permute.xlu1 %885 }
 0x39c   : > { %v4054_v45 = vsel %vm4044_vm15, %v4051_v33, %v4053_v43  ;;  %v4056_v48 = vsel %vm4046_vm11, %v4042_v2, 1326507024  ;;  %vm2647_vm13 = vweird.f32 %v10734_v42  ;;  %v2644_v47 = vsel %vm11390_vm7, 0, %v2642_v63  ;;  %v14159_v63 = vld [vmem:[#allocation9_spill] sm:$0xff] }
 0x39d   : > { %v4057_v16 = vsel %vm4045_vm0, %v4039_v14, %v4056_v48  ;;  %v12342_v9 = vmul.u32.u64.low %v12236_v11, %v4054_v45  ;;  %v12343_v62 = vmul.u32.u64.high %v12236_v11, %v4054_v45, %v12342_v9  ;;  %v3970_v1 = vshll.u32 %v12333_v34, 30  ;;  %8160 = vmatpush3.bf16.msra.mxu1 %v8723_v27 }
 0x39e   : > { %v4050_v46 = vsel %vm4044_vm15, %v4047_v22, %v4049_v3  ;;  %v4058_v14 = vsel %vm4044_vm15, %v4055_v28, %v4057_v16  ;;  %v2648_v49 = vadd.s32 3, %v2644_v47  ;;  %v2652_v37 = vxor.u32 2147483648, %v14158_v25  ;;  %8161 = vmatprep.subr.bf16.mxu1 %v8724_v23 }
 0x39f   : > { %v12355_v2 = vmul.u32.u64.low %v12236_v11, %v4058_v14  ;;  %v12356_v59 = vmul.u32.u64.high %v12236_v11, %v4058_v14, %v12355_v2  ;;  %v2655_v33 = vxor.u32 2147483648, %v14159_v63  ;;  %v12360_v0 = vsub.s32 %v3967_v36, %v3970_v1 }
 0x3a0   : > { %v2554_v31 = vsel %vm2543_vm10, nan, %v2553_v50  ;;  %v2649_v43 = vand.u32 3, %v2648_v49  ;;  %v923_v22 = vmul.f32 %v12130_v53, %v886_v56  ;;  %v14160_v3 = vand.u32 2147483647, %v12008_v35  ;;  %v14166_v2 = vld [vmem:[#allocation15_spill] sm:$0xff] }
 0x3a1   : > { %v3887_v45 = vxor.u32 2147483648, %v3886_v24  ;;  %v4066_v48 = vmul.u32 %v12236_v11, %v4050_v46  ;;  %v4069_v36 = vadd.s32 1, %v12343_v62  ;;  %v2745_v16 = vsub.s32 4, %v14163_v12  ;;  %v12383_v46 = vpop.f32.mrb[0].mxu0  ;;  %8162 = vmatpush3.bf16.msra.mxu1 %v8724_v23 }
 0x3a2   : > { %vm12368_vm7 = vcmp.le.f32.partialorder %v14160_v3, 0.7853982  ;;  %v3973_v15 = vsub.s32 0, %v12360_v0  ;;  %vm2651_vm10 = vcmp.eq.s32.totalorder %v2649_v43, 0  ;;  %vm2654_vm11 = vcmp.eq.s32.totalorder %v2649_v43, 2  ;;  %v12391_v27 = vpop.f32.mrb[1].mxu0 }
 0x3a3   : > { %v758_v53 = vmul.f32 %v11994_v6, %v721_v10  ;;  %vm4068_vm15 = vc.u32 %v12356_v59, %v12342_v9  ;;  %vm2650_vm0 = vcmp.lt.s32.totalorder %v2649_v43, 2  ;;  %v2653_v50 = vsel %vm2651_vm10, %v14159_v63, %v2652_v37  ;;  %v14164_v10 = vld [vmem:[#allocation68_spill] sm:$0xff] }
 0x3a4   : > { %v2656_v20 = vsel %vm2654_vm11, %v2655_v33, %v14158_v25  ;;  %v7660_v11 = vmin.u32 %v3973_v15, %v12360_v0  ;;  %v4070_v47 = vsel %vm4068_vm15, %v4069_v36, %v12343_v62  ;;  %vm14165_vm5 = vcmp.lt.s32.totalorder %v14164_v10, 0  ;;  %v14171_v15 = vld [vmem:[#allocation10_spill] sm:$0xff] }
 0x3a5   : > { %v2657_v56 = vsel %vm2650_vm0, %v2653_v50, %v2656_v20  ;;  %v955_v1 = vadd.f32 %v923_v22, %v758_v53  ;;  %v4071_v14 = vadd.s32 %v4070_v47, %v4066_v48  ;;  %v2746_v49 = vsel %vm14165_vm5, %v2745_v16, %v14163_v12  ;;  %v12398_v22 = vpop.f32.mrb[2].mxu0  ;;  %v14172_v20 = vld [vmem:[#allocation14_spill] sm:$0xff] }
 0x3a6   : > { %v2658_v6 = vsel %vm2647_vm13, nan, %v2657_v56  ;;  %v2849_v25 = vsub.s32 4, %v14166_v2  ;;  %v3975_v37 = vclz %v7660_v11  ;;  %v2748_v43 = vsel %vm11449_vm6, 0, %v2746_v49  ;;  %v12403_v36 = vpop.f32.mrb[3].mxu0 }
 0x3a7   : > { %v4330_v63 = vpack.c.bf16 %v2658_v6, %v2554_v31  ;;  %v12394_v62 = vadd.f32 %v12167_v26, %v955_v1  ;;  %8875 = vsinq.f32 %v12214_v30  ;;  %vm14168_vm13 = vcmp.lt.s32.totalorder %v12008_v35, 0 }
 0x3a8   : > { %v3888_v42 = vsel %vm14168_vm13, %v3887_v45, %v3886_v24  ;;  %v4072_v3 = vadd.s32 536870912, %v4071_v14  ;;  %v2752_v48 = vadd.s32 3, %v2748_v43  ;;  %v7661_v12 = vadd.s32 4294967294, %v3975_v37 }
 0x3a9   : > { %vm14169_vm5 = vcmask 261120   ;;  %v13814_v26 = vand.u32 2147483647, %v12394_v62  ;;  %v4222_v31 = vand.u32 2139095040, %v12394_v62  ;;  %vm14170_vm6 = vcmp.lt.s32.totalorder %v11129_v61, 0 }
 0x3aa   : > { %8128 = vmatmul.mubr.msk.bf16.gmra.mrb[12].mxu0 %vm14169_vm5, %v4330_v63  ;;  %v2850_v16 = vsel %vm14170_vm6, %v2849_v25, %v14166_v2  ;;  %v3963_v30 = vadd.s32 %v12286_v51, %v12283_v8  ;;  %v12413_v24 = vshrl.u32 %v4072_v3, 30  ;;  %v2753_v45 = vand.u32 3, %v2752_v48 }
 0x3ab   : > { %v2756_v53 = vxor.u32 2147483648, %v14171_v15  ;;  %v3891_v23 = vsel %vm12368_vm7, %v12008_v35, %v3888_v42  ;;  %vm7662_vm10 = vcmp.lt.s32.totalorder %v7661_v12, 0  ;;  %v4223_v50 = vshrl.u32 %v4222_v31, 23 }
 0x3ac   : > { %v2759_v11 = vxor.u32 2147483648, %v14172_v20  ;;  %v3978_v47 = vsel %vm7662_vm10, 0, %v7661_v12  ;;  %v4074_v56 = vshll.u32 %v12413_v24, 30  ;;  %v4226_v1 = vand.u32 8388607, %v13814_v26 }
 0x3ad   : > { %v2852_v8 = vsel %vm11801_vm9, 0, %v2850_v16  ;;  %v3979_v51 = vsub.s32 32, %v3978_v47  ;;  %v3983_v6 = vsub.s32 4294967266, %v3978_v47  ;;  %v7671_v49 = vadd.s32 4294967169, %v4223_v50 }
 0x3ae   : > { %vm2755_vm11 = vcmp.eq.s32.totalorder %v2753_v45, 0  ;;  %v3980_v2 = vshll.u32 %v12360_v0, %v3978_v47  ;;  %v12426_v25 = vsub.s32 %v4071_v14, %v4074_v56  ;;  %vm2758_vm15 = vcmp.eq.s32.totalorder %v2753_v45, 2 }
 0x3af   : > { %v2757_v37 = vsel %vm2755_vm11, %v14172_v20, %v2756_v53  ;;  %v3981_v63 = vshrl.u32 %v3963_v30, %v3979_v51  ;;  %v3984_v33 = vadd.s32 127, %v3983_v6  ;;  %v4229_v43 = vadd.s32 1, %v7671_v49 }
 0x3b0   : > { %v2760_v42 = vsel %vm2758_vm15, %v2759_v11, %v14171_v15  ;;  %8877 = vcosq.f32 %v3891_v23  ;;  %v4077_v52 = vsub.s32 0, %v12426_v25  ;;  %v4227_v3 = vor.u32 8388608, %v4226_v1 }
 0x3b1   : > { %v2856_v48 = vadd.s32 3, %v2852_v8  ;;  %v3982_v12 = vor.u32 %v3981_v63, %v3980_v2  ;;  %v3985_v31 = vshll.u32 %v3984_v33, 23  ;;  %vm4230_vm9 = vcmp.gt.s32.totalorder %v4229_v43, 0  ;;  %v12431_v0 = vpop.eup %8875 }
 0x3b2   : > { %vm2754_vm0 = vcmp.lt.s32.totalorder %v2753_v45, 2  ;;  %8879 = vsinq.f32 %v3891_v23  ;;  %vm13815_vm13 = vcmp.lt.s32.totalorder %v12170_v57, 0  ;;  %v7664_v14 = vmin.u32 %v4077_v52, %v12426_v25 }
 0x3b3   : > { %v4231_v16 = vsel %vm4230_vm9, %v4229_v43, 0  ;;  %v2761_v30 = vsel %vm2754_vm0, %v2757_v37, %v2760_v42  ;;  %v3986_v53 = vor.u32 4788187, %v3985_v31  ;;  %v4067_v15 = vadd.s32 %v12342_v9, %v12356_v59 }
 0x3b4   : > { %v4233_v50 = vand.u32 31, %v4231_v16  ;;  %vm2751_vm5 = vweird.f32 %v14164_v10  ;;  %v14173_v20 = vand.u32 2147483647, %v12170_v57  ;;  %v4079_v23 = vclz %v7664_v14 }
 0x3b5   : > { %v12444_v11 = vshll.u32 %v4227_v3, 8  ;;  %v12446_v47 = vand.u32 3, %v2856_v48  ;;  %v2860_v56 = vxor.u32 2147483648, %v11888_v60  ;;  %v3987_v1 = vand.u32 2147483647, %v3986_v53 }
 0x3b6   : > { %vm12440_vm6 = vcmp.le.f32.partialorder %v14173_v20, 0.7853982  ;;  %v3989_v8 = vcvt.s32.f32 %v3982_v12  ;;  %v4234_v51 = vsub.s32 32, %v4233_v50  ;;  %v12449_v9 = vsel %vm2751_vm5, nan, %v2761_v30 }
 0x3b7   : > { %v7665_v59 = vadd.s32 4294967294, %v4079_v23  ;;  %v12451_v10 = vshrl.u32 %v4231_v16, 5  ;;  %v4236_v6 = vshll.u32 %v13844_v39, %v4233_v50  ;;  %v2863_v49 = vxor.u32 2147483648, %v11875_v19 }
 0x3b8   : > { %v3990_v2 = vmul.f32 %v3989_v8, %v3987_v1  ;;  %v4237_v37 = vshrl.u32 %v13852_v40, %v4234_v51  ;;  %v4239_v63 = vshll.u32 %v13852_v40, %v4233_v50  ;;  %v4240_v33 = vshrl.u32 %v13842_v41, %v4234_v51 }
 0x3b9   : > { %vm7666_vm10 = vcmp.lt.s32.totalorder %v7665_v59, 0  ;;  %v4242_v43 = vshll.u32 %v13842_v41, %v4233_v50  ;;  %v4243_v42 = vshrl.u32 %v13843_v7, %v4234_v51  ;;  %v4246_v52 = vshrl.u32 %v13845_v58, %v4234_v51 }
 0x3ba   : > { %vm2859_vm11 = vcmp.eq.s32.totalorder %v12446_v47, 0  ;;  %v3991_v3 = vxor.u32 2147483648, %v3990_v2  ;;  %v4082_v48 = vsel %vm7666_vm10, 0, %v7665_v59  ;;  %v4245_v12 = vshll.u32 %v13843_v7, %v4233_v50  ;;  %v12464_v14 = vpop.eup %8877 }
 0x3bb   : > { %v4249_v31 = vshrl.u32 %v13846_v13, %v4234_v51  ;;  %v4083_v40 = vsub.s32 32, %v4082_v48  ;;  %v4087_v16 = vsub.s32 4294967266, %v4082_v48  ;;  %v4244_v30 = vor.u32 %v4243_v42, %v4242_v43 }
 0x3bc   : > { %v4248_v53 = vshll.u32 %v13845_v58, %v4233_v50  ;;  %vm2862_vm15 = vcmp.eq.s32.totalorder %v12446_v47, 2  ;;  %v3992_v41 = vsel %vm13815_vm13, %v3991_v3, %v3990_v2  ;;  %v4238_v20 = vor.u32 %v4237_v37, %v4236_v6  ;;  %v12470_v8 = vpop.eup %8879 }
 0x3bd   : > { %v4241_v23 = vor.u32 %v4240_v33, %v4239_v63  ;;  %v4247_v1 = vor.u32 %v4246_v52, %v4245_v12  ;;  %v4084_v7 = vshll.u32 %v12426_v25, %v4082_v48  ;;  %v4085_v13 = vshrl.u32 %v4067_v15, %v4083_v40 }
 0x3be   : > { %v4088_v59 = vadd.s32 127, %v4087_v16  ;;  %v4235_v26 = vshrl.u32 %v13844_v39, %v4234_v51  ;;  %v3995_v58 = vsel %vm12440_vm6, %v12170_v57, %v3992_v41  ;;  %v4250_v50 = vor.u32 %v4249_v31, %v4248_v53  ;;  %v14176_v53 = vld [vmem:[#allocation46_spill] sm:$0xff] }
 0x3bf   : > { %vm4251_vm0 = vcmp.lt.s32.totalorder %v12451_v10, 1  ;;  %vm4254_vm5 = vcmp.lt.s32.totalorder %v12451_v10, 4  ;;  %v4086_v6 = vor.u32 %v4085_v13, %v4084_v7  ;;  %vm4252_vm10 = vcmp.lt.s32.totalorder %v12451_v10, 2  ;;  %v14178_v13 = vld [vmem:[#allocation33_spill] sm:$0xff] }
 0x3c0   : > { %v4089_v2 = vshll.u32 %v4088_v59, 23  ;;  %v4256_v25 = vsel %vm4254_vm5, %v4244_v30, 2102212464  ;;  %vm4253_vm13 = vcmp.lt.s32.totalorder %v12451_v10, 3  ;;  %v4255_v39 = vsel %vm4251_vm0, %v4235_v26, %v4238_v20 }
 0x3c1   : > { %v4259_v15 = vsel %vm4251_vm0, %v4238_v20, %v4241_v23  ;;  %v4260_v51 = vsel %vm4254_vm5, %v4247_v1, 920167782  ;;  %v4257_v63 = vsel %vm4253_vm13, %v4241_v23, %v4256_v25  ;;  %v4263_v43 = vsel %vm4251_vm0, %v4241_v23, %v4244_v30  ;;  %v14185_v25 = vld [vmem:[#allocation7_spill] sm:$0xff] }
 0x3c2   : > { %v4090_v37 = vor.u32 4788187, %v4089_v2  ;;  %v4261_v33 = vsel %vm4253_vm13, %v4244_v30, %v4260_v51  ;;  %vm4013_vm9 = vcmp.lt.s32.totalorder %v12173_v54, 0  ;;  %v4093_v42 = vcvt.s32.f32 %v4086_v6 }
 0x3c3   : > { %v4262_v52 = vsel %vm4252_vm10, %v4259_v15, %v4261_v33  ;;  %v4264_v3 = vsel %vm4254_vm5, %v4250_v50, 1326507024  ;;  %v2861_v26 = vsel %vm2859_vm11, %v11875_v19, %v2860_v56  ;;  %vm2858_vm0 = vcmp.lt.s32.totalorder %v12446_v47, 2  ;;  %v14180_v50 = vld [vmem:[#allocation62_spill] sm:$0xff] }
 0x3c4   : > { %v4091_v48 = vand.u32 2147483647, %v4090_v37  ;;  %v4265_v12 = vsel %vm4253_vm13, %v4247_v1, %v4264_v3  ;;  %v12495_v31 = vmul.u32.u64.low %v12444_v11, %v4262_v52  ;;  %v12496_v40 = vmul.u32.u64.high %v12444_v11, %v4262_v52, %v12495_v31  ;;  %v14188_v37 = vld [vmem:[#allocation66_spill] sm:$0xff]  ;;  %v14190_v3 = vld [vmem:[#allocation29_spill] sm:$0xff] }
 0x3c5   : > { %v4266_v16 = vsel %vm4252_vm10, %v4263_v43, %v4265_v12  ;;  %v2864_v30 = vsel %vm2862_vm15, %v2863_v49, %v11888_v60  ;;  %v2953_v41 = vsub.s32 4, %v14176_v53  ;;  %8881 = vcosq.f32 %v3995_v58 }
 0x3c6   : > { %v4094_v20 = vmul.f32 %v4093_v42, %v4091_v48  ;;  %v12506_v19 = vmul.u32.u64.low %v12444_v11, %v4266_v16  ;;  %v12507_v56 = vmul.u32.u64.high %v12444_v11, %v4266_v16, %v12506_v19  ;;  %v2865_v23 = vsel %vm2858_vm0, %v2861_v26, %v2864_v30 }
 0x3c7   : > { %v4258_v1 = vsel %vm4252_vm10, %v4255_v39, %v4257_v63  ;;  %vm14177_vm13 = vweird.f32 %v11129_v61  ;;  %vm14179_vm11 = vcmp.lt.s32.totalorder %v14178_v13, 0  ;;  %v4277_v49 = vadd.s32 1, %v12496_v40 }
 0x3c8   : > { %v2866_v7 = vsel %vm14177_vm13, nan, %v2865_v23  ;;  %v2954_v47 = vsel %vm14179_vm11, %v2953_v41, %v14176_v53  ;;  %v4095_v60 = vxor.u32 2147483648, %v4094_v20  ;;  %vm14181_vm15 = vnez %v14180_v50  ;;  %v14191_v41 = vld [vmem:[#allocation41_spill] sm:$0xff] }
 0x3c9   : > { %v4331_v59 = vpack.c.bf16 %v2866_v7, %v12449_v9  ;;  %v2956_v6 = vsel %vm14181_vm15, 0, %v2954_v47  ;;  %8883 = vsinq.f32 %v3995_v58  ;;  %v14182_v2 = vand.u32 2147483647, %v12173_v54  ;;  %v14187_v9 = vld [vmem:[#allocation67_spill] sm:$0xff]  ;;  %v14205_v7 = vld [vmem:[#allocation12_spill] sm:$0xff] }
 0x3ca   : > { %v2960_v61 = vadd.s32 3, %v2956_v6  ;;  %v3057_v39 = vsub.s32 4, %v14185_v25  ;;  %v4274_v15 = vmul.u32 %v12444_v11, %v4258_v1  ;;  %vm4276_vm10 = vc.u32 %v12507_v56, %v12495_v31  ;;  %v14196_v6 = vld [vmem:[#allocation43_spill] sm:$0xff] }
 0x3cb   : > { %vm12522_vm5 = vcmp.le.f32.partialorder %v14182_v2, 0.7853982  ;;  %vm14186_vm0 = vcmask 261120   ;;  %v2964_v51 = vxor.u32 2147483648, %v14187_v9  ;;  %v2967_v63 = vxor.u32 2147483648, %v14188_v37 }
 0x3cc   : > { %8131 = vmatprep.mubr.msk.bf16.mxu0 %vm14186_vm0, %v4331_v59  ;;  %v4278_v58 = vsel %vm4276_vm10, %v4277_v49, %v12496_v40  ;;  %vm2959_vm13 = vweird.f32 %v14178_v13  ;;  %v2961_v33 = vand.u32 3, %v2960_v61  ;;  %vm14189_vm11 = vcmp.lt.s32.totalorder %v11209_v32, 0  ;;  %v14195_v59 = vld [vmem:[#allocation27_spill] sm:$0xff]  ;;  %v14197_v61 = vld [vmem:[#allocation32_spill] sm:$0xff] }
 0x3cd   : > { %v3058_v43 = vsel %vm14189_vm11, %v3057_v39, %v14185_v25  ;;  %v4096_v11 = vsel %vm4013_vm9, %v4095_v60, %v4094_v20  ;;  %v4279_v42 = vadd.s32 %v4278_v58, %v4274_v15  ;;  %vm3063_vm15 = vweird.f32 %v11209_v32 }
 0x3ce   : > { %v3060_v52 = vsel %vm11823_vm2, 0, %v3058_v43  ;;  %v3161_v26 = vsub.s32 4, %v14190_v3  ;;  %v12544_v48 = vadd.s32 %v12495_v31, %v12507_v56  ;;  %vm2963_vm10 = vcmp.eq.s32.totalorder %v2961_v33, 0  ;;  %v14192_v31 = vld [vmem:[#allocation11_spill] sm:$0xff] }
 0x3cf   : > { %vm2966_vm0 = vcmp.eq.s32.totalorder %v2961_v33, 2  ;;  %v3068_v12 = vxor.u32 2147483648, %v11948_v44  ;;  %v4280_v40 = vadd.s32 536870912, %v4279_v42  ;;  %v2965_v16 = vsel %vm2963_vm10, %v14188_v37, %v2964_v51  ;;  %v12562_v60 = vpop.eup %8881 }
 0x3d0   : > { %v2968_v30 = vsel %vm2966_vm0, %v2967_v63, %v14187_v9  ;;  %v3064_v53 = vadd.s32 3, %v3060_v52  ;;  %v12552_v55 = vsel %vm12522_vm5, %v12173_v54, %v4096_v11  ;;  %vm2962_vm2 = vcmp.lt.s32.totalorder %v2961_v33, 2  ;;  %v14198_v63 = vld [vmem:[#allocation16_spill] sm:$0xff] }
 0x3d1   : > { %v3071_v20 = vxor.u32 2147483648, %v14191_v41  ;;  %vm14193_vm11 = vcmp.lt.s32.totalorder %v14192_v31, 0  ;;  %v12558_v56 = vshrl.u32 %v4280_v40, 30  ;;  %v2969_v23 = vsel %vm2962_vm2, %v2965_v16, %v2968_v30  ;;  %v14201_v30 = vld [vmem:[#allocation59_spill] sm:$0xff] }
 0x3d2   : > { %v3162_v19 = vsel %vm14193_vm11, %v3161_v26, %v14190_v3  ;;  %v3065_v1 = vand.u32 3, %v3064_v53  ;;  %v3172_v50 = vxor.u32 2147483648, %v14195_v59  ;;  %v3175_v2 = vxor.u32 2147483648, %v14196_v6 }
 0x3d3   : > { %v3164_v47 = vsel %vm11882_vm1, 0, %v3162_v19  ;;  %v3265_v25 = vsub.s32 4, %v14197_v61  ;;  %v4282_v39 = vshll.u32 %v12558_v56, 30  ;;  %v12568_v15 = vpop.eup %8883  ;;  %vm14199_vm1 = vcmp.lt.s32.totalorder %v14198_v63, 0 }
 0x3d4   : > { %v3168_v49 = vadd.s32 3, %v3164_v47  ;;  %vm3066_vm10 = vcmp.lt.s32.totalorder %v3065_v1, 2  ;;  %vm3067_vm0 = vcmp.eq.s32.totalorder %v3065_v1, 0  ;;  %vm3070_vm11 = vcmp.eq.s32.totalorder %v3065_v1, 2  ;;  %v14203_v1 = vld [vmem:[#allocation48_spill] sm:$0xff] }
 0x3d5   : > { %v3069_v9 = vsel %vm3067_vm0, %v14191_v41, %v3068_v12  ;;  %v3072_v51 = vsel %vm3070_vm11, %v3071_v20, %v11948_v44  ;;  %v3266_v58 = vsel %vm14199_vm1, %v3265_v25, %v14197_v61  ;;  %v12575_v33 = vsub.s32 %v4279_v42, %v4282_v39  ;;  %v14209_v61 = vld [vmem:[#allocation81_spill] sm:$0xff] }
 0x3d6   : > { %v3169_v37 = vand.u32 3, %v3168_v49  ;;  %v2970_v43 = vsel %vm2959_vm13, nan, %v2969_v23  ;;  %v3073_v11 = vsel %vm3066_vm10, %v3069_v9, %v3072_v51  ;;  %v3268_v3 = vsel %vm12012_vm8, 0, %v3266_v58 }
 0x3d7   : > { %v3074_v26 = vsel %vm3063_vm15, nan, %v3073_v11  ;;  %v4285_v44 = vsub.s32 0, %v12575_v33  ;;  %vm3167_vm1 = vweird.f32 %v14192_v31  ;;  %v3272_v16 = vadd.s32 3, %v3268_v3  ;;  %v14211_v3 = vld [vmem:[#allocation57_spill] sm:$0xff] }
 0x3d8   : > { %vm3170_vm2 = vcmp.lt.s32.totalorder %v3169_v37, 2  ;;  %vm3171_vm0 = vcmp.eq.s32.totalorder %v3169_v37, 0  ;;  %vm3174_vm11 = vcmp.eq.s32.totalorder %v3169_v37, 2  ;;  %v4332_v12 = vpack.c.bf16 %v3074_v26, %v2970_v43 }
 0x3d9   : > { %v3173_v40 = vsel %vm3171_vm0, %v14196_v6, %v3172_v50  ;;  %v3176_v42 = vsel %vm3174_vm11, %v3175_v2, %v14195_v59  ;;  %v3369_v53 = vsub.s32 4, %v14201_v30  ;;  %v7672_v41 = vmin.u32 %v4285_v44, %v12575_v33  ;;  %v14206_v59 = vld [vmem:[#allocation78_spill] sm:$0xff] }
 0x3da   : > { %v3177_v13 = vsel %vm3170_vm2, %v3173_v40, %v3176_v42  ;;  %vm14202_vm8 = vcmask 261120   ;;  %vm3271_vm13 = vweird.f32 %v14198_v63  ;;  %v3276_v32 = vxor.u32 2147483648, %v12228_v21  ;;  %v14208_v6 = vld [vmem:[#allocation82_spill] sm:$0xff] }
 0x3db   : > { %8132 = vmatmul.mubr.msk.bf16.gmra.mrb[16].mxu0 %vm14202_vm8, %v4332_v12  ;;  %v3279_v20 = vxor.u32 2147483648, %v12224_v18  ;;  %v3178_v19 = vsel %vm3167_vm1, nan, %v3177_v13  ;;  %v3273_v23 = vand.u32 3, %v3272_v16  ;;  %vm14204_vm15 = vcmp.lt.s32.totalorder %v14203_v1, 0  ;;  %v14212_v40 = vld [vmem:[#allocation42_spill] sm:$0xff]  ;;  %v14213_v13 = vld [vmem:[#allocation25_spill] sm:$0xff] }
 0x3dc   : > { %v3370_v31 = vsel %vm14204_vm15, %v3369_v53, %v14201_v30  ;;  %v3473_v47 = vsub.s32 4, %v14205_v7  ;;  %v4287_v49 = vclz %v7672_v41  ;;  %vm14207_vm10 = vnez %v14206_v59 }
 0x3dd   : > { %v3372_v50 = vsel %vm14207_vm10, 0, %v3370_v31  ;;  %v3380_v2 = vxor.u32 2147483648, %v14208_v6  ;;  %v3383_v25 = vxor.u32 2147483648, %v14209_v61  ;;  %vm3274_vm2 = vcmp.lt.s32.totalorder %v3273_v23, 2 }
 0x3de   : > { %vm3275_vm0 = vcmp.eq.s32.totalorder %v3273_v23, 0  ;;  %vm3278_vm11 = vcmp.eq.s32.totalorder %v3273_v23, 2  ;;  %v3376_v39 = vadd.s32 3, %v3372_v50  ;;  %v7673_v9 = vadd.s32 4294967294, %v4287_v49  ;;  %v12619_v23 = vpop.f32.mrb[4].mxu0 }
 0x3df   : > { %v3277_v51 = vsel %vm3275_vm0, %v12224_v18, %v3276_v32  ;;  %v3280_v37 = vsel %vm3278_vm11, %v3279_v20, %v12228_v21  ;;  %vm14210_vm1 = vcmp.lt.s32.totalorder %v11662_v5, 0  ;;  %v3484_v26 = vxor.u32 2147483648, %v14211_v3  ;;  %v14215_v32 = vld [vmem:[#allocation40_spill] sm:$0xff]  ;;  %v12625_v59 = vpop.f32.mrb[5].mxu0 }
 0x3e0   : > { %v3474_v58 = vsel %vm14210_vm1, %v3473_v47, %v14205_v7  ;;  %v3281_v43 = vsel %vm3274_vm2, %v3277_v51, %v3280_v37  ;;  %v3377_v11 = vand.u32 3, %v3376_v39  ;;  %vm7674_vm8 = vcmp.lt.s32.totalorder %v7673_v9, 0  ;;  %v12629_v50 = vpop.f32.mrb[6].mxu0  ;;  %v14227_v47 = vld [vmem:[#allocation64_spill] sm:$0xff] }
 0x3e1   : > { %v3476_v52 = vsel %vm12122_vm4, 0, %v3474_v58  ;;  %v3282_v44 = vsel %vm3271_vm13, nan, %v3281_v43  ;;  %v3577_v18 = vsub.s32 4, %v14212_v40  ;;  %v4290_v42 = vsel %vm7674_vm8, 0, %v7673_v9  ;;  %v12632_v39 = vpop.f32.mrb[7].mxu0 }
 0x3e2   : > { %v3480_v12 = vadd.s32 3, %v3476_v52  ;;  %v4333_v21 = vpack.c.bf16 %v3282_v44, %v3178_v19  ;;  %vm3379_vm15 = vcmp.eq.s32.totalorder %v3377_v11, 0  ;;  %v3487_v16 = vxor.u32 2147483648, %v14213_v13  ;;  %v14221_v52 = vld [vmem:[#allocation36_spill] sm:$0xff] }
 0x3e3   : > { %v4291_v30 = vsub.s32 32, %v4290_v42  ;;  %v4295_v53 = vsub.s32 4294967266, %v4290_v42  ;;  %vm3378_vm10 = vcmp.lt.s32.totalorder %v3377_v11, 2  ;;  %v3381_v17 = vsel %vm3379_vm15, %v14209_v61, %v3380_v2 }
 0x3e4   : > { %v4292_v41 = vshll.u32 %v12575_v33, %v4290_v42  ;;  %vm14214_vm4 = vcmask 261120   ;;  %vm3382_vm2 = vcmp.eq.s32.totalorder %v3377_v11, 2  ;;  %v3481_v63 = vand.u32 3, %v3480_v12 }
 0x3e5   : > { %8135 = vmatprep.mubr.msk.bf16.mxu0 %vm14214_vm4, %v4333_v21  ;;  %vm14216_vm13 = vcmp.lt.s32.totalorder %v14215_v32, 0  ;;  %v4293_v19 = vshrl.u32 %v12544_v48, %v4291_v30  ;;  %v4296_v31 = vadd.s32 127, %v4295_v53  ;;  %v3384_v7 = vsel %vm3382_vm2, %v3383_v25, %v14208_v6  ;;  %v14222_v21 = vld [vmem:[#allocation39_spill] sm:$0xff] }
 0x3e6   : > { %v3578_v20 = vsel %vm14216_vm13, %v3577_v18, %v14212_v40  ;;  %vm3375_vm0 = vweird.f32 %v14203_v1  ;;  %v3385_v33 = vsel %vm3378_vm10, %v3381_v17, %v3384_v7  ;;  %vm3479_vm11 = vweird.f32 %v11662_v5 }
 0x3e7   : > { %v3580_v49 = vsel %vm12136_vm14, 0, %v3578_v20  ;;  %vm3483_vm1 = vcmp.eq.s32.totalorder %v3481_v63, 0  ;;  %v4294_v2 = vor.u32 %v4293_v19, %v4292_v41  ;;  %v4297_v61 = vshll.u32 %v4296_v31, 23 }
 0x3e8   : > { %v3485_v48 = vsel %vm3483_vm1, %v14213_v13, %v3484_v26  ;;  %vm3486_vm8 = vcmp.eq.s32.totalorder %v3481_v63, 2  ;;  %vm4221_vm15 = vcmp.lt.s32.totalorder %v12394_v62, 0  ;;  %vm3482_vm14 = vcmp.lt.s32.totalorder %v3481_v63, 2 }
 0x3e9   : > { %v3488_v6 = vsel %vm3486_vm8, %v3487_v16, %v14211_v3  ;;  %v3584_v25 = vadd.s32 3, %v3580_v49  ;;  %v3588_v9 = vxor.u32 2147483648, %v12264_v29  ;;  %v14218_v51 = vand.u32 2147483647, %v12394_v62 }
 0x3ea   : > { %v4298_v58 = vor.u32 4788187, %v4297_v61  ;;  %v3489_v43 = vsel %vm3482_vm14, %v3485_v48, %v3488_v6  ;;  %v3591_v11 = vxor.u32 2147483648, %v12261_v4  ;;  %v3681_v26 = vsub.s32 4, %v14221_v52 }
 0x3eb   : > { %vm12639_vm10 = vcmp.le.f32.partialorder %v14218_v51, 0.7853982  ;;  %8885 = vcosq.f32 %v12552_v55  ;;  %v3386_v3 = vsel %vm3375_vm0, nan, %v3385_v33  ;;  %v3490_v44 = vsel %vm3479_vm11, nan, %v3489_v43  ;;  %v14230_v33 = vld [vmem:[#allocation49_spill] sm:$0xff] }
 0x3ec   : > { %v3585_v12 = vand.u32 3, %v3584_v25  ;;  %v4299_v40 = vand.u32 2147483647, %v4298_v58  ;;  %v4301_v18 = vcvt.s32.f32 %v4294_v2  ;;  %v4334_v42 = vpack.c.bf16 %v3490_v44, %v3386_v3 }
 0x3ed   : > { %vm14223_vm4 = vcmp.lt.s32.totalorder %v14222_v21, 0  ;;  %8887 = vsinq.f32 %v12552_v55  ;;  %vm14225_vm0 = vcmask 261120   ;;  %vm3583_vm11 = vweird.f32 %v14215_v32  ;;  %v14226_v55 = vld [vmem:[#allocation72_spill] sm:$0xff] }
 0x3ee   : > { %v3682_v13 = vsel %vm14223_vm4, %v3681_v26, %v14221_v52  ;;  %vm3587_vm2 = vcmp.eq.s32.totalorder %v3585_v12, 0  ;;  %vm3590_vm13 = vcmp.eq.s32.totalorder %v3585_v12, 2  ;;  %v4302_v1 = vmul.f32 %v4301_v18, %v4299_v40  ;;  %8136 = vmatmul.mubr.msk.bf16.gmra.mrb[20].mxu0 %vm14225_vm0, %v4334_v42 }
 0x3ef   : > { %v3684_v30 = vsel %vm12205_vm3, 0, %v3682_v13  ;;  %v3589_v5 = vsel %vm3587_vm2, %v12261_v4, %v3588_v9  ;;  %v3592_v53 = vsel %vm3590_vm13, %v3591_v11, %v12264_v29  ;;  %v3692_v41 = vxor.u32 2147483648, %v12431_v0  ;;  %v14229_v29 = vld [vmem:[#allocation23_spill] sm:$0xff] }
 0x3f0   : > { %v3688_v17 = vadd.s32 3, %v3684_v30  ;;  %v3695_v63 = vxor.u32 2147483648, %v12266_v38  ;;  %v3785_v20 = vsub.s32 4, %v14226_v55  ;;  %v4303_v19 = vxor.u32 2147483648, %v4302_v1 }
 0x3f1   : > { %vm3586_vm1 = vcmp.lt.s32.totalorder %v3585_v12, 2  ;;  %vm3687_vm3 = vweird.f32 %v14222_v21  ;;  %vm14228_vm8 = vcmp.lt.s32.totalorder %v14227_v47, 0  ;;  %v3796_v49 = vxor.u32 2147483648, %v14229_v29 }
 0x3f2   : > { %v3689_v31 = vand.u32 3, %v3688_v17  ;;  %v3593_v7 = vsel %vm3586_vm1, %v3589_v5, %v3592_v53  ;;  %v3786_v4 = vsel %vm14228_vm8, %v3785_v20, %v14226_v55  ;;  %v3889_v2 = vsub.s32 4, %v14230_v33 }
 0x3f3   : > { %v4304_v61 = vsel %vm4221_vm15, %v4303_v19, %v4302_v1  ;;  %v3788_v51 = vsel %vm11400_vm12, 0, %v3786_v4  ;;  %v3594_v58 = vsel %vm3583_vm11, nan, %v3593_v7  ;;  %vm3791_vm13 = vweird.f32 %v14227_v47  ;;  %v14238_v47 = vld [vmem:[#allocation71_spill] sm:$0xff] }
 0x3f4   : > { %vm3690_vm14 = vcmp.lt.s32.totalorder %v3689_v31, 2  ;;  %vm3691_vm4 = vcmp.eq.s32.totalorder %v3689_v31, 0  ;;  %vm3694_vm2 = vcmp.eq.s32.totalorder %v3689_v31, 2  ;;  %v4307_v48 = vsel %vm12639_vm10, %v12394_v62, %v4304_v61 }
 0x3f5   : > { %v3693_v6 = vsel %vm3691_vm4, %v12266_v38, %v3692_v41  ;;  %v3696_v25 = vsel %vm3694_vm2, %v3695_v63, %v12431_v0  ;;  %v3792_v11 = vadd.s32 3, %v3788_v51  ;;  %vm14232_vm0 = vcmp.lt.s32.totalorder %v12008_v35, 0  ;;  %v12684_v26 = vpop.eup %8885  ;;  %v14233_v0 = vld [vmem:[#allocation30_spill] sm:$0xff] }
 0x3f6   : > { %v3697_v43 = vsel %vm3690_vm14, %v3693_v6, %v3696_v25  ;;  %v3890_v52 = vsel %vm14232_vm0, %v3889_v2, %v14230_v33  ;;  %8889 = vcosq.f32 %v4307_v48  ;;  %v3799_v3 = vxor.u32 2147483648, %v14233_v0  ;;  %v14240_v6 = vld [vmem:[#allocation35_spill] sm:$0xff] }
 0x3f7   : > { %v3698_v38 = vsel %vm3687_vm3, nan, %v3697_v43  ;;  %v3892_v32 = vsel %vm12368_vm7, 0, %v3890_v52  ;;  %v3793_v12 = vand.u32 3, %v3792_v11  ;;  %v3993_v18 = vsub.s32 4, %v12333_v34  ;;  %v8888_v42 = vpop.eup %8887  ;;  %v14241_v52 = vld [vmem:[#allocation6_spill] sm:$0xff] }
 0x3f8   : > { %v4335_v44 = vpack.c.bf16 %v3698_v38, %v3594_v58  ;;  %v3896_v40 = vadd.s32 3, %v3892_v32  ;;  %8891 = vsinq.f32 %v4307_v48  ;;  %v3900_v13 = vxor.u32 2147483648, %v12470_v8 }
 0x3f9   : > { %v3903_v16 = vxor.u32 2147483648, %v12464_v14  ;;  %v4097_v30 = vsub.s32 4, %v12413_v24  ;;  %vm14234_vm12 = vcmask 261120   ;;  %vm3794_vm11 = vcmp.lt.s32.totalorder %v3793_v12, 2 }
 0x3fa   : > { %8139 = vmatprep.mubr.msk.bf16.mxu0 %vm14234_vm12, %v4335_v44  ;;  %vm3795_vm1 = vcmp.eq.s32.totalorder %v3793_v12, 0  ;;  %vm3798_vm3 = vcmp.eq.s32.totalorder %v3793_v12, 2  ;;  %v3897_v28 = vand.u32 3, %v3896_v40  ;;  %vm14235_vm7 = vcmp.lt.s32.totalorder %v12170_v57, 0  ;;  %v14243_v44 = vld [vmem:[#allocation17_spill] sm:$0xff] }
 0x3fb   : > { %v3797_v21 = vsel %vm3795_vm1, %v14233_v0, %v3796_v49  ;;  %v3800_v1 = vsel %vm3798_vm3, %v3799_v3, %v14229_v29  ;;  %v3994_v5 = vsel %vm14235_vm7, %v3993_v18, %v12333_v34  ;;  %v4098_v53 = vsel %vm4013_vm9, %v4097_v30, %v12413_v24  ;;  %v14236_v29 = vld [vmem:[#allocation8_spill] sm:$0xff]  ;;  %vm14237_vm9 = vmmov %vm14234_vm12 }
 0x3fc   : > { %v3801_v17 = vsel %vm3794_vm11, %v3797_v21, %v3800_v1  ;;  %vm3895_vm8 = vweird.f32 %v12008_v35  ;;  %vm3899_vm14 = vcmp.eq.s32.totalorder %v3897_v28, 0  ;;  %vm3902_vm4 = vcmp.eq.s32.totalorder %v3897_v28, 2 }
 0x3fd   : > { %vm3898_vm2 = vcmp.lt.s32.totalorder %v3897_v28, 2  ;;  %v3901_v41 = vsel %vm3899_vm14, %v12464_v14, %v3900_v13  ;;  %v3904_v63 = vsel %vm3902_vm4, %v3903_v16, %v12470_v8  ;;  %v3996_v55 = vsel %vm12440_vm6, 0, %v3994_v5 }
 0x3fe   : > { %vm3999_vm0 = vweird.f32 %v12170_v57  ;;  %v3905_v34 = vsel %vm3898_vm2, %v3901_v41, %v3904_v63  ;;  %v4000_v20 = vadd.s32 3, %v3996_v55  ;;  %v4004_v19 = vxor.u32 2147483648, %v12568_v15 }
 0x3ff   : > { %v4100_v24 = vsel %vm12522_vm5, 0, %v4098_v53  ;;  %v3802_v35 = vsel %vm3791_vm13, nan, %v3801_v17  ;;  %v3906_v31 = vsel %vm3895_vm8, nan, %v3905_v34  ;;  %v4007_v14 = vxor.u32 2147483648, %v12562_v60 }
 0x400   : > { %v4104_v7 = vadd.s32 3, %v4100_v24  ;;  %v4336_v8 = vpack.c.bf16 %v3906_v31, %v3802_v35  ;;  %v4001_v4 = vand.u32 3, %v4000_v20  ;;  %v4108_v45 = vxor.u32 2147483648, %v8888_v42  ;;  %v8890_v33 = vpop.eup %8889 }
 0x401   : > { %v4201_v49 = vsub.s32 4, %v14236_v29  ;;  %vm4103_vm6 = vweird.f32 %v12173_v54  ;;  %v4111_v61 = vxor.u32 2147483648, %v12684_v26  ;;  %v4305_v10 = vsub.s32 4, %v12558_v56 }
 0x402   : > { %v4105_v2 = vand.u32 3, %v4104_v7  ;;  %8140 = vmatmul.mubr.msk.bf16.gmra.mrb[24].mxu0 %vm14237_vm9, %v4336_v8  ;;  %vm4003_vm5 = vcmp.eq.s32.totalorder %v4001_v4, 0  ;;  %vm4006_vm13 = vcmp.eq.s32.totalorder %v4001_v4, 2  ;;  %vm14239_vm12 = vcmp.lt.s32.totalorder %v14238_v47, 0  ;;  %v8892_v9 = vpop.eup %8891 }
 0x403   : > { %v4202_v48 = vsel %vm14239_vm12, %v4201_v49, %v14236_v29  ;;  %v4212_v25 = vxor.u32 2147483648, %v14240_v6  ;;  %vm4002_vm11 = vcmp.lt.s32.totalorder %v4001_v4, 2  ;;  %v4005_v51 = vsel %vm4003_vm5, %v12562_v60, %v4004_v19  ;;  %v12736_v60 = vld [vmem:[%s13580_s6] ss:$0 sm:$0xff] }
 0x404   : > { %v4008_v58 = vsel %vm4006_vm13, %v4007_v14, %v12568_v15  ;;  %vm4107_vm1 = vcmp.eq.s32.totalorder %v4105_v2, 0  ;;  %vm4110_vm3 = vcmp.eq.s32.totalorder %v4105_v2, 2  ;;  %vm14242_vm7 = vnez %v14241_v52 }
 0x405   : > { %v4009_v43 = vsel %vm4002_vm11, %v4005_v51, %v4008_v58  ;;  %v4109_v11 = vsel %vm4107_vm1, %v12684_v26, %v4108_v45  ;;  %v4204_v38 = vsel %vm14242_vm7, 0, %v4202_v48  ;;  %vm4106_vm8 = vcmp.lt.s32.totalorder %v4105_v2, 2 }
 0x406   : > { %v4112_v0 = vsel %vm4110_vm3, %v4111_v61, %v8888_v42  ;;  %v4208_v3 = vadd.s32 3, %v4204_v38  ;;  %v4306_v32 = vsel %vm4221_vm15, %v4305_v10, %v12558_v56  ;;  %v4010_v15 = vsel %vm3999_vm0, nan, %v4009_v43 }
 0x407   : > { %v4113_v26 = vsel %vm4106_vm8, %v4109_v11, %v4112_v0  ;;  %v4215_v12 = vxor.u32 2147483648, %v14243_v44  ;;  %v4308_v40 = vsel %vm12639_vm10, 0, %v4306_v32  ;;  %v4316_v56 = vxor.u32 2147483648, %v8892_v9  ;;  %vm14244_vm10 = vmmov %vm14237_vm9 }
 0x408   : > { %v4114_v18 = vsel %vm4103_vm6, nan, %v4113_v26  ;;  %v4209_v42 = vand.u32 3, %v4208_v3  ;;  %v4312_v13 = vadd.s32 3, %v4308_v40  ;;  %v4319_v30 = vxor.u32 2147483648, %v8890_v33  ;;  %vm14245_vm13 = vmmov %vm14244_vm10 }
 0x409   : > { %v4337_v16 = vpack.c.bf16 %v4114_v18, %v4010_v15  ;;  %v4911_v28 = vadd.f32 %v12383_v46, %v12736_v60  ;;  %v4909_v57 = vadd.f32 %v12736_v60, %v12391_v27  ;;  %v4912_v37 = vadd.f32 %v12398_v22, %v12736_v60 }
 0x40a   : > { %vm4211_vm15 = vcmp.eq.s32.totalorder %v4209_v42, 0  ;;  %vm4214_vm14 = vcmp.eq.s32.totalorder %v4209_v42, 2  ;;  %v4313_v21 = vand.u32 3, %v4312_v13  ;;  %vm4207_vm4 = vweird.f32 %v14238_v47 }
 0x40b   : > { %8143 = vmatprep.mubr.msk.bf16.mxu0 %vm14244_vm10, %v4337_v16  ;;  %vm4210_vm2 = vcmp.lt.s32.totalorder %v4209_v42, 2  ;;  %v4213_v54 = vsel %vm4211_vm15, %v14243_v44, %v4212_v25  ;;  %v4216_v1 = vsel %vm4214_vm14, %v4215_v12, %v14240_v6  ;;  %v4943_v46 = vmul.f32 0.2, %v4911_v28 }
 0x40c   : > { %v4217_v5 = vsel %vm4210_vm2, %v4213_v54, %v4216_v1  ;;  %vm4315_vm0 = vcmp.eq.s32.totalorder %v4313_v21, 0  ;;  %vm4318_vm6 = vcmp.eq.s32.totalorder %v4313_v21, 2  ;;  %vm4314_vm9 = vcmp.lt.s32.totalorder %v4313_v21, 2  ;;  %v8725_v1 = vld [vmem:[%s9134_s28 + $0x40] sm:$0xff]  }
 0x40d   : > { %v4317_v27 = vsel %vm4315_vm0, %v8890_v33, %v4316_v56  ;;  %v4320_v53 = vsel %vm4318_vm6, %v4319_v30, %v8892_v9  ;;  %v4941_v17 = vmul.f32 0.2, %v4909_v57  ;;  %vm4311_vm5 = vweird.f32 %v12394_v62  ;;  %8195 = vmatprep.subr.bf16.mxu1 %v8725_v1 }
 0x40e   : > { %v4321_v22 = vsel %vm4314_vm9, %v4317_v27, %v4320_v53  ;;  %v4944_v41 = vmul.f32 0.2, %v4912_v37  ;;  %v4910_v63 = vadd.f32 %v12736_v60, %v12403_v36  ;;  %v4218_v55 = vsel %vm4207_vm4, nan, %v4217_v5  ;;  %v8726_v5 = vld [vmem:[%s9134_s28 + $0x48] sm:$0xff]   ;;  %v8728_v27 = vld [vmem:[%s9134_s28 + $0x58] sm:$0xff]   ;;  %v8729_v53 = vld [vmem:[%s9134_s28 + $0x60] sm:$0xff]  }
 0x40f   : > { %v4322_v34 = vsel %vm4311_vm5, nan, %v4321_v22  ;;  %v4913_v20 = vadd.f32 %v12736_v60, %v12625_v59  ;;  %v4916_v19 = vadd.f32 %v12629_v50, %v12736_v60  ;;  %v4975_v35 = vmax.f32 %v4911_v28, %v4943_v46  ;;  %v8727_v46 = vld [vmem:[%s9134_s28 + $0x50] sm:$0xff]  }
 0x410   : > { %v4338_v24 = vpack.c.bf16 %v4322_v34, %v4218_v55  ;;  %v4976_v31 = vmax.f32 %v4912_v37, %v4944_v41  ;;  %v4942_v14 = vmul.f32 0.2, %v4910_v63  ;;  %v4915_v62 = vadd.f32 %v12619_v23, %v12736_v60 }
 0x411   : > { %v4945_v7 = vmul.f32 0.2, %v4913_v20  ;;  %v4914_v36 = vadd.f32 %v12736_v60, %v12632_v39  ;;  %v4973_v8 = vmax.f32 %v4909_v57, %v4941_v17  ;;  %v4948_v29 = vmul.f32 0.2, %v4916_v19  ;;  %v8730_v17 = vld [vmem:[%s9134_s28 + $0x68] sm:$0xff]  }
 0x412   : > { %8144 = vmatmul.mubr.msk.bf16.gmra.mrb[28].mxu0 %vm14245_vm13, %v4338_v24  ;;  %v4974_v4 = vmax.f32 %v4910_v63, %v4942_v14  ;;  %v12769_v45 = vmul.f32 1.4142135, %v4976_v31  ;;  %v12775_v2 = vmul.f32 1.4142135, %v4975_v35  ;;  %v4947_v23 = vmul.f32 0.2, %v4915_v62 }
 0x413   : > { %v4977_v59 = vmax.f32 %v4913_v20, %v4945_v7  ;;  %v4946_v50 = vmul.f32 0.2, %v4914_v36  ;;  %v12771_v49 = vmul.f32 1.4142135, %v4973_v8  ;;  %v4980_v47 = vmax.f32 %v4916_v19, %v4948_v29  ;;  %v8731_v35 = vld [vmem:[%s9134_s28 + $0x70] sm:$0xff]  }
 0x414   : > { %v12773_v33 = vmul.f32 1.4142135, %v4974_v4  ;;  %v5038_v6 = vpack.c.bf16 %v12769_v45, %v12775_v2  ;;  %v4979_v25 = vmax.f32 %v4915_v62, %v4947_v23 }
 0x415   : > { %v4978_v61 = vmax.f32 %v4914_v36, %v4946_v50  ;;  %v12779_v10 = vmul.f32 1.4142135, %v4977_v59  ;;  %v12787_v51 = vmul.f32 1.4142135, %v4980_v47  ;;  %v8732_v59 = vld [vmem:[%s9134_s28 + $0x78] sm:$0xff]  }
 0x416   : > { %v5037_v39 = vpack.c.bf16 %v12773_v33, %v12771_v49  ;;  %v12789_v58 = vmul.f32 1.4142135, %v4979_v25 }
 0x417   : > { %v12781_v48 = vmul.f32 1.4142135, %v4978_v61 }
 0x418   : > { %8163 = vmatprep.mubr.bf16.mxu1 %v5037_v39  ;;  %v5040_v43 = vpack.c.bf16 %v12787_v51, %v12789_v58 }
 0x419   : > { %8164 = vmatmul.mubr.bf16.vlgmr.msra.gmra.mrb[0].mxu1 %v5038_v6  ;;  %v5039_v9 = vpack.c.bf16 %v12781_v48, %v12779_v10 }
 0x41a   : > { %8196 = vmatpush3.bf16.msra.mxu1 %v8725_v1 }
 0x41b   : > { %8167 = vmatprep.mubr.bf16.mxu1 %v5039_v9  ;;  %8197 = vmatprep.subr.bf16.mxu1 %v8726_v5 }
 0x41e   : > { %8198 = vmatpush3.bf16.msra.mxu1 %v8726_v5 }
 0x41f   : > { %8199 = vmatprep.subr.bf16.mxu1 %v8727_v46 }
 0x421   : > { %8168 = vmatmul.mubr.bf16.gmra.mrb[4].mxu1 %v5040_v43 }
 0x422   : > { %8200 = vmatpush3.bf16.msra.mxu1 %v8727_v46 }
 0x423   : > { %8201 = vmatprep.subr.bf16.mxu1 %v8728_v27 }
 0x426   : > { %8202 = vmatpush3.bf16.msra.mxu1 %v8728_v27 }
 0x427   : > { %8203 = vmatprep.subr.bf16.mxu1 %v8729_v53 }
 0x42a   : > { %v8125_v11 = vpop.f32.mrb[8].mxu0  ;;  %8204 = vmatpush3.bf16.msra.mxu1 %v8729_v53 }
 0x42b   : > { %v4919_v52 = vadd.f32 %v8125_v11, %v12736_v60  ;;  %v4807_v38 = vpop.f32.mrb[9].mxu0  ;;  %8205 = vmatprep.subr.bf16.mxu1 %v8730_v17 }
 0x42c   : > { %v4917_v0 = vadd.f32 %v12736_v60, %v4807_v38  ;;  %v8126_v3 = vpop.f32.mrb[10].mxu0 }
 0x42d   : > { %v4951_v32 = vmul.f32 0.2, %v4919_v52  ;;  %v4920_v15 = vadd.f32 %v8126_v3, %v12736_v60  ;;  %v4810_v26 = vpop.f32.mrb[11].mxu0 }
 0x42e   : > { %v4949_v44 = vmul.f32 0.2, %v4917_v0  ;;  %v4918_v12 = vadd.f32 %v12736_v60, %v4810_v26  ;;  %8206 = vmatpush3.bf16.msra.mxu1 %v8730_v17 }
 0x42f   : > { %v4952_v40 = vmul.f32 0.2, %v4920_v15  ;;  %v4983_v13 = vmax.f32 %v4919_v52, %v4951_v32  ;;  %8207 = vmatprep.subr.bf16.mxu1 %v8731_v35 }
 0x430   : > { %v4981_v18 = vmax.f32 %v4917_v0, %v4949_v44  ;;  %v4950_v42 = vmul.f32 0.2, %v4918_v12 }
 0x431   : > { %v4984_v56 = vmax.f32 %v4920_v15, %v4952_v40  ;;  %v12803_v21 = vmul.f32 1.4142135, %v4983_v13 }
 0x432   : > { %v4982_v16 = vmax.f32 %v4918_v12, %v4950_v42  ;;  %v12799_v28 = vmul.f32 1.4142135, %v4981_v18  ;;  %8208 = vmatpush3.bf16.msra.mxu1 %v8731_v35 }
 0x433   : > { %v12797_v30 = vmul.f32 1.4142135, %v4984_v56  ;;  %8209 = vmatprep.subr.bf16.mxu1 %v8732_v59 }
 0x434   : > { %v12801_v57 = vmul.f32 1.4142135, %v4982_v16 }
 0x435   : > { %v5042_v54 = vpack.c.bf16 %v12797_v30, %v12803_v21 }
 0x436   : > { %v5041_v37 = vpack.c.bf16 %v12801_v57, %v12799_v28  ;;  %8210 = vmatpush3.bf16.msra.mxu1 %v8732_v59 }
 0x438   : > { %8171 = vmatprep.mubr.bf16.mxu1 %v5041_v37 }
 0x439   : > { %8172 = vmatmul.mubr.bf16.gmra.mrb[8].mxu1 %v5042_v54 }
 0x47d   : > { %v8129_v22 = vpop.f32.mrb[12].mxu0 }
 0x47e   : > { %v4923_v41 = vadd.f32 %v8129_v22, %v12736_v60  ;;  %v4823_v63 = vpop.f32.mrb[13].mxu0 }
 0x47f   : > { %v4921_v55 = vadd.f32 %v12736_v60, %v4823_v63  ;;  %v8130_v34 = vpop.f32.mrb[14].mxu0 }
 0x480   : > { %v4955_v20 = vmul.f32 0.2, %v4923_v41  ;;  %v4924_v19 = vadd.f32 %v8130_v34, %v12736_v60  ;;  %v4826_v24 = vpop.f32.mrb[15].mxu0 }
 0x481   : > { %v4953_v31 = vmul.f32 0.2, %v4921_v55  ;;  %v4922_v14 = vadd.f32 %v12736_v60, %v4826_v24 }
 0x482   : > { %v4956_v62 = vmul.f32 0.2, %v4924_v19  ;;  %v4987_v8 = vmax.f32 %v4923_v41, %v4955_v20 }
 0x483   : > { %v4985_v7 = vmax.f32 %v4921_v55, %v4953_v31  ;;  %v4954_v36 = vmul.f32 0.2, %v4922_v14 }
 0x484   : > { %v4988_v4 = vmax.f32 %v4924_v19, %v4956_v62  ;;  %v12827_v39 = vmul.f32 1.4142135, %v4987_v8 }
 0x485   : > { %v4986_v29 = vmax.f32 %v4922_v14, %v4954_v36  ;;  %v12823_v23 = vmul.f32 1.4142135, %v4985_v7 }
 0x486   : > { %v12821_v50 = vmul.f32 1.4142135, %v4988_v4 }
 0x487   : > { %v12825_v61 = vmul.f32 1.4142135, %v4986_v29 }
 0x488   : > { %v5044_v6 = vpack.c.bf16 %v12821_v50, %v12827_v39 }
 0x489   : > { %v5043_v47 = vpack.c.bf16 %v12825_v61, %v12823_v23 }
 0x48b   : > { %8175 = vmatprep.mubr.bf16.mxu1 %v5043_v47 }
 0x48c   : > { %8176 = vmatmul.mubr.bf16.gmra.mrb[12].mxu1 %v5044_v6 }
 0x4ae   : > { %v8133_v25 = vpop.f32.mrb[16].mxu0 }
 0x4af   : > { %v4927_v9 = vadd.f32 %v8133_v25, %v12736_v60  ;;  %v4839_v43 = vpop.f32.mrb[17].mxu0 }
 0x4b0   : > { %v4925_v11 = vadd.f32 %v12736_v60, %v4839_v43  ;;  %v8134_v52 = vpop.f32.mrb[18].mxu0 }
 0x4b1   : > { %v4959_v38 = vmul.f32 0.2, %v4927_v9  ;;  %v4928_v0 = vadd.f32 %v8134_v52, %v12736_v60  ;;  %v4842_v3 = vpop.f32.mrb[19].mxu0 }
 0x4b2   : > { %v4957_v32 = vmul.f32 0.2, %v4925_v11  ;;  %v4926_v15 = vadd.f32 %v12736_v60, %v4842_v3 }
 0x4b3   : > { %v4960_v26 = vmul.f32 0.2, %v4928_v0  ;;  %v4991_v40 = vmax.f32 %v4927_v9, %v4959_v38 }
 0x4b4   : > { %v4989_v44 = vmax.f32 %v4925_v11, %v4957_v32  ;;  %v4958_v12 = vmul.f32 0.2, %v4926_v15 }
 0x4b5   : > { %v4992_v18 = vmax.f32 %v4928_v0, %v4960_v26  ;;  %v12843_v37 = vmul.f32 1.4142135, %v4991_v40 }
 0x4b6   : > { %v4990_v42 = vmax.f32 %v4926_v15, %v4958_v12  ;;  %v12839_v56 = vmul.f32 1.4142135, %v4989_v44 }
 0x4b7   : > { %v12837_v13 = vmul.f32 1.4142135, %v4992_v18 }
 0x4b8   : > { %v12841_v16 = vmul.f32 1.4142135, %v4990_v42 }
 0x4b9   : > { %v5046_v1 = vpack.c.bf16 %v12837_v13, %v12843_v37 }
 0x4ba   : > { %v5045_v54 = vpack.c.bf16 %v12841_v16, %v12839_v56 }
 0x4bc   : > { %8179 = vmatprep.mubr.bf16.mxu1 %v5045_v54 }
 0x4bd   : > { %8180 = vmatmul.mubr.bf16.gmra.mrb[16].mxu1 %v5046_v1 }
 0x4c1   : > { %v8137_v5 = vpop.f32.mrb[20].mxu0 }
 0x4c2   : > { %v4931_v46 = vadd.f32 %v8137_v5, %v12736_v60  ;;  %v4855_v27 = vpop.f32.mrb[21].mxu0 }
 0x4c3   : > { %v4929_v53 = vadd.f32 %v12736_v60, %v4855_v27  ;;  %v8138_v17 = vpop.f32.mrb[22].mxu0 }
 0x4c4   : > { %v4963_v22 = vmul.f32 0.2, %v4931_v46  ;;  %v4932_v41 = vadd.f32 %v8138_v17, %v12736_v60  ;;  %v4858_v63 = vpop.f32.mrb[23].mxu0 }
 0x4c5   : > { %v4961_v55 = vmul.f32 0.2, %v4929_v53  ;;  %v4930_v34 = vadd.f32 %v12736_v60, %v4858_v63 }
 0x4c6   : > { %v4964_v20 = vmul.f32 0.2, %v4932_v41  ;;  %v4995_v35 = vmax.f32 %v4931_v46, %v4963_v22 }
 0x4c7   : > { %v4993_v19 = vmax.f32 %v4929_v53, %v4961_v55  ;;  %v4962_v24 = vmul.f32 0.2, %v4930_v34 }
 0x4c8   : > { %v4996_v31 = vmax.f32 %v4932_v41, %v4964_v20  ;;  %v12859_v8 = vmul.f32 1.4142135, %v4995_v35 }
 0x4c9   : > { %v4994_v14 = vmax.f32 %v4930_v34, %v4962_v24  ;;  %v12855_v7 = vmul.f32 1.4142135, %v4993_v19  ;;  %v12888_v24 = vld [vmem:[%s13582_s8] ss:$0 sm:$0xff] }
 0x4ca   : > { %v12853_v62 = vmul.f32 1.4142135, %v4996_v31 }
 0x4cb   : > { %v12857_v36 = vmul.f32 1.4142135, %v4994_v14 }
 0x4cc   : > { %v5048_v59 = vpack.c.bf16 %v12853_v62, %v12859_v8 }
 0x4cd   : > { %v5047_v4 = vpack.c.bf16 %v12857_v36, %v12855_v7 }
 0x4cf   : > { %8183 = vmatprep.mubr.bf16.mxu1 %v5047_v4 }
 0x4d0   : > { %8184 = vmatmul.mubr.bf16.gmra.mrb[20].mxu1 %v5048_v59 }
 0x4d5   : > { %v8141_v29 = vpop.f32.mrb[24].mxu0 }
 0x4d6   : > { %v4935_v47 = vadd.f32 %v8141_v29, %v12736_v60  ;;  %v4871_v6 = vpop.f32.mrb[25].mxu0 }
 0x4d7   : > { %v4933_v25 = vadd.f32 %v12736_v60, %v4871_v6  ;;  %v8142_v9 = vpop.f32.mrb[26].mxu0 }
 0x4d8   : > { %v4967_v43 = vmul.f32 0.2, %v4935_v47  ;;  %v4936_v11 = vadd.f32 %v8142_v9, %v12736_v60  ;;  %v4874_v52 = vpop.f32.mrb[27].mxu0 }
 0x4d9   : > { %v4965_v38 = vmul.f32 0.2, %v4933_v25  ;;  %v4934_v0 = vadd.f32 %v12736_v60, %v4874_v52 }
 0x4da   : > { %v4968_v3 = vmul.f32 0.2, %v4936_v11  ;;  %v4999_v26 = vmax.f32 %v4935_v47, %v4967_v43 }
 0x4db   : > { %v4997_v32 = vmax.f32 %v4933_v25, %v4965_v38  ;;  %v4966_v15 = vmul.f32 0.2, %v4934_v0 }
 0x4dc   : > { %v5000_v44 = vmax.f32 %v4936_v11, %v4968_v3  ;;  %v12875_v54 = vmul.f32 1.4142135, %v4999_v26 }
 0x4dd   : > { %v4998_v12 = vmax.f32 %v4934_v0, %v4966_v15  ;;  %v12871_v18 = vmul.f32 1.4142135, %v4997_v32 }
 0x4de   : > { %v12869_v40 = vmul.f32 1.4142135, %v5000_v44 }
 0x4df   : > { %v12873_v42 = vmul.f32 1.4142135, %v4998_v12 }
 0x4e0   : > { %v5050_v5 = vpack.c.bf16 %v12869_v40, %v12875_v54 }
 0x4e1   : > { %v5049_v1 = vpack.c.bf16 %v12873_v42, %v12871_v18 }
 0x4e3   : > { %8187 = vmatprep.mubr.bf16.mxu1 %v5049_v1 }
 0x4e4   : > { %8188 = vmatmul.mubr.bf16.gmra.mrb[24].mxu1 %v5050_v5 }
 0x4e5   : > { %v8145_v46 = vpop.f32.mrb[28].mxu0 }
 0x4e6   : > { %v4939_v27 = vadd.f32 %v8145_v46, %v12736_v60  ;;  %v4887_v53 = vpop.f32.mrb[29].mxu0 }
 0x4e7   : > { %v4937_v17 = vadd.f32 %v12736_v60, %v4887_v53  ;;  %v8146_v22 = vpop.f32.mrb[30].mxu0 }
 0x4e8   : > { %v4971_v41 = vmul.f32 0.2, %v4939_v27  ;;  %v4940_v63 = vadd.f32 %v8146_v22, %v12736_v60  ;;  %v4890_v55 = vpop.f32.mrb[31].mxu0 }
 0x4e9   : > { %v4969_v34 = vmul.f32 0.2, %v4937_v17  ;;  %v4938_v20 = vadd.f32 %v12736_v60, %v4890_v55 }
 0x4ea   : > { %v4972_v19 = vmul.f32 0.2, %v4940_v63  ;;  %v5003_v14 = vmax.f32 %v4939_v27, %v4971_v41 }
 0x4eb   : > { %v5001_v35 = vmax.f32 %v4937_v17, %v4969_v34  ;;  %v4970_v31 = vmul.f32 0.2, %v4938_v20 }
 0x4ec   : > { %v5004_v4 = vmax.f32 %v4940_v63, %v4972_v19  ;;  %v8165_v59 = vpop.f32.mrb[0].mxu1  ;;  %v12899_v3 = vmul.f32 1.4142135, %v5003_v14 }
 0x4ed   : > { %v5002_v29 = vmax.f32 %v4938_v20, %v4970_v31  ;;  %v5167_v47 = vadd.f32 %v8165_v59, %v12888_v24  ;;  %v5158_v6 = vpop.f32.mrb[1].mxu1  ;;  %v12891_v25 = vmul.f32 1.4142135, %v5001_v35 }
 0x4ee   : > { %v12893_v9 = vmul.f32 1.4142135, %v5004_v4  ;;  %v5159_v60 = vadd.f32 %v12888_v24, %v5158_v6  ;;  %v8166_v43 = vpop.f32.mrb[2].mxu1 }
 0x4ef   : > { %v12896_v11 = vmul.f32 1.4142135, %v5002_v29  ;;  %v5287_v52 = vmul.f32 0.2, %v5167_v47  ;;  %v5170_v38 = vadd.f32 %v8166_v43, %v12888_v24  ;;  %v5161_v0 = vpop.f32.mrb[3].mxu1 }
 0x4f0   : > { %v5285_v32 = vmul.f32 0.2, %v5159_v60  ;;  %v5162_v15 = vadd.f32 %v12888_v24, %v5161_v0  ;;  %v5052_v1 = vpack.c.bf16 %v12893_v9, %v12899_v3 }
 0x4f1   : > { %v5051_v26 = vpack.c.bf16 %v12896_v11, %v12891_v25  ;;  %v5319_v44 = vmax.f32 %v5167_v47, %v5287_v52  ;;  %v5288_v12 = vmul.f32 0.2, %v5170_v38 }
 0x4f2   : > { %v5317_v5 = vmax.f32 %v5159_v60, %v5285_v32  ;;  %v5286_v46 = vmul.f32 0.2, %v5162_v15 }
 0x4f3   : > { %8191 = vmatprep.mubr.bf16.mxu1 %v5051_v26  ;;  %v5320_v27 = vmax.f32 %v5170_v38, %v5288_v12  ;;  %v5351_v22 = vmul.f32 1.4142135, %v5319_v44 }
 0x4f4   : > { %8192 = vmatmul.mubr.bf16.gmra.mrb[28].mxu1 %v5052_v1  ;;  %v5318_v53 = vmax.f32 %v5162_v15, %v5286_v46  ;;  %v8169_v17 = vpop.f32.mrb[4].mxu1  ;;  %v5349_v34 = vmul.f32 1.4142135, %v5317_v5 }
 0x4f5   : > { %v5352_v41 = vmul.f32 1.4142135, %v5320_v27  ;;  %v5183_v63 = vadd.f32 %v8169_v17, %v12888_v24  ;;  %v5174_v55 = vpop.f32.mrb[5].mxu1 }
 0x4f6   : > { %v5350_v20 = vmul.f32 1.4142135, %v5318_v53  ;;  %v5175_v19 = vadd.f32 %v12888_v24, %v5174_v55  ;;  %v8170_v35 = vpop.f32.mrb[6].mxu1 }
 0x4f7   : > { %v5382_v31 = vpack.c.bf16 %v5352_v41, %v5351_v22  ;;  %v5291_v14 = vmul.f32 0.2, %v5183_v63  ;;  %v5186_v4 = vadd.f32 %v8170_v35, %v12888_v24  ;;  %v5177_v59 = vpop.f32.mrb[7].mxu1 }
 0x4f8   : > { %v5289_v29 = vmul.f32 0.2, %v5175_v19  ;;  %v5178_v47 = vadd.f32 %v12888_v24, %v5177_v59  ;;  %v5381_v6 = vpack.c.bf16 %v5350_v20, %v5349_v34 }
 0x4f9   : > { %v5323_v60 = vmax.f32 %v5183_v63, %v5291_v14  ;;  %v5292_v43 = vmul.f32 0.2, %v5186_v4 }
 0x4fa   : > { %v5321_v52 = vmax.f32 %v5175_v19, %v5289_v29  ;;  %v5290_v38 = vmul.f32 0.2, %v5178_v47  ;;  %8211 = vmatprep.mubr.bf16.mxu1 %v5381_v6 }
 0x4fb   : > { %v5324_v0 = vmax.f32 %v5186_v4, %v5292_v43  ;;  %v5355_v15 = vmul.f32 1.4142135, %v5323_v60 }
 0x4fc   : > { %v5322_v32 = vmax.f32 %v5178_v47, %v5290_v38  ;;  %8212 = vmatmul.mubr.bf16.vlgmr.msra.gmra.mrb[32].mxu1 %v5382_v31  ;;  %v5353_v44 = vmul.f32 1.4142135, %v5321_v52  ;;  %v8733_v38 = vld [vmem:[%s9134_s28 + $0x80] sm:$0xff]  }
 0x4fd   : > { %v5356_v26 = vmul.f32 1.4142135, %v5324_v0  ;;  %v8734_v0 = vld [vmem:[%s9134_s28 + $0x88] sm:$0xff]   ;;  %8243 = vmatprep.subr.bf16.mxu0 %v8733_v38 }
 0x4fe   : > { %v5354_v12 = vmul.f32 1.4142135, %v5322_v32  ;;  %8244 = vmatpush3.bf16.msra.mxu0 %v8733_v38  ;;  %v8735_v32 = vld [vmem:[%s9134_s28 + $0x90] sm:$0xff]  }
 0x4ff   : > { %v5384_v1 = vpack.c.bf16 %v5356_v26, %v5355_v15  ;;  %8245 = vmatprep.subr.bf16.mxu0 %v8734_v0  ;;  %v8736_v15 = vld [vmem:[%s9134_s28 + $0x98] sm:$0xff]   ;;  %v8737_v26 = vld [vmem:[%s9134_s28 + $0xa0] sm:$0xff]  }
 0x500   : > { %v5383_v5 = vpack.c.bf16 %v5354_v12, %v5353_v44  ;;  %v8738_v44 = vld [vmem:[%s9134_s28 + $0xa8] sm:$0xff]  }
 0x502   : > { %8215 = vmatprep.mubr.bf16.mxu1 %v5383_v5  ;;  %8246 = vmatpush3.bf16.msra.mxu0 %v8734_v0 }
 0x503   : > { %8247 = vmatprep.subr.bf16.mxu0 %v8735_v32 }
 0x504   : > { %8216 = vmatmul.mubr.bf16.gmra.mrb[36].mxu1 %v5384_v1 }
 0x506   : > { %8248 = vmatpush3.bf16.msra.mxu0 %v8735_v32 }
 0x507   : > { %8249 = vmatprep.subr.bf16.mxu0 %v8736_v15 }
 0x50a   : > { %8250 = vmatpush3.bf16.msra.mxu0 %v8736_v15 }
 0x50b   : > { %8251 = vmatprep.subr.bf16.mxu0 %v8737_v26 }
 0x50c   : > { %v8173_v46 = vpop.f32.mrb[8].mxu1 }
 0x50d   : > { %v5199_v27 = vadd.f32 %v8173_v46, %v12888_v24  ;;  %v5190_v53 = vpop.f32.mrb[9].mxu1 }
 0x50e   : > { %v5191_v17 = vadd.f32 %v12888_v24, %v5190_v53  ;;  %v8174_v22 = vpop.f32.mrb[10].mxu1  ;;  %8252 = vmatpush3.bf16.msra.mxu0 %v8737_v26 }
 0x50f   : > { %v5295_v41 = vmul.f32 0.2, %v5199_v27  ;;  %v5202_v63 = vadd.f32 %v8174_v22, %v12888_v24  ;;  %v5193_v55 = vpop.f32.mrb[11].mxu1  ;;  %8253 = vmatprep.subr.bf16.mxu0 %v8738_v44 }
 0x510   : > { %v5293_v34 = vmul.f32 0.2, %v5191_v17  ;;  %v5194_v20 = vadd.f32 %v12888_v24, %v5193_v55 }
 0x511   : > { %v5327_v19 = vmax.f32 %v5199_v27, %v5295_v41  ;;  %v5296_v35 = vmul.f32 0.2, %v5202_v63  ;;  %v8739_v41 = vld [vmem:[%s9134_s28 + $0xb0] sm:$0xff]  }
 0x512   : > { %v5325_v31 = vmax.f32 %v5191_v17, %v5293_v34  ;;  %v5294_v14 = vmul.f32 0.2, %v5194_v20  ;;  %8254 = vmatpush3.bf16.msra.mxu0 %v8738_v44 }
 0x513   : > { %v5328_v4 = vmax.f32 %v5202_v63, %v5296_v35  ;;  %v5359_v29 = vmul.f32 1.4142135, %v5327_v19  ;;  %8255 = vmatprep.subr.bf16.mxu0 %v8739_v41 }
 0x514   : > { %v5326_v59 = vmax.f32 %v5194_v20, %v5294_v14  ;;  %v5357_v6 = vmul.f32 1.4142135, %v5325_v31  ;;  %v8740_v14 = vld [vmem:[%s9134_s28 + $0xb8] sm:$0xff]  }
 0x515   : > { %v5360_v47 = vmul.f32 1.4142135, %v5328_v4 }
 0x516   : > { %v5358_v60 = vmul.f32 1.4142135, %v5326_v59  ;;  %8256 = vmatpush3.bf16.msra.mxu0 %v8739_v41 }
 0x517   : > { %v5386_v43 = vpack.c.bf16 %v5360_v47, %v5359_v29  ;;  %8257 = vmatprep.subr.bf16.mxu0 %v8740_v14 }
 0x518   : > { %v5385_v52 = vpack.c.bf16 %v5358_v60, %v5357_v6 }
 0x51a   : > { %8219 = vmatprep.mubr.bf16.mxu1 %v5385_v52  ;;  %8258 = vmatpush3.bf16.msra.mxu0 %v8740_v14 }
 0x51b   : > { %8220 = vmatmul.mubr.bf16.gmra.mrb[40].mxu1 %v5386_v43 }
 0x55f   : > { %v8177_v12 = vpop.f32.mrb[12].mxu1 }
 0x560   : > { %v5215_v1 = vadd.f32 %v8177_v12, %v12888_v24  ;;  %v5206_v5 = vpop.f32.mrb[13].mxu1 }
 0x561   : > { %v5207_v46 = vadd.f32 %v12888_v24, %v5206_v5  ;;  %v8178_v27 = vpop.f32.mrb[14].mxu1 }
 0x562   : > { %v5299_v53 = vmul.f32 0.2, %v5215_v1  ;;  %v5218_v17 = vadd.f32 %v8178_v27, %v12888_v24  ;;  %v5209_v22 = vpop.f32.mrb[15].mxu1 }
 0x563   : > { %v5297_v63 = vmul.f32 0.2, %v5207_v46  ;;  %v5210_v55 = vadd.f32 %v12888_v24, %v5209_v22 }
 0x564   : > { %v5331_v34 = vmax.f32 %v5215_v1, %v5299_v53  ;;  %v5300_v20 = vmul.f32 0.2, %v5218_v17 }
 0x565   : > { %v5329_v19 = vmax.f32 %v5207_v46, %v5297_v63  ;;  %v5298_v35 = vmul.f32 0.2, %v5210_v55 }
 0x566   : > { %v5332_v31 = vmax.f32 %v5218_v17, %v5300_v20  ;;  %v5363_v59 = vmul.f32 1.4142135, %v5331_v34 }
 0x567   : > { %v5330_v4 = vmax.f32 %v5210_v55, %v5298_v35  ;;  %v5361_v47 = vmul.f32 1.4142135, %v5329_v19 }
 0x568   : > { %v5364_v29 = vmul.f32 1.4142135, %v5332_v31 }
 0x569   : > { %v5362_v6 = vmul.f32 1.4142135, %v5330_v4 }
 0x56a   : > { %v5388_v60 = vpack.c.bf16 %v5364_v29, %v5363_v59 }
 0x56b   : > { %v5387_v43 = vpack.c.bf16 %v5362_v6, %v5361_v47 }
 0x56d   : > { %8223 = vmatprep.mubr.bf16.mxu1 %v5387_v43 }
 0x56e   : > { %8224 = vmatmul.mubr.bf16.gmra.mrb[44].mxu1 %v5388_v60 }
 0x590   : > { %v8181_v52 = vpop.f32.mrb[16].mxu1 }
 0x591   : > { %v5231_v38 = vadd.f32 %v8181_v52, %v12888_v24  ;;  %v5222_v0 = vpop.f32.mrb[17].mxu1 }
 0x592   : > { %v5223_v32 = vadd.f32 %v12888_v24, %v5222_v0  ;;  %v8182_v15 = vpop.f32.mrb[18].mxu1 }
 0x593   : > { %v5303_v26 = vmul.f32 0.2, %v5231_v38  ;;  %v5234_v44 = vadd.f32 %v8182_v15, %v12888_v24  ;;  %v5225_v12 = vpop.f32.mrb[19].mxu1 }
 0x594   : > { %v5301_v1 = vmul.f32 0.2, %v5223_v32  ;;  %v5226_v5 = vadd.f32 %v12888_v24, %v5225_v12 }
 0x595   : > { %v5335_v46 = vmax.f32 %v5231_v38, %v5303_v26  ;;  %v5304_v27 = vmul.f32 0.2, %v5234_v44 }
 0x596   : > { %v5333_v53 = vmax.f32 %v5223_v32, %v5301_v1  ;;  %v5302_v17 = vmul.f32 0.2, %v5226_v5 }
 0x597   : > { %v5336_v22 = vmax.f32 %v5234_v44, %v5304_v27  ;;  %v5367_v63 = vmul.f32 1.4142135, %v5335_v46 }
 0x598   : > { %v5334_v41 = vmax.f32 %v5226_v5, %v5302_v17  ;;  %v5365_v34 = vmul.f32 1.4142135, %v5333_v53 }
 0x599   : > { %v5368_v55 = vmul.f32 1.4142135, %v5336_v22 }
 0x59a   : > { %v5366_v20 = vmul.f32 1.4142135, %v5334_v41 }
 0x59b   : > { %v5390_v19 = vpack.c.bf16 %v5368_v55, %v5367_v63 }
 0x59c   : > { %v5389_v35 = vpack.c.bf16 %v5366_v20, %v5365_v34 }
 0x59e   : > { %8227 = vmatprep.mubr.bf16.mxu1 %v5389_v35 }
 0x59f   : > { %8228 = vmatmul.mubr.bf16.gmra.mrb[48].mxu1 %v5390_v19 }
 0x5a3   : > { %v8185_v31 = vpop.f32.mrb[20].mxu1 }
 0x5a4   : > { %v5247_v14 = vadd.f32 %v8185_v31, %v12888_v24  ;;  %v5238_v4 = vpop.f32.mrb[21].mxu1 }
 0x5a5   : > { %v5239_v59 = vadd.f32 %v12888_v24, %v5238_v4  ;;  %v8186_v29 = vpop.f32.mrb[22].mxu1 }
 0x5a6   : > { %v5307_v47 = vmul.f32 0.2, %v5247_v14  ;;  %v5250_v6 = vadd.f32 %v8186_v29, %v12888_v24  ;;  %v5241_v60 = vpop.f32.mrb[23].mxu1 }
 0x5a7   : > { %v5305_v43 = vmul.f32 0.2, %v5239_v59  ;;  %v5242_v52 = vadd.f32 %v12888_v24, %v5241_v60 }
 0x5a8   : > { %v5339_v38 = vmax.f32 %v5247_v14, %v5307_v47  ;;  %v5308_v0 = vmul.f32 0.2, %v5250_v6 }
 0x5a9   : > { %v5337_v32 = vmax.f32 %v5239_v59, %v5305_v43  ;;  %v5306_v15 = vmul.f32 0.2, %v5242_v52 }
 0x5aa   : > { %v5340_v26 = vmax.f32 %v5250_v6, %v5308_v0  ;;  %v5371_v12 = vmul.f32 1.4142135, %v5339_v38 }
 0x5ab   : > { %v5338_v44 = vmax.f32 %v5242_v52, %v5306_v15  ;;  %v5369_v5 = vmul.f32 1.4142135, %v5337_v32 }
 0x5ac   : > { %v5372_v1 = vmul.f32 1.4142135, %v5340_v26 }
 0x5ad   : > { %v5370_v46 = vmul.f32 1.4142135, %v5338_v44 }
 0x5ae   : > { %v5392_v27 = vpack.c.bf16 %v5372_v1, %v5371_v12 }
 0x5af   : > { %v5391_v53 = vpack.c.bf16 %v5370_v46, %v5369_v5 }
 0x5b1   : > { %8231 = vmatprep.mubr.bf16.mxu1 %v5391_v53 }
 0x5b2   : > { %8232 = vmatmul.mubr.bf16.gmra.mrb[52].mxu1 %v5392_v27 }
 0x5b7   : > { %v8189_v17 = vpop.f32.mrb[24].mxu1 }
 0x5b8   : > { %v5263_v22 = vadd.f32 %v8189_v17, %v12888_v24  ;;  %v5254_v41 = vpop.f32.mrb[25].mxu1 }
 0x5b9   : > { %v5255_v63 = vadd.f32 %v12888_v24, %v5254_v41  ;;  %v8190_v55 = vpop.f32.mrb[26].mxu1 }
 0x5ba   : > { %v5311_v34 = vmul.f32 0.2, %v5263_v22  ;;  %v5266_v20 = vadd.f32 %v8190_v55, %v12888_v24  ;;  %v5257_v19 = vpop.f32.mrb[27].mxu1 }
 0x5bb   : > { %v5309_v35 = vmul.f32 0.2, %v5255_v63  ;;  %v5258_v31 = vadd.f32 %v12888_v24, %v5257_v19 }
 0x5bc   : > { %v5343_v14 = vmax.f32 %v5263_v22, %v5311_v34  ;;  %v5312_v4 = vmul.f32 0.2, %v5266_v20  ;;  %v12945_v34 = vld [vmem:[%s13582_s8 + $0x1] ss:$0 sm:$0xff] }
 0x5bd   : > { %v5341_v59 = vmax.f32 %v5255_v63, %v5309_v35  ;;  %v5310_v29 = vmul.f32 0.2, %v5258_v31 }
 0x5be   : > { %v5344_v47 = vmax.f32 %v5266_v20, %v5312_v4  ;;  %v5375_v60 = vmul.f32 1.4142135, %v5343_v14 }
 0x5bf   : > { %v5342_v6 = vmax.f32 %v5258_v31, %v5310_v29  ;;  %v5373_v52 = vmul.f32 1.4142135, %v5341_v59 }
 0x5c0   : > { %v5376_v43 = vmul.f32 1.4142135, %v5344_v47 }
 0x5c1   : > { %v5374_v38 = vmul.f32 1.4142135, %v5342_v6 }
 0x5c2   : > { %v5394_v0 = vpack.c.bf16 %v5376_v43, %v5375_v60 }
 0x5c3   : > { %v5393_v32 = vpack.c.bf16 %v5374_v38, %v5373_v52 }
 0x5c5   : > { %8235 = vmatprep.mubr.bf16.mxu1 %v5393_v32 }
 0x5c6   : > { %8236 = vmatmul.mubr.bf16.gmra.mrb[56].mxu1 %v5394_v0 }
 0x5c7   : > { %v8193_v15 = vpop.f32.mrb[28].mxu1 }
 0x5c8   : > { %v5279_v26 = vadd.f32 %v8193_v15, %v12888_v24  ;;  %v5270_v44 = vpop.f32.mrb[29].mxu1 }
 0x5c9   : > { %v5271_v12 = vadd.f32 %v12888_v24, %v5270_v44  ;;  %v8194_v1 = vpop.f32.mrb[30].mxu1 }
 0x5ca   : > { %v5315_v5 = vmul.f32 0.2, %v5279_v26  ;;  %v5282_v46 = vadd.f32 %v8194_v1, %v12888_v24  ;;  %v5273_v27 = vpop.f32.mrb[31].mxu1 }
 0x5cb   : > { %v5313_v53 = vmul.f32 0.2, %v5271_v12  ;;  %v5274_v17 = vadd.f32 %v12888_v24, %v5273_v27 }
 0x5cc   : > { %v5347_v22 = vmax.f32 %v5279_v26, %v5315_v5  ;;  %v5316_v41 = vmul.f32 0.2, %v5282_v46 }
 0x5cd   : > { %v5345_v63 = vmax.f32 %v5271_v12, %v5313_v53  ;;  %v5314_v55 = vmul.f32 0.2, %v5274_v17 }
 0x5ce   : > { %v5348_v20 = vmax.f32 %v5282_v46, %v5316_v41  ;;  %v5379_v31 = vmul.f32 1.4142135, %v5347_v22 }
 0x5cf   : > { %v5346_v19 = vmax.f32 %v5274_v17, %v5314_v55  ;;  %v8213_v35 = vpop.f32.mrb[32].mxu1  ;;  %v5377_v29 = vmul.f32 1.4142135, %v5345_v63 }
 0x5d0   : > { %v5380_v14 = vmul.f32 1.4142135, %v5348_v20  ;;  %v5513_v4 = vadd.f32 %v8213_v35, %v12945_v34  ;;  %v5504_v59 = vpop.f32.mrb[33].mxu1 }
 0x5d1   : > { %v5378_v47 = vmul.f32 1.4142135, %v5346_v19  ;;  %v5505_v24 = vadd.f32 %v12945_v34, %v5504_v59  ;;  %v8214_v6 = vpop.f32.mrb[34].mxu1 }
 0x5d2   : > { %v5396_v60 = vpack.c.bf16 %v5380_v14, %v5379_v31  ;;  %v5633_v43 = vmul.f32 0.2, %v5513_v4  ;;  %v5516_v52 = vadd.f32 %v8214_v6, %v12945_v34  ;;  %v5507_v38 = vpop.f32.mrb[35].mxu1 }
 0x5d3   : > { %v5395_v0 = vpack.c.bf16 %v5378_v47, %v5377_v29  ;;  %v5631_v32 = vmul.f32 0.2, %v5505_v24  ;;  %v5508_v15 = vadd.f32 %v12945_v34, %v5507_v38 }
 0x5d4   : > { %v5665_v26 = vmax.f32 %v5513_v4, %v5633_v43  ;;  %v5634_v44 = vmul.f32 0.2, %v5516_v52 }
 0x5d5   : > { %8239 = vmatprep.mubr.bf16.mxu1 %v5395_v0  ;;  %v5663_v12 = vmax.f32 %v5505_v24, %v5631_v32  ;;  %v5632_v1 = vmul.f32 0.2, %v5508_v15 }
 0x5d6   : > { %8240 = vmatmul.mubr.bf16.gmra.mrb[60].mxu1 %v5396_v60  ;;  %v5697_v5 = vmul.f32 1.4142135, %v5665_v26  ;;  %v5666_v46 = vmax.f32 %v5516_v52, %v5634_v44 }
 0x5d7   : > { %v5695_v27 = vmul.f32 1.4142135, %v5663_v12  ;;  %v5664_v53 = vmax.f32 %v5508_v15, %v5632_v1  ;;  %v8217_v17 = vpop.f32.mrb[36].mxu1 }
 0x5d8   : > { %v5698_v22 = vmul.f32 1.4142135, %v5666_v46  ;;  %v5529_v41 = vadd.f32 %v8217_v17, %v12945_v34  ;;  %v5520_v63 = vpop.f32.mrb[37].mxu1  ;;  %v5729_v31 = vadd.f32 %v5697_v5, %v12775_v2 }
 0x5d9   : > { %v5727_v55 = vadd.f32 %v5695_v27, %v12771_v49  ;;  %v5696_v20 = vmul.f32 1.4142135, %v5664_v53  ;;  %v5521_v19 = vadd.f32 %v12945_v34, %v5520_v63  ;;  %v8218_v35 = vpop.f32.mrb[38].mxu1 }
 0x5da   : > { %v5730_v14 = vadd.f32 %v5698_v22, %v12769_v45  ;;  %v5637_v4 = vmul.f32 0.2, %v5529_v41  ;;  %v5532_v59 = vadd.f32 %v8218_v35, %v12945_v34  ;;  %v5523_v29 = vpop.f32.mrb[39].mxu1  ;;  %v12965_v45 = vmul.f32 0.70710677, %v5729_v31 }
 0x5db   : > { %v5728_v47 = vadd.f32 %v5696_v20, %v12773_v33  ;;  %v5635_v24 = vmul.f32 0.2, %v5521_v19  ;;  %v5524_v6 = vadd.f32 %v12945_v34, %v5523_v29  ;;  %v12961_v52 = vmul.f32 0.70710677, %v5727_v55 }
 0x5dc   : > { %v12959_v60 = vmul.f32 0.70710677, %v5730_v14  ;;  %v5669_v49 = vmax.f32 %v5529_v41, %v5637_v4  ;;  %v5638_v43 = vmul.f32 0.2, %v5532_v59 }
 0x5dd   : > { %v12963_v38 = vmul.f32 0.70710677, %v5728_v47  ;;  %v5667_v2 = vmax.f32 %v5521_v19, %v5635_v24  ;;  %v5636_v0 = vmul.f32 0.2, %v5524_v6 }
 0x5de   : > { %v5701_v32 = vmul.f32 1.4142135, %v5669_v49  ;;  %v5670_v15 = vmax.f32 %v5532_v59, %v5638_v43  ;;  %v5792_v12 = vpack.c.bf16 %v12959_v60, %v12965_v45 }
 0x5df   : > { %v5699_v26 = vmul.f32 1.4142135, %v5667_v2  ;;  %v5668_v44 = vmax.f32 %v5524_v6, %v5636_v0  ;;  %v5791_v33 = vpack.c.bf16 %v12963_v38, %v12961_v52 }
 0x5e0   : > { %v5702_v1 = vmul.f32 1.4142135, %v5670_v15  ;;  %v5733_v27 = vadd.f32 %v5701_v32, %v12789_v58 }
 0x5e1   : > { %v5731_v5 = vadd.f32 %v5699_v26, %v12779_v10  ;;  %v5700_v46 = vmul.f32 1.4142135, %v5668_v44  ;;  %8259 = vmatprep.mubr.bf16.mxu0 %v5791_v33 }
 0x5e2   : > { %v5734_v53 = vadd.f32 %v5702_v1, %v12787_v51  ;;  %8260 = vmatmul.mubr.bf16.vlgmr.msra.gmra.mrb[32].mxu0 %v5792_v12  ;;  %v12981_v55 = vmul.f32 0.70710677, %v5733_v27 }
 0x5e3   : > { %v5732_v17 = vadd.f32 %v5700_v46, %v12781_v48  ;;  %v12977_v41 = vmul.f32 0.70710677, %v5731_v5 }
 0x5e4   : > { %v12975_v22 = vmul.f32 0.70710677, %v5734_v53 }
 0x5e5   : > { %v12979_v63 = vmul.f32 0.70710677, %v5732_v17  ;;  %v8743_v17 = vld [vmem:[%s9134_s28 + $0xd0] sm:$0xff]  }
 0x5e6   : > { %v5794_v20 = vpack.c.bf16 %v12975_v22, %v12981_v55 }
 0x5e7   : > { %v5793_v10 = vpack.c.bf16 %v12979_v63, %v12977_v41 }
 0x5e9   : > { %8263 = vmatprep.mubr.bf16.mxu0 %v5793_v10  ;;  %v8744_v10 = vld [vmem:[%s9134_s28 + $0xd8] sm:$0xff]  }
 0x5ea   : > { %8264 = vmatmul.mubr.bf16.gmra.mrb[36].mxu0 %v5794_v20  ;;  %v8745_v20 = vld [vmem:[%s9134_s28 + $0xe0] sm:$0xff]  }
 0x5ee   : > { %v8221_v51 = vpop.f32.mrb[40].mxu1 }
 0x5ef   : > { %v5545_v58 = vadd.f32 %v8221_v51, %v12945_v34  ;;  %v5536_v48 = vpop.f32.mrb[41].mxu1 }
 0x5f0   : > { %v5537_v19 = vadd.f32 %v12945_v34, %v5536_v48  ;;  %v8222_v35 = vpop.f32.mrb[42].mxu1 }
 0x5f1   : > { %v5641_v31 = vmul.f32 0.2, %v5545_v58  ;;  %v5548_v14 = vadd.f32 %v8222_v35, %v12945_v34  ;;  %v5539_v4 = vpop.f32.mrb[43].mxu1 }
 0x5f2   : > { %v5639_v59 = vmul.f32 0.2, %v5537_v19  ;;  %v5540_v29 = vadd.f32 %v12945_v34, %v5539_v4 }
 0x5f3   : > { %v5673_v47 = vmax.f32 %v5545_v58, %v5641_v31  ;;  %v5642_v24 = vmul.f32 0.2, %v5548_v14 }
 0x5f4   : > { %v5671_v6 = vmax.f32 %v5537_v19, %v5639_v59  ;;  %v5640_v49 = vmul.f32 0.2, %v5540_v29  ;;  %v8746_v59 = vld [vmem:[%s9134_s28 + $0xe8] sm:$0xff]  }
 0x5f5   : > { %v5705_v43 = vmul.f32 1.4142135, %v5673_v47  ;;  %v5674_v2 = vmax.f32 %v5548_v14, %v5642_v24 }
 0x5f6   : > { %v5703_v0 = vmul.f32 1.4142135, %v5671_v6  ;;  %v5672_v32 = vmax.f32 %v5540_v29, %v5640_v49 }
 0x5f7   : > { %v5706_v15 = vmul.f32 1.4142135, %v5674_v2  ;;  %v5737_v33 = vadd.f32 %v5705_v43, %v12803_v21 }
 0x5f8   : > { %v5735_v26 = vadd.f32 %v5703_v0, %v12799_v28  ;;  %v5704_v44 = vmul.f32 1.4142135, %v5672_v32  ;;  %v8747_v32 = vld [vmem:[%s9134_s28 + $0xf0] sm:$0xff]  }
 0x5f9   : > { %v5738_v12 = vadd.f32 %v5706_v15, %v12797_v30  ;;  %v13001_v53 = vmul.f32 0.70710677, %v5737_v33  ;;  %v8741_v30 = vld [vmem:[%s9134_s28 + $0xc0] sm:$0xff]  }
 0x5fa   : > { %v5736_v1 = vadd.f32 %v5704_v44, %v12801_v57  ;;  %v12997_v46 = vmul.f32 0.70710677, %v5735_v26  ;;  %v8742_v57 = vld [vmem:[%s9134_s28 + $0xc8] sm:$0xff]   ;;  %8291 = vmatprep.subr.bf16.mxu1 %v8741_v30 }
 0x5fb   : > { %v12995_v5 = vmul.f32 0.70710677, %v5738_v12  ;;  %8292 = vmatpush3.bf16.msra.mxu1 %v8741_v30 }
 0x5fc   : > { %v12999_v27 = vmul.f32 0.70710677, %v5736_v1  ;;  %8293 = vmatprep.subr.bf16.mxu1 %v8742_v57 }
 0x5fd   : > { %v5796_v21 = vpack.c.bf16 %v12995_v5, %v13001_v53 }
 0x5fe   : > { %v5795_v28 = vpack.c.bf16 %v12999_v27, %v12997_v46 }
 0x5ff   : > { %8294 = vmatpush3.bf16.msra.mxu1 %v8742_v57 }
 0x600   : > { %8267 = vmatprep.mubr.bf16.mxu0 %v5795_v28  ;;  %8295 = vmatprep.subr.bf16.mxu1 %v8743_v17 }
 0x601   : > { %8268 = vmatmul.mubr.bf16.gmra.mrb[40].mxu0 %v5796_v21  ;;  %v8748_v21 = vld [vmem:[%s9134_s28 + $0xf8] sm:$0xff]  }
 0x603   : > { %8296 = vmatpush3.bf16.msra.mxu1 %v8743_v17 }
 0x604   : > { %8297 = vmatprep.subr.bf16.mxu1 %v8744_v10 }
 0x607   : > { %8298 = vmatpush3.bf16.msra.mxu1 %v8744_v10 }
 0x608   : > { %8299 = vmatprep.subr.bf16.mxu1 %v8745_v20 }
 0x60b   : > { %8300 = vmatpush3.bf16.msra.mxu1 %v8745_v20 }
 0x60c   : > { %8301 = vmatprep.subr.bf16.mxu1 %v8746_v59 }
 0x60f   : > { %8302 = vmatpush3.bf16.msra.mxu1 %v8746_v59 }
 0x610   : > { %8303 = vmatprep.subr.bf16.mxu1 %v8747_v32 }
 0x613   : > { %8304 = vmatpush3.bf16.msra.mxu1 %v8747_v32 }
 0x614   : > { %8305 = vmatprep.subr.bf16.mxu1 %v8748_v21 }
 0x617   : > { %8306 = vmatpush3.bf16.msra.mxu1 %v8748_v21 }
 0x641   : > { %v8225_v51 = vpop.f32.mrb[44].mxu1 }
 0x642   : > { %v5561_v58 = vadd.f32 %v8225_v51, %v12945_v34  ;;  %v5552_v48 = vpop.f32.mrb[45].mxu1 }
 0x643   : > { %v5553_v19 = vadd.f32 %v12945_v34, %v5552_v48  ;;  %v8226_v35 = vpop.f32.mrb[46].mxu1 }
 0x644   : > { %v5645_v31 = vmul.f32 0.2, %v5561_v58  ;;  %v5564_v14 = vadd.f32 %v8226_v35, %v12945_v34  ;;  %v5555_v4 = vpop.f32.mrb[47].mxu1 }
 0x645   : > { %v5643_v29 = vmul.f32 0.2, %v5553_v19  ;;  %v5556_v47 = vadd.f32 %v12945_v34, %v5555_v4 }
 0x646   : > { %v5677_v24 = vmax.f32 %v5561_v58, %v5645_v31  ;;  %v5646_v6 = vmul.f32 0.2, %v5564_v14 }
 0x647   : > { %v5675_v49 = vmax.f32 %v5553_v19, %v5643_v29  ;;  %v5644_v43 = vmul.f32 0.2, %v5556_v47 }
 0x648   : > { %v5709_v2 = vmul.f32 1.4142135, %v5677_v24  ;;  %v5678_v0 = vmax.f32 %v5564_v14, %v5646_v6 }
 0x649   : > { %v5707_v15 = vmul.f32 1.4142135, %v5675_v49  ;;  %v5676_v26 = vmax.f32 %v5556_v47, %v5644_v43 }
 0x64a   : > { %v5710_v44 = vmul.f32 1.4142135, %v5678_v0  ;;  %v5741_v1 = vadd.f32 %v5709_v2, %v12827_v39 }
 0x64b   : > { %v5739_v33 = vadd.f32 %v5707_v15, %v12823_v23  ;;  %v5708_v12 = vmul.f32 1.4142135, %v5676_v26 }
 0x64c   : > { %v5742_v28 = vadd.f32 %v5710_v44, %v12821_v50  ;;  %v13029_v20 = vmul.f32 0.70710677, %v5741_v1 }
 0x64d   : > { %v5740_v30 = vadd.f32 %v5708_v12, %v12825_v61  ;;  %v13025_v17 = vmul.f32 0.70710677, %v5739_v33 }
 0x64e   : > { %v13023_v57 = vmul.f32 0.70710677, %v5742_v28 }
 0x64f   : > { %v13027_v10 = vmul.f32 0.70710677, %v5740_v30 }
 0x650   : > { %v5798_v50 = vpack.c.bf16 %v13023_v57, %v13029_v20 }
 0x651   : > { %v5797_v23 = vpack.c.bf16 %v13027_v10, %v13025_v17 }
 0x653   : > { %8271 = vmatprep.mubr.bf16.mxu0 %v5797_v23 }
 0x654   : > { %8272 = vmatmul.mubr.bf16.gmra.mrb[44].mxu0 %v5798_v50 }
 0x672   : > { %v8229_v61 = vpop.f32.mrb[48].mxu1 }
 0x673   : > { %v5577_v39 = vadd.f32 %v8229_v61, %v12945_v34  ;;  %v5568_v51 = vpop.f32.mrb[49].mxu1 }
 0x674   : > { %v5569_v58 = vadd.f32 %v12945_v34, %v5568_v51  ;;  %v8230_v48 = vpop.f32.mrb[50].mxu1 }
 0x675   : > { %v5649_v19 = vmul.f32 0.2, %v5577_v39  ;;  %v5580_v35 = vadd.f32 %v8230_v48, %v12945_v34  ;;  %v5571_v31 = vpop.f32.mrb[51].mxu1 }
 0x676   : > { %v5647_v14 = vmul.f32 0.2, %v5569_v58  ;;  %v5572_v4 = vadd.f32 %v12945_v34, %v5571_v31 }
 0x677   : > { %v5681_v59 = vmax.f32 %v5577_v39, %v5649_v19  ;;  %v5650_v29 = vmul.f32 0.2, %v5580_v35 }
 0x678   : > { %v5679_v47 = vmax.f32 %v5569_v58, %v5647_v14  ;;  %v5648_v24 = vmul.f32 0.2, %v5572_v4 }
 0x679   : > { %v5713_v6 = vmul.f32 1.4142135, %v5681_v59  ;;  %v5682_v49 = vmax.f32 %v5580_v35, %v5650_v29 }
 0x67a   : > { %v5711_v43 = vmul.f32 1.4142135, %v5679_v47  ;;  %v5680_v2 = vmax.f32 %v5572_v4, %v5648_v24 }
 0x67b   : > { %v5714_v0 = vmul.f32 1.4142135, %v5682_v49  ;;  %v5745_v26 = vadd.f32 %v5713_v6, %v12843_v37 }
 0x67c   : > { %v5743_v32 = vadd.f32 %v5711_v43, %v12839_v56  ;;  %v5712_v15 = vmul.f32 1.4142135, %v5680_v2 }
 0x67d   : > { %v5746_v44 = vadd.f32 %v5714_v0, %v12837_v13  ;;  %v13049_v21 = vmul.f32 0.70710677, %v5745_v26 }
 0x67e   : > { %v5744_v33 = vadd.f32 %v5712_v15, %v12841_v16  ;;  %v13045_v1 = vmul.f32 0.70710677, %v5743_v32 }
 0x67f   : > { %v13043_v12 = vmul.f32 0.70710677, %v5746_v44 }
 0x680   : > { %v13047_v28 = vmul.f32 0.70710677, %v5744_v33 }
 0x681   : > { %v5800_v56 = vpack.c.bf16 %v13043_v12, %v13049_v21 }
 0x682   : > { %v5799_v30 = vpack.c.bf16 %v13047_v28, %v13045_v1 }
 0x684   : > { %8275 = vmatprep.mubr.bf16.mxu0 %v5799_v30 }
 0x685   : > { %v8233_v37 = vpop.f32.mrb[52].mxu1  ;;  %8276 = vmatmul.mubr.bf16.gmra.mrb[48].mxu0 %v5800_v56 }
 0x686   : > { %v5593_v13 = vadd.f32 %v8233_v37, %v12945_v34  ;;  %v5584_v16 = vpop.f32.mrb[53].mxu1 }
 0x687   : > { %v5585_v23 = vadd.f32 %v12945_v34, %v5584_v16  ;;  %v8234_v50 = vpop.f32.mrb[54].mxu1 }
 0x688   : > { %v5653_v61 = vmul.f32 0.2, %v5593_v13  ;;  %v5596_v39 = vadd.f32 %v8234_v50, %v12945_v34  ;;  %v5587_v51 = vpop.f32.mrb[55].mxu1 }
 0x689   : > { %v5651_v58 = vmul.f32 0.2, %v5585_v23  ;;  %v5588_v48 = vadd.f32 %v12945_v34, %v5587_v51 }
 0x68a   : > { %v5685_v19 = vmax.f32 %v5593_v13, %v5653_v61  ;;  %v5654_v35 = vmul.f32 0.2, %v5596_v39 }
 0x68b   : > { %v5683_v31 = vmax.f32 %v5585_v23, %v5651_v58  ;;  %v5652_v14 = vmul.f32 0.2, %v5588_v48 }
 0x68c   : > { %v5717_v4 = vmul.f32 1.4142135, %v5685_v19  ;;  %v5686_v59 = vmax.f32 %v5596_v39, %v5654_v35 }
 0x68d   : > { %v5715_v29 = vmul.f32 1.4142135, %v5683_v31  ;;  %v5684_v47 = vmax.f32 %v5588_v48, %v5652_v14 }
 0x68e   : > { %v5718_v24 = vmul.f32 1.4142135, %v5686_v59  ;;  %v5749_v43 = vadd.f32 %v5717_v4, %v12859_v8 }
 0x68f   : > { %v5747_v6 = vadd.f32 %v5715_v29, %v12855_v7  ;;  %v5716_v49 = vmul.f32 1.4142135, %v5684_v47 }
 0x690   : > { %v5750_v2 = vadd.f32 %v5718_v24, %v12853_v62  ;;  %v13069_v44 = vmul.f32 0.70710677, %v5749_v43 }
 0x691   : > { %v5748_v0 = vadd.f32 %v5716_v49, %v12857_v36  ;;  %v13065_v15 = vmul.f32 0.70710677, %v5747_v6 }
 0x692   : > { %v13063_v32 = vmul.f32 0.70710677, %v5750_v2 }
 0x693   : > { %v13067_v26 = vmul.f32 0.70710677, %v5748_v0 }
 0x694   : > { %v5802_v7 = vpack.c.bf16 %v13063_v32, %v13069_v44 }
 0x695   : > { %v5801_v33 = vpack.c.bf16 %v13067_v26, %v13065_v15 }
 0x697   : > { %8279 = vmatprep.mubr.bf16.mxu0 %v5801_v33 }
 0x698   : > { %8280 = vmatmul.mubr.bf16.gmra.mrb[52].mxu0 %v5802_v7 }
 0x699   : > { %v8237_v8 = vpop.f32.mrb[56].mxu1 }
 0x69a   : > { %v5609_v62 = vadd.f32 %v8237_v8, %v12945_v34  ;;  %v5600_v36 = vpop.f32.mrb[57].mxu1 }
 0x69b   : > { %v5601_v30 = vadd.f32 %v12945_v34, %v5600_v36  ;;  %v8238_v56 = vpop.f32.mrb[58].mxu1 }
 0x69c   : > { %v5657_v37 = vmul.f32 0.2, %v5609_v62  ;;  %v5612_v13 = vadd.f32 %v8238_v56, %v12945_v34  ;;  %v5603_v16 = vpop.f32.mrb[59].mxu1 }
 0x69d   : > { %v5655_v23 = vmul.f32 0.2, %v5601_v30  ;;  %v5604_v50 = vadd.f32 %v12945_v34, %v5603_v16 }
 0x69e   : > { %v5689_v61 = vmax.f32 %v5609_v62, %v5657_v37  ;;  %v5658_v39 = vmul.f32 0.2, %v5612_v13 }
 0x69f   : > { %v5687_v51 = vmax.f32 %v5601_v30, %v5655_v23  ;;  %v5656_v58 = vmul.f32 0.2, %v5604_v50 }
 0x6a0   : > { %v5721_v48 = vmul.f32 1.4142135, %v5689_v61  ;;  %v5690_v19 = vmax.f32 %v5612_v13, %v5658_v39 }
 0x6a1   : > { %v5719_v35 = vmul.f32 1.4142135, %v5687_v51  ;;  %v5688_v31 = vmax.f32 %v5604_v50, %v5656_v58 }
 0x6a2   : > { %v5722_v14 = vmul.f32 1.4142135, %v5690_v19  ;;  %v5753_v29 = vadd.f32 %v5721_v48, %v12875_v54 }
 0x6a3   : > { %v5751_v4 = vadd.f32 %v5719_v35, %v12871_v18  ;;  %v5720_v59 = vmul.f32 1.4142135, %v5688_v31  ;;  %v13103_v35 = vld [vmem:[%s13582_s8 + $0x2] ss:$0 sm:$0xff] }
 0x6a4   : > { %v5754_v47 = vadd.f32 %v5722_v14, %v12869_v40  ;;  %v13089_v2 = vmul.f32 0.70710677, %v5753_v29 }
 0x6a5   : > { %v5752_v24 = vadd.f32 %v5720_v59, %v12873_v42  ;;  %v13085_v49 = vmul.f32 0.70710677, %v5751_v4 }
 0x6a6   : > { %v13083_v6 = vmul.f32 0.70710677, %v5754_v47 }
 0x6a7   : > { %v13087_v43 = vmul.f32 0.70710677, %v5752_v24 }
 0x6a8   : > { %v5804_v40 = vpack.c.bf16 %v13083_v6, %v13089_v2 }
 0x6a9   : > { %v8241_v0 = vpop.f32.mrb[60].mxu1  ;;  %v5803_v33 = vpack.c.bf16 %v13087_v43, %v13085_v49 }
 0x6aa   : > { %v5625_v18 = vadd.f32 %v8241_v0, %v12945_v34  ;;  %v5616_v7 = vpop.f32.mrb[61].mxu1 }
 0x6ab   : > { %v5617_v42 = vadd.f32 %v12945_v34, %v5616_v7  ;;  %v8242_v54 = vpop.f32.mrb[62].mxu1  ;;  %8283 = vmatprep.mubr.bf16.mxu0 %v5803_v33 }
 0x6ac   : > { %v5661_v8 = vmul.f32 0.2, %v5625_v18  ;;  %v5628_v62 = vadd.f32 %v8242_v54, %v12945_v34  ;;  %v5619_v36 = vpop.f32.mrb[63].mxu1  ;;  %8284 = vmatmul.mubr.bf16.gmra.mrb[56].mxu0 %v5804_v40 }
 0x6ad   : > { %v5659_v30 = vmul.f32 0.2, %v5617_v42  ;;  %v5620_v56 = vadd.f32 %v12945_v34, %v5619_v36 }
 0x6ae   : > { %v5693_v37 = vmax.f32 %v5625_v18, %v5661_v8  ;;  %v5662_v13 = vmul.f32 0.2, %v5628_v62 }
 0x6af   : > { %v5691_v16 = vmax.f32 %v5617_v42, %v5659_v30  ;;  %v5660_v23 = vmul.f32 0.2, %v5620_v56 }
 0x6b0   : > { %v5725_v50 = vmul.f32 1.4142135, %v5693_v37  ;;  %v5694_v61 = vmax.f32 %v5628_v62, %v5662_v13 }
 0x6b1   : > { %v5723_v39 = vmul.f32 1.4142135, %v5691_v16  ;;  %v5692_v51 = vmax.f32 %v5620_v56, %v5660_v23 }
 0x6b2   : > { %v5726_v58 = vmul.f32 1.4142135, %v5694_v61  ;;  %v5757_v31 = vadd.f32 %v5725_v50, %v12899_v3 }
 0x6b3   : > { %v5755_v48 = vadd.f32 %v5723_v39, %v12891_v25  ;;  %v5724_v19 = vmul.f32 1.4142135, %v5692_v51 }
 0x6b4   : > { %v5758_v34 = vadd.f32 %v5726_v58, %v12893_v9  ;;  %v13116_v18 = vmul.f32 0.70710677, %v5757_v31 }
 0x6b5   : > { %v5756_v14 = vadd.f32 %v5724_v19, %v12896_v11  ;;  %v8261_v4 = vpop.f32.mrb[32].mxu0  ;;  %v13111_v24 = vmul.f32 0.70710677, %v5755_v48 }
 0x6b6   : > { %v13108_v59 = vmul.f32 0.70710677, %v5758_v34  ;;  %v5923_v29 = vadd.f32 %v8261_v4, %v13103_v35  ;;  %v5914_v47 = vpop.f32.mrb[33].mxu0 }
 0x6b7   : > { %v13113_v25 = vmul.f32 0.70710677, %v5756_v14  ;;  %v5915_v0 = vadd.f32 %v13103_v35, %v5914_v47  ;;  %v8262_v33 = vpop.f32.mrb[34].mxu0 }
 0x6b8   : > { %v6043_v3 = vmul.f32 0.2, %v5923_v29  ;;  %v5926_v9 = vadd.f32 %v8262_v33, %v13103_v35  ;;  %v5917_v7 = vpop.f32.mrb[35].mxu0  ;;  %v5806_v54 = vpack.c.bf16 %v13108_v59, %v13116_v18 }
 0x6b9   : > { %v5805_v11 = vpack.c.bf16 %v13113_v25, %v13111_v24  ;;  %v6041_v40 = vmul.f32 0.2, %v5915_v0  ;;  %v5918_v42 = vadd.f32 %v13103_v35, %v5917_v7 }
 0x6ba   : > { %v6075_v8 = vmax.f32 %v5923_v29, %v6043_v3  ;;  %v6044_v62 = vmul.f32 0.2, %v5926_v9 }
 0x6bb   : > { %8287 = vmatprep.mubr.bf16.mxu0 %v5805_v11  ;;  %v6073_v36 = vmax.f32 %v5915_v0, %v6041_v40  ;;  %v6042_v30 = vmul.f32 0.2, %v5918_v42 }
 0x6bc   : > { %8288 = vmatmul.mubr.bf16.gmra.mrb[60].mxu0 %v5806_v54  ;;  %v6076_v56 = vmax.f32 %v5926_v9, %v6044_v62  ;;  %v6107_v16 = vmul.f32 1.4142135, %v6075_v8 }
 0x6bd   : > { %v6074_v37 = vmax.f32 %v5918_v42, %v6042_v30  ;;  %v8265_v13 = vpop.f32.mrb[36].mxu0  ;;  %v6105_v39 = vmul.f32 1.4142135, %v6073_v36 }
 0x6be   : > { %v6108_v23 = vmul.f32 1.4142135, %v6076_v56  ;;  %v5939_v50 = vadd.f32 %v8265_v13, %v13103_v35  ;;  %v5930_v61 = vpop.f32.mrb[37].mxu0 }
 0x6bf   : > { %v6106_v51 = vmul.f32 1.4142135, %v6074_v37  ;;  %v5931_v58 = vadd.f32 %v13103_v35, %v5930_v61  ;;  %v8266_v48 = vpop.f32.mrb[38].mxu0 }
 0x6c0   : > { %v6138_v19 = vpack.c.bf16 %v6108_v23, %v6107_v16  ;;  %v6047_v31 = vmul.f32 0.2, %v5939_v50  ;;  %v5942_v34 = vadd.f32 %v8266_v48, %v13103_v35  ;;  %v5933_v14 = vpop.f32.mrb[39].mxu0 }
 0x6c1   : > { %v6045_v4 = vmul.f32 0.2, %v5931_v58  ;;  %v5934_v29 = vadd.f32 %v13103_v35, %v5933_v14  ;;  %v6137_v47 = vpack.c.bf16 %v6106_v51, %v6105_v39 }
 0x6c2   : > { %v6079_v0 = vmax.f32 %v5939_v50, %v6047_v31  ;;  %v6048_v33 = vmul.f32 0.2, %v5942_v34 }
 0x6c3   : > { %v6077_v3 = vmax.f32 %v5931_v58, %v6045_v4  ;;  %v6046_v9 = vmul.f32 0.2, %v5934_v29  ;;  %8307 = vmatprep.mubr.bf16.mxu1 %v6137_v47 }
 0x6c4   : > { %v6080_v7 = vmax.f32 %v5942_v34, %v6048_v33  ;;  %8308 = vmatmul.mubr.bf16.vlgmr.msra.gmra.mrb[64].mxu1 %v6138_v19  ;;  %v6111_v40 = vmul.f32 1.4142135, %v6079_v0 }
 0x6c5   : > { %v6078_v11 = vmax.f32 %v5934_v29, %v6046_v9  ;;  %v6109_v54 = vmul.f32 1.4142135, %v6077_v3  ;;  %v8749_v9 = vld [vmem:[%s9134_s28 + $0x100] sm:$0xff]  }
 0x6c6   : > { %v6112_v42 = vmul.f32 1.4142135, %v6080_v7  ;;  %v8750_v7 = vld [vmem:[%s9134_s28 + $0x108] sm:$0xff]   ;;  %8339 = vmatprep.subr.bf16.mxu0 %v8749_v9 }
 0x6c7   : > { %v6110_v8 = vmul.f32 1.4142135, %v6078_v11  ;;  %8340 = vmatpush3.bf16.msra.mxu0 %v8749_v9  ;;  %v8751_v11 = vld [vmem:[%s9134_s28 + $0x110] sm:$0xff]  }
 0x6c8   : > { %v6140_v62 = vpack.c.bf16 %v6112_v42, %v6111_v40  ;;  %8341 = vmatprep.subr.bf16.mxu0 %v8750_v7  ;;  %v8752_v40 = vld [vmem:[%s9134_s28 + $0x118] sm:$0xff]   ;;  %v8753_v42 = vld [vmem:[%s9134_s28 + $0x120] sm:$0xff]  }
 0x6c9   : > { %v6139_v36 = vpack.c.bf16 %v6110_v8, %v6109_v54  ;;  %v8754_v54 = vld [vmem:[%s9134_s28 + $0x128] sm:$0xff]  }
 0x6cb   : > { %8311 = vmatprep.mubr.bf16.mxu1 %v6139_v36  ;;  %8342 = vmatpush3.bf16.msra.mxu0 %v8750_v7 }
 0x6cc   : > { %8312 = vmatmul.mubr.bf16.gmra.mrb[68].mxu1 %v6140_v62  ;;  %8343 = vmatprep.subr.bf16.mxu0 %v8751_v11 }
 0x6cf   : > { %8344 = vmatpush3.bf16.msra.mxu0 %v8751_v11 }
 0x6d0   : > { %8345 = vmatprep.subr.bf16.mxu0 %v8752_v40 }
 0x6d3   : > { %8346 = vmatpush3.bf16.msra.mxu0 %v8752_v40 }
 0x6d4   : > { %v8269_v30 = vpop.f32.mrb[40].mxu0  ;;  %8347 = vmatprep.subr.bf16.mxu0 %v8753_v42 }
 0x6d5   : > { %v5955_v56 = vadd.f32 %v8269_v30, %v13103_v35  ;;  %v5946_v37 = vpop.f32.mrb[41].mxu0 }
 0x6d6   : > { %v5947_v13 = vadd.f32 %v13103_v35, %v5946_v37  ;;  %v8270_v16 = vpop.f32.mrb[42].mxu0 }
 0x6d7   : > { %v6051_v23 = vmul.f32 0.2, %v5955_v56  ;;  %v5958_v50 = vadd.f32 %v8270_v16, %v13103_v35  ;;  %v5949_v61 = vpop.f32.mrb[43].mxu0  ;;  %8348 = vmatpush3.bf16.msra.mxu0 %v8753_v42 }
 0x6d8   : > { %v6049_v39 = vmul.f32 0.2, %v5947_v13  ;;  %v5950_v51 = vadd.f32 %v13103_v35, %v5949_v61  ;;  %8349 = vmatprep.subr.bf16.mxu0 %v8754_v54 }
 0x6d9   : > { %v6083_v58 = vmax.f32 %v5955_v56, %v6051_v23  ;;  %v6052_v48 = vmul.f32 0.2, %v5958_v50  ;;  %v8755_v23 = vld [vmem:[%s9134_s28 + $0x130] sm:$0xff]  }
 0x6da   : > { %v6081_v19 = vmax.f32 %v5947_v13, %v6049_v39  ;;  %v6050_v31 = vmul.f32 0.2, %v5950_v51 }
 0x6db   : > { %v6084_v34 = vmax.f32 %v5958_v50, %v6052_v48  ;;  %v6115_v4 = vmul.f32 1.4142135, %v6083_v58  ;;  %8350 = vmatpush3.bf16.msra.mxu0 %v8754_v54 }
 0x6dc   : > { %v6082_v14 = vmax.f32 %v5950_v51, %v6050_v31  ;;  %v6113_v47 = vmul.f32 1.4142135, %v6081_v19  ;;  %8351 = vmatprep.subr.bf16.mxu0 %v8755_v23  ;;  %v8756_v31 = vld [vmem:[%s9134_s28 + $0x138] sm:$0xff]  }
 0x6dd   : > { %v6116_v29 = vmul.f32 1.4142135, %v6084_v34 }
 0x6de   : > { %v6114_v0 = vmul.f32 1.4142135, %v6082_v14 }
 0x6df   : > { %v6142_v33 = vpack.c.bf16 %v6116_v29, %v6115_v4  ;;  %8352 = vmatpush3.bf16.msra.mxu0 %v8755_v23 }
 0x6e0   : > { %v6141_v3 = vpack.c.bf16 %v6114_v0, %v6113_v47  ;;  %8353 = vmatprep.subr.bf16.mxu0 %v8756_v31 }
 0x6e2   : > { %8315 = vmatprep.mubr.bf16.mxu1 %v6141_v3 }
 0x6e3   : > { %8316 = vmatmul.mubr.bf16.gmra.mrb[72].mxu1 %v6142_v33  ;;  %8354 = vmatpush3.bf16.msra.mxu0 %v8756_v31 }
 0x727   : > { %v8273_v8 = vpop.f32.mrb[44].mxu0 }
 0x728   : > { %v5971_v62 = vadd.f32 %v8273_v8, %v13103_v35  ;;  %v5962_v36 = vpop.f32.mrb[45].mxu0 }
 0x729   : > { %v5963_v30 = vadd.f32 %v13103_v35, %v5962_v36  ;;  %v8274_v56 = vpop.f32.mrb[46].mxu0 }
 0x72a   : > { %v6055_v37 = vmul.f32 0.2, %v5971_v62  ;;  %v5974_v13 = vadd.f32 %v8274_v56, %v13103_v35  ;;  %v5965_v16 = vpop.f32.mrb[47].mxu0 }
 0x72b   : > { %v6053_v50 = vmul.f32 0.2, %v5963_v30  ;;  %v5966_v61 = vadd.f32 %v13103_v35, %v5965_v16 }
 0x72c   : > { %v6087_v39 = vmax.f32 %v5971_v62, %v6055_v37  ;;  %v6056_v51 = vmul.f32 0.2, %v5974_v13 }
 0x72d   : > { %v6085_v58 = vmax.f32 %v5963_v30, %v6053_v50  ;;  %v6054_v48 = vmul.f32 0.2, %v5966_v61 }
 0x72e   : > { %v6088_v19 = vmax.f32 %v5974_v13, %v6056_v51  ;;  %v6119_v14 = vmul.f32 1.4142135, %v6087_v39 }
 0x72f   : > { %v6086_v34 = vmax.f32 %v5966_v61, %v6054_v48  ;;  %v6117_v29 = vmul.f32 1.4142135, %v6085_v58 }
 0x730   : > { %v6120_v4 = vmul.f32 1.4142135, %v6088_v19 }
 0x731   : > { %v6118_v47 = vmul.f32 1.4142135, %v6086_v34 }
 0x732   : > { %v6144_v0 = vpack.c.bf16 %v6120_v4, %v6119_v14 }
 0x733   : > { %v6143_v33 = vpack.c.bf16 %v6118_v47, %v6117_v29 }
 0x735   : > { %8319 = vmatprep.mubr.bf16.mxu1 %v6143_v33 }
 0x736   : > { %8320 = vmatmul.mubr.bf16.gmra.mrb[76].mxu1 %v6144_v0 }
 0x758   : > { %v8277_v3 = vpop.f32.mrb[48].mxu0 }
 0x759   : > { %v5987_v9 = vadd.f32 %v8277_v3, %v13103_v35  ;;  %v5978_v7 = vpop.f32.mrb[49].mxu0 }
 0x75a   : > { %v5979_v11 = vadd.f32 %v13103_v35, %v5978_v7  ;;  %v8278_v40 = vpop.f32.mrb[50].mxu0 }
 0x75b   : > { %v6059_v42 = vmul.f32 0.2, %v5987_v9  ;;  %v5990_v54 = vadd.f32 %v8278_v40, %v13103_v35  ;;  %v5981_v8 = vpop.f32.mrb[51].mxu0 }
 0x75c   : > { %v6057_v62 = vmul.f32 0.2, %v5979_v11  ;;  %v5982_v36 = vadd.f32 %v13103_v35, %v5981_v8 }
 0x75d   : > { %v6091_v30 = vmax.f32 %v5987_v9, %v6059_v42  ;;  %v6060_v56 = vmul.f32 0.2, %v5990_v54 }
 0x75e   : > { %v6089_v37 = vmax.f32 %v5979_v11, %v6057_v62  ;;  %v6058_v13 = vmul.f32 0.2, %v5982_v36 }
 0x75f   : > { %v6092_v16 = vmax.f32 %v5990_v54, %v6060_v56  ;;  %v6123_v50 = vmul.f32 1.4142135, %v6091_v30 }
 0x760   : > { %v6090_v23 = vmax.f32 %v5982_v36, %v6058_v13  ;;  %v6121_v39 = vmul.f32 1.4142135, %v6089_v37 }
 0x761   : > { %v6124_v61 = vmul.f32 1.4142135, %v6092_v16 }
 0x762   : > { %v6122_v51 = vmul.f32 1.4142135, %v6090_v23 }
 0x763   : > { %v6146_v58 = vpack.c.bf16 %v6124_v61, %v6123_v50 }
 0x764   : > { %v6145_v48 = vpack.c.bf16 %v6122_v51, %v6121_v39 }
 0x766   : > { %8323 = vmatprep.mubr.bf16.mxu1 %v6145_v48 }
 0x767   : > { %8324 = vmatmul.mubr.bf16.gmra.mrb[80].mxu1 %v6146_v58 }
 0x76b   : > { %v8281_v19 = vpop.f32.mrb[52].mxu0 }
 0x76c   : > { %v6003_v31 = vadd.f32 %v8281_v19, %v13103_v35  ;;  %v5994_v34 = vpop.f32.mrb[53].mxu0 }
 0x76d   : > { %v5995_v14 = vadd.f32 %v13103_v35, %v5994_v34  ;;  %v8282_v4 = vpop.f32.mrb[54].mxu0 }
 0x76e   : > { %v6063_v29 = vmul.f32 0.2, %v6003_v31  ;;  %v6006_v47 = vadd.f32 %v8282_v4, %v13103_v35  ;;  %v5997_v0 = vpop.f32.mrb[55].mxu0 }
 0x76f   : > { %v6061_v33 = vmul.f32 0.2, %v5995_v14  ;;  %v5998_v3 = vadd.f32 %v13103_v35, %v5997_v0 }
 0x770   : > { %v6095_v9 = vmax.f32 %v6003_v31, %v6063_v29  ;;  %v6064_v7 = vmul.f32 0.2, %v6006_v47 }
 0x771   : > { %v6093_v11 = vmax.f32 %v5995_v14, %v6061_v33  ;;  %v6062_v40 = vmul.f32 0.2, %v5998_v3 }
 0x772   : > { %v6096_v42 = vmax.f32 %v6006_v47, %v6064_v7  ;;  %v6127_v8 = vmul.f32 1.4142135, %v6095_v9 }
 0x773   : > { %v6094_v54 = vmax.f32 %v5998_v3, %v6062_v40  ;;  %v6125_v36 = vmul.f32 1.4142135, %v6093_v11 }
 0x774   : > { %v6128_v62 = vmul.f32 1.4142135, %v6096_v42 }
 0x775   : > { %v6126_v30 = vmul.f32 1.4142135, %v6094_v54 }
 0x776   : > { %v6148_v56 = vpack.c.bf16 %v6128_v62, %v6127_v8 }
 0x777   : > { %v6147_v37 = vpack.c.bf16 %v6126_v30, %v6125_v36 }
 0x779   : > { %8327 = vmatprep.mubr.bf16.mxu1 %v6147_v37 }
 0x77a   : > { %8328 = vmatmul.mubr.bf16.gmra.mrb[84].mxu1 %v6148_v56 }
 0x77f   : > { %v8285_v13 = vpop.f32.mrb[56].mxu0 }
 0x780   : > { %v6019_v16 = vadd.f32 %v8285_v13, %v13103_v35  ;;  %v6010_v23 = vpop.f32.mrb[57].mxu0 }
 0x781   : > { %v6011_v50 = vadd.f32 %v13103_v35, %v6010_v23  ;;  %v8286_v61 = vpop.f32.mrb[58].mxu0 }
 0x782   : > { %v6067_v39 = vmul.f32 0.2, %v6019_v16  ;;  %v6022_v51 = vadd.f32 %v8286_v61, %v13103_v35  ;;  %v6013_v58 = vpop.f32.mrb[59].mxu0 }
 0x783   : > { %v6065_v48 = vmul.f32 0.2, %v6011_v50  ;;  %v6014_v19 = vadd.f32 %v13103_v35, %v6013_v58 }
 0x784   : > { %v6099_v31 = vmax.f32 %v6019_v16, %v6067_v39  ;;  %v6068_v34 = vmul.f32 0.2, %v6022_v51  ;;  %v13163_v39 = vld [vmem:[%s13582_s8 + $0x3] ss:$0 sm:$0xff] }
 0x785   : > { %v6097_v14 = vmax.f32 %v6011_v50, %v6065_v48  ;;  %v6066_v4 = vmul.f32 0.2, %v6014_v19 }
 0x786   : > { %v6100_v29 = vmax.f32 %v6022_v51, %v6068_v34  ;;  %v6131_v0 = vmul.f32 1.4142135, %v6099_v31 }
 0x787   : > { %v6098_v47 = vmax.f32 %v6014_v19, %v6066_v4  ;;  %v6129_v3 = vmul.f32 1.4142135, %v6097_v14 }
 0x788   : > { %v6132_v33 = vmul.f32 1.4142135, %v6100_v29 }
 0x789   : > { %v6130_v9 = vmul.f32 1.4142135, %v6098_v47 }
 0x78a   : > { %v6150_v7 = vpack.c.bf16 %v6132_v33, %v6131_v0 }
 0x78b   : > { %v6149_v11 = vpack.c.bf16 %v6130_v9, %v6129_v3 }
 0x78d   : > { %8331 = vmatprep.mubr.bf16.mxu1 %v6149_v11 }
 0x78e   : > { %8332 = vmatmul.mubr.bf16.gmra.mrb[88].mxu1 %v6150_v7 }
 0x78f   : > { %v8289_v40 = vpop.f32.mrb[60].mxu0 }
 0x790   : > { %v6035_v42 = vadd.f32 %v8289_v40, %v13103_v35  ;;  %v6026_v54 = vpop.f32.mrb[61].mxu0 }
 0x791   : > { %v6027_v8 = vadd.f32 %v13103_v35, %v6026_v54  ;;  %v8290_v62 = vpop.f32.mrb[62].mxu0 }
 0x792   : > { %v6071_v36 = vmul.f32 0.2, %v6035_v42  ;;  %v6038_v30 = vadd.f32 %v8290_v62, %v13103_v35  ;;  %v6029_v56 = vpop.f32.mrb[63].mxu0 }
 0x793   : > { %v6069_v37 = vmul.f32 0.2, %v6027_v8  ;;  %v6030_v13 = vadd.f32 %v13103_v35, %v6029_v56 }
 0x794   : > { %v6103_v16 = vmax.f32 %v6035_v42, %v6071_v36  ;;  %v6072_v23 = vmul.f32 0.2, %v6038_v30 }
 0x795   : > { %v6101_v50 = vmax.f32 %v6027_v8, %v6069_v37  ;;  %v6070_v61 = vmul.f32 0.2, %v6030_v13 }
 0x796   : > { %v6104_v51 = vmax.f32 %v6038_v30, %v6072_v23  ;;  %v6135_v19 = vmul.f32 1.4142135, %v6103_v16 }
 0x797   : > { %v6102_v58 = vmax.f32 %v6030_v13, %v6070_v61  ;;  %v8309_v48 = vpop.f32.mrb[64].mxu1  ;;  %v6133_v4 = vmul.f32 1.4142135, %v6101_v50 }
 0x798   : > { %v6136_v31 = vmul.f32 1.4142135, %v6104_v51  ;;  %v6269_v34 = vadd.f32 %v8309_v48, %v13163_v39  ;;  %v6260_v14 = vpop.f32.mrb[65].mxu1 }
 0x799   : > { %v6134_v29 = vmul.f32 1.4142135, %v6102_v58  ;;  %v6261_v35 = vadd.f32 %v13163_v39, %v6260_v14  ;;  %v8310_v47 = vpop.f32.mrb[66].mxu1 }
 0x79a   : > { %v6152_v0 = vpack.c.bf16 %v6136_v31, %v6135_v19  ;;  %v6389_v33 = vmul.f32 0.2, %v6269_v34  ;;  %v6272_v3 = vadd.f32 %v8310_v47, %v13163_v39  ;;  %v6263_v9 = vpop.f32.mrb[67].mxu1 }
 0x79b   : > { %v6151_v7 = vpack.c.bf16 %v6134_v29, %v6133_v4  ;;  %v6387_v11 = vmul.f32 0.2, %v6261_v35  ;;  %v6264_v40 = vadd.f32 %v13163_v39, %v6263_v9 }
 0x79c   : > { %v6421_v42 = vmax.f32 %v6269_v34, %v6389_v33  ;;  %v6390_v54 = vmul.f32 0.2, %v6272_v3 }
 0x79d   : > { %8335 = vmatprep.mubr.bf16.mxu1 %v6151_v7  ;;  %v6419_v8 = vmax.f32 %v6261_v35, %v6387_v11  ;;  %v6388_v62 = vmul.f32 0.2, %v6264_v40 }
 0x79e   : > { %8336 = vmatmul.mubr.bf16.gmra.mrb[92].mxu1 %v6152_v0  ;;  %v6453_v36 = vmul.f32 1.4142135, %v6421_v42  ;;  %v6422_v30 = vmax.f32 %v6272_v3, %v6390_v54 }
 0x79f   : > { %v6451_v56 = vmul.f32 1.4142135, %v6419_v8  ;;  %v6420_v37 = vmax.f32 %v6264_v40, %v6388_v62  ;;  %v8313_v13 = vpop.f32.mrb[68].mxu1 }
 0x7a0   : > { %v6454_v16 = vmul.f32 1.4142135, %v6422_v30  ;;  %v6285_v23 = vadd.f32 %v8313_v13, %v13163_v39  ;;  %v6276_v50 = vpop.f32.mrb[69].mxu1  ;;  %v6485_v19 = vadd.f32 %v6453_v36, %v12965_v45 }
 0x7a1   : > { %v6483_v61 = vadd.f32 %v6451_v56, %v12961_v52  ;;  %v6452_v51 = vmul.f32 1.4142135, %v6420_v37  ;;  %v6277_v58 = vadd.f32 %v13163_v39, %v6276_v50  ;;  %v8314_v48 = vpop.f32.mrb[70].mxu1 }
 0x7a2   : > { %v6486_v31 = vadd.f32 %v6454_v16, %v12959_v60  ;;  %v6393_v34 = vmul.f32 0.2, %v6285_v23  ;;  %v6288_v14 = vadd.f32 %v8314_v48, %v13163_v39  ;;  %v6279_v4 = vpop.f32.mrb[71].mxu1  ;;  %v13183_v60 = vmul.f32 0.70710677, %v6485_v19 }
 0x7a3   : > { %v6484_v29 = vadd.f32 %v6452_v51, %v12963_v38  ;;  %v6391_v35 = vmul.f32 0.2, %v6277_v58  ;;  %v6280_v47 = vadd.f32 %v13163_v39, %v6279_v4  ;;  %v13179_v3 = vmul.f32 0.70710677, %v6483_v61 }
 0x7a4   : > { %v13177_v0 = vmul.f32 0.70710677, %v6486_v31  ;;  %v6425_v52 = vmax.f32 %v6285_v23, %v6393_v34  ;;  %v6394_v33 = vmul.f32 0.2, %v6288_v14 }
 0x7a5   : > { %v13181_v9 = vmul.f32 0.70710677, %v6484_v29  ;;  %v6423_v45 = vmax.f32 %v6277_v58, %v6391_v35  ;;  %v6392_v7 = vmul.f32 0.2, %v6280_v47 }
 0x7a6   : > { %v6457_v11 = vmul.f32 1.4142135, %v6425_v52  ;;  %v6426_v40 = vmax.f32 %v6288_v14, %v6394_v33  ;;  %v6548_v8 = vpack.c.bf16 %v13177_v0, %v13183_v60 }
 0x7a7   : > { %v6455_v42 = vmul.f32 1.4142135, %v6423_v45  ;;  %v6424_v54 = vmax.f32 %v6280_v47, %v6392_v7  ;;  %v6547_v38 = vpack.c.bf16 %v13181_v9, %v13179_v3 }
 0x7a8   : > { %v6458_v62 = vmul.f32 1.4142135, %v6426_v40  ;;  %v6489_v56 = vadd.f32 %v6457_v11, %v12981_v55 }
 0x7a9   : > { %v6487_v36 = vadd.f32 %v6455_v42, %v12977_v41  ;;  %v6456_v30 = vmul.f32 1.4142135, %v6424_v54  ;;  %8355 = vmatprep.mubr.bf16.mxu0 %v6547_v38 }
 0x7aa   : > { %v6490_v37 = vadd.f32 %v6458_v62, %v12975_v22  ;;  %8356 = vmatmul.mubr.bf16.vlgmr.msra.gmra.mrb[64].mxu0 %v6548_v8  ;;  %v13199_v61 = vmul.f32 0.70710677, %v6489_v56 }
 0x7ab   : > { %v6488_v13 = vadd.f32 %v6456_v30, %v12979_v63  ;;  %v13195_v23 = vmul.f32 0.70710677, %v6487_v36 }
 0x7ac   : > { %v13193_v16 = vmul.f32 0.70710677, %v6490_v37 }
 0x7ad   : > { %v13197_v50 = vmul.f32 0.70710677, %v6488_v13  ;;  %v8759_v13 = vld [vmem:[%s9134_s28 + $0x150] sm:$0xff]  }
 0x7ae   : > { %v6550_v51 = vpack.c.bf16 %v13193_v16, %v13199_v61 }
 0x7af   : > { %v6549_v41 = vpack.c.bf16 %v13197_v50, %v13195_v23 }
 0x7b1   : > { %8359 = vmatprep.mubr.bf16.mxu0 %v6549_v41  ;;  %v8760_v41 = vld [vmem:[%s9134_s28 + $0x158] sm:$0xff]  }
 0x7b2   : > { %8360 = vmatmul.mubr.bf16.gmra.mrb[68].mxu0 %v6550_v51  ;;  %v8761_v51 = vld [vmem:[%s9134_s28 + $0x160] sm:$0xff]  }
 0x7b6   : > { %v8317_v22 = vpop.f32.mrb[72].mxu1 }
 0x7b7   : > { %v6301_v55 = vadd.f32 %v8317_v22, %v13163_v39  ;;  %v6292_v63 = vpop.f32.mrb[73].mxu1 }
 0x7b8   : > { %v6293_v58 = vadd.f32 %v13163_v39, %v6292_v63  ;;  %v8318_v48 = vpop.f32.mrb[74].mxu1 }
 0x7b9   : > { %v6397_v19 = vmul.f32 0.2, %v6301_v55  ;;  %v6304_v31 = vadd.f32 %v8318_v48, %v13163_v39  ;;  %v6295_v34 = vpop.f32.mrb[75].mxu1 }
 0x7ba   : > { %v6395_v14 = vmul.f32 0.2, %v6293_v58  ;;  %v6296_v4 = vadd.f32 %v13163_v39, %v6295_v34 }
 0x7bb   : > { %v6429_v29 = vmax.f32 %v6301_v55, %v6397_v19  ;;  %v6398_v35 = vmul.f32 0.2, %v6304_v31 }
 0x7bc   : > { %v6427_v47 = vmax.f32 %v6293_v58, %v6395_v14  ;;  %v6396_v52 = vmul.f32 0.2, %v6296_v4  ;;  %v8762_v14 = vld [vmem:[%s9134_s28 + $0x168] sm:$0xff]  }
 0x7bd   : > { %v6461_v33 = vmul.f32 1.4142135, %v6429_v29  ;;  %v6430_v45 = vmax.f32 %v6304_v31, %v6398_v35 }
 0x7be   : > { %v6459_v7 = vmul.f32 1.4142135, %v6427_v47  ;;  %v6428_v11 = vmax.f32 %v6296_v4, %v6396_v52 }
 0x7bf   : > { %v6462_v40 = vmul.f32 1.4142135, %v6430_v45  ;;  %v6493_v38 = vadd.f32 %v6461_v33, %v13001_v53 }
 0x7c0   : > { %v6491_v42 = vadd.f32 %v6459_v7, %v12997_v46  ;;  %v6460_v54 = vmul.f32 1.4142135, %v6428_v11  ;;  %v8763_v11 = vld [vmem:[%s9134_s28 + $0x170] sm:$0xff]  }
 0x7c1   : > { %v6494_v8 = vadd.f32 %v6462_v40, %v12995_v5  ;;  %v13219_v37 = vmul.f32 0.70710677, %v6493_v38  ;;  %v8757_v5 = vld [vmem:[%s9134_s28 + $0x140] sm:$0xff]  }
 0x7c2   : > { %v6492_v62 = vadd.f32 %v6460_v54, %v12999_v27  ;;  %v13215_v30 = vmul.f32 0.70710677, %v6491_v42  ;;  %v8758_v27 = vld [vmem:[%s9134_s28 + $0x148] sm:$0xff]   ;;  %8387 = vmatprep.subr.bf16.mxu1 %v8757_v5 }
 0x7c3   : > { %v13213_v36 = vmul.f32 0.70710677, %v6494_v8  ;;  %8388 = vmatpush3.bf16.msra.mxu1 %v8757_v5 }
 0x7c4   : > { %v13217_v56 = vmul.f32 0.70710677, %v6492_v62  ;;  %8389 = vmatprep.subr.bf16.mxu1 %v8758_v27 }
 0x7c5   : > { %v6552_v53 = vpack.c.bf16 %v13213_v36, %v13219_v37 }
 0x7c6   : > { %v6551_v46 = vpack.c.bf16 %v13217_v56, %v13215_v30 }
 0x7c7   : > { %8390 = vmatpush3.bf16.msra.mxu1 %v8758_v27 }
 0x7c8   : > { %8363 = vmatprep.mubr.bf16.mxu0 %v6551_v46  ;;  %8391 = vmatprep.subr.bf16.mxu1 %v8759_v13 }
 0x7c9   : > { %8364 = vmatmul.mubr.bf16.gmra.mrb[72].mxu0 %v6552_v53  ;;  %v8764_v53 = vld [vmem:[%s9134_s28 + $0x178] sm:$0xff]   ;;  %s8908_s28 = scalar_lea.vmem %s13529_s23, 256 }
 0x7ca   : > { %p8909_p12 = scmp.ne.s32.totalorder %s13529_s23, %s8908_s28  ;;  %p8916_p2 = scmp.lt.s32.totalorder %s8914_s13, %s8908_s28 }
 0x7cb   : > { %8392 = vmatpush3.bf16.msra.mxu1 %v8759_v13 }
 0x7cc   : > { %8393 = vmatprep.subr.bf16.mxu1 %v8760_v41  ;;  %p8910_p13 = pnand %p8909_p12, %p9097_p4  ;;  %p8917_p3 = por %p8916_p2, %p8915_p1 }
 0x7ce   : > { %p8911_p0 = pneg %p8910_p13 }
 0x7cf   : > { %8394 = vmatpush3.bf16.msra.mxu1 %v8760_v41 }
 0x7d0   : > { %8395 = vmatprep.subr.bf16.mxu1 %v8761_v51  ;;  %p8918_p5 = pnand %p8917_p3, %p8911_p0 }
 0x7d3   : > { %8396 = vmatpush3.bf16.msra.mxu1 %v8761_v51 }
 0x7d4   : > { %8397 = vmatprep.subr.bf16.mxu1 %v8762_v14 }
 0x7d7   : > { %8398 = vmatpush3.bf16.msra.mxu1 %v8762_v14 }
 0x7d8   : > { %8399 = vmatprep.subr.bf16.mxu1 %v8763_v11 }
 0x7db   : > { %8400 = vmatpush3.bf16.msra.mxu1 %v8763_v11 }
 0x7dc   : > { %8401 = vmatprep.subr.bf16.mxu1 %v8764_v53 }
 0x7df   : > { %8402 = vmatpush3.bf16.msra.mxu1 %v8764_v53 }
 0x809   : > { %v8321_v22 = vpop.f32.mrb[76].mxu1 }
 0x80a   : > { %v6317_v55 = vadd.f32 %v8321_v22, %v13163_v39  ;;  %v6308_v63 = vpop.f32.mrb[77].mxu1 }
 0x80b   : > { %v6309_v58 = vadd.f32 %v13163_v39, %v6308_v63  ;;  %v8322_v48 = vpop.f32.mrb[78].mxu1 }
 0x80c   : > { %v6401_v19 = vmul.f32 0.2, %v6317_v55  ;;  %v6320_v31 = vadd.f32 %v8322_v48, %v13163_v39  ;;  %v6311_v34 = vpop.f32.mrb[79].mxu1 }
 0x80d   : > { %v6399_v4 = vmul.f32 0.2, %v6309_v58  ;;  %v6312_v29 = vadd.f32 %v13163_v39, %v6311_v34 }
 0x80e   : > { %v6433_v35 = vmax.f32 %v6317_v55, %v6401_v19  ;;  %v6402_v47 = vmul.f32 0.2, %v6320_v31 }
 0x80f   : > { %v6431_v52 = vmax.f32 %v6309_v58, %v6399_v4  ;;  %v6400_v33 = vmul.f32 0.2, %v6312_v29 }
 0x810   : > { %v6465_v45 = vmul.f32 1.4142135, %v6433_v35  ;;  %v6434_v7 = vmax.f32 %v6320_v31, %v6402_v47 }
 0x811   : > { %v6463_v40 = vmul.f32 1.4142135, %v6431_v52  ;;  %v6432_v42 = vmax.f32 %v6312_v29, %v6400_v33 }
 0x812   : > { %v6466_v54 = vmul.f32 1.4142135, %v6434_v7  ;;  %v6497_v62 = vadd.f32 %v6465_v45, %v13029_v20 }
 0x813   : > { %v6495_v38 = vadd.f32 %v6463_v40, %v13025_v17  ;;  %v6464_v8 = vmul.f32 1.4142135, %v6432_v42 }
 0x814   : > { %v6498_v46 = vadd.f32 %v6466_v54, %v13023_v57  ;;  %v13247_v51 = vmul.f32 0.70710677, %v6497_v62 }
 0x815   : > { %v6496_v5 = vadd.f32 %v6464_v8, %v13027_v10  ;;  %v13243_v13 = vmul.f32 0.70710677, %v6495_v38 }
 0x816   : > { %v13241_v27 = vmul.f32 0.70710677, %v6498_v46 }
 0x817   : > { %v13245_v41 = vmul.f32 0.70710677, %v6496_v5 }
 0x818   : > { %v6554_v57 = vpack.c.bf16 %v13241_v27, %v13247_v51 }
 0x819   : > { %v6553_v17 = vpack.c.bf16 %v13245_v41, %v13243_v13 }
 0x81b   : > { %8367 = vmatprep.mubr.bf16.mxu0 %v6553_v17 }
 0x81c   : > { %8368 = vmatmul.mubr.bf16.gmra.mrb[76].mxu0 %v6554_v57 }
 0x83a   : > { %v8325_v10 = vpop.f32.mrb[80].mxu1 }
 0x83b   : > { %v6333_v20 = vadd.f32 %v8325_v10, %v13163_v39  ;;  %v6324_v22 = vpop.f32.mrb[81].mxu1 }
 0x83c   : > { %v6325_v55 = vadd.f32 %v13163_v39, %v6324_v22  ;;  %v8326_v63 = vpop.f32.mrb[82].mxu1 }
 0x83d   : > { %v6405_v58 = vmul.f32 0.2, %v6333_v20  ;;  %v6336_v48 = vadd.f32 %v8326_v63, %v13163_v39  ;;  %v6327_v19 = vpop.f32.mrb[83].mxu1 }
 0x83e   : > { %v6403_v31 = vmul.f32 0.2, %v6325_v55  ;;  %v6328_v34 = vadd.f32 %v13163_v39, %v6327_v19 }
 0x83f   : > { %v6437_v14 = vmax.f32 %v6333_v20, %v6405_v58  ;;  %v6406_v4 = vmul.f32 0.2, %v6336_v48 }
 0x840   : > { %v6435_v29 = vmax.f32 %v6325_v55, %v6403_v31  ;;  %v6404_v35 = vmul.f32 0.2, %v6328_v34 }
 0x841   : > { %v6469_v47 = vmul.f32 1.4142135, %v6437_v14  ;;  %v6438_v52 = vmax.f32 %v6336_v48, %v6406_v4 }
 0x842   : > { %v6467_v33 = vmul.f32 1.4142135, %v6435_v29  ;;  %v6436_v45 = vmax.f32 %v6328_v34, %v6404_v35 }
 0x843   : > { %v6470_v7 = vmul.f32 1.4142135, %v6438_v52  ;;  %v6501_v42 = vadd.f32 %v6469_v47, %v13049_v21 }
 0x844   : > { %v6499_v11 = vadd.f32 %v6467_v33, %v13045_v1  ;;  %v6468_v40 = vmul.f32 1.4142135, %v6436_v45 }
 0x845   : > { %v6502_v54 = vadd.f32 %v6470_v7, %v13043_v12  ;;  %v13267_v53 = vmul.f32 0.70710677, %v6501_v42 }
 0x846   : > { %v6500_v38 = vadd.f32 %v6468_v40, %v13047_v28  ;;  %v13263_v62 = vmul.f32 0.70710677, %v6499_v11 }
 0x847   : > { %v13261_v8 = vmul.f32 0.70710677, %v6502_v54 }
 0x848   : > { %v13265_v46 = vmul.f32 0.70710677, %v6500_v38 }
 0x849   : > { %v6556_v1 = vpack.c.bf16 %v13261_v8, %v13267_v53 }
 0x84a   : > { %v6555_v5 = vpack.c.bf16 %v13265_v46, %v13263_v62 }
 0x84c   : > { %8371 = vmatprep.mubr.bf16.mxu0 %v6555_v5 }
 0x84d   : > { %v8329_v21 = vpop.f32.mrb[84].mxu1  ;;  %8372 = vmatmul.mubr.bf16.gmra.mrb[80].mxu0 %v6556_v1 }
 0x84e   : > { %v6349_v12 = vadd.f32 %v8329_v21, %v13163_v39  ;;  %v6340_v28 = vpop.f32.mrb[85].mxu1 }
 0x84f   : > { %v6341_v17 = vadd.f32 %v13163_v39, %v6340_v28  ;;  %v8330_v57 = vpop.f32.mrb[86].mxu1 }
 0x850   : > { %v6409_v10 = vmul.f32 0.2, %v6349_v12  ;;  %v6352_v20 = vadd.f32 %v8330_v57, %v13163_v39  ;;  %v6343_v22 = vpop.f32.mrb[87].mxu1 }
 0x851   : > { %v6407_v55 = vmul.f32 0.2, %v6341_v17  ;;  %v6344_v63 = vadd.f32 %v13163_v39, %v6343_v22 }
 0x852   : > { %v6441_v58 = vmax.f32 %v6349_v12, %v6409_v10  ;;  %v6410_v48 = vmul.f32 0.2, %v6352_v20 }
 0x853   : > { %v6439_v19 = vmax.f32 %v6341_v17, %v6407_v55  ;;  %v6408_v31 = vmul.f32 0.2, %v6344_v63 }
 0x854   : > { %v6473_v34 = vmul.f32 1.4142135, %v6441_v58  ;;  %v6442_v14 = vmax.f32 %v6352_v20, %v6410_v48 }
 0x855   : > { %v6471_v4 = vmul.f32 1.4142135, %v6439_v19  ;;  %v6440_v29 = vmax.f32 %v6344_v63, %v6408_v31 }
 0x856   : > { %v6474_v35 = vmul.f32 1.4142135, %v6442_v14  ;;  %v6505_v33 = vadd.f32 %v6473_v34, %v13069_v44 }
 0x857   : > { %v6503_v47 = vadd.f32 %v6471_v4, %v13065_v15  ;;  %v6472_v52 = vmul.f32 1.4142135, %v6440_v29 }
 0x858   : > { %v6506_v45 = vadd.f32 %v6474_v35, %v13063_v32  ;;  %v13287_v54 = vmul.f32 0.70710677, %v6505_v33 }
 0x859   : > { %v6504_v7 = vadd.f32 %v6472_v52, %v13067_v26  ;;  %v13283_v40 = vmul.f32 0.70710677, %v6503_v47 }
 0x85a   : > { %v13281_v11 = vmul.f32 0.70710677, %v6506_v45 }
 0x85b   : > { %v13285_v42 = vmul.f32 0.70710677, %v6504_v7 }
 0x85c   : > { %v6558_v15 = vpack.c.bf16 %v13281_v11, %v13287_v54 }
 0x85d   : > { %v6557_v38 = vpack.c.bf16 %v13285_v42, %v13283_v40 }
 0x85f   : > { %8375 = vmatprep.mubr.bf16.mxu0 %v6557_v38 }
 0x860   : > { %8376 = vmatmul.mubr.bf16.gmra.mrb[84].mxu0 %v6558_v15 }
 0x861   : > { %v8333_v44 = vpop.f32.mrb[88].mxu1 }
 0x862   : > { %v6365_v32 = vadd.f32 %v8333_v44, %v13163_v39  ;;  %v6356_v26 = vpop.f32.mrb[89].mxu1 }
 0x863   : > { %v6357_v5 = vadd.f32 %v13163_v39, %v6356_v26  ;;  %v8334_v1 = vpop.f32.mrb[90].mxu1 }
 0x864   : > { %v6413_v21 = vmul.f32 0.2, %v6365_v32  ;;  %v6368_v12 = vadd.f32 %v8334_v1, %v13163_v39  ;;  %v6359_v28 = vpop.f32.mrb[91].mxu1 }
 0x865   : > { %v6411_v17 = vmul.f32 0.2, %v6357_v5  ;;  %v6360_v57 = vadd.f32 %v13163_v39, %v6359_v28 }
 0x866   : > { %v6445_v10 = vmax.f32 %v6365_v32, %v6413_v21  ;;  %v6414_v20 = vmul.f32 0.2, %v6368_v12 }
 0x867   : > { %v6443_v22 = vmax.f32 %v6357_v5, %v6411_v17  ;;  %v6412_v55 = vmul.f32 0.2, %v6360_v57 }
 0x868   : > { %v6477_v63 = vmul.f32 1.4142135, %v6445_v10  ;;  %v6446_v58 = vmax.f32 %v6368_v12, %v6414_v20 }
 0x869   : > { %v6475_v48 = vmul.f32 1.4142135, %v6443_v22  ;;  %v6444_v19 = vmax.f32 %v6360_v57, %v6412_v55 }
 0x86a   : > { %v6478_v31 = vmul.f32 1.4142135, %v6446_v58  ;;  %v6509_v4 = vadd.f32 %v6477_v63, %v13089_v2 }
 0x86b   : > { %v6507_v34 = vadd.f32 %v6475_v48, %v13085_v49  ;;  %v6476_v14 = vmul.f32 1.4142135, %v6444_v19  ;;  %v13321_v48 = vld [vmem:[%s13582_s8 + $0x4] ss:$0 sm:$0xff] }
 0x86c   : > { %v6510_v29 = vadd.f32 %v6478_v31, %v13083_v6  ;;  %v13307_v45 = vmul.f32 0.70710677, %v6509_v4 }
 0x86d   : > { %v6508_v35 = vadd.f32 %v6476_v14, %v13087_v43  ;;  %v13303_v52 = vmul.f32 0.70710677, %v6507_v34 }
 0x86e   : > { %v13301_v47 = vmul.f32 0.70710677, %v6510_v29 }
 0x86f   : > { %v13305_v33 = vmul.f32 0.70710677, %v6508_v35 }
 0x870   : > { %v6560_v6 = vpack.c.bf16 %v13301_v47, %v13307_v45 }
 0x871   : > { %v8337_v7 = vpop.f32.mrb[92].mxu1  ;;  %v6559_v38 = vpack.c.bf16 %v13305_v33, %v13303_v52 }
 0x872   : > { %v6381_v49 = vadd.f32 %v8337_v7, %v13163_v39  ;;  %v6372_v15 = vpop.f32.mrb[93].mxu1 }
 0x873   : > { %v6373_v43 = vadd.f32 %v13163_v39, %v6372_v15  ;;  %v8338_v2 = vpop.f32.mrb[94].mxu1  ;;  %8379 = vmatprep.mubr.bf16.mxu0 %v6559_v38 }
 0x874   : > { %v6417_v44 = vmul.f32 0.2, %v6381_v49  ;;  %v6384_v32 = vadd.f32 %v8338_v2, %v13163_v39  ;;  %v6375_v26 = vpop.f32.mrb[95].mxu1  ;;  %8380 = vmatmul.mubr.bf16.gmra.mrb[88].mxu0 %v6560_v6 }
 0x875   : > { %v6415_v5 = vmul.f32 0.2, %v6373_v43  ;;  %v6376_v1 = vadd.f32 %v13163_v39, %v6375_v26 }
 0x876   : > { %v6449_v21 = vmax.f32 %v6381_v49, %v6417_v44  ;;  %v6418_v12 = vmul.f32 0.2, %v6384_v32 }
 0x877   : > { %v6447_v28 = vmax.f32 %v6373_v43, %v6415_v5  ;;  %v6416_v17 = vmul.f32 0.2, %v6376_v1 }
 0x878   : > { %v6481_v57 = vmul.f32 1.4142135, %v6449_v21  ;;  %v6450_v10 = vmax.f32 %v6384_v32, %v6418_v12 }
 0x879   : > { %v6479_v20 = vmul.f32 1.4142135, %v6447_v28  ;;  %v6448_v22 = vmax.f32 %v6376_v1, %v6416_v17 }
 0x87a   : > { %v6482_v55 = vmul.f32 1.4142135, %v6450_v10  ;;  %v6513_v19 = vadd.f32 %v6481_v57, %v13116_v18 }
 0x87b   : > { %v6511_v63 = vadd.f32 %v6479_v20, %v13111_v24  ;;  %v6480_v58 = vmul.f32 1.4142135, %v6448_v22 }
 0x87c   : > { %v6514_v39 = vadd.f32 %v6482_v55, %v13108_v59  ;;  %v13334_v49 = vmul.f32 0.70710677, %v6513_v19 }
 0x87d   : > { %v6512_v31 = vadd.f32 %v6480_v58, %v13113_v25  ;;  %v8357_v34 = vpop.f32.mrb[64].mxu0  ;;  %v13329_v35 = vmul.f32 0.70710677, %v6511_v63 }
 0x87e   : > { %v13326_v14 = vmul.f32 0.70710677, %v6514_v39  ;;  %v6679_v4 = vadd.f32 %v8357_v34, %v13321_v48  ;;  %v6670_v29 = vpop.f32.mrb[65].mxu0 }
 0x87f   : > { %v13331_v24 = vmul.f32 0.70710677, %v6512_v31  ;;  %v6671_v7 = vadd.f32 %v13321_v48, %v6670_v29  ;;  %v8358_v38 = vpop.f32.mrb[66].mxu0 }
 0x880   : > { %v6799_v18 = vmul.f32 0.2, %v6679_v4  ;;  %v6682_v59 = vadd.f32 %v8358_v38, %v13321_v48  ;;  %v6673_v15 = vpop.f32.mrb[67].mxu0  ;;  %v6562_v2 = vpack.c.bf16 %v13326_v14, %v13334_v49 }
 0x881   : > { %v6561_v25 = vpack.c.bf16 %v13331_v24, %v13329_v35  ;;  %v6797_v6 = vmul.f32 0.2, %v6671_v7  ;;  %v6674_v43 = vadd.f32 %v13321_v48, %v6673_v15 }
 0x882   : > { %v6831_v44 = vmax.f32 %v6679_v4, %v6799_v18  ;;  %v6800_v32 = vmul.f32 0.2, %v6682_v59 }
 0x883   : > { %8383 = vmatprep.mubr.bf16.mxu0 %v6561_v25  ;;  %v6829_v26 = vmax.f32 %v6671_v7, %v6797_v6  ;;  %v6798_v5 = vmul.f32 0.2, %v6674_v43 }
 0x884   : > { %8384 = vmatmul.mubr.bf16.gmra.mrb[92].mxu0 %v6562_v2  ;;  %v6832_v1 = vmax.f32 %v6682_v59, %v6800_v32  ;;  %v6863_v28 = vmul.f32 1.4142135, %v6831_v44 }
 0x885   : > { %v6830_v21 = vmax.f32 %v6674_v43, %v6798_v5  ;;  %v8361_v12 = vpop.f32.mrb[68].mxu0  ;;  %v6861_v20 = vmul.f32 1.4142135, %v6829_v26 }
 0x886   : > { %v6864_v17 = vmul.f32 1.4142135, %v6832_v1  ;;  %v6695_v57 = vadd.f32 %v8361_v12, %v13321_v48  ;;  %v6686_v10 = vpop.f32.mrb[69].mxu0 }
 0x887   : > { %v6862_v22 = vmul.f32 1.4142135, %v6830_v21  ;;  %v6687_v55 = vadd.f32 %v13321_v48, %v6686_v10  ;;  %v8362_v63 = vpop.f32.mrb[70].mxu0 }
 0x888   : > { %v6894_v58 = vpack.c.bf16 %v6864_v17, %v6863_v28  ;;  %v6803_v19 = vmul.f32 0.2, %v6695_v57  ;;  %v6698_v39 = vadd.f32 %v8362_v63, %v13321_v48  ;;  %v6689_v31 = vpop.f32.mrb[71].mxu0 }
 0x889   : > { %v6801_v34 = vmul.f32 0.2, %v6687_v55  ;;  %v6690_v4 = vadd.f32 %v13321_v48, %v6689_v31  ;;  %v6893_v29 = vpack.c.bf16 %v6862_v22, %v6861_v20 }
 0x88a   : > { %v6835_v7 = vmax.f32 %v6695_v57, %v6803_v19  ;;  %v6804_v38 = vmul.f32 0.2, %v6698_v39 }
 0x88b   : > { %v6833_v18 = vmax.f32 %v6687_v55, %v6801_v34  ;;  %v6802_v59 = vmul.f32 0.2, %v6690_v4  ;;  %8403 = vmatprep.mubr.bf16.mxu1 %v6893_v29 }
 0x88c   : > { %v6836_v15 = vmax.f32 %v6698_v39, %v6804_v38  ;;  %8404 = vmatmul.mubr.bf16.vlgmr.msra.gmra.mrb[96].mxu1 %v6894_v58  ;;  %v6867_v6 = vmul.f32 1.4142135, %v6835_v7 }
 0x88d   : > { %v6834_v25 = vmax.f32 %v6690_v4, %v6802_v59  ;;  %v6865_v2 = vmul.f32 1.4142135, %v6833_v18 }
 0x88e   : > { %v6868_v43 = vmul.f32 1.4142135, %v6836_v15 }
 0x88f   : > { %v6866_v44 = vmul.f32 1.4142135, %v6834_v25 }
 0x890   : > { %v6896_v32 = vpack.c.bf16 %v6868_v43, %v6867_v6 }
 0x891   : > { %v6895_v26 = vpack.c.bf16 %v6866_v44, %v6865_v2 }
 0x893   : > { %8407 = vmatprep.mubr.bf16.mxu1 %v6895_v26 }
 0x894   : > { %8408 = vmatmul.mubr.bf16.gmra.mrb[100].mxu1 %v6896_v32 }
 0x89c   : > { %v8365_v5 = vpop.f32.mrb[72].mxu0 }
 0x89d   : > { %v6711_v1 = vadd.f32 %v8365_v5, %v13321_v48  ;;  %v6702_v21 = vpop.f32.mrb[73].mxu0 }
 0x89e   : > { %v6703_v12 = vadd.f32 %v13321_v48, %v6702_v21  ;;  %v8366_v28 = vpop.f32.mrb[74].mxu0 }
 0x89f   : > { %v6807_v17 = vmul.f32 0.2, %v6711_v1  ;;  %v6714_v57 = vadd.f32 %v8366_v28, %v13321_v48  ;;  %v6705_v10 = vpop.f32.mrb[75].mxu0 }
 0x8a0   : > { %v6805_v20 = vmul.f32 0.2, %v6703_v12  ;;  %v6706_v22 = vadd.f32 %v13321_v48, %v6705_v10 }
 0x8a1   : > { %v6839_v55 = vmax.f32 %v6711_v1, %v6807_v17  ;;  %v6808_v63 = vmul.f32 0.2, %v6714_v57 }
 0x8a2   : > { %v6837_v58 = vmax.f32 %v6703_v12, %v6805_v20  ;;  %v6806_v19 = vmul.f32 0.2, %v6706_v22 }
 0x8a3   : > { %v6840_v39 = vmax.f32 %v6714_v57, %v6808_v63  ;;  %v6871_v34 = vmul.f32 1.4142135, %v6839_v55 }
 0x8a4   : > { %v6838_v31 = vmax.f32 %v6706_v22, %v6806_v19  ;;  %v6869_v29 = vmul.f32 1.4142135, %v6837_v58 }
 0x8a5   : > { %v6872_v4 = vmul.f32 1.4142135, %v6840_v39 }
 0x8a6   : > { %v6870_v7 = vmul.f32 1.4142135, %v6838_v31 }
 0x8a7   : > { %v6898_v38 = vpack.c.bf16 %v6872_v4, %v6871_v34 }
 0x8a8   : > { %v6897_v18 = vpack.c.bf16 %v6870_v7, %v6869_v29 }
 0x8aa   : > { %8411 = vmatprep.mubr.bf16.mxu1 %v6897_v18 }
 0x8ab   : > { %8412 = vmatmul.mubr.bf16.gmra.mrb[104].mxu1 %v6898_v38 }
 0x8ef   : > { %v8369_v59 = vpop.f32.mrb[76].mxu0 }
 0x8f0   : > { %v6727_v15 = vadd.f32 %v8369_v59, %v13321_v48  ;;  %v6718_v25 = vpop.f32.mrb[77].mxu0 }
 0x8f1   : > { %v6719_v6 = vadd.f32 %v13321_v48, %v6718_v25  ;;  %v8370_v43 = vpop.f32.mrb[78].mxu0 }
 0x8f2   : > { %v6811_v2 = vmul.f32 0.2, %v6727_v15  ;;  %v6730_v44 = vadd.f32 %v8370_v43, %v13321_v48  ;;  %v6721_v32 = vpop.f32.mrb[79].mxu0 }
 0x8f3   : > { %v6809_v26 = vmul.f32 0.2, %v6719_v6  ;;  %v6722_v5 = vadd.f32 %v13321_v48, %v6721_v32 }
 0x8f4   : > { %v6843_v1 = vmax.f32 %v6727_v15, %v6811_v2  ;;  %v6812_v21 = vmul.f32 0.2, %v6730_v44 }
 0x8f5   : > { %v6841_v12 = vmax.f32 %v6719_v6, %v6809_v26  ;;  %v6810_v28 = vmul.f32 0.2, %v6722_v5 }
 0x8f6   : > { %v6844_v17 = vmax.f32 %v6730_v44, %v6812_v21  ;;  %v6875_v10 = vmul.f32 1.4142135, %v6843_v1 }
 0x8f7   : > { %v6842_v57 = vmax.f32 %v6722_v5, %v6810_v28  ;;  %v6873_v22 = vmul.f32 1.4142135, %v6841_v12 }
 0x8f8   : > { %v6876_v20 = vmul.f32 1.4142135, %v6844_v17 }
 0x8f9   : > { %v6874_v55 = vmul.f32 1.4142135, %v6842_v57 }
 0x8fa   : > { %v6900_v63 = vpack.c.bf16 %v6876_v20, %v6875_v10 }
 0x8fb   : > { %v6899_v58 = vpack.c.bf16 %v6874_v55, %v6873_v22 }
 0x8fd   : > { %8415 = vmatprep.mubr.bf16.mxu1 %v6899_v58 }
 0x8fe   : > { %8416 = vmatmul.mubr.bf16.gmra.mrb[108].mxu1 %v6900_v63 }
 0x920   : > { %v8373_v19 = vpop.f32.mrb[80].mxu0 }
 0x921   : > { %v6743_v39 = vadd.f32 %v8373_v19, %v13321_v48  ;;  %v6734_v31 = vpop.f32.mrb[81].mxu0 }
 0x922   : > { %v6735_v34 = vadd.f32 %v13321_v48, %v6734_v31  ;;  %v8374_v4 = vpop.f32.mrb[82].mxu0 }
 0x923   : > { %v6815_v29 = vmul.f32 0.2, %v6743_v39  ;;  %v6746_v7 = vadd.f32 %v8374_v4, %v13321_v48  ;;  %v6737_v38 = vpop.f32.mrb[83].mxu0 }
 0x924   : > { %v6813_v18 = vmul.f32 0.2, %v6735_v34  ;;  %v6738_v59 = vadd.f32 %v13321_v48, %v6737_v38 }
 0x925   : > { %v6847_v15 = vmax.f32 %v6743_v39, %v6815_v29  ;;  %v6816_v25 = vmul.f32 0.2, %v6746_v7 }
 0x926   : > { %v6845_v6 = vmax.f32 %v6735_v34, %v6813_v18  ;;  %v6814_v43 = vmul.f32 0.2, %v6738_v59 }
 0x927   : > { %v6848_v2 = vmax.f32 %v6746_v7, %v6816_v25  ;;  %v6879_v32 = vmul.f32 1.4142135, %v6847_v15 }
 0x928   : > { %v6846_v44 = vmax.f32 %v6738_v59, %v6814_v43  ;;  %v6877_v5 = vmul.f32 1.4142135, %v6845_v6 }
 0x929   : > { %v6880_v26 = vmul.f32 1.4142135, %v6848_v2 }
 0x92a   : > { %v6878_v1 = vmul.f32 1.4142135, %v6846_v44 }
 0x92b   : > { %v6902_v21 = vpack.c.bf16 %v6880_v26, %v6879_v32 }
 0x92c   : > { %v6901_v12 = vpack.c.bf16 %v6878_v1, %v6877_v5 }
 0x92e   : > { %8419 = vmatprep.mubr.bf16.mxu1 %v6901_v12 }
 0x92f   : > { %8420 = vmatmul.mubr.bf16.gmra.mrb[112].mxu1 %v6902_v21 }
 0x933   : > { %v8377_v28 = vpop.f32.mrb[84].mxu0 }
 0x934   : > { %v6759_v17 = vadd.f32 %v8377_v28, %v13321_v48  ;;  %v6750_v57 = vpop.f32.mrb[85].mxu0 }
 0x935   : > { %v6751_v10 = vadd.f32 %v13321_v48, %v6750_v57  ;;  %v8378_v20 = vpop.f32.mrb[86].mxu0 }
 0x936   : > { %v6819_v22 = vmul.f32 0.2, %v6759_v17  ;;  %v6762_v55 = vadd.f32 %v8378_v20, %v13321_v48  ;;  %v6753_v63 = vpop.f32.mrb[87].mxu0 }
 0x937   : > { %v6817_v58 = vmul.f32 0.2, %v6751_v10  ;;  %v6754_v19 = vadd.f32 %v13321_v48, %v6753_v63 }
 0x938   : > { %v6851_v39 = vmax.f32 %v6759_v17, %v6819_v22  ;;  %v6820_v31 = vmul.f32 0.2, %v6762_v55 }
 0x939   : > { %v6849_v34 = vmax.f32 %v6751_v10, %v6817_v58  ;;  %v6818_v4 = vmul.f32 0.2, %v6754_v19 }
 0x93a   : > { %v6852_v29 = vmax.f32 %v6762_v55, %v6820_v31  ;;  %v6883_v38 = vmul.f32 1.4142135, %v6851_v39 }
 0x93b   : > { %v6850_v7 = vmax.f32 %v6754_v19, %v6818_v4  ;;  %v6881_v59 = vmul.f32 1.4142135, %v6849_v34 }
 0x93c   : > { %v6884_v18 = vmul.f32 1.4142135, %v6852_v29 }
 0x93d   : > { %v6882_v15 = vmul.f32 1.4142135, %v6850_v7 }
 0x93e   : > { %v6904_v25 = vpack.c.bf16 %v6884_v18, %v6883_v38 }
 0x93f   : > { %v6903_v6 = vpack.c.bf16 %v6882_v15, %v6881_v59 }
 0x941   : > { %8423 = vmatprep.mubr.bf16.mxu1 %v6903_v6 }
 0x942   : > { %8424 = vmatmul.mubr.bf16.gmra.mrb[116].mxu1 %v6904_v25 }
 0x947   : > { %v8381_v43 = vpop.f32.mrb[88].mxu0 }
 0x948   : > { %v6775_v2 = vadd.f32 %v8381_v43, %v13321_v48  ;;  %v6766_v44 = vpop.f32.mrb[89].mxu0 }
 0x949   : > { %v6767_v32 = vadd.f32 %v13321_v48, %v6766_v44  ;;  %v8382_v26 = vpop.f32.mrb[90].mxu0 }
 0x94a   : > { %v6823_v5 = vmul.f32 0.2, %v6775_v2  ;;  %v6778_v1 = vadd.f32 %v8382_v26, %v13321_v48  ;;  %v6769_v21 = vpop.f32.mrb[91].mxu0 }
 0x94b   : > { %v6821_v12 = vmul.f32 0.2, %v6767_v32  ;;  %v6770_v28 = vadd.f32 %v13321_v48, %v6769_v21 }
 0x94c   : > { %v6855_v17 = vmax.f32 %v6775_v2, %v6823_v5  ;;  %v6824_v57 = vmul.f32 0.2, %v6778_v1 }
 0x94d   : > { %v6853_v10 = vmax.f32 %v6767_v32, %v6821_v12  ;;  %v6822_v20 = vmul.f32 0.2, %v6770_v28 }
 0x94e   : > { %v6856_v22 = vmax.f32 %v6778_v1, %v6824_v57  ;;  %v6887_v63 = vmul.f32 1.4142135, %v6855_v17 }
 0x94f   : > { %v6854_v55 = vmax.f32 %v6770_v28, %v6822_v20  ;;  %v6885_v19 = vmul.f32 1.4142135, %v6853_v10 }
 0x950   : > { %v6888_v58 = vmul.f32 1.4142135, %v6856_v22 }
 0x951   : > { %v6886_v39 = vmul.f32 1.4142135, %v6854_v55 }
 0x952   : > { %v6906_v31 = vpack.c.bf16 %v6888_v58, %v6887_v63 }
 0x953   : > { %v6905_v34 = vpack.c.bf16 %v6886_v39, %v6885_v19 }
 0x955   : > { %8427 = vmatprep.mubr.bf16.mxu1 %v6905_v34 }
 0x956   : > { %8428 = vmatmul.mubr.bf16.gmra.mrb[120].mxu1 %v6906_v31  ;;  %v13373_v31 = vld [vmem:[%s13582_s8 + $0x5] ss:$0 sm:$0xff] }
 0x957   : > { %v8385_v4 = vpop.f32.mrb[92].mxu0 }
 0x958   : > { %v6791_v29 = vadd.f32 %v8385_v4, %v13321_v48  ;;  %v6782_v7 = vpop.f32.mrb[93].mxu0 }
 0x959   : > { %v6783_v38 = vadd.f32 %v13321_v48, %v6782_v7  ;;  %v8386_v18 = vpop.f32.mrb[94].mxu0 }
 0x95a   : > { %v6827_v59 = vmul.f32 0.2, %v6791_v29  ;;  %v6794_v15 = vadd.f32 %v8386_v18, %v13321_v48  ;;  %v6785_v25 = vpop.f32.mrb[95].mxu0 }
 0x95b   : > { %v6825_v6 = vmul.f32 0.2, %v6783_v38  ;;  %v6786_v43 = vadd.f32 %v13321_v48, %v6785_v25 }
 0x95c   : > { %v6859_v2 = vmax.f32 %v6791_v29, %v6827_v59  ;;  %v6828_v44 = vmul.f32 0.2, %v6794_v15 }
 0x95d   : > { %v6857_v32 = vmax.f32 %v6783_v38, %v6825_v6  ;;  %v6826_v26 = vmul.f32 0.2, %v6786_v43 }
 0x95e   : > { %v6860_v5 = vmax.f32 %v6794_v15, %v6828_v44  ;;  %v6891_v12 = vmul.f32 1.4142135, %v6859_v2 }
 0x95f   : > { %v6858_v1 = vmax.f32 %v6786_v43, %v6826_v26  ;;  %v8405_v21 = vpop.f32.mrb[96].mxu1  ;;  %v6889_v57 = vmul.f32 1.4142135, %v6857_v32 }
 0x960   : > { %v6892_v28 = vmul.f32 1.4142135, %v6860_v5  ;;  %v7016_v17 = vpop.f32.mrb[97].mxu1  ;;  %v7025_v44 = vadd.f32 %v8405_v21, %v13373_v31 }
 0x961   : > { %v6890_v10 = vmul.f32 1.4142135, %v6858_v1  ;;  %v8406_v20 = vpop.f32.mrb[98].mxu1  ;;  %v7017_v4 = vadd.f32 %v13373_v31, %v7016_v17 }
 0x962   : > { %v6908_v22 = vpack.c.bf16 %v6892_v28, %v6891_v12  ;;  %v7019_v55 = vpop.f32.mrb[99].mxu1  ;;  %v7028_v6 = vadd.f32 %v8406_v20, %v13373_v31  ;;  %v7145_v28 = vmul.f32 0.2, %v7025_v44 }
 0x963   : > { %v6907_v63 = vpack.c.bf16 %v6890_v10, %v6889_v57  ;;  %v7020_v34 = vadd.f32 %v13373_v31, %v7019_v55  ;;  %v7143_v7 = vmul.f32 0.2, %v7017_v4 }
 0x964   : > { %v7146_v1 = vmul.f32 0.2, %v7028_v6  ;;  %v7177_v55 = vmax.f32 %v7025_v44, %v7145_v28 }
 0x965   : > { %8431 = vmatprep.mubr.bf16.mxu1 %v6907_v63  ;;  %v7144_v29 = vmul.f32 0.2, %v7020_v34  ;;  %v7175_v18 = vmax.f32 %v7017_v4, %v7143_v7 }
 0x966   : > { %8432 = vmatmul.mubr.bf16.gmra.mrb[124].mxu1 %v6908_v22  ;;  %v7178_v20 = vmax.f32 %v7028_v6, %v7146_v1  ;;  %v7209_v4 = vmul.f32 1.4142135, %v7177_v55 }
 0x967   : > { %v8409_v58 = vpop.f32.mrb[100].mxu1  ;;  %v7176_v38 = vmax.f32 %v7020_v34, %v7144_v29  ;;  %v7207_v25 = vmul.f32 1.4142135, %v7175_v18 }
 0x968   : > { %v7032_v48 = vpop.f32.mrb[101].mxu1 }
 0x969   : > { %v8410_v19 = vpop.f32.mrb[102].mxu1  ;;  %v7208_v59 = vmul.f32 1.4142135, %v7176_v38  ;;  %v7239_v5 = vadd.f32 %v7207_v25, %v13179_v3  ;;  %v7033_v57 = vadd.f32 %v13373_v31, %v7032_v48  ;;  %v7210_v3 = vmul.f32 1.4142135, %v7178_v20 }
 0x96a   : > { %v7035_v39 = vpop.f32.mrb[103].mxu1  ;;  %v7044_v21 = vadd.f32 %v8410_v19, %v13373_v31 }
 0x96b   : > { %v7240_v32 = vadd.f32 %v7208_v59, %v13181_v9  ;;  %v7036_v12 = vadd.f32 %v13373_v31, %v7035_v39  ;;  %v13385_v10 = vmul.f32 0.70710677, %v7239_v5  ;;  %v7147_v63 = vmul.f32 0.2, %v7033_v57 }
 0x96c   : > { %v7041_v39 = vadd.f32 %v8409_v58, %v13373_v31  ;;  %v7150_v7 = vmul.f32 0.2, %v7044_v21  ;;  %v7242_v48 = vadd.f32 %v7210_v3, %v13177_v0  ;;  %v7241_v59 = vadd.f32 %v7209_v4, %v13183_v60 }
 0x96d   : > { %v13382_v17 = vmul.f32 0.70710677, %v7240_v32  ;;  %v7148_v22 = vmul.f32 0.2, %v7036_v12  ;;  %v7179_v29 = vmax.f32 %v7033_v57, %v7147_v63 }
 0x96e   : > { %v7149_v18 = vmul.f32 0.2, %v7041_v39  ;;  %v7182_v6 = vmax.f32 %v7044_v21, %v7150_v7  ;;  %v13393_v44 = vmul.f32 0.70710677, %v7242_v48  ;;  %v13396_v5 = vmul.f32 0.70710677, %v7241_v59 }
 0x96f   : > { %v7304_v9 = vpack.c.bf16 %v13382_v17, %v13385_v10  ;;  %v7180_v34 = vmax.f32 %v7036_v12, %v7148_v22  ;;  %v7211_v25 = vmul.f32 1.4142135, %v7179_v29 }
 0x970   : > { %v7181_v19 = vmax.f32 %v7041_v39, %v7149_v18  ;;  %v7214_v12 = vmul.f32 1.4142135, %v7182_v6  ;;  %v7305_v60 = vpack.c.bf16 %v13393_v44, %v13396_v5 }
 0x971   : > { %v7212_v38 = vmul.f32 1.4142135, %v7180_v34  ;;  %v7243_v58 = vadd.f32 %v7211_v25, %v13195_v23 }
 0x972   : > { %v7213_v57 = vmul.f32 1.4142135, %v7181_v19 }
 0x973   : > { %v7244_v32 = vadd.f32 %v7212_v38, %v13197_v50  ;;  %v13405_v20 = vmul.f32 0.70710677, %v7243_v58  ;;  %v7246_v50 = vadd.f32 %v7214_v12, %v13193_v16  ;;  %v13439_v12 = vld [vmem:[%s527_s24] sm:$0xf] }
 0x974   : > { %8073 = vmatprep.mubr.bf16.mxu0 %v13439_v12 }
 0x975   : > { %v13400_v28 = vmul.f32 0.70710677, %v7244_v32  ;;  %v13411_v21 = vmul.f32 0.70710677, %v7246_v50 }
 0x977   : > { %v7306_v23 = vpack.c.bf16 %v13400_v28, %v13405_v20 }
 0x97e   : > { %v8413_v15 = vpop.f32.mrb[104].mxu1 }
 0x97f   : > { %v7048_v43 = vpop.f32.mrb[105].mxu1  ;;  %v7057_v4 = vadd.f32 %v8413_v15, %v13373_v31 }
 0x980   : > { %v8414_v2 = vpop.f32.mrb[106].mxu1  ;;  %v7049_v0 = vadd.f32 %v13373_v31, %v7048_v43 }
 0x981   : > { %v7051_v26 = vpop.f32.mrb[107].mxu1  ;;  %v7060_v34 = vadd.f32 %v8414_v2, %v13373_v31 }
 0x982   : > { %v7052_v1 = vadd.f32 %v13373_v31, %v7051_v26  ;;  %v7151_v55 = vmul.f32 0.2, %v7049_v0  ;;  %v7245_v26 = vadd.f32 %v7213_v57, %v13199_v61  ;;  %v7153_v61 = vmul.f32 0.2, %v7057_v4 }
 0x983   : > { %v7154_v7 = vmul.f32 0.2, %v7060_v34 }
 0x984   : > { %v7152_v22 = vmul.f32 0.2, %v7052_v1  ;;  %v7183_v3 = vmax.f32 %v7049_v0, %v7151_v55  ;;  %v13413_v43 = vmul.f32 0.70710677, %v7245_v26  ;;  %v7185_v25 = vmax.f32 %v7057_v4, %v7153_v61 }
 0x985   : > { %v7186_v18 = vmax.f32 %v7060_v34, %v7154_v7 }
 0x986   : > { %v7184_v63 = vmax.f32 %v7052_v1, %v7152_v22  ;;  %v7307_v16 = vpack.c.bf16 %v13411_v21, %v13413_v43  ;;  %v7215_v29 = vmul.f32 1.4142135, %v7183_v3  ;;  %v7217_v32 = vmul.f32 1.4142135, %v7185_v25 }
 0x987   : > { %v7218_v2 = vmul.f32 1.4142135, %v7186_v18 }
 0x988   : > { %v7216_v39 = vmul.f32 1.4142135, %v7184_v63  ;;  %v7247_v38 = vadd.f32 %v7215_v29, %v13215_v30  ;;  %v7249_v58 = vadd.f32 %v7217_v32, %v13219_v37  ;;  %v7320_v63 = vld [vmem:[%s13584_s10] sm:$0xff] }
 0x989   : > { %v7250_v19 = vadd.f32 %v7218_v2, %v13213_v36  ;;  %7323 = vperm.xlu1 %8695, %v7320_v63  }
 0x98a   : > { %v7248_v48 = vadd.f32 %v7216_v39, %v13217_v56  ;;  %v13423_v6 = vmul.f32 0.70710677, %v7247_v38  ;;  %v13431_v56 = vmul.f32 0.70710677, %v7249_v58 }
 0x98b   : > { %v13429_v1 = vmul.f32 0.70710677, %v7250_v19 }
 0x98c   : > { %v13421_v59 = vmul.f32 0.70710677, %v7248_v48 }
 0x98d   : > { %v7309_v30 = vpack.c.bf16 %v13429_v1, %v13431_v56 }
 0x98e   : > { %v7308_v15 = vpack.c.bf16 %v13421_v59, %v13423_v6 }
 0x9d1   : > { %v8417_v0 = vpop.f32.mrb[108].mxu1 }
 0x9d2   : > { %v7073_v36 = vadd.f32 %v8417_v0, %v13373_v31  ;;  %v7064_v37 = vpop.f32.mrb[109].mxu1 }
 0x9d3   : > { %v7065_v57 = vadd.f32 %v13373_v31, %v7064_v37  ;;  %v8418_v22 = vpop.f32.mrb[110].mxu1 }
 0x9d4   : > { %v7157_v50 = vmul.f32 0.2, %v7073_v36  ;;  %v7076_v55 = vadd.f32 %v8418_v22, %v13373_v31  ;;  %v7067_v26 = vpop.f32.mrb[111].mxu1 }
 0x9d5   : > { %v7155_v3 = vmul.f32 0.2, %v7065_v57  ;;  %v7068_v34 = vadd.f32 %v13373_v31, %v7067_v26 }
 0x9d6   : > { %v7189_v39 = vmax.f32 %v7073_v36, %v7157_v50  ;;  %v7158_v4 = vmul.f32 0.2, %v7076_v55 }
 0x9d7   : > { %v7187_v29 = vmax.f32 %v7065_v57, %v7155_v3  ;;  %v7156_v7 = vmul.f32 0.2, %v7068_v34 }
 0x9d8   : > { %v7221_v48 = vmul.f32 1.4142135, %v7189_v39  ;;  %v7190_v61 = vmax.f32 %v7076_v55, %v7158_v4 }
 0x9d9   : > { %v7219_v38 = vmul.f32 1.4142135, %v7187_v29  ;;  %v7188_v18 = vmax.f32 %v7068_v34, %v7156_v7 }
 0x9da   : > { %v7253_v25 = vadd.f32 %v7221_v48, %v13247_v51  ;;  %v7222_v2 = vmul.f32 1.4142135, %v7190_v61 }
 0x9db   : > { %v7251_v32 = vadd.f32 %v7219_v38, %v13243_v13  ;;  %v7220_v19 = vmul.f32 1.4142135, %v7188_v18 }
 0x9dc   : > { %v7254_v58 = vadd.f32 %v7222_v2, %v13241_v27  ;;  %v13453_v37 = vmul.f32 0.70710677, %v7253_v25 }
 0x9dd   : > { %v7252_v0 = vadd.f32 %v7220_v19, %v13245_v41  ;;  %v13457_v57 = vmul.f32 0.70710677, %v7251_v32 }
 0x9de   : > { %v13455_v36 = vmul.f32 0.70710677, %v7254_v58 }
 0x9df   : > { %v13459_v22 = vmul.f32 0.70710677, %v7252_v0 }
 0x9e0   : > { %v7311_v50 = vpack.c.bf16 %v13455_v36, %v13453_v37 }
 0x9e1   : > { %v7310_v51 = vpack.c.bf16 %v13459_v22, %v13457_v57 }
 0xa02   : > { %v8421_v13 = vpop.f32.mrb[112].mxu1 }
 0xa03   : > { %v7089_v55 = vadd.f32 %v8421_v13, %v13373_v31  ;;  %v7080_v27 = vpop.f32.mrb[113].mxu1 }
 0xa04   : > { %v7081_v41 = vadd.f32 %v13373_v31, %v7080_v27  ;;  %v8422_v26 = vpop.f32.mrb[114].mxu1 }
 0xa05   : > { %v7161_v63 = vmul.f32 0.2, %v7089_v55  ;;  %v7092_v3 = vadd.f32 %v8422_v26, %v13373_v31  ;;  %v7083_v34 = vpop.f32.mrb[115].mxu1 }
 0xa06   : > { %v7159_v39 = vmul.f32 0.2, %v7081_v41  ;;  %v7084_v4 = vadd.f32 %v13373_v31, %v7083_v34 }
 0xa07   : > { %v7193_v29 = vmax.f32 %v7089_v55, %v7161_v63  ;;  %v7162_v7 = vmul.f32 0.2, %v7092_v3 }
 0xa08   : > { %v7191_v48 = vmax.f32 %v7081_v41, %v7159_v39  ;;  %v7160_v61 = vmul.f32 0.2, %v7084_v4 }
 0xa09   : > { %v7225_v38 = vmul.f32 1.4142135, %v7193_v29  ;;  %v7194_v18 = vmax.f32 %v7092_v3, %v7162_v7 }
 0xa0a   : > { %v7223_v25 = vmul.f32 1.4142135, %v7191_v48  ;;  %v7192_v2 = vmax.f32 %v7084_v4, %v7160_v61 }
 0xa0b   : > { %v7257_v32 = vadd.f32 %v7225_v38, %v13267_v53  ;;  %v7226_v19 = vmul.f32 1.4142135, %v7194_v18 }
 0xa0c   : > { %v7255_v58 = vadd.f32 %v7223_v25, %v13263_v62  ;;  %v7224_v0 = vmul.f32 1.4142135, %v7192_v2 }
 0xa0d   : > { %v7258_v13 = vadd.f32 %v7226_v19, %v13261_v8  ;;  %v7289_v26 = vmul.f32 0.70710677, %v7257_v32 }
 0xa0e   : > { %v7256_v27 = vadd.f32 %v7224_v0, %v13265_v46  ;;  %v7287_v55 = vmul.f32 0.70710677, %v7255_v58 }
 0xa0f   : > { %v7290_v34 = vmul.f32 0.70710677, %v7258_v13 }
 0xa10   : > { %v7288_v63 = vmul.f32 0.70710677, %v7256_v27 }
 0xa11   : > { %v7313_v41 = vpack.c.bf16 %v7290_v34, %v7289_v26 }
 0xa12   : > { %v7312_v39 = vpack.c.bf16 %v7288_v63, %v7287_v55 }
 0xa14   : > { %8057 = vmatprep.subr.bf16.mxu0 %v7312_v39 }
 0xa15   : > { %v8425_v3 = vpop.f32.mrb[116].mxu1  ;;  %8058 = vmatpush3.bf16.xpose.msra.mxu0 %v7304_v9 }
 0xa16   : > { %v7105_v53 = vadd.f32 %v8425_v3, %v13373_v31  ;;  %v7096_v62 = vpop.f32.mrb[117].mxu1  ;;  %8059 = vmatprep.subr.bf16.mxu0 %v7313_v41 }
 0xa17   : > { %v7097_v8 = vadd.f32 %v13373_v31, %v7096_v62  ;;  %v8426_v4 = vpop.f32.mrb[118].mxu1 }
 0xa18   : > { %v7165_v46 = vmul.f32 0.2, %v7105_v53  ;;  %v7108_v29 = vadd.f32 %v8426_v4, %v13373_v31  ;;  %v7099_v7 = vpop.f32.mrb[119].mxu1 }
 0xa19   : > { %v7163_v48 = vmul.f32 0.2, %v7097_v8  ;;  %v7100_v61 = vadd.f32 %v13373_v31, %v7099_v7 }
 0xa1a   : > { %v7197_v38 = vmax.f32 %v7105_v53, %v7165_v46  ;;  %v7166_v18 = vmul.f32 0.2, %v7108_v29 }
 0xa1b   : > { %v7195_v25 = vmax.f32 %v7097_v8, %v7163_v48  ;;  %v7164_v2 = vmul.f32 0.2, %v7100_v61 }
 0xa1c   : > { %v7229_v17 = vmul.f32 1.4142135, %v7197_v38  ;;  %v7198_v10 = vmax.f32 %v7108_v29, %v7166_v18 }
 0xa1d   : > { %v7227_v9 = vmul.f32 1.4142135, %v7195_v25  ;;  %v7196_v32 = vmax.f32 %v7100_v61, %v7164_v2  ;;  %8060 = vmatpush3.bf16.xpose.msra.mxu0 %v7305_v60 }
 0xa1e   : > { %v7261_v19 = vadd.f32 %v7229_v17, %v13287_v54  ;;  %v7230_v58 = vmul.f32 1.4142135, %v7198_v10 }
 0xa1f   : > { %v7259_v0 = vadd.f32 %v7227_v9, %v13283_v40  ;;  %v7228_v13 = vmul.f32 1.4142135, %v7196_v32 }
 0xa20   : > { %v7262_v27 = vadd.f32 %v7230_v58, %v13281_v11  ;;  %v7293_v34 = vmul.f32 0.70710677, %v7261_v19 }
 0xa21   : > { %v7260_v26 = vadd.f32 %v7228_v13, %v13285_v42  ;;  %v7291_v63 = vmul.f32 0.70710677, %v7259_v0 }
 0xa22   : > { %v7294_v55 = vmul.f32 0.70710677, %v7262_v27 }
 0xa23   : > { %v7292_v41 = vmul.f32 0.70710677, %v7260_v26 }
 0xa24   : > { %v7315_v39 = vpack.c.bf16 %v7294_v55, %v7293_v34 }
 0xa25   : > { %v7314_v3 = vpack.c.bf16 %v7292_v41, %v7291_v63 }
 0xa27   : > { %8061 = vmatprep.subr.bf16.mxu0 %v7314_v3 }
 0xa28   : > { %8062 = vmatpush3.bf16.xpose.msra.mxu0 %v7306_v23 }
 0xa29   : > { %v8429_v54 = vpop.f32.mrb[120].mxu1  ;;  %8063 = vmatprep.subr.bf16.mxu0 %v7315_v39 }
 0xa2a   : > { %v7121_v44 = vadd.f32 %v8429_v54, %v13373_v31  ;;  %v7112_v40 = vpop.f32.mrb[121].mxu1 }
 0xa2b   : > { %v7113_v11 = vadd.f32 %v13373_v31, %v7112_v40  ;;  %v8430_v5 = vpop.f32.mrb[122].mxu1 }
 0xa2c   : > { %v7169_v42 = vmul.f32 0.2, %v7121_v44  ;;  %v7124_v60 = vadd.f32 %v8430_v5, %v13373_v31  ;;  %v7115_v53 = vpop.f32.mrb[123].mxu1 }
 0xa2d   : > { %v7167_v62 = vmul.f32 0.2, %v7113_v11  ;;  %v7116_v8 = vadd.f32 %v13373_v31, %v7115_v53 }
 0xa2e   : > { %v7201_v4 = vmax.f32 %v7121_v44, %v7169_v42  ;;  %v7170_v46 = vmul.f32 0.2, %v7124_v60 }
 0xa2f   : > { %v7199_v29 = vmax.f32 %v7113_v11, %v7167_v62  ;;  %v7168_v7 = vmul.f32 0.2, %v7116_v8 }
 0xa30   : > { %v7233_v28 = vmul.f32 1.4142135, %v7201_v4  ;;  %v7202_v20 = vmax.f32 %v7124_v60, %v7170_v46  ;;  %8064 = vmatpush3.bf16.xpose.msra.mxu0 %v7307_v16 }
 0xa31   : > { %v7231_v23 = vmul.f32 1.4142135, %v7199_v29  ;;  %v7200_v48 = vmax.f32 %v7116_v8, %v7168_v7 }
 0xa32   : > { %v7265_v61 = vadd.f32 %v7233_v28, %v13307_v45  ;;  %v7234_v38 = vmul.f32 1.4142135, %v7202_v20 }
 0xa33   : > { %v7263_v18 = vadd.f32 %v7231_v23, %v13303_v52  ;;  %v7232_v25 = vmul.f32 1.4142135, %v7200_v48 }
 0xa34   : > { %v7266_v2 = vadd.f32 %v7234_v38, %v13301_v47  ;;  %v7297_v10 = vmul.f32 0.70710677, %v7265_v61 }
 0xa35   : > { %v7264_v17 = vadd.f32 %v7232_v25, %v13305_v33  ;;  %v7295_v32 = vmul.f32 0.70710677, %v7263_v18 }
 0xa36   : > { %v7298_v9 = vmul.f32 0.70710677, %v7266_v2 }
 0xa37   : > { %v7296_v19 = vmul.f32 0.70710677, %v7264_v17 }
 0xa38   : > { %v7317_v58 = vpack.c.bf16 %v7298_v9, %v7297_v10 }
 0xa39   : > { %v8433_v0 = vpop.f32.mrb[124].mxu1  ;;  %v7316_v13 = vpack.c.bf16 %v7296_v19, %v7295_v32 }
 0xa3a   : > { %v7137_v45 = vadd.f32 %v8433_v0, %v13373_v31  ;;  %v7128_v27 = vpop.f32.mrb[125].mxu1 }
 0xa3b   : > { %v7129_v21 = vadd.f32 %v13373_v31, %v7128_v27  ;;  %v8434_v43 = vpop.f32.mrb[126].mxu1  ;;  %8065 = vmatprep.subr.bf16.mxu0 %v7316_v13 }
 0xa3c   : > { %v7173_v52 = vmul.f32 0.2, %v7137_v45  ;;  %v7140_v16 = vadd.f32 %v8434_v43, %v13373_v31  ;;  %v7131_v47 = vpop.f32.mrb[127].mxu1  ;;  %8066 = vmatpush3.bf16.xpose.msra.mxu0 %v7308_v15 }
 0xa3d   : > { %v7171_v33 = vmul.f32 0.2, %v7129_v21  ;;  %v7132_v26 = vadd.f32 %v13373_v31, %v7131_v47  ;;  %8067 = vmatprep.subr.bf16.mxu0 %v7317_v58 }
 0xa3e   : > { %v7205_v34 = vmax.f32 %v7137_v45, %v7173_v52  ;;  %v7174_v55 = vmul.f32 0.2, %v7140_v16 }
 0xa3f   : > { %v7203_v63 = vmax.f32 %v7129_v21, %v7171_v33  ;;  %v7172_v41 = vmul.f32 0.2, %v7132_v26 }
 0xa40   : > { %v7237_v39 = vmul.f32 1.4142135, %v7205_v34  ;;  %v7206_v3 = vmax.f32 %v7140_v16, %v7174_v55 }
 0xa41   : > { %v7235_v54 = vmul.f32 1.4142135, %v7203_v63  ;;  %v7204_v44 = vmax.f32 %v7132_v26, %v7172_v41 }
 0xa42   : > { %v7269_v40 = vadd.f32 %v7237_v39, %v13334_v49  ;;  %v7238_v11 = vmul.f32 1.4142135, %v7206_v3 }
 0xa43   : > { %v7267_v5 = vadd.f32 %v7235_v54, %v13329_v35  ;;  %v7236_v59 = vmul.f32 1.4142135, %v7204_v44 }
 0xa44   : > { %v7270_v6 = vadd.f32 %v7238_v11, %v13326_v14  ;;  %8068 = vmatpush3.bf16.xpose.msra.mxu0 %v7309_v30  ;;  %v7301_v15 = vmul.f32 0.70710677, %v7269_v40  ;;  %v7324_v14 = vpop.permute.xlu1 %7323 }
 0xa45   : > { %v7268_v31 = vadd.f32 %v7236_v59, %v13331_v24  ;;  %v7299_v60 = vmul.f32 0.70710677, %v7267_v5 }
 0xa46   : > { %v7302_v42 = vmul.f32 0.70710677, %v7270_v6 }
 0xa47   : > { %v7300_v53 = vmul.f32 0.70710677, %v7268_v31 }
 0xa48   : > { %v7319_v62 = vpack.c.bf16 %v7302_v42, %v7301_v15 }
 0xa49   : > { %v7318_v49 = vpack.c.bf16 %v7300_v53, %v7299_v60 }
 0xa4b   : > { %8069 = vmatprep.subr.bf16.mxu0 %v7318_v49 }
 0xa4c   : > { %8070 = vmatpush3.bf16.xpose.msra.mxu0 %v7310_v51 }
 0xa4d   : > { %8071 = vmatprep.subr.bf16.mxu0 %v7319_v62 }
 0xa54   : > { %8072 = vmatpush3.bf16.xpose.msra.mxu0 %v7311_v50 }
 0xa5b   : > { %8074 = vmatmul.mubr.bf16.vlgmr.msra.gmra.mrb[96].mxu0 %v13439_v12 }
 0xb2e   : > { %v7360_v35 = vpop.f32.mrb[96].mxu0 }
 0xb2f   : > { %v7362_v24 = vpop.f32.mrb[97].mxu0  ;;  %v7361_v1 = vadd.f32 %v7360_v35, %v7324_v14 }
 0xb30   : > { %v7363_v56 = vadd.f32 %v7362_v24, %v7324_v14  ;;  %v7364_v30 = vpop.f32.mrb[98].mxu0 }
 0xb31   : > { %7367 = vst [vmem:[%s488_s15] sm:$0xff] %v7361_v1  ;;  %v7365_v12 = vpop.f32.mrb[99].mxu0 }
 0xb32   : > { %7368 = vst [vmem:[%s488_s15 + $0x8] sm:$0xff] %v7363_v56 }
 0xb33   : > { %8921 = shalt.err (!%p8918_p5)
}
 0xb34   : > { %s8922_s14 = scalar_lea.hbm %s13527_s12, 256  ;;  %s8926_s24 = scalar_lea.hbm %s13585_s11, 512 }
 0xb35   : > { %p8923_p6 = scmp.ne.s32.totalorder %s13527_s12, %s8922_s14  ;;  %p8927_p10 = scmp.lt.u32.totalorder %s13527_s12, %s13585_s11 }
 0xb36   : > { %p8928_p11 = scmp.lt.u32.totalorder %s8926_s24, %s8922_s14  ;;  %p8930_p13 = scmp.lt.u32.totalorder %s8922_s14, %s13527_s12 }
 0xb37   : > { %p8924_p7 = pnand %p8923_p6, %p9097_p4 }
 0xb38   : > { %p8929_p12 = por %p8928_p11, %p8927_p10 }
 0xb39   : > { %p8925_p9 = pneg %p8924_p7 }
 0xb3a   : > { %p8931_p0 = por %p8930_p13, %p8929_p12 }
 0xb3c   : > { %p8932_p1 = pnand %p8931_p0, %p8925_p9 }
 0xb3e   : > { %8935 = shalt.err (!%p8932_p1)
}
 0xb3f   : > { %8596 = dma.vmem_to_hbm [thread:$0]  (%p9097_p4), %s13529_s23, 256, %s13527_s12, %s7370_s20  }
 0xb40 PF: > { %p8602_p2 = scmp.ge.s32.totalorder %s8986_s22, 2  ;;  %s7398_s28 = sand.u32 1, %s8966_s17  }
 0xb41   : > { %s7399_s13 = scalar_lea.sflag [#allocation3], %s7398_s28 }
 0xb42   : > { %p8599_p3 = pnand %p8602_p2, %p9104_p8 }
 0xb44   : > { %8961 = dma.done.wait (!%p8599_p3), %s7399_s13, 256  }
 0xb45   : > { %8963 = vsyncadd (!%p8599_p3), %s7399_s13, 4294967040  ;;  %s24_s22 = sadd.s32 1, %s8986_s22   ;;  %s14246_s17 = smov %s8970_s18 }
 0xb46   : > { %p21_p5 = scmp.ge.s32.totalorder %s24_s22, 4   ;;  %s14247_s18 = smov %s8974_s19 }
 0xb47   : > { %s14248_s19 = smov %s9110_s30  ;;  %s14249_s20 = smov %s8982_s21 }
 0xb48   : > { %s14250_s21 = smov %s14252_s25  ;;  %23 = sbr.rel (!%p21_p5) target bundleno = 6 (0x6), region = 124 }
 0xb4f   :  { %7404 = vsyncpa [#allocation3], 1 }
 0xb50   :  { %7406 = vsyncpa [#allocation3 + $0x1], 1 }

</bundles_post_ra>
